<compile_context>
chip_gen: v5e
topology: v5e:2x2
jax: 0.10.0
libtpu: 0.0.40
codegen_flags: <defaults>
</compile_context>

<pallas_src>
import math
import functools

import jax
import jax.numpy as jnp
from jax import lax
from jax.experimental import pallas as pl
from jax.experimental.pallas import tpu as pltpu


# ---------------------------------------------------------------------------
# Kernels
# ---------------------------------------------------------------------------
def _single_block_kernel(x_ref, w_ref, b_ref, o_ref, *, scaling_factor):
    # z = x @ W^T + b, contracting K of x (dim 1) with K of W (dim 1).
    z = lax.dot_general(
        x_ref[...], w_ref[...],
        dimension_numbers=(((1,), (1,)), ((), ())),
        preferred_element_type=jnp.float32,
    )
    z = z + b_ref[...]                                   # (1, N) broadcast over rows
    o_ref[...] = (scaling_factor * (z * jax.nn.sigmoid(z))).astype(o_ref.dtype)


def _tiled_kernel(x_ref, w_ref, b_ref, o_ref, acc_ref, *, scaling_factor):
    # grid = (B/tm, N/tn, K/tk); K is the reduction axis (last, "arbitrary").
    k = pl.program_id(2)

    @pl.when(k == 0)
    def _():
        acc_ref[...] = jnp.zeros_like(acc_ref)

    # x tile (tm, tk) x weight tile (tn, tk), contract the K dims -> (tm, tn).
    acc_ref[...] += lax.dot_general(
        x_ref[...], w_ref[...],
        dimension_numbers=(((1,), (1,)), ((), ())),
        preferred_element_type=jnp.float32,
    )

    @pl.when(k == pl.num_programs(2) - 1)
    def _():
        z = acc_ref[...] + b_ref[...]                    # bias broadcast over rows
        o_ref[...] = (scaling_factor * (z * jax.nn.sigmoid(z))).astype(o_ref.dtype)


# ---------------------------------------------------------------------------
# Wrapper
# ---------------------------------------------------------------------------
def _pick_tile(dim, preferred, align):
    """Largest multiple of `align` <= preferred that divides `dim`, else `dim`."""
    if dim <= preferred:
        return dim
    t = (preferred // align) * align
    while t >= align:
        if dim % t == 0:
            return t
        t -= align
    return dim  # full dimension always satisfies the tiling constraint


def fused_linear_swish(x, weight, bias, scaling_factor,
                       *, single_block_bytes=4 * 1024 * 1024):
    """y = scaling_factor * swish(x @ weight.T + bias)."""
    B, K = x.shape
    N, K2 = weight.shape
    assert K == K2 and bias.shape == (N,)
    b2 = bias.reshape(1, N)
    sf = float(scaling_factor)

    total_bytes = 4 * (B * K + N * K + N + B * N)
    if total_bytes <= single_block_bytes:
        # Whole problem in VMEM: one invocation, no grid, no accumulator.
        kernel = functools.partial(_single_block_kernel, scaling_factor=sf)
        return pl.pallas_call(
            kernel,
            out_shape=jax.ShapeDtypeStruct((B, N), x.dtype),
            in_specs=[
                pl.BlockSpec((B, K), lambda: (0, 0)),    # x
                pl.BlockSpec((N, K), lambda: (0, 0)),    # weight (native layout)
                pl.BlockSpec((1, N), lambda: (0, 0)),    # bias
            ],
            out_specs=pl.BlockSpec((B, N), lambda: (0, 0)),
        )(x, weight, b2)

    # Tiled path: large, MXU-aligned tiles (multiples of 256 when divisible,
    # otherwise 128-aligned).  ~5 MiB VMEM at (256, 512, 512) f32 with double
    # buffering, comfortably under the 32 MiB default scoped limit on v5e/v6e/v7x.
    tm = _pick_tile(B, 256, 8)
    tn = _pick_tile(N, 512, 128)
    tk = _pick_tile(K, 512, 128)
    grid = (B // tm, N // tn, K // tk)

    kernel = functools.partial(_tiled_kernel, scaling_factor=sf)
    return pl.pallas_call(
        kernel,
        out_shape=jax.ShapeDtypeStruct((B, N), x.dtype),
        grid_spec=pltpu.PrefetchScalarGridSpec(
            num_scalar_prefetch=0,
            grid=grid,
            in_specs=[
                pl.BlockSpec((tm, tk), lambda i, j, k: (i, k)),   # x
                pl.BlockSpec((tn, tk), lambda i, j, k: (j, k)),   # weight (N, K), no transpose
                pl.BlockSpec((1, tn), lambda i, j, k: (0, j)),    # bias
            ],
            out_specs=pl.BlockSpec((tm, tn), lambda i, j, k: (i, j)),
            scratch_shapes=[pltpu.VMEM((tm, tn), jnp.float32)],
        ),
        compiler_params=pltpu.CompilerParams(
            dimension_semantics=("parallel", "parallel", "arbitrary"),
        ),
    )(x, weight, b2)


# ---------------------------------------------------------------------------
# Parameter init mirroring nn.Linear-style kaiming_uniform_(a=sqrt(5))
# ---------------------------------------------------------------------------
def init_params(key, in_features, out_features):
    kw, kb = jax.random.split(key)
    bound = 1.0 / math.sqrt(in_features)   # kaiming_uniform(a=sqrt(5)) on (out, in)
    weight = jax.random.uniform(
        kw, (out_features, in_features), jnp.float32, -bound, bound
    )
    bias = jax.random.uniform(kb, (out_features,), jnp.float32, -bound, bound)
    return weight, bias


def _reference(x, weight, bias, scaling_factor):
    z = x @ weight.T + bias
    return scaling_factor * (z * jax.nn.sigmoid(z))


if __name__ == "__main__":
    in_features = 1024
    out_features = 512
    scaling_factor = 2.0

    key = jax.random.PRNGKey(0)
    k1, k2, kp = jax.random.split(key, 3)
    weight, bias = init_params(kp, in_features, out_features)

    # Case 1: small batch -> single-block path.
    x_small = jax.random.normal(k1, (128, in_features), jnp.float32)
    y_small = jax.block_until_ready(
        fused_linear_swish(x_small, weight, bias, scaling_factor)
    )
    ref_small = _reference(x_small, weight, bias, scaling_factor)
    assert y_small.shape == (128, out_features)
    assert jnp.allclose(y_small, ref_small, atol=1e-4, rtol=1e-4)

    # Case 2: larger batch -> tiled path with f32 accumulator over K.
    x_big = jax.random.normal(k2, (512, in_features), jnp.float32)
    y_big = jax.block_until_ready(
        fused_linear_swish(x_big, weight, bias, scaling_factor)
    )
    ref_big = _reference(x_big, weight, bias, scaling_factor)
    assert y_big.shape == (512, out_features)
    assert jnp.allclose(y_big, ref_big, atol=1e-4, rtol=1e-4)

    print("KERNEL_OK")
</pallas_src>

<mosaic_0001>
module attributes {stable_mosaic.version = 11 : i64} {
  func.func @_single_block_kernel(%arg0: memref<128x1024xf32, #tpu.memory_space<vmem>>, %arg1: memref<512x1024xf32, #tpu.memory_space<vmem>>, %arg2: memref<1x512xf32, #tpu.memory_space<vmem>>, %arg3: memref<128x512xf32, #tpu.memory_space<vmem>>) attributes {dimension_semantics = [], scalar_prefetch = 0 : i64, scratch_operands = 0 : i64, tpu.core_type = #tpu.core_type<tc>} {
    %c0 = arith.constant 0 : index
    %c0_0 = arith.constant 0 : index
    %0 = vector.load %arg0[%c0, %c0_0] : memref<128x1024xf32, #tpu.memory_space<vmem>>, vector<128x1024xf32>
    %c0_1 = arith.constant 0 : index
    %c0_2 = arith.constant 0 : index
    %1 = vector.load %arg1[%c0_1, %c0_2] : memref<512x1024xf32, #tpu.memory_space<vmem>>, vector<512x1024xf32>
    %cst = arith.constant dense<0.000000e+00> : vector<128x512xf32>
    %2 = tpu.matmul %0, %1, %cst {dimension_numbers = #tpu.dot_dimension_numbers<[1], [1], [0], [0], [0, 0, 1, 0], [], []>} : vector<128x1024xf32>, vector<512x1024xf32>, vector<128x512xf32> -> vector<128x512xf32>
    %c0_3 = arith.constant 0 : index
    %c0_4 = arith.constant 0 : index
    %3 = vector.load %arg2[%c0_3, %c0_4] : memref<1x512xf32, #tpu.memory_space<vmem>>, vector<1x512xf32>
    %4 = vector.broadcast %3 : vector<1x512xf32> to vector<128x512xf32>
    %5 = arith.addf %2, %4 : vector<128x512xf32>
    %6 = arith.negf %5 : vector<128x512xf32>
    %7 = math.exp %6 : vector<128x512xf32>
    %cst_5 = arith.constant 1.000000e+00 : f32
    %8 = vector.broadcast %cst_5 : f32 to vector<128x512xf32>
    %9 = arith.addf %8, %7 : vector<128x512xf32>
    %10 = arith.divf %8, %9 : vector<128x512xf32>
    %11 = arith.mulf %5, %10 : vector<128x512xf32>
    %cst_6 = arith.constant 2.000000e+00 : f32
    %12 = vector.broadcast %cst_6 : f32 to vector<128x512xf32>
    %13 = arith.mulf %12, %11 : vector<128x512xf32>
    %c0_7 = arith.constant 0 : index
    %c0_8 = arith.constant 0 : index
    %14 = vector.load %arg3[%c0_7, %c0_8] : memref<128x512xf32, #tpu.memory_space<vmem>>, vector<128x512xf32>
    tpu.vector_store %arg3[%c0_7, %c0_8], %13 {strides = array<i32>} : memref<128x512xf32, #tpu.memory_space<vmem>>, vector<128x512xf32>,
    return
  }
}

</mosaic_0001>

<bundles_post_ra>
// kernel: tpu_custom_call.1
= control target key start
LH: loop header
LB: loop body
LE: loop exit
PB: predicated region body
PF: predicated region fallthrough
CT: control target
= control target key end

     0   :  { %8 = vsyncpa [#allocation3], 0  ;;  %s6318_s0 = inlined_call_operand.hbm [shape: f32[128,1024], index: 0, kind: input, shape index: {}]   ;;  %s6319_s1 = inlined_call_operand.hbm [shape: f32[512,1024], index: 1, kind: input, shape index: {}]   ;;  %s6320_s2 = inlined_call_operand.hbm [shape: f32[1,512], index: 2, kind: input, shape index: {}]   ;;  %s6321_s3 = inlined_call_operand.hbm [shape: f32[128,512], index: 3, kind: output, shape index: {}]  }
   0x1   :  { %9 = vsyncpa [#allocation6], 0 }
   0x2   :  { %10 = vsyncpa [#allocation4], 0  ;;  %s28_s14 = sshll.u32 %s6319_s1, 4  ;;  %s5035_s15 = smov [#allocation5]   ;;  %s29_s14 = int_to_ptr.hbm [resolvable:$true] %s28_s14 }
   0x3   :  { %s30_s16 = sshll.u32 %s5035_s15, 4  ;;  %s15_s19 = sshll.u32 %s6318_s0, 4  ;;  %s31_s16 = int_to_ptr.vmem [resolvable:$true] %s30_s16  ;;  %s16_s19 = int_to_ptr.hbm [resolvable:$true] %s15_s19 }
   0x4   :  { %s5036_s20 = smov 1024   ;;  %s5037_s21 = smov 64  }
   0x5   :  { %36 = dma.hbm_to_vmem [thread:$0]  %s29_s14, 65536, %s31_s16, [#allocation6], %s5036_s20, %s5036_s20, %s5037_s21  }
   0x6   :  { %s5038_s22 = smov [#allocation2]   ;;  %s42_s26 = sshll.u32 %s6320_s2, 4  ;;  %s43_s26 = int_to_ptr.hbm [resolvable:$true] %s42_s26 }
   0x7   :  { %s17_s23 = sshll.u32 %s5038_s22, 4  ;;  %s5039_s1 = smov [#allocation7]   ;;  %s18_s23 = int_to_ptr.vmem [resolvable:$true] %s17_s23 }
   0x8   :  { %23 = dma.hbm_to_vmem [thread:$0]  %s16_s19, 16384, %s18_s23, [#allocation3], %s5036_s20, %s5036_s20, %s5037_s21  }
   0x9   :  { %s44_s27 = sshll.u32 %s5039_s1, 4  ;;  %s45_s27 = int_to_ptr.vmem [resolvable:$true] %s44_s27 }
   0xa   :  { %47 = dma.hbm_to_vmem [thread:$0]  %s43_s26, 64, %s45_s27, [#allocation6]  }
   0xb   :  { %5029 = dma.done.wait [#allocation3], 16384  }
   0xc   :  { %5030 = vsyncadd [#allocation3], 4294950912 }
   0xd   :  { %5031 = dma.done.wait [#allocation6], 65600  }
   0xe   :  { %5032 = vsyncadd [#allocation6], 4294901696  ;;  %v308_v0 = vld [vmem:[#allocation5 + $0x3c0] sm:$0xff]  ;;  %v310_v1 = vld [vmem:[#allocation5 + $0x3d0] sm:$0xff]  ;;  %s5040_s0 = smov [#allocation8]   ;;  %s4204_s30 = sshll.u32 %s6321_s3, 4  ;;  %s4205_s30 = int_to_ptr.hbm [resolvable:$true] %s4204_s30 }
   0xf   :  { %v309_v2 = vld [vmem:[#allocation5 + $0x3c8] sm:$0xff]  ;;  %710 = vmatpush.xpose.msra.mxu0 %v308_v0  ;;  %840 = vmatpush.xpose.msra.mxu2 %v310_v1  ;;  %v311_v3 = vld [vmem:[#allocation5 + $0x3d8] sm:$0xff]  ;;  %v300_v4 = vld [vmem:[#allocation5 + $0x380] sm:$0xff]  ;;  %s4202_s2 = sshll.u32 %s5040_s0, 4  ;;  %s5041_s4 = smov 512   ;;  %s4203_s2 = int_to_ptr.vmem [resolvable:$true] %s4202_s2 }
  0x10   :  { %775 = vmatpush.xpose.msra.mxu1 %v309_v2  ;;  %905 = vmatpush.xpose.msra.mxu3 %v311_v3  ;;  %v302_v5 = vld [vmem:[#allocation5 + $0x390] sm:$0xff]  ;;  %v301_v6 = vld [vmem:[#allocation5 + $0x388] sm:$0xff]  ;;  %v303_v7 = vld [vmem:[#allocation5 + $0x398] sm:$0xff]  ;;  %s5042_s5 = smov 32  }
  0x11   :  { %v292_v8 = vld [vmem:[#allocation5 + $0x340] sm:$0xff]  ;;  %v294_v9 = vld [vmem:[#allocation5 + $0x350] sm:$0xff]  ;;  %v293_v10 = vld [vmem:[#allocation5 + $0x348] sm:$0xff] }
  0x12   :  { %v295_v11 = vld [vmem:[#allocation5 + $0x358] sm:$0xff]  ;;  %v284_v12 = vld [vmem:[#allocation5 + $0x300] sm:$0xff]  ;;  %v286_v13 = vld [vmem:[#allocation5 + $0x310] sm:$0xff] }
  0x13   :  { %711 = vmatpush.xpose.msra.mxu0 %v300_v4  ;;  %841 = vmatpush.xpose.msra.mxu2 %v302_v5  ;;  %v285_v14 = vld [vmem:[#allocation5 + $0x308] sm:$0xff]  ;;  %v287_v15 = vld [vmem:[#allocation5 + $0x318] sm:$0xff]  ;;  %v276_v16 = vld [vmem:[#allocation5 + $0x2c0] sm:$0xff] }
  0x14   :  { %776 = vmatpush.xpose.msra.mxu1 %v301_v6  ;;  %906 = vmatpush.xpose.msra.mxu3 %v303_v7  ;;  %v278_v17 = vld [vmem:[#allocation5 + $0x2d0] sm:$0xff]  ;;  %v277_v18 = vld [vmem:[#allocation5 + $0x2c8] sm:$0xff]  ;;  %v279_v19 = vld [vmem:[#allocation5 + $0x2d8] sm:$0xff] }
  0x15   :  { %v268_v20 = vld [vmem:[#allocation5 + $0x280] sm:$0xff]  ;;  %v270_v21 = vld [vmem:[#allocation5 + $0x290] sm:$0xff]  ;;  %v269_v22 = vld [vmem:[#allocation5 + $0x288] sm:$0xff] }
  0x16   :  { %v271_v23 = vld [vmem:[#allocation5 + $0x298] sm:$0xff]  ;;  %v260_v24 = vld [vmem:[#allocation5 + $0x240] sm:$0xff]  ;;  %v262_v25 = vld [vmem:[#allocation5 + $0x250] sm:$0xff] }
  0x17   :  { %712 = vmatpush.xpose.msra.mxu0 %v292_v8  ;;  %842 = vmatpush.xpose.msra.mxu2 %v294_v9  ;;  %v261_v26 = vld [vmem:[#allocation5 + $0x248] sm:$0xff]  ;;  %v263_v27 = vld [vmem:[#allocation5 + $0x258] sm:$0xff]  ;;  %v252_v28 = vld [vmem:[#allocation5 + $0x200] sm:$0xff] }
  0x18   :  { %777 = vmatpush.xpose.msra.mxu1 %v293_v10  ;;  %907 = vmatpush.xpose.msra.mxu3 %v295_v11  ;;  %v254_v29 = vld [vmem:[#allocation5 + $0x210] sm:$0xff]  ;;  %v253_v30 = vld [vmem:[#allocation5 + $0x208] sm:$0xff]  ;;  %v255_v31 = vld [vmem:[#allocation5 + $0x218] sm:$0xff] }
  0x19   :  { %v244_v32 = vld [vmem:[#allocation5 + $0x1c0] sm:$0xff]  ;;  %v246_v33 = vld [vmem:[#allocation5 + $0x1d0] sm:$0xff]  ;;  %v245_v34 = vld [vmem:[#allocation5 + $0x1c8] sm:$0xff] }
  0x1a   :  { %v247_v35 = vld [vmem:[#allocation5 + $0x1d8] sm:$0xff]  ;;  %v236_v36 = vld [vmem:[#allocation5 + $0x180] sm:$0xff]  ;;  %v238_v37 = vld [vmem:[#allocation5 + $0x190] sm:$0xff] }
  0x1b   :  { %713 = vmatpush.xpose.msra.mxu0 %v284_v12  ;;  %843 = vmatpush.xpose.msra.mxu2 %v286_v13  ;;  %v237_v38 = vld [vmem:[#allocation5 + $0x188] sm:$0xff]  ;;  %v239_v39 = vld [vmem:[#allocation5 + $0x198] sm:$0xff]  ;;  %v228_v40 = vld [vmem:[#allocation5 + $0x140] sm:$0xff] }
  0x1c   :  { %778 = vmatpush.xpose.msra.mxu1 %v285_v14  ;;  %908 = vmatpush.xpose.msra.mxu3 %v287_v15  ;;  %v230_v41 = vld [vmem:[#allocation5 + $0x150] sm:$0xff]  ;;  %v229_v42 = vld [vmem:[#allocation5 + $0x148] sm:$0xff]  ;;  %v231_v43 = vld [vmem:[#allocation5 + $0x158] sm:$0xff] }
  0x1d   :  { %v220_v44 = vld [vmem:[#allocation5 + $0x100] sm:$0xff]  ;;  %v222_v45 = vld [vmem:[#allocation5 + $0x110] sm:$0xff]  ;;  %v221_v46 = vld [vmem:[#allocation5 + $0x108] sm:$0xff] }
  0x1e   :  { %v223_v47 = vld [vmem:[#allocation5 + $0x118] sm:$0xff]  ;;  %v212_v48 = vld [vmem:[#allocation5 + $0xc0] sm:$0xff]  ;;  %v214_v49 = vld [vmem:[#allocation5 + $0xd0] sm:$0xff] }
  0x1f   :  { %714 = vmatpush.xpose.msra.mxu0 %v276_v16  ;;  %844 = vmatpush.xpose.msra.mxu2 %v278_v17  ;;  %v213_v50 = vld [vmem:[#allocation5 + $0xc8] sm:$0xff]  ;;  %v215_v51 = vld [vmem:[#allocation5 + $0xd8] sm:$0xff]  ;;  %v204_v52 = vld [vmem:[#allocation5 + $0x80] sm:$0xff] }
  0x20   :  { %779 = vmatpush.xpose.msra.mxu1 %v277_v18  ;;  %909 = vmatpush.xpose.msra.mxu3 %v279_v19  ;;  %v206_v53 = vld [vmem:[#allocation5 + $0x90] sm:$0xff]  ;;  %v205_v54 = vld [vmem:[#allocation5 + $0x88] sm:$0xff]  ;;  %v207_v55 = vld [vmem:[#allocation5 + $0x98] sm:$0xff] }
  0x21   :  { %v196_v56 = vld [vmem:[#allocation5 + $0x40] sm:$0xff]  ;;  %v198_v57 = vld [vmem:[#allocation5 + $0x50] sm:$0xff]  ;;  %v197_v58 = vld [vmem:[#allocation5 + $0x48] sm:$0xff] }
  0x22   :  { %v199_v59 = vld [vmem:[#allocation5 + $0x58] sm:$0xff]  ;;  %v188_v60 = vld [vmem:[#allocation5] sm:$0xff]  ;;  %v190_v61 = vld [vmem:[#allocation5 + $0x10] sm:$0xff] }
  0x23   :  { %715 = vmatpush.xpose.msra.mxu0 %v268_v20  ;;  %845 = vmatpush.xpose.msra.mxu2 %v270_v21  ;;  %v189_v62 = vld [vmem:[#allocation5 + $0x8] sm:$0xff]  ;;  %v191_v63 = vld [vmem:[#allocation5 + $0x18] sm:$0xff]  ;;  %v314_v0 = vld [vmem:[#allocation5 + $0x3f0] sm:$0xff] }
  0x24   :  { %780 = vmatpush.xpose.msra.mxu1 %v269_v22  ;;  %910 = vmatpush.xpose.msra.mxu3 %v271_v23  ;;  %v312_v1 = vld [vmem:[#allocation5 + $0x3e0] sm:$0xff]  ;;  %v62_v3 = vld [vmem:[#allocation2 + $0x10] sm:$0xff]  ;;  %v61_v4 = vld [vmem:[#allocation2 + $0x8] sm:$0xff] }
  0x25   :  { %v60_v2 = vld [vmem:[#allocation2] sm:$0xff]  ;;  %v63_v5 = vld [vmem:[#allocation2 + $0x18] sm:$0xff]  ;;  %v313_v7 = vld [vmem:[#allocation5 + $0x3e8] sm:$0xff] }
  0x26   :  { %v315_v6 = vld [vmem:[#allocation5 + $0x3f8] sm:$0xff]  ;;  %v306_v8 = vld [vmem:[#allocation5 + $0x3b0] sm:$0xff]  ;;  %v304_v9 = vld [vmem:[#allocation5 + $0x3a0] sm:$0xff] }
  0x27   :  { %716 = vmatpush.xpose.msra.mxu0 %v260_v24  ;;  %846 = vmatpush.xpose.msra.mxu2 %v262_v25  ;;  %v307_v10 = vld [vmem:[#allocation5 + $0x3b8] sm:$0xff]  ;;  %v305_v11 = vld [vmem:[#allocation5 + $0x3a8] sm:$0xff]  ;;  %v298_v12 = vld [vmem:[#allocation5 + $0x370] sm:$0xff] }
  0x28   :  { %781 = vmatpush.xpose.msra.mxu1 %v261_v26  ;;  %911 = vmatpush.xpose.msra.mxu3 %v263_v27  ;;  %v296_v13 = vld [vmem:[#allocation5 + $0x360] sm:$0xff]  ;;  %v70_v15 = vld [vmem:[#allocation2 + $0x50] sm:$0xff]  ;;  %v69_v16 = vld [vmem:[#allocation2 + $0x48] sm:$0xff] }
  0x29   :  { %v68_v14 = vld [vmem:[#allocation2 + $0x40] sm:$0xff]  ;;  %v71_v17 = vld [vmem:[#allocation2 + $0x58] sm:$0xff]  ;;  %v297_v19 = vld [vmem:[#allocation5 + $0x368] sm:$0xff] }
  0x2a   :  { %v299_v18 = vld [vmem:[#allocation5 + $0x378] sm:$0xff]  ;;  %v290_v20 = vld [vmem:[#allocation5 + $0x330] sm:$0xff]  ;;  %v288_v21 = vld [vmem:[#allocation5 + $0x320] sm:$0xff] }
  0x2b   :  { %717 = vmatpush.xpose.msra.mxu0 %v252_v28  ;;  %847 = vmatpush.xpose.msra.mxu2 %v254_v29  ;;  %v291_v22 = vld [vmem:[#allocation5 + $0x338] sm:$0xff]  ;;  %v289_v23 = vld [vmem:[#allocation5 + $0x328] sm:$0xff]  ;;  %v282_v24 = vld [vmem:[#allocation5 + $0x2f0] sm:$0xff] }
  0x2c   :  { %782 = vmatpush.xpose.msra.mxu1 %v253_v30  ;;  %912 = vmatpush.xpose.msra.mxu3 %v255_v31  ;;  %v280_v25 = vld [vmem:[#allocation5 + $0x2e0] sm:$0xff]  ;;  %v78_v27 = vld [vmem:[#allocation2 + $0x90] sm:$0xff]  ;;  %v77_v28 = vld [vmem:[#allocation2 + $0x88] sm:$0xff] }
  0x2d   :  { %v76_v26 = vld [vmem:[#allocation2 + $0x80] sm:$0xff]  ;;  %v79_v29 = vld [vmem:[#allocation2 + $0x98] sm:$0xff]  ;;  %v281_v31 = vld [vmem:[#allocation5 + $0x2e8] sm:$0xff] }
  0x2e   :  { %v283_v30 = vld [vmem:[#allocation5 + $0x2f8] sm:$0xff] }
  0x2f   :  { %718 = vmatpush.xpose.msra.mxu0 %v244_v32  ;;  %848 = vmatpush.xpose.msra.mxu2 %v246_v33  ;;  %v274_v32 = vld [vmem:[#allocation5 + $0x2b0] sm:$0xff]  ;;  %v272_v33 = vld [vmem:[#allocation5 + $0x2a0] sm:$0xff] }
  0x30   :  { %783 = vmatpush.xpose.msra.mxu1 %v245_v34  ;;  %913 = vmatpush.xpose.msra.mxu3 %v247_v35  ;;  %v275_v34 = vld [vmem:[#allocation5 + $0x2b8] sm:$0xff]  ;;  %v273_v35 = vld [vmem:[#allocation5 + $0x2a8] sm:$0xff] }
  0x33   :  { %719 = vmatpush.xpose.msra.mxu0 %v236_v36  ;;  %849 = vmatpush.xpose.msra.mxu2 %v238_v37  ;;  %v266_v36 = vld [vmem:[#allocation5 + $0x270] sm:$0xff]  ;;  %v264_v37 = vld [vmem:[#allocation5 + $0x260] sm:$0xff] }
  0x34   :  { %784 = vmatpush.xpose.msra.mxu1 %v237_v38  ;;  %914 = vmatpush.xpose.msra.mxu3 %v239_v39  ;;  %v84_v38 = vld [vmem:[#allocation2 + $0xc0] sm:$0xff]  ;;  %v86_v39 = vld [vmem:[#allocation2 + $0xd0] sm:$0xff] }
  0x37   :  { %720 = vmatpush.xpose.msra.mxu0 %v228_v40  ;;  %850 = vmatpush.xpose.msra.mxu2 %v230_v41  ;;  %v85_v40 = vld [vmem:[#allocation2 + $0xc8] sm:$0xff]  ;;  %v87_v41 = vld [vmem:[#allocation2 + $0xd8] sm:$0xff] }
  0x38   :  { %785 = vmatpush.xpose.msra.mxu1 %v229_v42  ;;  %915 = vmatpush.xpose.msra.mxu3 %v231_v43  ;;  %v267_v42 = vld [vmem:[#allocation5 + $0x278] sm:$0xff]  ;;  %v265_v43 = vld [vmem:[#allocation5 + $0x268] sm:$0xff] }
  0x3b   :  { %721 = vmatpush.xpose.msra.mxu0 %v220_v44  ;;  %851 = vmatpush.xpose.msra.mxu2 %v222_v45  ;;  %v258_v44 = vld [vmem:[#allocation5 + $0x230] sm:$0xff]  ;;  %v256_v45 = vld [vmem:[#allocation5 + $0x220] sm:$0xff] }
  0x3c   :  { %786 = vmatpush.xpose.msra.mxu1 %v221_v46  ;;  %916 = vmatpush.xpose.msra.mxu3 %v223_v47  ;;  %v259_v46 = vld [vmem:[#allocation5 + $0x238] sm:$0xff]  ;;  %v257_v47 = vld [vmem:[#allocation5 + $0x228] sm:$0xff] }
  0x3f   :  { %722 = vmatpush.xpose.msra.mxu0 %v212_v48  ;;  %852 = vmatpush.xpose.msra.mxu2 %v214_v49  ;;  %v92_v48 = vld [vmem:[#allocation2 + $0x100] sm:$0xff]  ;;  %v94_v49 = vld [vmem:[#allocation2 + $0x110] sm:$0xff] }
  0x40   :  { %787 = vmatpush.xpose.msra.mxu1 %v213_v50  ;;  %917 = vmatpush.xpose.msra.mxu3 %v215_v51  ;;  %v93_v50 = vld [vmem:[#allocation2 + $0x108] sm:$0xff]  ;;  %v95_v51 = vld [vmem:[#allocation2 + $0x118] sm:$0xff] }
  0x43   :  { %723 = vmatpush.xpose.msra.mxu0 %v204_v52  ;;  %853 = vmatpush.xpose.msra.mxu2 %v206_v53  ;;  %v250_v52 = vld [vmem:[#allocation5 + $0x1f0] sm:$0xff]  ;;  %v248_v53 = vld [vmem:[#allocation5 + $0x1e0] sm:$0xff] }
  0x44   :  { %788 = vmatpush.xpose.msra.mxu1 %v205_v54  ;;  %918 = vmatpush.xpose.msra.mxu3 %v207_v55  ;;  %v251_v54 = vld [vmem:[#allocation5 + $0x1f8] sm:$0xff]  ;;  %v249_v55 = vld [vmem:[#allocation5 + $0x1e8] sm:$0xff] }
  0x47   :  { %724 = vmatpush.xpose.msra.mxu0 %v196_v56  ;;  %854 = vmatpush.xpose.msra.mxu2 %v198_v57  ;;  %v100_v56 = vld [vmem:[#allocation2 + $0x140] sm:$0xff]  ;;  %v102_v57 = vld [vmem:[#allocation2 + $0x150] sm:$0xff] }
  0x48   :  { %789 = vmatpush.xpose.msra.mxu1 %v197_v58  ;;  %919 = vmatpush.xpose.msra.mxu3 %v199_v59  ;;  %v101_v58 = vld [vmem:[#allocation2 + $0x148] sm:$0xff]  ;;  %v103_v59 = vld [vmem:[#allocation2 + $0x158] sm:$0xff] }
  0x4b   :  { %725 = vmatpush.xpose.msra.mxu0 %v188_v60  ;;  %855 = vmatpush.xpose.msra.mxu2 %v190_v61  ;;  %v242_v60 = vld [vmem:[#allocation5 + $0x1b0] sm:$0xff]  ;;  %v240_v61 = vld [vmem:[#allocation5 + $0x1a0] sm:$0xff] }
  0x4c   :  { %790 = vmatpush.xpose.msra.mxu1 %v189_v62  ;;  %920 = vmatpush.xpose.msra.mxu3 %v191_v63  ;;  %v243_v62 = vld [vmem:[#allocation5 + $0x1b8] sm:$0xff]  ;;  %v241_v63 = vld [vmem:[#allocation5 + $0x1a8] sm:$0xff] }
  0x4e   :  { %726 = vmatmul.f32.vlgmr.msra.gmra.mxu0 %v60_v2  ;;  %856 = vmatmul.f32.vlgmr.msra.gmra.mxu2 %v62_v3  ;;  %v109_v2 = vld [vmem:[#allocation2 + $0x188] sm:$0xff]  ;;  %v111_v3 = vld [vmem:[#allocation2 + $0x198] sm:$0xff] }
  0x4f   :  { %1100 = vmatpush.xpose.msrb.mxu2 %v314_v0  ;;  %970 = vmatpush.xpose.msrb.mxu0 %v312_v1  ;;  %v108_v0 = vld [vmem:[#allocation2 + $0x180] sm:$0xff]  ;;  %v110_v1 = vld [vmem:[#allocation2 + $0x190] sm:$0xff] }
  0x50   :  { %791 = vmatmul.f32.vlgmr.msra.gmra.mxu1 %v61_v4  ;;  %921 = vmatmul.f32.vlgmr.msra.gmra.mxu3 %v63_v5  ;;  %v234_v4 = vld [vmem:[#allocation5 + $0x170] sm:$0xff]  ;;  %v232_v5 = vld [vmem:[#allocation5 + $0x160] sm:$0xff] }
  0x51   :  { %1165 = vmatpush.xpose.msrb.mxu3 %v315_v6  ;;  %1035 = vmatpush.xpose.msrb.mxu1 %v313_v7  ;;  %v235_v6 = vld [vmem:[#allocation5 + $0x178] sm:$0xff]  ;;  %v233_v7 = vld [vmem:[#allocation5 + $0x168] sm:$0xff] }
  0x53   :  { %1101 = vmatpush.xpose.msrb.mxu2 %v306_v8  ;;  %971 = vmatpush.xpose.msrb.mxu0 %v304_v9  ;;  %v116_v8 = vld [vmem:[#allocation2 + $0x1c0] sm:$0xff]  ;;  %v118_v9 = vld [vmem:[#allocation2 + $0x1d0] sm:$0xff] }
  0x55   :  { %1166 = vmatpush.xpose.msrb.mxu3 %v307_v10  ;;  %1036 = vmatpush.xpose.msrb.mxu1 %v305_v11  ;;  %v117_v10 = vld [vmem:[#allocation2 + $0x1c8] sm:$0xff]  ;;  %v119_v11 = vld [vmem:[#allocation2 + $0x1d8] sm:$0xff] }
  0x56   :  { %729 = vmatmul.f32.gmra.mxu0 %v68_v14  ;;  %859 = vmatmul.f32.gmra.mxu2 %v70_v15  ;;  %v227_v14 = vld [vmem:[#allocation5 + $0x138] sm:$0xff]  ;;  %v225_v15 = vld [vmem:[#allocation5 + $0x128] sm:$0xff] }
  0x57   :  { %1102 = vmatpush.xpose.msrb.mxu2 %v298_v12  ;;  %972 = vmatpush.xpose.msrb.mxu0 %v296_v13  ;;  %v226_v12 = vld [vmem:[#allocation5 + $0x130] sm:$0xff]  ;;  %v224_v13 = vld [vmem:[#allocation5 + $0x120] sm:$0xff] }
  0x58   :  { %794 = vmatmul.f32.gmra.mxu1 %v69_v16  ;;  %924 = vmatmul.f32.gmra.mxu3 %v71_v17  ;;  %v124_v16 = vld [vmem:[#allocation2 + $0x200] sm:$0xff]  ;;  %v126_v17 = vld [vmem:[#allocation2 + $0x210] sm:$0xff] }
  0x59   :  { %1167 = vmatpush.xpose.msrb.mxu3 %v299_v18  ;;  %1037 = vmatpush.xpose.msrb.mxu1 %v297_v19  ;;  %v125_v18 = vld [vmem:[#allocation2 + $0x208] sm:$0xff]  ;;  %v127_v19 = vld [vmem:[#allocation2 + $0x218] sm:$0xff] }
  0x5b   :  { %1103 = vmatpush.xpose.msrb.mxu2 %v290_v20  ;;  %973 = vmatpush.xpose.msrb.mxu0 %v288_v21  ;;  %v218_v20 = vld [vmem:[#allocation5 + $0xf0] sm:$0xff]  ;;  %v216_v21 = vld [vmem:[#allocation5 + $0xe0] sm:$0xff] }
  0x5d   :  { %1168 = vmatpush.xpose.msrb.mxu3 %v291_v22  ;;  %1038 = vmatpush.xpose.msrb.mxu1 %v289_v23  ;;  %v219_v22 = vld [vmem:[#allocation5 + $0xf8] sm:$0xff]  ;;  %v217_v23 = vld [vmem:[#allocation5 + $0xe8] sm:$0xff] }
  0x5e   :  { %732 = vmatmul.f32.gmra.mxu0 %v76_v26  ;;  %862 = vmatmul.f32.gmra.mxu2 %v78_v27  ;;  %v133_v26 = vld [vmem:[#allocation2 + $0x248] sm:$0xff]  ;;  %v135_v27 = vld [vmem:[#allocation2 + $0x258] sm:$0xff] }
  0x5f   :  { %1104 = vmatpush.xpose.msrb.mxu2 %v282_v24  ;;  %974 = vmatpush.xpose.msrb.mxu0 %v280_v25  ;;  %v132_v24 = vld [vmem:[#allocation2 + $0x240] sm:$0xff]  ;;  %v134_v25 = vld [vmem:[#allocation2 + $0x250] sm:$0xff] }
  0x60   :  { %797 = vmatmul.f32.gmra.mxu1 %v77_v28  ;;  %927 = vmatmul.f32.gmra.mxu3 %v79_v29  ;;  %v210_v28 = vld [vmem:[#allocation5 + $0xb0] sm:$0xff]  ;;  %v208_v29 = vld [vmem:[#allocation5 + $0xa0] sm:$0xff] }
  0x61   :  { %1169 = vmatpush.xpose.msrb.mxu3 %v283_v30  ;;  %1039 = vmatpush.xpose.msrb.mxu1 %v281_v31  ;;  %v211_v30 = vld [vmem:[#allocation5 + $0xb8] sm:$0xff]  ;;  %v209_v31 = vld [vmem:[#allocation5 + $0xa8] sm:$0xff] }
  0x63   :  { %1105 = vmatpush.xpose.msrb.mxu2 %v274_v32  ;;  %975 = vmatpush.xpose.msrb.mxu0 %v272_v33  ;;  %v140_v32 = vld [vmem:[#allocation2 + $0x280] sm:$0xff]  ;;  %v142_v33 = vld [vmem:[#allocation2 + $0x290] sm:$0xff] }
  0x65   :  { %1170 = vmatpush.xpose.msrb.mxu3 %v275_v34  ;;  %1040 = vmatpush.xpose.msrb.mxu1 %v273_v35  ;;  %v141_v34 = vld [vmem:[#allocation2 + $0x288] sm:$0xff]  ;;  %v143_v35 = vld [vmem:[#allocation2 + $0x298] sm:$0xff] }
  0x66   :  { %735 = vmatmul.f32.gmra.mxu0 %v84_v38  ;;  %865 = vmatmul.f32.gmra.mxu2 %v86_v39  ;;  %v203_v38 = vld [vmem:[#allocation5 + $0x78] sm:$0xff]  ;;  %v201_v39 = vld [vmem:[#allocation5 + $0x68] sm:$0xff] }
  0x67   :  { %1106 = vmatpush.xpose.msrb.mxu2 %v266_v36  ;;  %976 = vmatpush.xpose.msrb.mxu0 %v264_v37  ;;  %v202_v36 = vld [vmem:[#allocation5 + $0x70] sm:$0xff]  ;;  %v200_v37 = vld [vmem:[#allocation5 + $0x60] sm:$0xff] }
  0x68   :  { %800 = vmatmul.f32.gmra.mxu1 %v85_v40  ;;  %930 = vmatmul.f32.gmra.mxu3 %v87_v41  ;;  %v148_v40 = vld [vmem:[#allocation2 + $0x2c0] sm:$0xff]  ;;  %v150_v41 = vld [vmem:[#allocation2 + $0x2d0] sm:$0xff] }
  0x69   :  { %1171 = vmatpush.xpose.msrb.mxu3 %v267_v42  ;;  %1041 = vmatpush.xpose.msrb.mxu1 %v265_v43  ;;  %v149_v42 = vld [vmem:[#allocation2 + $0x2c8] sm:$0xff]  ;;  %v151_v43 = vld [vmem:[#allocation2 + $0x2d8] sm:$0xff] }
  0x6b   :  { %1107 = vmatpush.xpose.msrb.mxu2 %v258_v44  ;;  %977 = vmatpush.xpose.msrb.mxu0 %v256_v45  ;;  %v194_v44 = vld [vmem:[#allocation5 + $0x30] sm:$0xff]  ;;  %v192_v45 = vld [vmem:[#allocation5 + $0x20] sm:$0xff] }
  0x6d   :  { %1172 = vmatpush.xpose.msrb.mxu3 %v259_v46  ;;  %1042 = vmatpush.xpose.msrb.mxu1 %v257_v47  ;;  %v195_v46 = vld [vmem:[#allocation5 + $0x38] sm:$0xff]  ;;  %v193_v47 = vld [vmem:[#allocation5 + $0x28] sm:$0xff] }
  0x6e   :  { %738 = vmatmul.f32.gmra.mxu0 %v92_v48  ;;  %868 = vmatmul.f32.gmra.mxu2 %v94_v49  ;;  %v156_v48 = vld [vmem:[#allocation2 + $0x300] sm:$0xff]  ;;  %v158_v49 = vld [vmem:[#allocation2 + $0x310] sm:$0xff] }
  0x6f   :  { %1108 = vmatpush.xpose.msrb.mxu2 %v250_v52  ;;  %978 = vmatpush.xpose.msrb.mxu0 %v248_v53  ;;  %v438_v52 = vld [vmem:[#allocation5 + $0x7d0] sm:$0xff]  ;;  %v436_v53 = vld [vmem:[#allocation5 + $0x7c0] sm:$0xff] }
  0x70   :  { %803 = vmatmul.f32.gmra.mxu1 %v93_v50  ;;  %933 = vmatmul.f32.gmra.mxu3 %v95_v51  ;;  %v157_v50 = vld [vmem:[#allocation2 + $0x308] sm:$0xff]  ;;  %v159_v51 = vld [vmem:[#allocation2 + $0x318] sm:$0xff] }
  0x71   :  { %1173 = vmatpush.xpose.msrb.mxu3 %v251_v54  ;;  %1043 = vmatpush.xpose.msrb.mxu1 %v249_v55  ;;  %v439_v54 = vld [vmem:[#allocation5 + $0x7d8] sm:$0xff]  ;;  %v437_v55 = vld [vmem:[#allocation5 + $0x7c8] sm:$0xff] }
  0x73   :  { %1109 = vmatpush.xpose.msrb.mxu2 %v242_v60  ;;  %979 = vmatpush.xpose.msrb.mxu0 %v240_v61  ;;  %v430_v60 = vld [vmem:[#allocation5 + $0x790] sm:$0xff]  ;;  %v428_v61 = vld [vmem:[#allocation5 + $0x780] sm:$0xff] }
  0x75   :  { %1174 = vmatpush.xpose.msrb.mxu3 %v243_v62  ;;  %1044 = vmatpush.xpose.msrb.mxu1 %v241_v63  ;;  %v431_v62 = vld [vmem:[#allocation5 + $0x798] sm:$0xff]  ;;  %v429_v63 = vld [vmem:[#allocation5 + $0x788] sm:$0xff] }
  0x76   :  { %741 = vmatmul.f32.gmra.mxu0 %v100_v56  ;;  %871 = vmatmul.f32.gmra.mxu2 %v102_v57  ;;  %v164_v56 = vld [vmem:[#allocation2 + $0x340] sm:$0xff]  ;;  %v166_v57 = vld [vmem:[#allocation2 + $0x350] sm:$0xff] }
  0x77   :  { %1110 = vmatpush.xpose.msrb.mxu2 %v234_v4  ;;  %980 = vmatpush.xpose.msrb.mxu0 %v232_v5  ;;  %v422_v4 = vld [vmem:[#allocation5 + $0x750] sm:$0xff]  ;;  %v420_v5 = vld [vmem:[#allocation5 + $0x740] sm:$0xff] }
  0x78   :  { %806 = vmatmul.f32.gmra.mxu1 %v101_v58  ;;  %936 = vmatmul.f32.gmra.mxu3 %v103_v59  ;;  %v165_v58 = vld [vmem:[#allocation2 + $0x348] sm:$0xff]  ;;  %v167_v59 = vld [vmem:[#allocation2 + $0x358] sm:$0xff] }
  0x79   :  { %1175 = vmatpush.xpose.msrb.mxu3 %v235_v6  ;;  %1045 = vmatpush.xpose.msrb.mxu1 %v233_v7  ;;  %v423_v6 = vld [vmem:[#allocation5 + $0x758] sm:$0xff]  ;;  %v421_v7 = vld [vmem:[#allocation5 + $0x748] sm:$0xff] }
  0x7b   :  { %1111 = vmatpush.xpose.msrb.mxu2 %v226_v12  ;;  %981 = vmatpush.xpose.msrb.mxu0 %v224_v13  ;;  %v700_v12 = vld [vmem:[#allocation7] sm:$0xf]  ;;  %v414_v13 = vld [vmem:[#allocation5 + $0x710] sm:$0xff] }
  0x7d   :  { %1176 = vmatpush.xpose.msrb.mxu3 %v227_v14  ;;  %1046 = vmatpush.xpose.msrb.mxu1 %v225_v15  ;;  %v412_v14 = vld [vmem:[#allocation5 + $0x700] sm:$0xff]  ;;  %v415_v15 = vld [vmem:[#allocation5 + $0x718] sm:$0xff] }
  0x7e   :  { %744 = vmatmul.f32.gmra.mxu0 %v108_v0  ;;  %874 = vmatmul.f32.gmra.mxu2 %v110_v1  ;;  %v172_v0 = vld [vmem:[#allocation2 + $0x380] sm:$0xff]  ;;  %v174_v1 = vld [vmem:[#allocation2 + $0x390] sm:$0xff] }
  0x7f   :  { %1112 = vmatpush.xpose.msrb.mxu2 %v218_v20  ;;  %982 = vmatpush.xpose.msrb.mxu0 %v216_v21  ;;  %v66_v20 = vld [vmem:[#allocation2 + $0x30] sm:$0xff] }
  0x80   :  { %809 = vmatmul.f32.gmra.mxu1 %v109_v2  ;;  %939 = vmatmul.f32.gmra.mxu3 %v111_v3  ;;  %v173_v2 = vld [vmem:[#allocation2 + $0x388] sm:$0xff]  ;;  %v175_v3 = vld [vmem:[#allocation2 + $0x398] sm:$0xff] }
  0x81   :  { %1177 = vmatpush.xpose.msrb.mxu3 %v219_v22  ;;  %1047 = vmatpush.xpose.msrb.mxu1 %v217_v23  ;;  %v65_v23 = vld [vmem:[#allocation2 + $0x28] sm:$0xff] }
  0x83   :  { %1113 = vmatpush.xpose.msrb.mxu2 %v210_v28  ;;  %983 = vmatpush.xpose.msrb.mxu0 %v208_v29  ;;  %v407_v28 = vld [vmem:[#allocation5 + $0x6d8] sm:$0xff] }
  0x85   :  { %1178 = vmatpush.xpose.msrb.mxu3 %v211_v30  ;;  %1048 = vmatpush.xpose.msrb.mxu1 %v209_v31 }
  0x86   :  { %747 = vmatmul.f32.gmra.mxu0 %v116_v8  ;;  %877 = vmatmul.f32.gmra.mxu2 %v118_v9  ;;  %v180_v8 = vld [vmem:[#allocation2 + $0x3c0] sm:$0xff]  ;;  %v182_v9 = vld [vmem:[#allocation2 + $0x3d0] sm:$0xff] }
  0x87   :  { %1114 = vmatpush.xpose.msrb.mxu2 %v202_v36  ;;  %984 = vmatpush.xpose.msrb.mxu0 %v200_v37 }
  0x88   :  { %812 = vmatmul.f32.gmra.mxu1 %v117_v10  ;;  %942 = vmatmul.f32.gmra.mxu3 %v119_v11  ;;  %v181_v10 = vld [vmem:[#allocation2 + $0x3c8] sm:$0xff]  ;;  %v183_v11 = vld [vmem:[#allocation2 + $0x3d8] sm:$0xff] }
  0x89   :  { %1179 = vmatpush.xpose.msrb.mxu3 %v203_v38  ;;  %1049 = vmatpush.xpose.msrb.mxu1 %v201_v39  ;;  %v73_v39 = vld [vmem:[#allocation2 + $0x68] sm:$0xff] }
  0x8b   :  { %1115 = vmatpush.xpose.msrb.mxu2 %v194_v44  ;;  %985 = vmatpush.xpose.msrb.mxu0 %v192_v45  ;;  %v399_v44 = vld [vmem:[#allocation5 + $0x698] sm:$0xff] }
  0x8d   :  { %1180 = vmatpush.xpose.msrb.mxu3 %v195_v46  ;;  %1050 = vmatpush.xpose.msrb.mxu1 %v193_v47 }
  0x8e   :  { %750 = vmatmul.f32.gmra.mxu0 %v124_v16  ;;  %880 = vmatmul.f32.gmra.mxu2 %v126_v17  ;;  %v5072_v16 = vperm.slane %v700_v12, 0  ;;  %v413_v17 = vld [vmem:[#allocation5 + $0x708] sm:$0xff]  ;;  %v383_v12 = vld [vmem:[#allocation5 + $0x618] sm:$0xff] }
  0x8f   :  { %1360 = vmatpush.xpose.msra.mxu2 %v438_v52  ;;  %1230 = vmatpush.xpose.msra.mxu0 %v436_v53 }
  0x90   :  { %815 = vmatmul.f32.gmra.mxu1 %v125_v18  ;;  %945 = vmatmul.f32.gmra.mxu3 %v127_v19  ;;  %v64_v19 = vld [vmem:[#allocation2 + $0x20] sm:$0xff] }
  0x91   :  { %1425 = vmatpush.xpose.msra.mxu3 %v439_v54  ;;  %1295 = vmatpush.xpose.msra.mxu1 %v437_v55  ;;  %v81_v55 = vld [vmem:[#allocation2 + $0xa8] sm:$0xff] }
  0x93   :  { %1361 = vmatpush.xpose.msra.mxu2 %v430_v60  ;;  %1231 = vmatpush.xpose.msra.mxu0 %v428_v61  ;;  %v391_v60 = vld [vmem:[#allocation5 + $0x658] sm:$0xff] }
  0x95   :  { %1426 = vmatpush.xpose.msra.mxu3 %v431_v62  ;;  %1296 = vmatpush.xpose.msra.mxu1 %v429_v63 }
  0x96   :  { %753 = vmatmul.f32.gmra.mxu0 %v132_v24  ;;  %883 = vmatmul.f32.gmra.mxu2 %v134_v25  ;;  %v67_v24 = vld [vmem:[#allocation2 + $0x38] sm:$0xff] }
  0x97   :  { %1362 = vmatpush.xpose.msra.mxu2 %v422_v4  ;;  %1232 = vmatpush.xpose.msra.mxu0 %v420_v5 }
  0x98   :  { %818 = vmatmul.f32.gmra.mxu1 %v133_v26  ;;  %948 = vmatmul.f32.gmra.mxu3 %v135_v27  ;;  %v406_v26 = vld [vmem:[#allocation5 + $0x6d0] sm:$0xff]  ;;  %v404_v27 = vld [vmem:[#allocation5 + $0x6c0] sm:$0xff] }
  0x99   :  { %1427 = vmatpush.xpose.msra.mxu3 %v423_v6  ;;  %1297 = vmatpush.xpose.msra.mxu1 %v421_v7  ;;  %v89_v7 = vld [vmem:[#allocation2 + $0xe8] sm:$0xff] }
  0x9b   :  { %1363 = vmatpush.xpose.msra.mxu2 %v414_v13  ;;  %1233 = vmatpush.xpose.msra.mxu0 %v412_v14 }
  0x9d   :  { %1428 = vmatpush.xpose.msra.mxu3 %v415_v15  ;;  %1298 = vmatpush.xpose.msra.mxu1 %v413_v17  ;;  %v381_v17 = vld [vmem:[#allocation5 + $0x608] sm:$0xff] }
  0x9e   :  { %756 = vmatmul.f32.gmra.mxu0 %v140_v32  ;;  %886 = vmatmul.f32.gmra.mxu2 %v142_v33  ;;  %v405_v32 = vld [vmem:[#allocation5 + $0x6c8] sm:$0xff] }
  0x9f   :  { %1364 = vmatpush.xpose.msra.mxu2 %v406_v26  ;;  %1234 = vmatpush.xpose.msra.mxu0 %v404_v27  ;;  %v374_v27 = vld [vmem:[#allocation5 + $0x5d0] sm:$0xff] }
  0xa0   :  { %821 = vmatmul.f32.gmra.mxu1 %v141_v34  ;;  %951 = vmatmul.f32.gmra.mxu3 %v143_v35  ;;  %v72_v34 = vld [vmem:[#allocation2 + $0x60] sm:$0xff]  ;;  %v74_v35 = vld [vmem:[#allocation2 + $0x70] sm:$0xff] }
  0xa1   :  { %1429 = vmatpush.xpose.msra.mxu3 %v407_v28  ;;  %1299 = vmatpush.xpose.msra.mxu1 %v405_v32  ;;  %v372_v28 = vld [vmem:[#allocation5 + $0x5c0] sm:$0xff] }
  0xa5   :  { %1430 = vmatpush.xpose.msra.mxu3 %v399_v44  ;;  %v366_v44 = vld [vmem:[#allocation5 + $0x590] sm:$0xff] }
  0xa6   :  { %759 = vmatmul.f32.gmra.mxu0 %v148_v40  ;;  %889 = vmatmul.f32.gmra.mxu2 %v150_v41  ;;  %v75_v40 = vld [vmem:[#allocation2 + $0x78] sm:$0xff] }
  0xa8   :  { %824 = vmatmul.f32.gmra.mxu1 %v149_v42  ;;  %954 = vmatmul.f32.gmra.mxu3 %v151_v43  ;;  %v398_v42 = vld [vmem:[#allocation5 + $0x690] sm:$0xff]  ;;  %v396_v43 = vld [vmem:[#allocation5 + $0x680] sm:$0xff] }
  0xa9   :  { %1365 = vmatpush.xpose.msra.mxu2 %v398_v42  ;;  %1235 = vmatpush.xpose.msra.mxu0 %v396_v43  ;;  %v107_v42 = vld [vmem:[#allocation2 + $0x178] sm:$0xff] }
  0xaa   :  { %1431 = vmatpush.xpose.msra.mxu3 %v391_v60 }
  0xae   :  { %762 = vmatmul.f32.gmra.mxu0 %v156_v48  ;;  %892 = vmatmul.f32.gmra.mxu2 %v158_v49  ;;  %v397_v48 = vld [vmem:[#allocation5 + $0x688] sm:$0xff] }
  0xaf   :  { %1300 = vmatpush.xpose.msra.mxu1 %v397_v48  ;;  %1432 = vmatpush.xpose.msra.mxu3 %v383_v12  ;;  %v123_v12 = vld [vmem:[#allocation2 + $0x1f8] sm:$0xff] }
  0xb0   :  { %827 = vmatmul.f32.gmra.mxu1 %v157_v50  ;;  %957 = vmatmul.f32.gmra.mxu3 %v159_v51  ;;  %v80_v50 = vld [vmem:[#allocation2 + $0xa0] sm:$0xff]  ;;  %v82_v51 = vld [vmem:[#allocation2 + $0xb0] sm:$0xff] }
  0xb6   :  { %765 = vmatmul.f32.gmra.mxu0 %v164_v56  ;;  %895 = vmatmul.f32.gmra.mxu2 %v166_v57  ;;  %v83_v56 = vld [vmem:[#allocation2 + $0xb8] sm:$0xff] }
  0xb8   :  { %830 = vmatmul.f32.gmra.mxu1 %v165_v58  ;;  %960 = vmatmul.f32.gmra.mxu3 %v167_v59  ;;  %v390_v58 = vld [vmem:[#allocation5 + $0x650] sm:$0xff]  ;;  %v388_v59 = vld [vmem:[#allocation5 + $0x640] sm:$0xff] }
  0xb9   :  { %1366 = vmatpush.xpose.msra.mxu2 %v390_v58  ;;  %1236 = vmatpush.xpose.msra.mxu0 %v388_v59  ;;  %v113_v58 = vld [vmem:[#allocation2 + $0x1a8] sm:$0xff]  ;;  %v115_v59 = vld [vmem:[#allocation2 + $0x1b8] sm:$0xff] }
  0xbe   :  { %768 = vmatmul.f32.gmra.mxu0 %v172_v0  ;;  %898 = vmatmul.f32.gmra.mxu2 %v174_v1  ;;  %v389_v0 = vld [vmem:[#allocation5 + $0x648] sm:$0xff] }
  0xbf   :  { %1301 = vmatpush.xpose.msra.mxu1 %v389_v0 }
  0xc0   :  { %833 = vmatmul.f32.gmra.mxu1 %v173_v2  ;;  %963 = vmatmul.f32.gmra.mxu3 %v175_v3  ;;  %v88_v2 = vld [vmem:[#allocation2 + $0xe0] sm:$0xff]  ;;  %v90_v3 = vld [vmem:[#allocation2 + $0xf0] sm:$0xff] }
  0xc3   :  { %1302 = vmatpush.xpose.msra.mxu1 %v381_v17  ;;  %v351_v17 = vld [vmem:[#allocation5 + $0x518] sm:$0xff] }
  0xc6   :  { %771 = vmatmul.f32.gmra.mxu0 %v180_v8  ;;  %901 = vmatmul.f32.gmra.mxu2 %v182_v9  ;;  %v91_v8 = vld [vmem:[#allocation2 + $0xf8] sm:$0xff] }
  0xc8   :  { %836 = vmatmul.f32.gmra.mxu1 %v181_v10  ;;  %966 = vmatmul.f32.gmra.mxu3 %v183_v11  ;;  %v382_v10 = vld [vmem:[#allocation5 + $0x610] sm:$0xff]  ;;  %v380_v11 = vld [vmem:[#allocation5 + $0x600] sm:$0xff] }
  0xc9   :  { %1367 = vmatpush.xpose.msra.mxu2 %v382_v10  ;;  %1237 = vmatpush.xpose.msra.mxu0 %v380_v11  ;;  %v121_v11 = vld [vmem:[#allocation2 + $0x1e8] sm:$0xff] }
  0xcb   :  { %v727_v18 = vpop.f32.mrf.mxu0 }
  0xcc   :  { %v728_v21 = vadd.f32 %v727_v18, %v5072_v16 }
  0xcd   :  { %v792_v22 = vpop.f32.mrf.mxu1  ;;  %1368 = vmatpush.xpose.msra.mxu2 %v374_v27  ;;  %1238 = vmatpush.xpose.msra.mxu0 %v372_v28 }
  0xce   :  { %v793_v25 = vadd.f32 %v792_v22, %v728_v21  ;;  %986 = vmatmul.f32.vlgmr.msrb.gmra.mxu0 %v64_v19  ;;  %1116 = vmatmul.f32.vlgmr.msrb.gmra.mxu2 %v66_v20  ;;  %v96_v19 = vld [vmem:[#allocation2 + $0x120] sm:$0xff]  ;;  %v98_v20 = vld [vmem:[#allocation2 + $0x130] sm:$0xff] }
  0xd0   :  { %1051 = vmatmul.f32.vlgmr.msrb.gmra.mxu1 %v65_v23  ;;  %1181 = vmatmul.f32.vlgmr.msrb.gmra.mxu3 %v67_v24  ;;  %v97_v24 = vld [vmem:[#allocation2 + $0x128] sm:$0xff] }
  0xd1   :  { %v857_v29 = vpop.f32.mrf.mxu2  ;;  %1369 = vmatpush.xpose.msra.mxu2 %v366_v44 }
  0xd2   :  { %v858_v30 = vadd.f32 %v857_v29, %v793_v25  ;;  %v99_v25 = vld [vmem:[#allocation2 + $0x138] sm:$0xff] }
  0xd3   :  { %v922_v31 = vpop.f32.mrf.mxu3  ;;  %v730_v33 = vpop.f32.mrf.mxu0  ;;  %v375_v29 = vld [vmem:[#allocation5 + $0x5d8] sm:$0xff] }
  0xd4   :  { %v731_v36 = vadd.f32 %v730_v33, %v5072_v16  ;;  %v5076_v37 = vadd.f32 %v922_v31, %v858_v30  ;;  %1433 = vmatpush.xpose.msra.mxu3 %v375_v29  ;;  %v373_v33 = vld [vmem:[#allocation5 + $0x5c8] sm:$0xff] }
  0xd5   :  { %v795_v38 = vpop.f32.mrf.mxu1  ;;  %1303 = vmatpush.xpose.msra.mxu1 %v373_v33  ;;  %v129_v29 = vld [vmem:[#allocation2 + $0x228] sm:$0xff]  ;;  %v340_v33 = vld [vmem:[#allocation5 + $0x4c0] sm:$0xff] }
  0xd6   :  { %v796_v41 = vadd.f32 %v795_v38, %v731_v36  ;;  %989 = vmatmul.f32.gmra.mxu0 %v72_v34  ;;  %1119 = vmatmul.f32.gmra.mxu2 %v74_v35  ;;  %v104_v35 = vld [vmem:[#allocation2 + $0x160] sm:$0xff]  ;;  %v106_v36 = vld [vmem:[#allocation2 + $0x170] sm:$0xff] }
  0xd8   :  { %1054 = vmatmul.f32.gmra.mxu1 %v73_v39  ;;  %1184 = vmatmul.f32.gmra.mxu3 %v75_v40 }
  0xd9   :  { %v860_v45 = vpop.f32.mrf.mxu2 }
  0xda   :  { %v861_v46 = vadd.f32 %v860_v45, %v796_v41  ;;  %v105_v41 = vld [vmem:[#allocation2 + $0x168] sm:$0xff]  ;;  %v364_v45 = vld [vmem:[#allocation5 + $0x580] sm:$0xff] }
  0xdb   :  { %v925_v47 = vpop.f32.mrf.mxu3  ;;  %v733_v49 = vpop.f32.mrf.mxu0  ;;  %1239 = vmatpush.xpose.msra.mxu0 %v364_v45 }
  0xdc   :  { %v734_v52 = vadd.f32 %v733_v49, %v5072_v16  ;;  %v5079_v53 = vadd.f32 %v925_v47, %v861_v46  ;;  %v367_v46 = vld [vmem:[#allocation5 + $0x598] sm:$0xff] }
  0xdd   :  { %v798_v54 = vpop.f32.mrf.mxu1  ;;  %1434 = vmatpush.xpose.msra.mxu3 %v367_v46 }
  0xde   :  { %v799_v57 = vadd.f32 %v798_v54, %v734_v52  ;;  %992 = vmatmul.f32.gmra.mxu0 %v80_v50  ;;  %1122 = vmatmul.f32.gmra.mxu2 %v82_v51  ;;  %v365_v50 = vld [vmem:[#allocation5 + $0x588] sm:$0xff]  ;;  %v112_v52 = vld [vmem:[#allocation2 + $0x1a0] sm:$0xff]  ;;  %v114_v54 = vld [vmem:[#allocation2 + $0x1b0] sm:$0xff] }
  0xdf   :  { %1304 = vmatpush.xpose.msra.mxu1 %v365_v50  ;;  %v334_v50 = vld [vmem:[#allocation5 + $0x490] sm:$0xff] }
  0xe0   :  { %1057 = vmatmul.f32.gmra.mxu1 %v81_v55  ;;  %1187 = vmatmul.f32.gmra.mxu3 %v83_v56 }
  0xe1   :  { %v863_v61 = vpop.f32.mrf.mxu2 }
  0xe2   :  { %v864_v62 = vadd.f32 %v863_v61, %v799_v57  ;;  %v358_v61 = vld [vmem:[#allocation5 + $0x550] sm:$0xff] }
  0xe3   :  { %v928_v63 = vpop.f32.mrf.mxu3  ;;  %v736_v1 = vpop.f32.mrf.mxu0  ;;  %1370 = vmatpush.xpose.msra.mxu2 %v358_v61  ;;  %v146_v61 = vld [vmem:[#allocation2 + $0x2b0] sm:$0xff] }
  0xe4   :  { %v737_v4 = vadd.f32 %v736_v1, %v5072_v16  ;;  %v5082_v5 = vadd.f32 %v928_v63, %v864_v62  ;;  %v356_v62 = vld [vmem:[#allocation5 + $0x540] sm:$0xff]  ;;  %v359_v63 = vld [vmem:[#allocation5 + $0x558] sm:$0xff] }
  0xe5   :  { %v801_v6 = vpop.f32.mrf.mxu1  ;;  %1240 = vmatpush.xpose.msra.mxu0 %v356_v62  ;;  %1435 = vmatpush.xpose.msra.mxu3 %v359_v63 }
  0xe6   :  { %v802_v9 = vadd.f32 %v801_v6, %v737_v4  ;;  %995 = vmatmul.f32.gmra.mxu0 %v88_v2  ;;  %1125 = vmatmul.f32.gmra.mxu2 %v90_v3  ;;  %v357_v3 = vld [vmem:[#allocation5 + $0x548] sm:$0xff]  ;;  %v120_v6 = vld [vmem:[#allocation2 + $0x1e0] sm:$0xff] }
  0xe7   :  { %1305 = vmatpush.xpose.msra.mxu1 %v357_v3 }
  0xe8   :  { %1060 = vmatmul.f32.gmra.mxu1 %v89_v7  ;;  %1190 = vmatmul.f32.gmra.mxu3 %v91_v8  ;;  %v122_v7 = vld [vmem:[#allocation2 + $0x1f0] sm:$0xff] }
  0xe9   :  { %v866_v13 = vpop.f32.mrf.mxu2  ;;  %1436 = vmatpush.xpose.msra.mxu3 %v351_v17 }
  0xea   :  { %v867_v14 = vadd.f32 %v866_v13, %v802_v9 }
  0xeb   :  { %v931_v15 = vpop.f32.mrf.mxu3  ;;  %v739_v18 = vpop.f32.mrf.mxu0 }
  0xec   :  { %v740_v21 = vadd.f32 %v739_v18, %v5072_v16  ;;  %v5085_v22 = vadd.f32 %v931_v15, %v867_v14  ;;  %v350_v14 = vld [vmem:[#allocation5 + $0x510] sm:$0xff]  ;;  %v348_v15 = vld [vmem:[#allocation5 + $0x500] sm:$0xff] }
  0xed   :  { %v804_v23 = vpop.f32.mrf.mxu1  ;;  %1371 = vmatpush.xpose.msra.mxu2 %v350_v14  ;;  %1241 = vmatpush.xpose.msra.mxu0 %v348_v15  ;;  %v152_v14 = vld [vmem:[#allocation2 + $0x2e0] sm:$0xff]  ;;  %v154_v15 = vld [vmem:[#allocation2 + $0x2f0] sm:$0xff] }
  0xee   :  { %v805_v26 = vadd.f32 %v804_v23, %v740_v21  ;;  %998 = vmatmul.f32.gmra.mxu0 %v96_v19  ;;  %1128 = vmatmul.f32.gmra.mxu2 %v98_v20  ;;  %v349_v21 = vld [vmem:[#allocation5 + $0x508] sm:$0xff] }
  0xef   :  { %1306 = vmatpush.xpose.msra.mxu1 %v349_v21  ;;  %v155_v21 = vld [vmem:[#allocation2 + $0x2f8] sm:$0xff] }
  0xf0   :  { %1063 = vmatmul.f32.gmra.mxu1 %v97_v24  ;;  %1193 = vmatmul.f32.gmra.mxu3 %v99_v25  ;;  %v128_v24 = vld [vmem:[#allocation2 + $0x220] sm:$0xff]  ;;  %v130_v25 = vld [vmem:[#allocation2 + $0x230] sm:$0xff] }
  0xf1   :  { %v869_v30 = vpop.f32.mrf.mxu2  ;;  %1242 = vmatpush.xpose.msra.mxu0 %v340_v33  ;;  %v160_v33 = vld [vmem:[#allocation2 + $0x320] sm:$0xff] }
  0xf2   :  { %v870_v31 = vadd.f32 %v869_v30, %v805_v26  ;;  %v131_v30 = vld [vmem:[#allocation2 + $0x238] sm:$0xff] }
  0xf3   :  { %v934_v32 = vpop.f32.mrf.mxu3  ;;  %v742_v34 = vpop.f32.mrf.mxu0 }
  0xf4   :  { %v743_v38 = vadd.f32 %v742_v34, %v5072_v16  ;;  %v5088_v39 = vadd.f32 %v934_v32, %v870_v31  ;;  %v342_v32 = vld [vmem:[#allocation5 + $0x4d0] sm:$0xff]  ;;  %v343_v34 = vld [vmem:[#allocation5 + $0x4d8] sm:$0xff] }
  0xf5   :  { %v807_v40 = vpop.f32.mrf.mxu1  ;;  %1372 = vmatpush.xpose.msra.mxu2 %v342_v32  ;;  %1437 = vmatpush.xpose.msra.mxu3 %v343_v34  ;;  %v162_v34 = vld [vmem:[#allocation2 + $0x330] sm:$0xff] }
  0xf6   :  { %v808_v43 = vadd.f32 %v807_v40, %v743_v38  ;;  %1001 = vmatmul.f32.gmra.mxu0 %v104_v35  ;;  %1131 = vmatmul.f32.gmra.mxu2 %v106_v36  ;;  %v341_v40 = vld [vmem:[#allocation5 + $0x4c8] sm:$0xff] }
  0xf7   :  { %1307 = vmatpush.xpose.msra.mxu1 %v341_v40  ;;  %v161_v40 = vld [vmem:[#allocation2 + $0x328] sm:$0xff] }
  0xf8   :  { %1066 = vmatmul.f32.gmra.mxu1 %v105_v41  ;;  %1196 = vmatmul.f32.gmra.mxu3 %v107_v42  ;;  %v136_v42 = vld [vmem:[#allocation2 + $0x260] sm:$0xff] }
  0xf9   :  { %v872_v47 = vpop.f32.mrf.mxu2  ;;  %1373 = vmatpush.xpose.msra.mxu2 %v334_v50  ;;  %v441_v50 = vld [vmem:[#allocation5 + $0x7e8] sm:$0xff] }
  0xfa   :  { %v873_v48 = vadd.f32 %v872_v47, %v808_v43  ;;  %v138_v43 = vld [vmem:[#allocation2 + $0x270] sm:$0xff]  ;;  %v137_v47 = vld [vmem:[#allocation2 + $0x268] sm:$0xff] }
  0xfb   :  { %v937_v49 = vpop.f32.mrf.mxu3  ;;  %v745_v51 = vpop.f32.mrf.mxu0 }
  0xfc   :  { %v746_v55 = vadd.f32 %v745_v51, %v5072_v16  ;;  %v5091_v56 = vadd.f32 %v937_v49, %v873_v48  ;;  %v139_v48 = vld [vmem:[#allocation2 + $0x278] sm:$0xff]  ;;  %v332_v51 = vld [vmem:[#allocation5 + $0x480] sm:$0xff] }
  0xfd   :  { %v810_v57 = vpop.f32.mrf.mxu1  ;;  %1243 = vmatpush.xpose.msra.mxu0 %v332_v51 }
  0xfe   :  { %v811_v60 = vadd.f32 %v810_v57, %v746_v55  ;;  %1004 = vmatmul.f32.gmra.mxu0 %v112_v52  ;;  %1134 = vmatmul.f32.gmra.mxu2 %v114_v54  ;;  %v335_v52 = vld [vmem:[#allocation5 + $0x498] sm:$0xff] }
  0xff   :  { %1438 = vmatpush.xpose.msra.mxu3 %v335_v52  ;;  %v168_v52 = vld [vmem:[#allocation2 + $0x360] sm:$0xff] }
 0x100   :  { %1069 = vmatmul.f32.gmra.mxu1 %v113_v58  ;;  %1199 = vmatmul.f32.gmra.mxu3 %v115_v59  ;;  %v333_v58 = vld [vmem:[#allocation5 + $0x488] sm:$0xff] }
 0x101   :  { %v875_v0 = vpop.f32.mrf.mxu2  ;;  %1308 = vmatpush.xpose.msra.mxu1 %v333_v58 }
 0x102   :  { %v876_v1 = vadd.f32 %v875_v0, %v811_v60  ;;  %v144_v60 = vld [vmem:[#allocation2 + $0x2a0] sm:$0xff] }
 0x103   :  { %v940_v2 = vpop.f32.mrf.mxu3  ;;  %v748_v4 = vpop.f32.mrf.mxu0 }
 0x104   :  { %v749_v8 = vadd.f32 %v748_v4, %v5072_v16  ;;  %v5094_v9 = vadd.f32 %v940_v2, %v876_v1  ;;  %v145_v1 = vld [vmem:[#allocation2 + $0x2a8] sm:$0xff]  ;;  %v147_v2 = vld [vmem:[#allocation2 + $0x2b8] sm:$0xff]  ;;  %v326_v4 = vld [vmem:[#allocation5 + $0x450] sm:$0xff] }
 0x105   :  { %v813_v10 = vpop.f32.mrf.mxu1  ;;  %1374 = vmatpush.xpose.msra.mxu2 %v326_v4  ;;  %v178_v4 = vld [vmem:[#allocation2 + $0x3b0] sm:$0xff] }
 0x106   :  { %v814_v13 = vadd.f32 %v813_v10, %v749_v8  ;;  %1007 = vmatmul.f32.gmra.mxu0 %v120_v6  ;;  %1137 = vmatmul.f32.gmra.mxu2 %v122_v7  ;;  %v324_v6 = vld [vmem:[#allocation5 + $0x440] sm:$0xff]  ;;  %v327_v7 = vld [vmem:[#allocation5 + $0x458] sm:$0xff] }
 0x107   :  { %1244 = vmatpush.xpose.msra.mxu0 %v324_v6  ;;  %1439 = vmatpush.xpose.msra.mxu3 %v327_v7 }
 0x108   :  { %1072 = vmatmul.f32.gmra.mxu1 %v121_v11  ;;  %1202 = vmatmul.f32.gmra.mxu3 %v123_v12  ;;  %v325_v12 = vld [vmem:[#allocation5 + $0x448] sm:$0xff] }
 0x109   :  { %v878_v18 = vpop.f32.mrf.mxu2  ;;  %1309 = vmatpush.xpose.msra.mxu1 %v325_v12 }
 0x10a   :  { %v879_v19 = vadd.f32 %v878_v18, %v814_v13 }
 0x10b   :  { %v943_v20 = vpop.f32.mrf.mxu3  ;;  %v751_v23 = vpop.f32.mrf.mxu0 }
 0x10c   :  { %v752_v26 = vadd.f32 %v751_v23, %v5072_v16  ;;  %v5097_v27 = vadd.f32 %v943_v20, %v879_v19  ;;  %v153_v20 = vld [vmem:[#allocation2 + $0x2e8] sm:$0xff] }
 0x10d   :  { %v816_v28 = vpop.f32.mrf.mxu1 }
 0x10e   :  { %v817_v31 = vadd.f32 %v816_v28, %v752_v26  ;;  %1010 = vmatmul.f32.gmra.mxu0 %v128_v24  ;;  %1140 = vmatmul.f32.gmra.mxu2 %v130_v25  ;;  %v318_v24 = vld [vmem:[#allocation5 + $0x410] sm:$0xff]  ;;  %v316_v25 = vld [vmem:[#allocation5 + $0x400] sm:$0xff]  ;;  %v319_v26 = vld [vmem:[#allocation5 + $0x418] sm:$0xff] }
 0x10f   :  { %1375 = vmatpush.xpose.msra.mxu2 %v318_v24  ;;  %1245 = vmatpush.xpose.msra.mxu0 %v316_v25  ;;  %v185_v25 = vld [vmem:[#allocation2 + $0x3e8] sm:$0xff] }
 0x110   :  { %1075 = vmatmul.f32.gmra.mxu1 %v129_v29  ;;  %1205 = vmatmul.f32.gmra.mxu3 %v131_v30 }
 0x111   :  { %v881_v35 = vpop.f32.mrf.mxu2  ;;  %1440 = vmatpush.xpose.msra.mxu3 %v319_v26  ;;  %v187_v26 = vld [vmem:[#allocation2 + $0x3f8] sm:$0xff] }
 0x112   :  { %v882_v36 = vadd.f32 %v881_v35, %v817_v31  ;;  %v317_v31 = vld [vmem:[#allocation5 + $0x408] sm:$0xff] }
 0x113   :  { %v946_v38 = vpop.f32.mrf.mxu3  ;;  %v754_v41 = vpop.f32.mrf.mxu0  ;;  %1310 = vmatpush.xpose.msra.mxu1 %v317_v31 }
 0x114   :  { %v755_v44 = vadd.f32 %v754_v41, %v5072_v16  ;;  %v5100_v45 = vadd.f32 %v946_v38, %v882_v36  ;;  %v163_v41 = vld [vmem:[#allocation2 + $0x338] sm:$0xff] }
 0x115   :  { %v819_v46 = vpop.f32.mrf.mxu1 }
 0x116   :  { %v820_v49 = vadd.f32 %v819_v46, %v755_v44  ;;  %1013 = vmatmul.f32.gmra.mxu0 %v136_v42  ;;  %1143 = vmatmul.f32.gmra.mxu2 %v138_v43  ;;  %v442_v43 = vld [vmem:[#allocation5 + $0x7f0] sm:$0xff]  ;;  %v440_v44 = vld [vmem:[#allocation5 + $0x7e0] sm:$0xff]  ;;  %v443_v46 = vld [vmem:[#allocation5 + $0x7f8] sm:$0xff] }
 0x117   :  { %1620 = vmatpush.xpose.msrb.mxu2 %v442_v43  ;;  %1490 = vmatpush.xpose.msrb.mxu0 %v440_v44 }
 0x118   :  { %1078 = vmatmul.f32.gmra.mxu1 %v137_v47  ;;  %1208 = vmatmul.f32.gmra.mxu3 %v139_v48 }
 0x119   :  { %v884_v54 = vpop.f32.mrf.mxu2  ;;  %1685 = vmatpush.xpose.msrb.mxu3 %v443_v46  ;;  %1555 = vmatpush.xpose.msrb.mxu1 %v441_v50 }
 0x11a   :  { %v885_v55 = vadd.f32 %v884_v54, %v820_v49  ;;  %v170_v54 = vld [vmem:[#allocation2 + $0x370] sm:$0xff] }
 0x11b   :  { %v949_v57 = vpop.f32.mrf.mxu3  ;;  %v757_v59 = vpop.f32.mrf.mxu0 }
 0x11c   :  { %v758_v62 = vadd.f32 %v757_v59, %v5072_v16  ;;  %v5103_v63 = vadd.f32 %v949_v57, %v885_v55  ;;  %v169_v59 = vld [vmem:[#allocation2 + $0x368] sm:$0xff] }
 0x11d   :  { %v822_v0 = vpop.f32.mrf.mxu1 }
 0x11e   :  { %v823_v3 = vadd.f32 %v822_v0, %v758_v62  ;;  %1016 = vmatmul.f32.gmra.mxu0 %v144_v60  ;;  %1146 = vmatmul.f32.gmra.mxu2 %v146_v61  ;;  %v171_v60 = vld [vmem:[#allocation2 + $0x378] sm:$0xff] }
 0x120   :  { %1081 = vmatmul.f32.gmra.mxu1 %v145_v1  ;;  %1211 = vmatmul.f32.gmra.mxu3 %v147_v2 }
 0x121   :  { %v887_v8 = vpop.f32.mrf.mxu2 }
 0x122   :  { %v888_v10 = vadd.f32 %v887_v8, %v823_v3  ;;  %v176_v3 = vld [vmem:[#allocation2 + $0x3a0] sm:$0xff] }
 0x123   :  { %v952_v11 = vpop.f32.mrf.mxu3  ;;  %v760_v13 = vpop.f32.mrf.mxu0 }
 0x124   :  { %v761_v17 = vadd.f32 %v760_v13, %v5072_v16  ;;  %v5106_v18 = vadd.f32 %v952_v11, %v888_v10  ;;  %v177_v10 = vld [vmem:[#allocation2 + $0x3a8] sm:$0xff]  ;;  %v179_v11 = vld [vmem:[#allocation2 + $0x3b8] sm:$0xff] }
 0x125   :  { %v825_v19 = vpop.f32.mrf.mxu1 }
 0x126   :  { %v826_v23 = vadd.f32 %v825_v19, %v761_v17  ;;  %1019 = vmatmul.f32.gmra.mxu0 %v152_v14  ;;  %1149 = vmatmul.f32.gmra.mxu2 %v154_v15  ;;  %v184_v19 = vld [vmem:[#allocation2 + $0x3e0] sm:$0xff] }
 0x128   :  { %1084 = vmatmul.f32.gmra.mxu1 %v153_v20  ;;  %1214 = vmatmul.f32.gmra.mxu3 %v155_v21  ;;  %v186_v20 = vld [vmem:[#allocation2 + $0x3f0] sm:$0xff] }
 0x129   :  { %v890_v28 = vpop.f32.mrf.mxu2 }
 0x12a   :  { %v891_v29 = vadd.f32 %v890_v28, %v826_v23 }
 0x12b   :  { %v955_v30 = vpop.f32.mrf.mxu3  ;;  %v763_v32 = vpop.f32.mrf.mxu0 }
 0x12c   :  { %v764_v35 = vadd.f32 %v763_v32, %v5072_v16  ;;  %v5109_v36 = vadd.f32 %v955_v30, %v891_v29 }
 0x12d   :  { %v828_v38 = vpop.f32.mrf.mxu1 }
 0x12e   :  { %v829_v42 = vadd.f32 %v828_v38, %v764_v35  ;;  %1022 = vmatmul.f32.gmra.mxu0 %v160_v33  ;;  %1152 = vmatmul.f32.gmra.mxu2 %v162_v34  ;;  %v4547_v38 = vld [vmem:[#allocation2 + $0x10] sm:$0xff] }
 0x130   :  { %1087 = vmatmul.f32.gmra.mxu1 %v161_v40  ;;  %1217 = vmatmul.f32.gmra.mxu3 %v163_v41  ;;  %v4548_v40 = vld [vmem:[#allocation2 + $0x8] sm:$0xff]  ;;  %v4549_v41 = vld [vmem:[#allocation2 + $0x18] sm:$0xff] }
 0x131   :  { %v893_v47 = vpop.f32.mrf.mxu2 }
 0x132   :  { %v894_v48 = vadd.f32 %v893_v47, %v829_v42 }
 0x133   :  { %v958_v49 = vpop.f32.mrf.mxu3  ;;  %v766_v51 = vpop.f32.mrf.mxu0 }
 0x134   :  { %v767_v55 = vadd.f32 %v766_v51, %v5072_v16  ;;  %v5112_v57 = vadd.f32 %v958_v49, %v894_v48  ;;  %v4550_v51 = vld [vmem:[#allocation2 + $0x40] sm:$0xff] }
 0x135   :  { %v831_v58 = vpop.f32.mrf.mxu1 }
 0x136   :  { %v832_v61 = vadd.f32 %v831_v58, %v767_v55  ;;  %1025 = vmatmul.f32.gmra.mxu0 %v168_v52  ;;  %1155 = vmatmul.f32.gmra.mxu2 %v170_v54  ;;  %v4551_v52 = vld [vmem:[#allocation2 + $0x50] sm:$0xff]  ;;  %v432_v55 = vld [vmem:[#allocation5 + $0x7a0] sm:$0xff]  ;;  %v435_v58 = vld [vmem:[#allocation5 + $0x7b8] sm:$0xff] }
 0x137   :  { %v434_v54 = vld [vmem:[#allocation5 + $0x7b0] sm:$0xff]  ;;  %1491 = vmatpush.xpose.msrb.mxu0 %v432_v55  ;;  %1686 = vmatpush.xpose.msrb.mxu3 %v435_v58 }
 0x138   :  { %1090 = vmatmul.f32.gmra.mxu1 %v169_v59  ;;  %1220 = vmatmul.f32.gmra.mxu3 %v171_v60  ;;  %v4552_v59 = vld [vmem:[#allocation2 + $0x48] sm:$0xff] }
 0x139   :  { %v896_v62 = vpop.f32.mrf.mxu2  ;;  %1621 = vmatpush.xpose.msrb.mxu2 %v434_v54  ;;  %v433_v60 = vld [vmem:[#allocation5 + $0x7a8] sm:$0xff] }
 0x13a   :  { %v897_v0 = vadd.f32 %v896_v62, %v832_v61  ;;  %v4553_v62 = vld [vmem:[#allocation2 + $0x58] sm:$0xff]  ;;  %1556 = vmatpush.xpose.msrb.mxu1 %v433_v60 }
 0x13b   :  { %v961_v1 = vpop.f32.mrf.mxu3  ;;  %v769_v2 = vpop.f32.mrf.mxu0 }
 0x13c   :  { %v770_v6 = vadd.f32 %v769_v2, %v5072_v16  ;;  %v5115_v7 = vadd.f32 %v961_v1, %v897_v0 }
 0x13d   :  { %v834_v8 = vpop.f32.mrf.mxu1 }
 0x13e   :  { %v835_v12 = vadd.f32 %v834_v8, %v770_v6  ;;  %1028 = vmatmul.f32.gmra.mxu0 %v176_v3  ;;  %1158 = vmatmul.f32.gmra.mxu2 %v178_v4 }
 0x140   :  { %1093 = vmatmul.f32.gmra.mxu1 %v177_v10  ;;  %1223 = vmatmul.f32.gmra.mxu3 %v179_v11  ;;  %v4554_v11 = vld [vmem:[#allocation2 + $0x80] sm:$0xff] }
 0x141   :  { %v899_v13 = vpop.f32.mrf.mxu2 }
 0x142   :  { %v900_v14 = vadd.f32 %v899_v13, %v835_v12  ;;  %v4555_v12 = vld [vmem:[#allocation2 + $0x90] sm:$0xff] }
 0x143   :  { %v964_v15 = vpop.f32.mrf.mxu3  ;;  %v772_v17 = vpop.f32.mrf.mxu0  ;;  %v426_v13 = vld [vmem:[#allocation5 + $0x770] sm:$0xff] }
 0x144   :  { %v773_v21 = vadd.f32 %v772_v17, %v5072_v16  ;;  %v5118_v23 = vadd.f32 %v964_v15, %v900_v14  ;;  %v4546_v16 = vld [vmem:[#allocation2] sm:$0xff]  ;;  %v427_v15 = vld [vmem:[#allocation5 + $0x778] sm:$0xff]  ;;  %1622 = vmatpush.xpose.msrb.mxu2 %v426_v13 }
 0x145   :  { %v837_v24 = vpop.f32.mrf.mxu1  ;;  %v424_v14 = vld [vmem:[#allocation5 + $0x760] sm:$0xff]  ;;  %1687 = vmatpush.xpose.msrb.mxu3 %v427_v15  ;;  %v409_v15 = vld [vmem:[#allocation5 + $0x6e8] sm:$0xff] }
 0x146   :  { %v838_v28 = vadd.f32 %v837_v24, %v773_v21  ;;  %1031 = vmatmul.f32.gmra.mxu0 %v184_v19  ;;  %1161 = vmatmul.f32.gmra.mxu2 %v186_v20  ;;  %v4556_v19 = vld [vmem:[#allocation2 + $0x88] sm:$0xff]  ;;  %v4557_v21 = vld [vmem:[#allocation2 + $0x98] sm:$0xff] }
 0x147   :  { %v425_v20 = vld [vmem:[#allocation5 + $0x768] sm:$0xff]  ;;  %1492 = vmatpush.xpose.msrb.mxu0 %v424_v14 }
 0x148   :  { %1096 = vmatmul.f32.gmra.mxu1 %v185_v25  ;;  %1226 = vmatmul.f32.gmra.mxu3 %v187_v26  ;;  %v4564_v14 = vld [vmem:[#allocation2 + $0x108] sm:$0xff] }
 0x149   :  { %v902_v29 = vpop.f32.mrf.mxu2  ;;  %1557 = vmatpush.xpose.msrb.mxu1 %v425_v20 }
 0x14a   :  { %v903_v30 = vadd.f32 %v902_v29, %v838_v28 }
 0x14b   :  { %v967_v31 = vpop.f32.mrf.mxu3  ;;  %v987_v32 = vpop.f32.mrf.mxu0 }
 0x14c   :  { %v5120_v33 = vadd.f32 %v967_v31, %v903_v30  ;;  %v988_v34 = vadd.f32 %v987_v32, %v5076_v37 }
 0x14d   :  { %v1052_v35 = vpop.f32.mrf.mxu1 }
 0x14e   :  { %1246 = vmatmul.f32.vlgmr.msra.gmra.mxu0 %v4546_v16  ;;  %1376 = vmatmul.f32.vlgmr.msra.gmra.mxu2 %v4547_v38  ;;  %v1053_v42 = vadd.f32 %v1052_v35, %v988_v34  ;;  %v4558_v35 = vld [vmem:[#allocation2 + $0xc0] sm:$0xff]  ;;  %v4559_v16 = vld [vmem:[#allocation2 + $0xd0] sm:$0xff] }
 0x14f   :  { %v418_v38 = vld [vmem:[#allocation5 + $0x730] sm:$0xff] }
 0x150   :  { %1311 = vmatmul.f32.vlgmr.msra.gmra.mxu1 %v4548_v40  ;;  %1441 = vmatmul.f32.vlgmr.msra.gmra.mxu3 %v4549_v41  ;;  %v416_v40 = vld [vmem:[#allocation5 + $0x720] sm:$0xff]  ;;  %v419_v41 = vld [vmem:[#allocation5 + $0x738] sm:$0xff] }
 0x151   :  { %v1117_v43 = vpop.f32.mrf.mxu2  ;;  %1623 = vmatpush.xpose.msrb.mxu2 %v418_v38  ;;  %1493 = vmatpush.xpose.msrb.mxu0 %v416_v40 }
 0x152   :  { %v1118_v44 = vadd.f32 %v1117_v43, %v1053_v42  ;;  %1688 = vmatpush.xpose.msrb.mxu3 %v419_v41 }
 0x153   :  { %v1182_v46 = vpop.f32.mrf.mxu3  ;;  %v990_v47 = vpop.f32.mrf.mxu0 }
 0x154   :  { %v991_v48 = vadd.f32 %v990_v47, %v5079_v53  ;;  %v5124_v49 = vadd.f32 %v1182_v46, %v1118_v44  ;;  %v4560_v44 = vld [vmem:[#allocation2 + $0xc8] sm:$0xff] }
 0x155   :  { %v1055_v50 = vpop.f32.mrf.mxu1 }
 0x156   :  { %v4218_v37 = vmul.f32 -1.442695, %v5124_v49  ;;  %1249 = vmatmul.f32.gmra.mxu0 %v4550_v51  ;;  %1379 = vmatmul.f32.gmra.mxu2 %v4551_v52  ;;  %v1056_v61 = vadd.f32 %v1055_v50, %v991_v48  ;;  %v4561_v48 = vld [vmem:[#allocation2 + $0xd8] sm:$0xff] }
 0x158   :  { %1314 = vmatmul.f32.gmra.mxu1 %v4552_v59  ;;  %4290 = vpow2.f32 %v4218_v37  ;;  %1444 = vmatmul.f32.gmra.mxu3 %v4553_v62 }
 0x159   :  { %v1120_v53 = vpop.f32.mrf.mxu2 }
 0x15a   :  { %v1121_v0 = vadd.f32 %v1120_v53, %v1056_v61 }
 0x15b   :  { %v1185_v1 = vpop.f32.mrf.mxu3  ;;  %v993_v2 = vpop.f32.mrf.mxu0 }
 0x15c   :  { %v994_v3 = vadd.f32 %v993_v2, %v5082_v5  ;;  %v5128_v4 = vadd.f32 %v1185_v1, %v1121_v0  ;;  %v4562_v2 = vld [vmem:[#allocation2 + $0x100] sm:$0xff] }
 0x15d   :  { %v1058_v6 = vpop.f32.mrf.mxu1 }
 0x15e   :  { %v4291_v8 = vpop.eup %4290  ;;  %v4222_v10 = vmul.f32 -1.442695, %v5128_v4  ;;  %1252 = vmatmul.f32.gmra.mxu0 %v4554_v11  ;;  %1382 = vmatmul.f32.gmra.mxu2 %v4555_v12  ;;  %v1059_v5 = vadd.f32 %v1058_v6, %v994_v3  ;;  %v4563_v3 = vld [vmem:[#allocation2 + $0x110] sm:$0xff] }
 0x15f   :  { %v5131_v17 = vadd.f32 1.0, %v4291_v8  ;;  %v410_v6 = vld [vmem:[#allocation5 + $0x6f0] sm:$0xff]  ;;  %v408_v8 = vld [vmem:[#allocation5 + $0x6e0] sm:$0xff] }
 0x160   :  { %1317 = vmatmul.f32.gmra.mxu1 %v4556_v19  ;;  %4292 = vpow2.f32 %v4222_v10  ;;  %1447 = vmatmul.f32.gmra.mxu3 %v4557_v21  ;;  %v411_v10 = vld [vmem:[#allocation5 + $0x6f8] sm:$0xff] }
 0x161   :  { %4294 = vrcp.f32 %v5131_v17  ;;  %v1123_v24 = vpop.f32.mrf.mxu2  ;;  %v3055_v54 = vand.u32 2147483647, %v5131_v17  ;;  %v3057_v55 = vand.u32 2147483648, %v5131_v17  ;;  %vm3051_vm1 = vweird.f32 %v5131_v17  ;;  %1624 = vmatpush.xpose.msrb.mxu2 %v410_v6  ;;  %1494 = vmatpush.xpose.msrb.mxu0 %v408_v8 }
 0x162   :  { %v1124_v25 = vadd.f32 %v1123_v24, %v1059_v5  ;;  %v4565_v5 = vld [vmem:[#allocation2 + $0x118] sm:$0xff]  ;;  %1689 = vmatpush.xpose.msrb.mxu3 %v411_v10 }
 0x163   :  { %v1188_v26 = vpop.f32.mrf.mxu3  ;;  %v996_v28 = vpop.f32.mrf.mxu0  ;;  %vm3056_vm3 = vcmp.eq.f32.partialorder %v3055_v54, 8.507059e+37  ;;  %v3058_v12 = vor.u32 1.1754944e-38, %v3057_v55  ;;  %v400_v54 = vld [vmem:[#allocation5 + $0x6a0] sm:$0xff]  ;;  %v403_v55 = vld [vmem:[#allocation5 + $0x6b8] sm:$0xff] }
 0x164   :  { %v997_v29 = vadd.f32 %v996_v28, %v5085_v22  ;;  %v5135_v30 = vadd.f32 %v1188_v26, %v1124_v25  ;;  %v417_v22 = vld [vmem:[#allocation5 + $0x728] sm:$0xff] }
 0x165   :  { %v1061_v31 = vpop.f32.mrf.mxu1  ;;  %1558 = vmatpush.xpose.msrb.mxu1 %v417_v22  ;;  %v4567_v22 = vld [vmem:[#allocation2 + $0x150] sm:$0xff]  ;;  %1495 = vmatpush.xpose.msrb.mxu0 %v400_v54  ;;  %v4574_v54 = vld [vmem:[#allocation2 + $0x1c0] sm:$0xff] }
 0x166   :  { %v4293_v32 = vpop.eup %4292  ;;  %v4226_v34 = vmul.f32 -1.442695, %v5135_v30  ;;  %1255 = vmatmul.f32.gmra.mxu0 %v4558_v35  ;;  %1385 = vmatmul.f32.gmra.mxu2 %v4559_v16  ;;  %v1062_v47 = vadd.f32 %v1061_v31, %v997_v29 }
 0x167   :  { %v4295_v42 = vpop.eup %4294  ;;  %v5138_v43 = vadd.f32 1.0, %v4293_v32  ;;  %1690 = vmatpush.xpose.msrb.mxu3 %v403_v55  ;;  %v4575_v55 = vld [vmem:[#allocation2 + $0x1d0] sm:$0xff] }
 0x168   :  { %1320 = vmatmul.f32.gmra.mxu1 %v4560_v44  ;;  %v3047_v46 = vmul.f32 %v4295_v42, %v5131_v17  ;;  %4296 = vpow2.f32 %v4226_v34  ;;  %1450 = vmatmul.f32.gmra.mxu3 %v4561_v48  ;;  %vm3052_vm0 = vweird.f32 %v4295_v42 }
 0x169   :  { %4298 = vrcp.f32 %v5138_v43  ;;  %v1126_v50 = vpop.f32.mrf.mxu2  ;;  %vm5150_vm2 = vmor %vm3051_vm1, %vm3052_vm0  ;;  %1559 = vmatpush.xpose.msrb.mxu1 %v409_v15  ;;  %v3117_v31 = vand.u32 2147483648, %v5138_v43  ;;  %v3115_v16 = vand.u32 2147483647, %v5138_v43  ;;  %vm3111_vm5 = vweird.f32 %v5138_v43 }
 0x16a   :  { %v3048_v37 = vsub.f32 1.0, %v3047_v46  ;;  %v1127_v51 = vadd.f32 %v1126_v50, %v1062_v47 }
 0x16b   :  { %v1191_v52 = vpop.f32.mrf.mxu3  ;;  %v999_v58 = vpop.f32.mrf.mxu0  ;;  %v3118_v47 = vor.u32 1.1754944e-38, %v3117_v31  ;;  %vm3116_vm7 = vcmp.eq.f32.partialorder %v3115_v16, 8.507059e+37 }
 0x16c   :  { %v3049_v59 = vmul.f32 %v4295_v42, %v3048_v37  ;;  %v1000_v60 = vadd.f32 %v999_v58, %v5088_v39  ;;  %v5145_v61 = vadd.f32 %v1191_v52, %v1127_v51  ;;  %v4569_v52 = vld [vmem:[#allocation2 + $0x158] sm:$0xff] }
 0x16d   :  { %v1064_v62 = vpop.f32.mrf.mxu1 }
 0x16e   :  { %v4297_v53 = vpop.eup %4296  ;;  %v3050_v0 = vadd.f32 %v4295_v42, %v3049_v59  ;;  %v4230_v1 = vmul.f32 -1.442695, %v5145_v61  ;;  %1258 = vmatmul.f32.gmra.mxu0 %v4562_v2  ;;  %1388 = vmatmul.f32.gmra.mxu2 %v4563_v3  ;;  %v1065_v20 = vadd.f32 %v1064_v62, %v1000_v60  ;;  %v401_v62 = vld [vmem:[#allocation5 + $0x6a8] sm:$0xff] }
 0x16f   :  { %v4299_v11 = vpop.eup %4298  ;;  %v5154_v13 = vadd.f32 1.0, %v4297_v53  ;;  %1560 = vmatpush.xpose.msrb.mxu1 %v401_v62 }
 0x170   :  { %1323 = vmatmul.f32.gmra.mxu1 %v4564_v14  ;;  %v3054_v17 = vsel %vm5150_vm2, %v4295_v42, %v3050_v0  ;;  %v3107_v19 = vmul.f32 %v4299_v11, %v5138_v43  ;;  %4300 = vpow2.f32 %v4230_v1  ;;  %1453 = vmatmul.f32.gmra.mxu3 %v4565_v5  ;;  %vm3112_vm4 = vweird.f32 %v4299_v11  ;;  %v402_v43 = vld [vmem:[#allocation5 + $0x6b0] sm:$0xff] }
 0x171   :  { %v3059_v21 = vsel %vm3056_vm3, %v3058_v12, %v3054_v17  ;;  %4302 = vrcp.f32 %v5154_v13  ;;  %v1129_v24 = vpop.f32.mrf.mxu2  ;;  %vm3113_vm6 = vmor %vm3111_vm5, %vm3112_vm4  ;;  %1625 = vmatpush.xpose.msrb.mxu2 %v402_v43  ;;  %v3177_v2 = vand.u32 2147483648, %v5154_v13  ;;  %vm3171_vm9 = vweird.f32 %v5154_v13  ;;  %v4570_v17 = vld [vmem:[#allocation2 + $0x180] sm:$0xff] }
 0x172   :  { %v4006_v25 = vmul.f32 %v3059_v21, %v5124_v49  ;;  %v3108_v26 = vsub.f32 1.0, %v3107_v19  ;;  %v1130_v28 = vadd.f32 %v1129_v24, %v1065_v20  ;;  %v4566_v49 = vld [vmem:[#allocation2 + $0x140] sm:$0xff]  ;;  %v4571_v19 = vld [vmem:[#allocation2 + $0x190] sm:$0xff] }
 0x173   :  { %v1194_v29 = vpop.f32.mrf.mxu3  ;;  %v1002_v32 = vpop.f32.mrf.mxu0  ;;  %v3178_v5 = vor.u32 1.1754944e-38, %v3177_v2  ;;  %v394_v21 = vld [vmem:[#allocation5 + $0x670] sm:$0xff]  ;;  %v392_v24 = vld [vmem:[#allocation5 + $0x660] sm:$0xff]  ;;  %v4577_v2 = vld [vmem:[#allocation2 + $0x1d8] sm:$0xff] }
 0x174   :  { %v4070_v34 = vmul.f32 2.0, %v4006_v25  ;;  %v3109_v35 = vmul.f32 %v4299_v11, %v3108_v26  ;;  %v1003_v40 = vadd.f32 %v1002_v32, %v5091_v56  ;;  %v5164_v41 = vadd.f32 %v1194_v29, %v1130_v28  ;;  %v4568_v56 = vld [vmem:[#allocation2 + $0x148] sm:$0xff]  ;;  %v395_v25 = vld [vmem:[#allocation5 + $0x678] sm:$0xff]  ;;  %1496 = vmatpush.xpose.msrb.mxu0 %v392_v24 }
 0x175   :  { %v1067_v38 = vpop.f32.mrf.mxu1  ;;  %1626 = vmatpush.xpose.msrb.mxu2 %v394_v21  ;;  %v4573_v32 = vld [vmem:[#allocation2 + $0x198] sm:$0xff]  ;;  %1691 = vmatpush.xpose.msrb.mxu3 %v395_v25  ;;  %v4578_v25 = vld [vmem:[#allocation2 + $0x200] sm:$0xff] }
 0x176   :  { %v4301_v42 = vpop.eup %4300  ;;  %4134 = vst [vmem:[#allocation8] sm:$0xff] %v4070_v34  ;;  %v3110_v44 = vadd.f32 %v4299_v11, %v3109_v35  ;;  %1261 = vmatmul.f32.gmra.mxu0 %v4566_v49  ;;  %1391 = vmatmul.f32.gmra.mxu2 %v4567_v22  ;;  %v4234_v50 = vmul.f32 -1.442695, %v5164_v41  ;;  %v1068_v59 = vadd.f32 %v1067_v38, %v1003_v40  ;;  %v393_v34 = vld [vmem:[#allocation5 + $0x668] sm:$0xff] }
 0x177   :  { %v5167_v46 = vpop.eup %4302  ;;  %v5169_v48 = vadd.f32 1.0, %v4301_v42  ;;  %1561 = vmatpush.xpose.msrb.mxu1 %v393_v34  ;;  %v378_v34 = vld [vmem:[#allocation5 + $0x5f0] sm:$0xff] }
 0x178   :  { %1326 = vmatmul.f32.gmra.mxu1 %v4568_v56  ;;  %v3114_v37 = vsel %vm3113_vm6, %v4299_v11, %v3110_v44  ;;  %v3167_v51 = vmul.f32 %v5167_v46, %v5154_v13  ;;  %1456 = vmatmul.f32.gmra.mxu3 %v4569_v52  ;;  %vm3172_vm8 = vweird.f32 %v5167_v46  ;;  %v3175_v11 = vand.u32 2147483647, %v5154_v13  ;;  %v4572_v13 = vld [vmem:[#allocation2 + $0x188] sm:$0xff] }
 0x179   :  { %v3119_v58 = vsel %vm3116_vm7, %v3118_v47, %v3114_v37  ;;  %4304 = vrcp.f32 %v5169_v48  ;;  %v1132_v60 = vpop.f32.mrf.mxu2  ;;  %vm5185_vm10 = vmor %vm3171_vm9, %vm3172_vm8  ;;  %v3235_v22 = vand.u32 2147483647, %v5169_v48  ;;  %vm3231_vm13 = vweird.f32 %v5169_v48 }
 0x17a   :  { %v4010_v53 = vmul.f32 %v3119_v58, %v5128_v4  ;;  %v3168_v0 = vsub.f32 1.0, %v3167_v51  ;;  %4306 = vpow2.f32 %v4234_v50  ;;  %v1133_v3 = vadd.f32 %v1132_v60, %v1068_v59  ;;  %v386_v58 = vld [vmem:[#allocation5 + $0x630] sm:$0xff]  ;;  %v384_v59 = vld [vmem:[#allocation5 + $0x620] sm:$0xff]  ;;  %v387_v60 = vld [vmem:[#allocation5 + $0x638] sm:$0xff] }
 0x17b   :  { %v1197_v1 = vpop.f32.mrf.mxu3  ;;  %v1005_v6 = vpop.f32.mrf.mxu0  ;;  %vm3176_vm11 = vcmp.eq.f32.partialorder %v3175_v11, 8.507059e+37  ;;  %1627 = vmatpush.xpose.msrb.mxu2 %v386_v58  ;;  %vm3236_vm15 = vcmp.eq.f32.partialorder %v3235_v22, 8.507059e+37  ;;  %1497 = vmatpush.xpose.msrb.mxu0 %v384_v59 }
 0x17c   :  { %v4074_v8 = vmul.f32 2.0, %v4010_v53  ;;  %v3169_v10 = vmul.f32 %v5167_v46, %v3168_v0  ;;  %v1006_v39 = vadd.f32 %v1005_v6, %v5094_v9  ;;  %v5182_v4 = vadd.f32 %v1197_v1, %v1133_v3  ;;  %v385_v0 = vld [vmem:[#allocation5 + $0x628] sm:$0xff]  ;;  %1692 = vmatpush.xpose.msrb.mxu3 %v387_v60 }
 0x17d   :  { %v1070_v12 = vpop.f32.mrf.mxu1  ;;  %1562 = vmatpush.xpose.msrb.mxu1 %v385_v0 }
 0x17e   :  { %4138 = vst [vmem:[#allocation8 + $0x20] sm:$0xff] %v4074_v8  ;;  %v3170_v14 = vadd.f32 %v5167_v46, %v3169_v10  ;;  %1264 = vmatmul.f32.gmra.mxu0 %v4570_v17  ;;  %1394 = vmatmul.f32.gmra.mxu2 %v4571_v19  ;;  %v4238_v9 = vmul.f32 -1.442695, %v5182_v4  ;;  %v1071_v31 = vadd.f32 %v1070_v12, %v1006_v39 }
 0x17f   :  { %v5189_v20 = vpop.eup %4304  ;;  %1628 = vmatpush.xpose.msrb.mxu2 %v378_v34 }
 0x180   :  { %1329 = vmatmul.f32.gmra.mxu1 %v4572_v13  ;;  %v4307_v26 = vpop.eup %4306  ;;  %v3174_v28 = vsel %vm5185_vm10, %v5167_v46, %v3170_v14  ;;  %v3227_v29 = vmul.f32 %v5189_v20, %v5169_v48  ;;  %1459 = vmatmul.f32.gmra.mxu3 %v4573_v32  ;;  %4308 = vpow2.f32 %v4238_v9  ;;  %v3237_v46 = vand.u32 2147483648, %v5169_v48 }
 0x181   :  { %v3179_v35 = vsel %vm3176_vm11, %v3178_v5, %v3174_v28  ;;  %v5197_v16 = vadd.f32 1.0, %v4307_v26  ;;  %v1135_v38 = vpop.f32.mrf.mxu2  ;;  %vm3232_vm12 = vweird.f32 %v5189_v20  ;;  %v4579_v26 = vld [vmem:[#allocation2 + $0x210] sm:$0xff] }
 0x182   :  { %v4014_v40 = vmul.f32 %v3179_v35, %v5135_v30  ;;  %v3228_v42 = vsub.f32 1.0, %v3227_v29  ;;  %v1136_v44 = vadd.f32 %v1135_v38, %v1071_v31  ;;  %vm3233_vm14 = vmor %vm3231_vm13, %vm3232_vm12  ;;  %v3238_v53 = vor.u32 1.1754944e-38, %v3237_v46  ;;  %v4580_v31 = vld [vmem:[#allocation2 + $0x208] sm:$0xff]  ;;  %v4581_v35 = vld [vmem:[#allocation2 + $0x218] sm:$0xff] }
 0x183   :  { %v1200_v49 = vpop.f32.mrf.mxu3  ;;  %4310 = vrcp.f32 %v5197_v16  ;;  %v1008_v47 = vpop.f32.mrf.mxu0  ;;  %v3297_v5 = vand.u32 2147483648, %v5197_v16  ;;  %vm3291_vm1 = vweird.f32 %v5197_v16  ;;  %v376_v38 = vld [vmem:[#allocation5 + $0x5e0] sm:$0xff]  ;;  %v377_v46 = vld [vmem:[#allocation5 + $0x5e8] sm:$0xff] }
 0x184   :  { %v4078_v50 = vmul.f32 2.0, %v4014_v40  ;;  %v3229_v56 = vmul.f32 %v5189_v20, %v3228_v42  ;;  %v5205_v37 = vadd.f32 %v1200_v49, %v1136_v44  ;;  %v1009_v30 = vadd.f32 %v1008_v47, %v5097_v27  ;;  %v4576_v27 = vld [vmem:[#allocation2 + $0x1c8] sm:$0xff]  ;;  %v379_v40 = vld [vmem:[#allocation5 + $0x5f8] sm:$0xff]  ;;  %1498 = vmatpush.xpose.msrb.mxu0 %v376_v38  ;;  %1563 = vmatpush.xpose.msrb.mxu1 %v377_v46  ;;  %v4586_v46 = vld [vmem:[#allocation2 + $0x280] sm:$0xff] }
 0x185   :  { %v1073_v51 = vpop.f32.mrf.mxu1  ;;  %v3298_v44 = vor.u32 1.1754944e-38, %v3297_v5  ;;  %1693 = vmatpush.xpose.msrb.mxu3 %v379_v40  ;;  %v362_v5 = vld [vmem:[#allocation5 + $0x570] sm:$0xff] }
 0x186   :  { %4142 = vst [vmem:[#allocation8 + $0x40] sm:$0xff] %v4078_v50  ;;  %v3230_v43 = vadd.f32 %v5189_v20, %v3229_v56  ;;  %v4242_v52 = vmul.f32 -1.442695, %v5205_v37  ;;  %1267 = vmatmul.f32.gmra.mxu0 %v4574_v54  ;;  %1397 = vmatmul.f32.gmra.mxu2 %v4575_v55  ;;  %v4309_v62 = vpop.eup %4308  ;;  %v1074_v8 = vadd.f32 %v1073_v51, %v1009_v30 }
 0x187   :  { %v5214_v1 = vadd.f32 1.0, %v4309_v62 }
 0x188   :  { %1332 = vmatmul.f32.gmra.mxu1 %v4576_v27  ;;  %v3234_v48 = vsel %vm3233_vm14, %v5189_v20, %v3230_v43  ;;  %4312 = vpow2.f32 %v4242_v52  ;;  %1462 = vmatmul.f32.gmra.mxu3 %v4577_v2  ;;  %v368_v27 = vld [vmem:[#allocation5 + $0x5a0] sm:$0xff]  ;;  %v4583_v2 = vld [vmem:[#allocation2 + $0x250] sm:$0xff] }
 0x189   :  { %v4311_v3 = vpop.eup %4310  ;;  %v3239_v6 = vsel %vm3236_vm15, %v3238_v53, %v3234_v48  ;;  %v1138_v10 = vpop.f32.mrf.mxu2  ;;  %4314 = vrcp.f32 %v5214_v1  ;;  %v3357_v54 = vand.u32 2147483648, %v5214_v1  ;;  %v3355_v60 = vand.u32 2147483647, %v5214_v1  ;;  %v370_v53 = vld [vmem:[#allocation5 + $0x5b0] sm:$0xff]  ;;  %v4582_v48 = vld [vmem:[#allocation2 + $0x240] sm:$0xff]  ;;  %1499 = vmatpush.xpose.msrb.mxu0 %v368_v27 }
 0x18a   :  { %v4018_v11 = vmul.f32 %v3239_v6, %v5145_v61  ;;  %v3287_v39 = vmul.f32 %v4311_v3, %v5197_v16  ;;  %v1139_v14 = vadd.f32 %v1138_v10, %v1074_v8  ;;  %vm3292_vm0 = vweird.f32 %v4311_v3  ;;  %1629 = vmatpush.xpose.msrb.mxu2 %v370_v53  ;;  %v4584_v6 = vld [vmem:[#allocation2 + $0x248] sm:$0xff]  ;;  %v371_v8 = vld [vmem:[#allocation5 + $0x5b8] sm:$0xff]  ;;  %v346_v53 = vld [vmem:[#allocation5 + $0x4f0] sm:$0xff] }
 0x18b   :  { %v1203_v12 = vpop.f32.mrf.mxu3  ;;  %v1011_v15 = vpop.f32.mrf.mxu0  ;;  %v3295_v61 = vand.u32 2147483647, %v5197_v16  ;;  %vm5231_vm2 = vmor %vm3291_vm1, %vm3292_vm0  ;;  %vm3351_vm5 = vweird.f32 %v5214_v1  ;;  %v369_v10 = vld [vmem:[#allocation5 + $0x5a8] sm:$0xff]  ;;  %vm3356_vm7 = vcmp.eq.f32.partialorder %v3355_v60, 8.507059e+37  ;;  %1694 = vmatpush.xpose.msrb.mxu3 %v371_v8  ;;  %v344_v27 = vld [vmem:[#allocation5 + $0x4e0] sm:$0xff] }
 0x18c   :  { %v4082_v17 = vmul.f32 2.0, %v4018_v11  ;;  %v3288_v19 = vsub.f32 1.0, %v3287_v39  ;;  %v1012_v9 = vadd.f32 %v1011_v15, %v5100_v45  ;;  %v5221_v21 = vadd.f32 %v1203_v12, %v1139_v14  ;;  %v4585_v15 = vld [vmem:[#allocation2 + $0x258] sm:$0xff]  ;;  %1564 = vmatpush.xpose.msrb.mxu1 %v369_v10 }
 0x18d   :  { %v1076_v20 = vpop.f32.mrf.mxu1  ;;  %vm3296_vm3 = vcmp.eq.f32.partialorder %v3295_v61, 8.507059e+37  ;;  %v3358_v12 = vor.u32 1.1754944e-38, %v3357_v54  ;;  %v4589_v54 = vld [vmem:[#allocation2 + $0x298] sm:$0xff] }
 0x18e   :  { %v4313_v13 = vpop.eup %4312  ;;  %4146 = vst [vmem:[#allocation8 + $0x60] sm:$0xff] %v4082_v17  ;;  %v3289_v24 = vmul.f32 %v4311_v3, %v3288_v19  ;;  %1270 = vmatmul.f32.gmra.mxu0 %v4578_v25  ;;  %1400 = vmatmul.f32.gmra.mxu2 %v4579_v26  ;;  %v4246_v29 = vmul.f32 -1.442695, %v5221_v21  ;;  %v1077_v22 = vadd.f32 %v1076_v20, %v1012_v9  ;;  %v360_v9 = vld [vmem:[#allocation5 + $0x560] sm:$0xff] }
 0x18f   :  { %v5224_v28 = vadd.f32 1.0, %v4313_v13  ;;  %v5227_v32 = vpop.eup %4314  ;;  %1630 = vmatpush.xpose.msrb.mxu2 %v362_v5  ;;  %1500 = vmatpush.xpose.msrb.mxu0 %v360_v9  ;;  %v4590_v5 = vld [vmem:[#allocation2 + $0x2c0] sm:$0xff]  ;;  %v4591_v9 = vld [vmem:[#allocation2 + $0x2d0] sm:$0xff] }
 0x190   :  { %1335 = vmatmul.f32.gmra.mxu1 %v4580_v31  ;;  %v3290_v45 = vadd.f32 %v4311_v3, %v3289_v24  ;;  %1465 = vmatmul.f32.gmra.mxu3 %v4581_v35  ;;  %v3347_v49 = vmul.f32 %v5227_v32, %v5214_v1  ;;  %vm3352_vm4 = vweird.f32 %v5227_v32 }
 0x191   :  { %4316 = vrcp.f32 %v5224_v28  ;;  %v1141_v16 = vpop.f32.mrf.mxu2  ;;  %vm5255_vm6 = vmor %vm3351_vm5, %vm3352_vm4  ;;  %v3415_v35 = vand.u32 2147483647, %v5224_v28  ;;  %vm3411_vm9 = vweird.f32 %v5224_v28 }
 0x192   :  { %v3294_v47 = vsel %vm5231_vm2, %v4311_v3, %v3290_v45  ;;  %4318 = vpow2.f32 %v4246_v29  ;;  %v3348_v51 = vsub.f32 1.0, %v3347_v49  ;;  %v1142_v30 = vadd.f32 %v1141_v16, %v1077_v22  ;;  %v361_v45 = vld [vmem:[#allocation5 + $0x568] sm:$0xff]  ;;  %v352_v49 = vld [vmem:[#allocation5 + $0x520] sm:$0xff] }
 0x193   :  { %v1206_v50 = vpop.f32.mrf.mxu3  ;;  %v3299_v56 = vsel %vm3296_vm3, %v3298_v44, %v3294_v47  ;;  %v1014_v43 = vpop.f32.mrf.mxu0  ;;  %v3417_v29 = vand.u32 2147483648, %v5224_v28  ;;  %1565 = vmatpush.xpose.msrb.mxu1 %v361_v45  ;;  %v354_v44 = vld [vmem:[#allocation5 + $0x530] sm:$0xff]  ;;  %vm3416_vm11 = vcmp.eq.f32.partialorder %v3415_v35, 8.507059e+37  ;;  %1501 = vmatpush.xpose.msrb.mxu0 %v352_v49 }
 0x194   :  { %v4022_v52 = vmul.f32 %v3299_v56, %v5164_v41  ;;  %v1015_v55 = vadd.f32 %v1014_v43, %v5103_v63  ;;  %v3349_v59 = vmul.f32 %v5227_v32, %v3348_v51  ;;  %v5246_v62 = vadd.f32 %v1206_v50, %v1142_v30  ;;  %v4587_v47 = vld [vmem:[#allocation2 + $0x290] sm:$0xff]  ;;  %v4588_v51 = vld [vmem:[#allocation2 + $0x288] sm:$0xff]  ;;  %1631 = vmatpush.xpose.msrb.mxu2 %v354_v44  ;;  %v355_v30 = vld [vmem:[#allocation5 + $0x538] sm:$0xff] }
 0x195   :  { %v1079_v58 = vpop.f32.mrf.mxu1  ;;  %v3418_v56 = vor.u32 1.1754944e-38, %v3417_v29 }
 0x196   :  { %v4086_v0 = vmul.f32 2.0, %v4022_v52  ;;  %1273 = vmatmul.f32.gmra.mxu0 %v4582_v48  ;;  %1403 = vmatmul.f32.gmra.mxu2 %v4583_v2  ;;  %v3350_v63 = vadd.f32 %v5227_v32, %v3349_v59  ;;  %v4250_v3 = vmul.f32 -1.442695, %v5246_v62  ;;  %v1080_v1 = vadd.f32 %v1079_v58, %v1015_v55 }
 0x197   :  { %v5248_v41 = vpop.eup %4316  ;;  %1502 = vmatpush.xpose.msrb.mxu0 %v344_v27  ;;  %v4596_v27 = vld [vmem:[#allocation2 + $0x308] sm:$0xff] }
 0x198   :  { %1338 = vmatmul.f32.gmra.mxu1 %v4584_v6  ;;  %v4319_v11 = vpop.eup %4318  ;;  %4150 = vst [vmem:[#allocation8 + $0x80] sm:$0xff] %v4086_v0  ;;  %v3407_v14 = vmul.f32 %v5248_v41, %v5224_v28  ;;  %1468 = vmatmul.f32.gmra.mxu3 %v4585_v15  ;;  %v3354_v17 = vsel %vm5255_vm6, %v5227_v32, %v3350_v63  ;;  %4320 = vpow2.f32 %v4250_v3  ;;  %v363_v32 = vld [vmem:[#allocation5 + $0x578] sm:$0xff]  ;;  %vm3412_vm8 = vweird.f32 %v5248_v41  ;;  %v353_v28 = vld [vmem:[#allocation5 + $0x528] sm:$0xff] }
 0x199   :  { %v5264_v19 = vadd.f32 1.0, %v4319_v11  ;;  %v1144_v20 = vpop.f32.mrf.mxu2  ;;  %v3359_v13 = vsel %vm3356_vm7, %v3358_v12, %v3354_v17  ;;  %1695 = vmatpush.xpose.msrb.mxu3 %v363_v32  ;;  %vm5280_vm10 = vmor %vm3411_vm9, %vm3412_vm8  ;;  %1566 = vmatpush.xpose.msrb.mxu1 %v353_v28  ;;  %v347_v3 = vld [vmem:[#allocation5 + $0x4f8] sm:$0xff]  ;;  %v345_v6 = vld [vmem:[#allocation5 + $0x4e8] sm:$0xff] }
 0x19a   :  { %v3408_v24 = vsub.f32 1.0, %v3407_v14  ;;  %v1145_v61 = vadd.f32 %v1144_v20, %v1080_v1  ;;  %v4026_v26 = vmul.f32 %v3359_v13, %v5182_v4  ;;  %1632 = vmatpush.xpose.msrb.mxu2 %v346_v53  ;;  %v338_v14 = vld [vmem:[#allocation5 + $0x4b0] sm:$0xff]  ;;  %v336_v1 = vld [vmem:[#allocation5 + $0x4a0] sm:$0xff] }
 0x19b   :  { %v1209_v25 = vpop.f32.mrf.mxu3  ;;  %4322 = vrcp.f32 %v5264_v19  ;;  %v1017_v31 = vpop.f32.mrf.mxu0  ;;  %v3477_v39 = vand.u32 2147483648, %v5264_v19  ;;  %v3475_v20 = vand.u32 2147483647, %v5264_v19  ;;  %vm3471_vm13 = vweird.f32 %v5264_v19  ;;  %1503 = vmatpush.xpose.msrb.mxu0 %v336_v1 }
 0x19c   :  { %v3409_v34 = vmul.f32 %v5248_v41, %v3408_v24  ;;  %v5272_v38 = vadd.f32 %v1209_v25, %v1145_v61  ;;  %v4090_v42 = vmul.f32 2.0, %v4026_v26  ;;  %v1018_v4 = vadd.f32 %v1017_v31, %v5106_v18  ;;  %v4592_v24 = vld [vmem:[#allocation2 + $0x2c8] sm:$0xff]  ;;  %v339_v61 = vld [vmem:[#allocation5 + $0x4b8] sm:$0xff] }
 0x19d   :  { %v1082_v40 = vpop.f32.mrf.mxu1  ;;  %1696 = vmatpush.xpose.msrb.mxu3 %v355_v30  ;;  %1567 = vmatpush.xpose.msrb.mxu1 %v345_v6  ;;  %v337_v25 = vld [vmem:[#allocation5 + $0x4a8] sm:$0xff]  ;;  %v4593_v31 = vld [vmem:[#allocation2 + $0x2d8] sm:$0xff]  ;;  %v3478_v32 = vor.u32 1.1754944e-38, %v3477_v39  ;;  %vm3476_vm15 = vcmp.eq.f32.partialorder %v3475_v20, 8.507059e+37 }
 0x19e   :  { %v3410_v22 = vadd.f32 %v5248_v41, %v3409_v34  ;;  %v4254_v16 = vmul.f32 -1.442695, %v5272_v38  ;;  %1276 = vmatmul.f32.gmra.mxu0 %v4586_v46  ;;  %1406 = vmatmul.f32.gmra.mxu2 %v4587_v47  ;;  %v4321_v50 = vpop.eup %4320  ;;  %4154 = vst [vmem:[#allocation8 + $0xa0] sm:$0xff] %v4090_v42  ;;  %v1083_v59 = vadd.f32 %v1082_v40, %v1018_v4  ;;  %v330_v40 = vld [vmem:[#allocation5 + $0x470] sm:$0xff]  ;;  %v328_v42 = vld [vmem:[#allocation5 + $0x460] sm:$0xff]  ;;  %v331_v46 = vld [vmem:[#allocation5 + $0x478] sm:$0xff] }
 0x19f   :  { %v5287_v52 = vadd.f32 1.0, %v4321_v50  ;;  %1633 = vmatpush.xpose.msrb.mxu2 %v338_v14  ;;  %v329_v47 = vld [vmem:[#allocation5 + $0x468] sm:$0xff]  ;;  %1504 = vmatpush.xpose.msrb.mxu0 %v328_v42  ;;  %v4597_v6 = vld [vmem:[#allocation2 + $0x318] sm:$0xff] }
 0x1a0   :  { %1341 = vmatmul.f32.gmra.mxu1 %v4588_v51  ;;  %v3414_v43 = vsel %vm5280_vm10, %v5248_v41, %v3410_v22  ;;  %4324 = vpow2.f32 %v4254_v16  ;;  %1471 = vmatmul.f32.gmra.mxu3 %v4589_v54  ;;  %v322_v54 = vld [vmem:[#allocation5 + $0x430] sm:$0xff] }
 0x1a1   :  { %v5289_v55 = vpop.eup %4322  ;;  %v3419_v58 = vsel %vm3416_vm11, %v3418_v56, %v3414_v43  ;;  %v1147_v60 = vpop.f32.mrf.mxu2  ;;  %4326 = vrcp.f32 %v5287_v52  ;;  %1697 = vmatpush.xpose.msrb.mxu3 %v347_v3  ;;  %1568 = vmatpush.xpose.msrb.mxu1 %v337_v25  ;;  %v3537_v18 = vand.u32 2147483648, %v5287_v52  ;;  %v3535_v28 = vand.u32 2147483647, %v5287_v52 }
 0x1a2   :  { %v4030_v0 = vmul.f32 %v3419_v58, %v5205_v37  ;;  %v3467_v48 = vmul.f32 %v5289_v55, %v5264_v19  ;;  %v1148_v41 = vadd.f32 %v1147_v60, %v1083_v59  ;;  %vm3472_vm12 = vweird.f32 %v5289_v55  ;;  %v4595_v59 = vld [vmem:[#allocation2 + $0x310] sm:$0xff] }
 0x1a3   :  { %v1212_v2 = vpop.f32.mrf.mxu3  ;;  %v1020_v63 = vpop.f32.mrf.mxu0  ;;  %vm3473_vm14 = vmor %vm3471_vm13, %vm3472_vm12  ;;  %1634 = vmatpush.xpose.msrb.mxu2 %v330_v40  ;;  %vm3531_vm1 = vweird.f32 %v5287_v52  ;;  %vm3536_vm3 = vcmp.eq.f32.partialorder %v3535_v28, 8.507059e+37 }
 0x1a4   :  { %v4094_v8 = vmul.f32 2.0, %v4030_v0  ;;  %v3468_v10 = vsub.f32 1.0, %v3467_v48  ;;  %v1021_v12 = vadd.f32 %v1020_v63, %v5109_v36  ;;  %v5297_v37 = vadd.f32 %v1212_v2, %v1148_v41  ;;  %v323_v0 = vld [vmem:[#allocation5 + $0x438] sm:$0xff]  ;;  %v321_v48 = vld [vmem:[#allocation5 + $0x428] sm:$0xff] }
 0x1a5   :  { %v1085_v11 = vpop.f32.mrf.mxu1  ;;  %1698 = vmatpush.xpose.msrb.mxu3 %v339_v61  ;;  %1569 = vmatpush.xpose.msrb.mxu1 %v329_v47  ;;  %v3538_v41 = vor.u32 1.1754944e-38, %v3537_v18 }
 0x1a6   :  { %v4325_v15 = vpop.eup %4324  ;;  %4158 = vst [vmem:[#allocation8 + $0xc0] sm:$0xff] %v4094_v8  ;;  %v3469_v17 = vmul.f32 %v5289_v55, %v3468_v10  ;;  %1279 = vmatmul.f32.gmra.mxu0 %v4590_v5  ;;  %1409 = vmatmul.f32.gmra.mxu2 %v4591_v9  ;;  %v4258_v36 = vmul.f32 -1.442695, %v5297_v37  ;;  %v1086_v34 = vadd.f32 %v1085_v11, %v1021_v12 }
 0x1a7   :  { %v5302_v13 = vadd.f32 1.0, %v4325_v15  ;;  %v5305_v26 = vpop.eup %4326  ;;  %1635 = vmatpush.xpose.msrb.mxu2 %v322_v54  ;;  %v4602_v54 = vld [vmem:[#allocation2 + $0x380] sm:$0xff] }
 0x1a8   :  { %1344 = vmatmul.f32.gmra.mxu1 %v4592_v24  ;;  %v3470_v29 = vadd.f32 %v5289_v55, %v3469_v17  ;;  %1474 = vmatmul.f32.gmra.mxu3 %v4593_v31  ;;  %v3527_v45 = vmul.f32 %v5305_v26, %v5287_v52  ;;  %vm3532_vm0 = vweird.f32 %v5305_v26 }
 0x1a9   :  { %4328 = vrcp.f32 %v5302_v13  ;;  %v1150_v35 = vpop.f32.mrf.mxu2  ;;  %1699 = vmatpush.xpose.msrb.mxu3 %v331_v46  ;;  %vm3533_vm2 = vmor %vm3531_vm1, %vm3532_vm0  ;;  %1570 = vmatpush.xpose.msrb.mxu1 %v321_v48  ;;  %v3597_v15 = vand.u32 2147483648, %v5302_v13  ;;  %v3595_v5 = vand.u32 2147483647, %v5302_v13  ;;  %vm3591_vm5 = vweird.f32 %v5302_v13 }
 0x1aa   :  { %v3474_v19 = vsel %vm3473_vm14, %v5289_v55, %v3470_v29  ;;  %4330 = vpow2.f32 %v4258_v36  ;;  %v3528_v49 = vsub.f32 1.0, %v3527_v45  ;;  %v1151_v22 = vadd.f32 %v1150_v35, %v1086_v34  ;;  %v320_v55 = vld [vmem:[#allocation5 + $0x420] sm:$0xff]  ;;  %v4599_v29 = vld [vmem:[#allocation2 + $0x350] sm:$0xff]  ;;  %v4600_v45 = vld [vmem:[#allocation2 + $0x348] sm:$0xff] }
 0x1ab   :  { %v1215_v4 = vpop.f32.mrf.mxu3  ;;  %v3479_v44 = vsel %vm3476_vm15, %v3478_v32, %v3474_v19  ;;  %v1023_v16 = vpop.f32.mrf.mxu0  ;;  %1505 = vmatpush.xpose.msrb.mxu0 %v320_v55  ;;  %v3598_v32 = vor.u32 1.1754944e-38, %v3597_v15  ;;  %vm3596_vm7 = vcmp.eq.f32.partialorder %v3595_v5, 8.507059e+37  ;;  %v4603_v55 = vld [vmem:[#allocation2 + $0x390] sm:$0xff] }
 0x1ac   :  { %v4034_v50 = vmul.f32 %v3479_v44, %v5221_v21  ;;  %v1024_v56 = vadd.f32 %v1023_v16, %v5112_v57  ;;  %v3529_v30 = vmul.f32 %v5305_v26, %v3528_v49  ;;  %v5321_v43 = vadd.f32 %v1215_v4, %v1151_v22  ;;  %v4594_v21 = vld [vmem:[#allocation2 + $0x300] sm:$0xff] }
 0x1ad   :  { %v1088_v51 = vpop.f32.mrf.mxu1  ;;  %1700 = vmatpush.xpose.msrb.mxu3 %v323_v0 }
 0x1ae   :  { %v4098_v58 = vmul.f32 2.0, %v4034_v50  ;;  %1282 = vmatmul.f32.gmra.mxu0 %v4594_v21  ;;  %1412 = vmatmul.f32.gmra.mxu2 %v4595_v59  ;;  %v3530_v60 = vadd.f32 %v5305_v26, %v3529_v30  ;;  %v4262_v53 = vmul.f32 -1.442695, %v5321_v43  ;;  %v1089_v3 = vadd.f32 %v1088_v51, %v1024_v56  ;;  %v4604_v59 = vld [vmem:[#allocation2 + $0x388] sm:$0xff] }
 0x1af   :  { %v4329_v57 = vpop.eup %4328 }
 0x1b0   :  { %1347 = vmatmul.f32.gmra.mxu1 %v4596_v27  ;;  %v4331_v2 = vpop.eup %4330  ;;  %4162 = vst [vmem:[#allocation8 + $0xe0] sm:$0xff] %v4098_v58  ;;  %v3587_v63 = vmul.f32 %v4329_v57, %v5302_v13  ;;  %1477 = vmatmul.f32.gmra.mxu3 %v4597_v6  ;;  %v3534_v52 = vsel %vm3533_vm2, %v5305_v26, %v3530_v60  ;;  %4332 = vpow2.f32 %v4262_v53  ;;  %vm3592_vm4 = vweird.f32 %v4329_v57  ;;  %v4598_v26 = vld [vmem:[#allocation2 + $0x340] sm:$0xff]  ;;  %v4605_v60 = vld [vmem:[#allocation2 + $0x398] sm:$0xff] }
 0x1b1   :  { %v5330_v8 = vadd.f32 1.0, %v4331_v2  ;;  %v1153_v10 = vpop.f32.mrf.mxu2  ;;  %v3539_v11 = vsel %vm3536_vm3, %v3538_v41, %v3534_v52  ;;  %vm3593_vm6 = vmor %vm3591_vm5, %vm3592_vm4 }
 0x1b2   :  { %v3588_v39 = vsub.f32 1.0, %v3587_v63  ;;  %v1154_v12 = vadd.f32 %v1153_v10, %v1089_v3  ;;  %v4038_v1 = vmul.f32 %v3539_v11, %v5246_v62 }
 0x1b3   :  { %v1218_v14 = vpop.f32.mrf.mxu3  ;;  %4334 = vrcp.f32 %v5330_v8  ;;  %v1026_v17 = vpop.f32.mrf.mxu0  ;;  %v3657_v18 = vand.u32 2147483648, %v5330_v8  ;;  %vm3651_vm9 = vweird.f32 %v5330_v8 }
 0x1b4   :  { %v3589_v20 = vmul.f32 %v4329_v57, %v3588_v39  ;;  %v5336_v9 = vadd.f32 %v1218_v14, %v1154_v12  ;;  %v4102_v24 = vmul.f32 2.0, %v4038_v1  ;;  %v1027_v61 = vadd.f32 %v1026_v17, %v5115_v7  ;;  %v4601_v7 = vld [vmem:[#allocation2 + $0x358] sm:$0xff]  ;;  %v4606_v17 = vld [vmem:[#allocation2 + $0x3c0] sm:$0xff] }
 0x1b5   :  { %v1091_v36 = vpop.f32.mrf.mxu1  ;;  %v3658_v53 = vor.u32 1.1754944e-38, %v3657_v18  ;;  %v4611_v18 = vld [vmem:[#allocation2 + $0x20] sm:$0xff] }
 0x1b6   :  { %v3590_v25 = vadd.f32 %v4329_v57, %v3589_v20  ;;  %v4266_v62 = vmul.f32 -1.442695, %v5336_v9  ;;  %1285 = vmatmul.f32.gmra.mxu0 %v4598_v26  ;;  %1415 = vmatmul.f32.gmra.mxu2 %v4599_v29  ;;  %v4333_v31 = vpop.eup %4332  ;;  %4166 = vst [vmem:[#allocation8 + $0x100] sm:$0xff] %v4102_v24  ;;  %v1092_v42 = vadd.f32 %v1091_v36, %v1027_v61  ;;  %v4607_v20 = vld [vmem:[#allocation2 + $0x3d0] sm:$0xff]  ;;  %v4609_v26 = vld [vmem:[#allocation2 + $0x3d8] sm:$0xff] }
 0x1b7   :  { %v5342_v35 = vadd.f32 1.0, %v4333_v31  ;;  %v4610_v29 = vld [vmem:[#allocation7] sm:$0xf] }
 0x1b8   :  { %1350 = vmatmul.f32.gmra.mxu1 %v4600_v45  ;;  %v3594_v34 = vsel %vm3593_vm6, %v4329_v57, %v3590_v25  ;;  %4336 = vpow2.f32 %v4266_v62  ;;  %1480 = vmatmul.f32.gmra.mxu3 %v4601_v7  ;;  %v5372_v31 = vperm.slane %v4610_v29, 1 }
 0x1b9   :  { %v4335_v13 = vpop.eup %4334  ;;  %v3599_v40 = vsel %vm3596_vm7, %v3598_v32, %v3594_v34  ;;  %v1156_v19 = vpop.f32.mrf.mxu2  ;;  %4338 = vrcp.f32 %v5342_v35  ;;  %v3717_v10 = vand.u32 2147483648, %v5342_v35  ;;  %v3715_v14 = vand.u32 2147483647, %v5342_v35 }
 0x1ba   :  { %v4042_v4 = vmul.f32 %v3599_v40, %v5272_v38  ;;  %v3647_v44 = vmul.f32 %v4335_v13, %v5330_v8  ;;  %v1157_v22 = vadd.f32 %v1156_v19, %v1092_v42  ;;  %vm3652_vm8 = vweird.f32 %v4335_v13 }
 0x1bb   :  { %v1221_v49 = vpop.f32.mrf.mxu3  ;;  %v1029_v16 = vpop.f32.mrf.mxu0  ;;  %v3655_v38 = vand.u32 2147483647, %v5330_v8  ;;  %vm3653_vm10 = vmor %vm3651_vm9, %vm3652_vm8  ;;  %vm3711_vm13 = vweird.f32 %v5342_v35  ;;  %v3718_v61 = vor.u32 1.1754944e-38, %v3717_v10  ;;  %vm3716_vm15 = vcmp.eq.f32.partialorder %v3715_v14, 8.507059e+37 }
 0x1bc   :  { %v4106_v46 = vmul.f32 2.0, %v4042_v4  ;;  %v3648_v47 = vsub.f32 1.0, %v3647_v44  ;;  %v1030_v56 = vadd.f32 %v1029_v16, %v5118_v23  ;;  %v5349_v51 = vadd.f32 %v1221_v49, %v1157_v22 }
 0x1bd   :  { %v1094_v50 = vpop.f32.mrf.mxu1  ;;  %vm3656_vm11 = vcmp.eq.f32.partialorder %v3655_v38, 8.507059e+37  ;;  %v567_v38 = vld [vmem:[#allocation5 + $0xbd8] sm:$0xff] }
 0x1be   :  { %v4337_v30 = vpop.eup %4336  ;;  %4170 = vst [vmem:[#allocation8 + $0x120] sm:$0xff] %v4106_v46  ;;  %v3649_v28 = vmul.f32 %v4335_v13, %v3648_v47  ;;  %1288 = vmatmul.f32.gmra.mxu0 %v4602_v54  ;;  %1418 = vmatmul.f32.gmra.mxu2 %v4603_v55  ;;  %v4270_v21 = vmul.f32 -1.442695, %v5349_v51  ;;  %v1095_v0 = vadd.f32 %v1094_v50, %v1030_v56  ;;  %v4612_v56 = vld [vmem:[#allocation2 + $0x30] sm:$0xff] }
 0x1bf   :  { %v5352_v58 = vadd.f32 1.0, %v4337_v30  ;;  %v4339_v57 = vpop.eup %4338  ;;  %v566_v30 = vld [vmem:[#allocation5 + $0xbd0] sm:$0xff]  ;;  %1945 = vmatpush.xpose.msra.mxu3 %v567_v38 }
 0x1c0   :  { %1353 = vmatmul.f32.gmra.mxu1 %v4604_v59  ;;  %v3650_v23 = vadd.f32 %v4335_v13, %v3649_v28  ;;  %1483 = vmatmul.f32.gmra.mxu3 %v4605_v60  ;;  %v3707_v27 = vmul.f32 %v4339_v57, %v5342_v35  ;;  %vm3712_vm12 = vweird.f32 %v4339_v57  ;;  %v564_v28 = vld [vmem:[#allocation5 + $0xbc0] sm:$0xff]  ;;  %v534_v38 = vld [vmem:[#allocation5 + $0xad0] sm:$0xff] }
 0x1c1   :  { %4340 = vrcp.f32 %v5352_v58  ;;  %v1159_v48 = vpop.f32.mrf.mxu2  ;;  %vm3713_vm14 = vmor %vm3711_vm13, %vm3712_vm12  ;;  %v3775_v19 = vand.u32 2147483647, %v5352_v58  ;;  %v3777_v4 = vand.u32 2147483648, %v5352_v58  ;;  %vm3771_vm1 = vweird.f32 %v5352_v58  ;;  %1880 = vmatpush.xpose.msra.mxu2 %v566_v30  ;;  %1750 = vmatpush.xpose.msra.mxu0 %v564_v28 }
 0x1c2   :  { %v3654_v2 = vsel %vm3653_vm10, %v4335_v13, %v3650_v23  ;;  %4342 = vpow2.f32 %v4270_v21  ;;  %v3708_v3 = vsub.f32 1.0, %v3707_v27  ;;  %v1160_v6 = vadd.f32 %v1159_v48, %v1095_v0  ;;  %v558_v27 = vld [vmem:[#allocation5 + $0xb90] sm:$0xff] }
 0x1c3   :  { %v1224_v41 = vpop.f32.mrf.mxu3  ;;  %v3659_v63 = vsel %vm3656_vm11, %v3658_v53, %v3654_v2  ;;  %v1032_v52 = vpop.f32.mrf.mxu0  ;;  %v3778_v21 = vor.u32 1.1754944e-38, %v3777_v4  ;;  %vm3776_vm3 = vcmp.eq.f32.partialorder %v3775_v19, 8.507059e+37  ;;  %v4614_v53 = vld [vmem:[#allocation2 + $0x38] sm:$0xff]  ;;  %v540_v4 = vld [vmem:[#allocation5 + $0xb00] sm:$0xff] }
 0x1c4   :  { %v4046_v8 = vmul.f32 %v3659_v63, %v5297_v37  ;;  %v1033_v11 = vadd.f32 %v1032_v52, %v5120_v33  ;;  %v3709_v12 = vmul.f32 %v4339_v57, %v3708_v3  ;;  %v5363_v1 = vadd.f32 %v1224_v41, %v1160_v6  ;;  %v4608_v33 = vld [vmem:[#allocation2 + $0x3c8] sm:$0xff]  ;;  %v556_v41 = vld [vmem:[#allocation5 + $0xb80] sm:$0xff]  ;;  %v559_v52 = vld [vmem:[#allocation5 + $0xb98] sm:$0xff] }
 0x1c5   :  { %v1097_v39 = vpop.f32.mrf.mxu1  ;;  %1881 = vmatpush.xpose.msra.mxu2 %v558_v27  ;;  %1751 = vmatpush.xpose.msra.mxu0 %v556_v41  ;;  %v533_v27 = vld [vmem:[#allocation5 + $0xac8] sm:$0xff] }
 0x1c6   :  { %v4110_v15 = vmul.f32 2.0, %v4046_v8  ;;  %1291 = vmatmul.f32.gmra.mxu0 %v4606_v17  ;;  %1421 = vmatmul.f32.gmra.mxu2 %v4607_v20  ;;  %v3710_v36 = vadd.f32 %v4339_v57, %v3709_v12  ;;  %v4274_v37 = vmul.f32 -1.442695, %v5363_v1  ;;  %v1098_v62 = vadd.f32 %v1097_v39, %v1033_v11  ;;  %v557_v8 = vld [vmem:[#allocation5 + $0xb88] sm:$0xff]  ;;  %v550_v17 = vld [vmem:[#allocation5 + $0xb50] sm:$0xff] }
 0x1c7   :  { %v5365_v5 = vpop.eup %4340  ;;  %1946 = vmatpush.xpose.msra.mxu3 %v559_v52 }
 0x1c8   :  { %1356 = vmatmul.f32.gmra.mxu1 %v4608_v33  ;;  %v4343_v24 = vpop.eup %4342  ;;  %4174 = vst [vmem:[#allocation8 + $0x140] sm:$0xff] %v4110_v15  ;;  %v3767_v25 = vmul.f32 %v5365_v5, %v5352_v58  ;;  %1486 = vmatmul.f32.gmra.mxu3 %v4609_v26  ;;  %v3714_v32 = vsel %vm3713_vm14, %v4339_v57, %v3710_v36  ;;  %4344 = vpow2.f32 %v4274_v37  ;;  %vm3772_vm0 = vweird.f32 %v5365_v5  ;;  %v4613_v58 = vld [vmem:[#allocation2 + $0x28] sm:$0xff] }
 0x1c9   :  { %v5374_v45 = vadd.f32 1.0, %v4343_v24  ;;  %v1162_v34 = vpop.f32.mrf.mxu2  ;;  %v3719_v35 = vsel %vm3716_vm15, %v3718_v61, %v3714_v32  ;;  %vm5390_vm2 = vmor %vm3771_vm1, %vm3772_vm0  ;;  %v565_v57 = vld [vmem:[#allocation5 + $0xbc8] sm:$0xff]  ;;  %v4615_v61 = vld [vmem:[#allocation2 + $0x60] sm:$0xff]  ;;  %1882 = vmatpush.xpose.msra.mxu2 %v550_v17 }
 0x1ca   :  { %v3768_v7 = vsub.f32 1.0, %v3767_v25  ;;  %v1163_v13 = vadd.f32 %v1162_v34, %v1098_v62  ;;  %v4050_v42 = vmul.f32 %v3719_v35, %v5321_v43  ;;  %1815 = vmatpush.xpose.msra.mxu1 %v565_v57  ;;  %v4616_v25 = vld [vmem:[#allocation2 + $0x70] sm:$0xff]  ;;  %v551_v62 = vld [vmem:[#allocation5 + $0xb58] sm:$0xff]  ;;  %v549_v26 = vld [vmem:[#allocation5 + $0xb48] sm:$0xff] }
 0x1cb   :  { %v1227_v40 = vpop.f32.mrf.mxu3  ;;  %4346 = vrcp.f32 %v5374_v45  ;;  %v1247_v44 = vpop.f32.mrf.mxu0  ;;  %v3835_v33 = vand.u32 2147483647, %v5374_v45  ;;  %v4617_v32 = vld [vmem:[#allocation2 + $0x68] sm:$0xff]  ;;  %vm3831_vm5 = vweird.f32 %v5374_v45  ;;  %1947 = vmatpush.xpose.msra.mxu3 %v551_v62  ;;  %v4619_v57 = vld [vmem:[#allocation2 + $0xa0] sm:$0xff] }
 0x1cc   :  { %v3769_v49 = vmul.f32 %v5365_v5, %v3768_v7  ;;  %v5382_v22 = vadd.f32 %v1227_v40, %v1163_v13  ;;  %v1248_v16 = vadd.f32 %v1247_v44, %v5372_v31  ;;  %v4114_v47 = vmul.f32 2.0, %v4050_v42  ;;  %v4618_v7 = vld [vmem:[#allocation2 + $0x78] sm:$0xff]  ;;  %v542_v13 = vld [vmem:[#allocation5 + $0xb10] sm:$0xff] }
 0x1cd   :  { %v1312_v46 = vpop.f32.mrf.mxu1  ;;  %vm3836_vm7 = vcmp.eq.f32.partialorder %v3835_v33, 8.507059e+37  ;;  %1883 = vmatpush.xpose.msra.mxu2 %v542_v13  ;;  %v517_v13 = vld [vmem:[#allocation5 + $0xa48] sm:$0xff] }
 0x1ce   :  { %v3770_v50 = vadd.f32 %v5365_v5, %v3769_v49  ;;  %v4278_v43 = vmul.f32 -1.442695, %v5382_v22  ;;  %1506 = vmatmul.f32.vlgmr.msrb.gmra.mxu0 %v4611_v18  ;;  %1636 = vmatmul.f32.vlgmr.msrb.gmra.mxu2 %v4612_v56  ;;  %v4345_v54 = vpop.eup %4344  ;;  %4178 = vst [vmem:[#allocation8 + $0x160] sm:$0xff] %v4114_v47  ;;  %v1313_v59 = vadd.f32 %v1312_v46, %v1248_v16  ;;  %v543_v49 = vld [vmem:[#allocation5 + $0xb18] sm:$0xff]  ;;  %v541_v16 = vld [vmem:[#allocation5 + $0xb08] sm:$0xff] }
 0x1cf   :  { %v5397_v60 = vadd.f32 1.0, %v4345_v54  ;;  %1816 = vmatpush.xpose.msra.mxu1 %v557_v8  ;;  %1948 = vmatpush.xpose.msra.mxu3 %v543_v49  ;;  %v508_v49 = vld [vmem:[#allocation5 + $0xa00] sm:$0xff] }
 0x1d0   :  { %1571 = vmatmul.f32.vlgmr.msrb.gmra.mxu1 %v4613_v58  ;;  %v3774_v23 = vsel %vm5390_vm2, %v5365_v5, %v3770_v50  ;;  %4348 = vpow2.f32 %v4278_v43  ;;  %1701 = vmatmul.f32.vlgmr.msrb.gmra.mxu3 %v4614_v53  ;;  %v548_v5 = vld [vmem:[#allocation5 + $0xb40] sm:$0xff]  ;;  %v535_v53 = vld [vmem:[#allocation5 + $0xad8] sm:$0xff] }
 0x1d1   :  { %v5399_v0 = vpop.eup %4346  ;;  %v3779_v48 = vsel %vm3776_vm3, %v3778_v21, %v3774_v23  ;;  %v1377_v2 = vpop.f32.mrf.mxu2  ;;  %4350 = vrcp.f32 %v5397_v60  ;;  %1752 = vmatpush.xpose.msra.mxu0 %v548_v5  ;;  %v3897_v56 = vand.u32 2147483648, %v5397_v60  ;;  %v3895_v55 = vand.u32 2147483647, %v5397_v60  ;;  %v4620_v23 = vld [vmem:[#allocation2 + $0xb0] sm:$0xff]  ;;  %1884 = vmatpush.xpose.msra.mxu2 %v534_v38 }
 0x1d2   :  { %v4054_v63 = vmul.f32 %v3779_v48, %v5336_v9  ;;  %v3827_v3 = vmul.f32 %v5399_v0, %v5374_v45  ;;  %v1378_v10 = vadd.f32 %v1377_v2, %v1313_v59  ;;  %v3837_v9 = vand.u32 2147483648, %v5374_v45  ;;  %v532_v59 = vld [vmem:[#allocation5 + $0xac0] sm:$0xff]  ;;  %v4621_v2 = vld [vmem:[#allocation2 + $0xa8] sm:$0xff] }
 0x1d3   :  { %v1442_v6 = vpop.f32.mrf.mxu3  ;;  %v1250_v11 = vpop.f32.mrf.mxu0  ;;  %vm3832_vm4 = vweird.f32 %v5399_v0  ;;  %1817 = vmatpush.xpose.msra.mxu1 %v549_v26  ;;  %vm3891_vm9 = vweird.f32 %v5397_v60  ;;  %v3898_v41 = vor.u32 1.1754944e-38, %v3897_v56  ;;  %vm3896_vm11 = vcmp.eq.f32.partialorder %v3895_v55, 8.507059e+37  ;;  %1949 = vmatpush.xpose.msra.mxu3 %v535_v53  ;;  %v4627_v55 = vld [vmem:[#allocation2 + $0x120] sm:$0xff] }
 0x1d4   :  { %v4118_v39 = vmul.f32 2.0, %v4054_v63  ;;  %v3828_v12 = vsub.f32 1.0, %v3827_v3  ;;  %v1251_v14 = vadd.f32 %v1250_v11, %v5372_v31  ;;  %v5407_v20 = vadd.f32 %v1442_v6, %v1378_v10  ;;  %vm3833_vm6 = vmor %vm3831_vm5, %vm3832_vm4  ;;  %v4622_v3 = vld [vmem:[#allocation2 + $0xb8] sm:$0xff]  ;;  %v526_v6 = vld [vmem:[#allocation5 + $0xa90] sm:$0xff] }
 0x1d5   :  { %v1315_v15 = vpop.f32.mrf.mxu1  ;;  %v3838_v40 = vor.u32 1.1754944e-38, %v3837_v9  ;;  %1753 = vmatpush.xpose.msra.mxu0 %v540_v4  ;;  %1885 = vmatpush.xpose.msra.mxu2 %v526_v6  ;;  %v4626_v4 = vld [vmem:[#allocation2 + $0xf8] sm:$0xff] }
 0x1d6   :  { %v4349_v36 = vpop.eup %4348  ;;  %4182 = vst [vmem:[#allocation8 + $0x180] sm:$0xff] %v4118_v39  ;;  %v3829_v37 = vmul.f32 %v5399_v0, %v3828_v12  ;;  %v1316_v24 = vadd.f32 %v1315_v15, %v1251_v14  ;;  %1509 = vmatmul.f32.gmra.mxu0 %v4615_v61  ;;  %1639 = vmatmul.f32.gmra.mxu2 %v4616_v25  ;;  %v527_v12 = vld [vmem:[#allocation5 + $0xa98] sm:$0xff]  ;;  %v525_v14 = vld [vmem:[#allocation5 + $0xa88] sm:$0xff]  ;;  %v518_v25 = vld [vmem:[#allocation5 + $0xa50] sm:$0xff] }
 0x1d7   :  { %v5412_v29 = vadd.f32 1.0, %v4349_v36  ;;  %v5414_v34 = vpop.eup %4350  ;;  %1818 = vmatpush.xpose.msra.mxu1 %v541_v16  ;;  %1950 = vmatpush.xpose.msra.mxu3 %v527_v12  ;;  %v495_v12 = vld [vmem:[#allocation5 + $0x998] sm:$0xff] }
 0x1d8   :  { %1574 = vmatmul.f32.gmra.mxu1 %v4617_v32  ;;  %v3830_v35 = vadd.f32 %v5399_v0, %v3829_v37  ;;  %1704 = vmatmul.f32.gmra.mxu3 %v4618_v7  ;;  %v3887_v42 = vmul.f32 %v5414_v34, %v5397_v60  ;;  %vm3892_vm8 = vweird.f32 %v5414_v34  ;;  %v524_v60 = vld [vmem:[#allocation5 + $0xa80] sm:$0xff]  ;;  %v519_v7 = vld [vmem:[#allocation5 + $0xa58] sm:$0xff] }
 0x1d9   :  { %4352 = vrcp.f32 %v5412_v29  ;;  %v1380_v19 = vpop.f32.mrf.mxu2  ;;  %vm3893_vm10 = vmor %vm3891_vm9, %vm3892_vm8  ;;  %1754 = vmatpush.xpose.msra.mxu0 %v532_v59  ;;  %v3955_v17 = vand.u32 2147483647, %v5412_v29  ;;  %v3957_v9 = vand.u32 2147483648, %v5412_v29  ;;  %vm3951_vm13 = vweird.f32 %v5412_v29  ;;  %1886 = vmatpush.xpose.msra.mxu2 %v518_v25  ;;  %v502_v59 = vld [vmem:[#allocation5 + $0x9d0] sm:$0xff]  ;;  %v4635_v25 = vld [vmem:[#allocation2 + $0x1a0] sm:$0xff] }
 0x1da   :  { %v3834_v44 = vsel %vm3833_vm6, %v5399_v0, %v3830_v35  ;;  %v1381_v45 = vadd.f32 %v1380_v19, %v1316_v24  ;;  %v3888_v47 = vsub.f32 1.0, %v3887_v42  ;;  %v4624_v35 = vld [vmem:[#allocation2 + $0xf0] sm:$0xff]  ;;  %v4625_v42 = vld [vmem:[#allocation2 + $0xe8] sm:$0xff] }
 0x1db   :  { %v3839_v46 = vsel %vm3836_vm7, %v3838_v40, %v3834_v44  ;;  %v1253_v50 = vpop.f32.mrf.mxu0  ;;  %v1445_v43 = vpop.f32.mrf.mxu3  ;;  %1819 = vmatpush.xpose.msra.mxu1 %v533_v27  ;;  %v3958_v40 = vor.u32 1.1754944e-38, %v3957_v9  ;;  %vm3956_vm15 = vcmp.eq.f32.partialorder %v3955_v17, 8.507059e+37  ;;  %1951 = vmatpush.xpose.msra.mxu3 %v519_v7  ;;  %v493_v17 = vld [vmem:[#allocation5 + $0x988] sm:$0xff] }
 0x1dc   :  { %v4058_v18 = vmul.f32 %v3839_v46, %v5349_v51  ;;  %v1254_v30 = vadd.f32 %v1253_v50, %v5372_v31  ;;  %v3889_v54 = vmul.f32 %v5414_v34, %v3888_v47  ;;  %v5430_v21 = vadd.f32 %v1445_v43, %v1381_v45  ;;  %v511_v47 = vld [vmem:[#allocation5 + $0xa18] sm:$0xff]  ;;  %v509_v50 = vld [vmem:[#allocation5 + $0xa08] sm:$0xff] }
 0x1dd   :  { %v1318_v28 = vpop.f32.mrf.mxu1  ;;  %1755 = vmatpush.xpose.msra.mxu0 %v524_v60  ;;  %v494_v60 = vld [vmem:[#allocation5 + $0x990] sm:$0xff] }
 0x1de   :  { %v4122_v58 = vmul.f32 2.0, %v4058_v18  ;;  %v1319_v51 = vadd.f32 %v1318_v28, %v1254_v30  ;;  %1512 = vmatmul.f32.gmra.mxu0 %v4619_v57  ;;  %1642 = vmatmul.f32.gmra.mxu2 %v4620_v23  ;;  %v3890_v48 = vadd.f32 %v5414_v34, %v3889_v54  ;;  %v500_v57 = vld [vmem:[#allocation5 + $0x9c0] sm:$0xff]  ;;  %v503_v23 = vld [vmem:[#allocation5 + $0x9d8] sm:$0xff] }
 0x1df   :  { %v5432_v0 = vpop.eup %4352  ;;  %1820 = vmatpush.xpose.msra.mxu1 %v525_v14  ;;  %1952 = vmatpush.xpose.msra.mxu3 %v511_v47  ;;  %v4641_v47 = vld [vmem:[#allocation2 + $0x1e8] sm:$0xff] }
 0x1e0   :  { %1577 = vmatmul.f32.gmra.mxu1 %v4621_v2  ;;  %4186 = vst [vmem:[#allocation8 + $0x1a0] sm:$0xff] %v4122_v58  ;;  %v3947_v63 = vmul.f32 %v5432_v0, %v5412_v29  ;;  %1707 = vmatmul.f32.gmra.mxu3 %v4622_v3  ;;  %v3894_v52 = vsel %vm3893_vm10, %v5414_v34, %v3890_v48  ;;  %vm3952_vm12 = vweird.f32 %v5432_v0  ;;  %v4623_v34 = vld [vmem:[#allocation2 + $0xe0] sm:$0xff]  ;;  %v510_v29 = vld [vmem:[#allocation5 + $0xa10] sm:$0xff]  ;;  %v4629_v58 = vld [vmem:[#allocation2 + $0x128] sm:$0xff] }
 0x1e1   :  { %v1383_v8 = vpop.f32.mrf.mxu2  ;;  %v3899_v10 = vsel %vm3896_vm11, %v3898_v41, %v3894_v52  ;;  %vm3953_vm14 = vmor %vm3951_vm13, %vm3952_vm12  ;;  %1887 = vmatpush.xpose.msra.mxu2 %v510_v29  ;;  %v4631_v52 = vld [vmem:[#allocation2 + $0x160] sm:$0xff] }
 0x1e2   :  { %v3948_v11 = vsub.f32 1.0, %v3947_v63  ;;  %v1384_v39 = vadd.f32 %v1383_v8, %v1319_v51  ;;  %v4062_v15 = vmul.f32 %v3899_v10, %v5363_v1  ;;  %v516_v1 = vld [vmem:[#allocation5 + $0xa40] sm:$0xff]  ;;  %v4630_v51 = vld [vmem:[#allocation2 + $0x138] sm:$0xff]  ;;  %v4632_v8 = vld [vmem:[#allocation2 + $0x170] sm:$0xff] }
 0x1e3   :  { %v1256_v5 = vpop.f32.mrf.mxu0  ;;  %v1448_v36 = vpop.f32.mrf.mxu3  ;;  %1756 = vmatpush.xpose.msra.mxu0 %v516_v1  ;;  %1821 = vmatpush.xpose.msra.mxu1 %v517_v13  ;;  %v4633_v10 = vld [vmem:[#allocation2 + $0x168] sm:$0xff]  ;;  %v486_v1 = vld [vmem:[#allocation5 + $0x950] sm:$0xff] }
 0x1e4   :  { %v3949_v37 = vmul.f32 %v5432_v0, %v3948_v11  ;;  %v1257_v33 = vadd.f32 %v1256_v5, %v5372_v31  ;;  %v5447_v24 = vadd.f32 %v1448_v36, %v1384_v39  ;;  %v4126_v62 = vmul.f32 2.0, %v4062_v15  ;;  %1953 = vmatpush.xpose.msra.mxu3 %v503_v23  ;;  %v4634_v11 = vld [vmem:[#allocation2 + $0x178] sm:$0xff]  ;;  %v492_v39 = vld [vmem:[#allocation5 + $0x980] sm:$0xff]  ;;  %v4644_v23 = vld [vmem:[#allocation2 + $0x230] sm:$0xff] }
 0x1e5   :  { %v1321_v61 = vpop.f32.mrf.mxu1  ;;  %1888 = vmatpush.xpose.msra.mxu2 %v502_v59 }
 0x1e6   :  { %v3950_v26 = vadd.f32 %v5432_v0, %v3949_v37  ;;  %v1322_v32 = vadd.f32 %v1321_v61, %v1257_v33  ;;  %1515 = vmatmul.f32.gmra.mxu0 %v4623_v34  ;;  %1645 = vmatmul.f32.gmra.mxu2 %v4624_v35  ;;  %4190 = vst [vmem:[#allocation8 + $0x1c0] sm:$0xff] %v4126_v62  ;;  %v4636_v62 = vld [vmem:[#allocation2 + $0x1b0] sm:$0xff]  ;;  %v484_v34 = vld [vmem:[#allocation5 + $0x940] sm:$0xff]  ;;  %v487_v35 = vld [vmem:[#allocation5 + $0x958] sm:$0xff] }
 0x1e7   :  { %1757 = vmatpush.xpose.msra.mxu0 %v508_v49  ;;  %1822 = vmatpush.xpose.msra.mxu1 %v509_v50  ;;  %v4639_v49 = vld [vmem:[#allocation2 + $0x1e0] sm:$0xff]  ;;  %v4642_v50 = vld [vmem:[#allocation2 + $0x1f8] sm:$0xff] }
 0x1e8   :  { %1580 = vmatmul.f32.gmra.mxu1 %v4625_v42  ;;  %v3954_v19 = vsel %vm3953_vm14, %v5432_v0, %v3950_v26  ;;  %1710 = vmatmul.f32.gmra.mxu3 %v4626_v4  ;;  %v501_v0 = vld [vmem:[#allocation5 + $0x9c8] sm:$0xff] }
 0x1e9   :  { %v3959_v44 = vsel %vm3956_vm15, %v3958_v40, %v3954_v19  ;;  %v1386_v45 = vpop.f32.mrf.mxu2  ;;  %1889 = vmatpush.xpose.msra.mxu2 %v494_v60  ;;  %1954 = vmatpush.xpose.msra.mxu3 %v495_v12  ;;  %v4637_v26 = vld [vmem:[#allocation2 + $0x1a8] sm:$0xff]  ;;  %v4647_v12 = vld [vmem:[#allocation2 + $0x260] sm:$0xff] }
 0x1ea   :  { %v4066_v16 = vmul.f32 %v3959_v44, %v5382_v22  ;;  %v1387_v46 = vadd.f32 %v1386_v45, %v1322_v32  ;;  %v4628_v22 = vld [vmem:[#allocation2 + $0x130] sm:$0xff]  ;;  %v4638_v32 = vld [vmem:[#allocation2 + $0x1b8] sm:$0xff]  ;;  %v485_v40 = vld [vmem:[#allocation5 + $0x948] sm:$0xff] }
 0x1eb   :  { %v1259_v43 = vpop.f32.mrf.mxu0  ;;  %v1451_v18 = vpop.f32.mrf.mxu3  ;;  %1758 = vmatpush.xpose.msra.mxu0 %v500_v57  ;;  %1823 = vmatpush.xpose.msra.mxu1 %v501_v0  ;;  %v4643_v57 = vld [vmem:[#allocation2 + $0x220] sm:$0xff]  ;;  %v4646_v0 = vld [vmem:[#allocation2 + $0x238] sm:$0xff] }
 0x1ec   :  { %v4130_v56 = vmul.f32 2.0, %v4066_v16  ;;  %v1260_v30 = vadd.f32 %v1259_v43, %v5372_v31  ;;  %v5456_v28 = vadd.f32 %v1451_v18, %v1387_v46  ;;  %v4640_v16 = vld [vmem:[#allocation2 + $0x1f0] sm:$0xff]  ;;  %v476_v43 = vld [vmem:[#allocation5 + $0x900] sm:$0xff]  ;;  %v479_v18 = vld [vmem:[#allocation5 + $0x918] sm:$0xff] }
 0x1ed   :  { %v1324_v38 = vpop.f32.mrf.mxu1  ;;  %1890 = vmatpush.xpose.msra.mxu2 %v486_v1  ;;  %1955 = vmatpush.xpose.msra.mxu3 %v487_v35  ;;  %v478_v46 = vld [vmem:[#allocation5 + $0x910] sm:$0xff] }
 0x1ee   :  { %4194 = vst [vmem:[#allocation8 + $0x1e0] sm:$0xff] %v4130_v56  ;;  %v1325_v54 = vadd.f32 %v1324_v38, %v1260_v30  ;;  %1518 = vmatmul.f32.gmra.mxu0 %v4627_v55  ;;  %1648 = vmatmul.f32.gmra.mxu2 %v4628_v22  ;;  %v477_v38 = vld [vmem:[#allocation5 + $0x908] sm:$0xff] }
 0x1ef   :  { %1759 = vmatpush.xpose.msra.mxu0 %v492_v39  ;;  %1824 = vmatpush.xpose.msra.mxu1 %v493_v17  ;;  %v4649_v17 = vld [vmem:[#allocation2 + $0x268] sm:$0xff] }
 0x1f0   :  { %1583 = vmatmul.f32.gmra.mxu1 %v4629_v58  ;;  %1713 = vmatmul.f32.gmra.mxu3 %v4630_v51 }
 0x1f1   :  { %v1389_v53 = vpop.f32.mrf.mxu2  ;;  %1891 = vmatpush.xpose.msra.mxu2 %v478_v46  ;;  %1956 = vmatpush.xpose.msra.mxu3 %v479_v18 }
 0x1f2   :  { %v1390_v27 = vadd.f32 %v1389_v53, %v1325_v54  ;;  %v470_v53 = vld [vmem:[#allocation5 + $0x8d0] sm:$0xff] }
 0x1f3   :  { %v1262_v48 = vpop.f32.mrf.mxu0  ;;  %v1454_v2 = vpop.f32.mrf.mxu3  ;;  %1760 = vmatpush.xpose.msra.mxu0 %v484_v34  ;;  %1825 = vmatpush.xpose.msra.mxu1 %v485_v40  ;;  %v454_v40 = vld [vmem:[#allocation5 + $0x850] sm:$0xff] }
 0x1f4   :  { %v1263_v41 = vadd.f32 %v1262_v48, %v5372_v31  ;;  %v5459_v63 = vadd.f32 %v1454_v2, %v1390_v27  ;;  %v4645_v27 = vld [vmem:[#allocation2 + $0x228] sm:$0xff]  ;;  %v468_v48 = vld [vmem:[#allocation5 + $0x8c0] sm:$0xff]  ;;  %v471_v2 = vld [vmem:[#allocation5 + $0x8d8] sm:$0xff] }
 0x1f5   :  { %v1327_v3 = vpop.f32.mrf.mxu1  ;;  %1892 = vmatpush.xpose.msra.mxu2 %v470_v53  ;;  %1957 = vmatpush.xpose.msra.mxu3 %v471_v2  ;;  %v445_v53 = vld [vmem:[#allocation5 + $0x808] sm:$0xff] }
 0x1f6   :  { %v1328_v6 = vadd.f32 %v1327_v3, %v1263_v41  ;;  %1521 = vmatmul.f32.gmra.mxu0 %v4631_v52  ;;  %1651 = vmatmul.f32.gmra.mxu2 %v4632_v8 }
 0x1f7   :  { %1761 = vmatpush.xpose.msra.mxu0 %v476_v43  ;;  %1826 = vmatpush.xpose.msra.mxu1 %v477_v38  ;;  %v4656_v38 = vld [vmem:[#allocation2 + $0x2f0] sm:$0xff] }
 0x1f8   :  { %1586 = vmatmul.f32.gmra.mxu1 %v4633_v10  ;;  %1716 = vmatmul.f32.gmra.mxu3 %v4634_v11 }
 0x1f9   :  { %v1392_v14 = vpop.f32.mrf.mxu2 }
 0x1fa   :  { %v1393_v15 = vadd.f32 %v1392_v14, %v1328_v6  ;;  %v469_v6 = vld [vmem:[#allocation5 + $0x8c8] sm:$0xff]  ;;  %v4648_v14 = vld [vmem:[#allocation2 + $0x270] sm:$0xff] }
 0x1fb   :  { %v1265_v9 = vpop.f32.mrf.mxu0  ;;  %v1457_v5 = vpop.f32.mrf.mxu3  ;;  %1762 = vmatpush.xpose.msra.mxu0 %v468_v48  ;;  %1827 = vmatpush.xpose.msra.mxu1 %v469_v6  ;;  %v4659_v6 = vld [vmem:[#allocation2 + $0x320] sm:$0xff] }
 0x1fc   :  { %v1266_v36 = vadd.f32 %v1265_v9, %v5372_v31  ;;  %v5462_v37 = vadd.f32 %v1457_v5, %v1393_v15  ;;  %v462_v15 = vld [vmem:[#allocation5 + $0x890] sm:$0xff]  ;;  %v4650_v9 = vld [vmem:[#allocation2 + $0x278] sm:$0xff]  ;;  %v460_v5 = vld [vmem:[#allocation5 + $0x880] sm:$0xff] }
 0x1fd   :  { %v1330_v33 = vpop.f32.mrf.mxu1  ;;  %1893 = vmatpush.xpose.msra.mxu2 %v462_v15 }
 0x1fe   :  { %v1331_v61 = vadd.f32 %v1330_v33, %v1266_v36  ;;  %1524 = vmatmul.f32.gmra.mxu0 %v4635_v25  ;;  %1654 = vmatmul.f32.gmra.mxu2 %v4636_v62  ;;  %v463_v36 = vld [vmem:[#allocation5 + $0x898] sm:$0xff]  ;;  %v461_v25 = vld [vmem:[#allocation5 + $0x888] sm:$0xff] }
 0x1ff   :  { %1763 = vmatpush.xpose.msra.mxu0 %v460_v5  ;;  %1958 = vmatpush.xpose.msra.mxu3 %v463_v36 }
 0x200   :  { %1589 = vmatmul.f32.gmra.mxu1 %v4637_v26  ;;  %1719 = vmatmul.f32.gmra.mxu3 %v4638_v32 }
 0x201   :  { %v1395_v7 = vpop.f32.mrf.mxu2  ;;  %1828 = vmatpush.xpose.msra.mxu1 %v461_v25  ;;  %1894 = vmatpush.xpose.msra.mxu2 %v454_v40 }
 0x202   :  { %v1396_v13 = vadd.f32 %v1395_v7, %v1331_v61  ;;  %v4651_v7 = vld [vmem:[#allocation2 + $0x2a0] sm:$0xff] }
 0x203   :  { %v1268_v42 = vpop.f32.mrf.mxu0  ;;  %v1460_v19 = vpop.f32.mrf.mxu3 }
 0x204   :  { %v1269_v4 = vadd.f32 %v1268_v42, %v5372_v31  ;;  %v5465_v29 = vadd.f32 %v1460_v19, %v1396_v13  ;;  %v4652_v13 = vld [vmem:[#allocation2 + $0x2b0] sm:$0xff]  ;;  %v4653_v42 = vld [vmem:[#allocation2 + $0x2a8] sm:$0xff]  ;;  %v4654_v19 = vld [vmem:[#allocation2 + $0x2b8] sm:$0xff] }
 0x205   :  { %v1333_v44 = vpop.f32.mrf.mxu1 }
 0x206   :  { %v1334_v45 = vadd.f32 %v1333_v44, %v1269_v4  ;;  %1527 = vmatmul.f32.gmra.mxu0 %v4639_v49  ;;  %1657 = vmatmul.f32.gmra.mxu2 %v4640_v16  ;;  %v452_v4 = vld [vmem:[#allocation5 + $0x840] sm:$0xff]  ;;  %v455_v44 = vld [vmem:[#allocation5 + $0x858] sm:$0xff]  ;;  %v453_v16 = vld [vmem:[#allocation5 + $0x848] sm:$0xff] }
 0x207   :  { %1764 = vmatpush.xpose.msra.mxu0 %v452_v4  ;;  %1959 = vmatpush.xpose.msra.mxu3 %v455_v44 }
 0x208   :  { %1592 = vmatmul.f32.gmra.mxu1 %v4641_v47  ;;  %1722 = vmatmul.f32.gmra.mxu3 %v4642_v50 }
 0x209   :  { %v1398_v56 = vpop.f32.mrf.mxu2  ;;  %1829 = vmatpush.xpose.msra.mxu1 %v453_v16  ;;  %v4669_v16 = vld [vmem:[#allocation2 + $0x3a8] sm:$0xff] }
 0x20a   :  { %v1399_v30 = vadd.f32 %v1398_v56, %v1334_v45 }
 0x20b   :  { %v1271_v54 = vpop.f32.mrf.mxu0  ;;  %v1463_v55 = vpop.f32.mrf.mxu3 }
 0x20c   :  { %v1272_v22 = vadd.f32 %v1271_v54, %v5372_v31  ;;  %v5468_v59 = vadd.f32 %v1463_v55, %v1399_v30  ;;  %v4655_v30 = vld [vmem:[#allocation2 + $0x2e0] sm:$0xff]  ;;  %v446_v54 = vld [vmem:[#allocation5 + $0x810] sm:$0xff]  ;;  %v4657_v55 = vld [vmem:[#allocation2 + $0x2e8] sm:$0xff] }
 0x20d   :  { %v1336_v58 = vpop.f32.mrf.mxu1  ;;  %1895 = vmatpush.xpose.msra.mxu2 %v446_v54  ;;  %1830 = vmatpush.xpose.msra.mxu1 %v445_v53 }
 0x20e   :  { %v1337_v51 = vadd.f32 %v1336_v58, %v1272_v22  ;;  %1530 = vmatmul.f32.gmra.mxu0 %v4643_v57  ;;  %1660 = vmatmul.f32.gmra.mxu2 %v4644_v23  ;;  %v4658_v22 = vld [vmem:[#allocation2 + $0x2f8] sm:$0xff]  ;;  %v444_v58 = vld [vmem:[#allocation5 + $0x800] sm:$0xff] }
 0x20f   :  { %1765 = vmatpush.xpose.msra.mxu0 %v444_v58  ;;  %v4672_v58 = vld [vmem:[#allocation2 + $0x3f0] sm:$0xff] }
 0x210   :  { %1595 = vmatmul.f32.gmra.mxu1 %v4645_v27  ;;  %1725 = vmatmul.f32.gmra.mxu3 %v4646_v0 }
 0x211   :  { %v1401_v41 = vpop.f32.mrf.mxu2 }
 0x212   :  { %v1402_v3 = vadd.f32 %v1401_v41, %v1337_v51  ;;  %v447_v51 = vld [vmem:[#allocation5 + $0x818] sm:$0xff] }
 0x213   :  { %v1274_v52 = vpop.f32.mrf.mxu0  ;;  %v1466_v8 = vpop.f32.mrf.mxu3  ;;  %1960 = vmatpush.xpose.msra.mxu3 %v447_v51  ;;  %v4673_v51 = vld [vmem:[#allocation2 + $0x3e8] sm:$0xff] }
 0x214   :  { %v1275_v60 = vadd.f32 %v1274_v52, %v5372_v31  ;;  %v5471_v10 = vadd.f32 %v1466_v8, %v1402_v3  ;;  %v4660_v52 = vld [vmem:[#allocation2 + $0x330] sm:$0xff] }
 0x215   :  { %v1339_v11 = vpop.f32.mrf.mxu1  ;;  %v570_v8 = vld [vmem:[#allocation5 + $0xbf0] sm:$0xff] }
 0x216   :  { %v1340_v39 = vadd.f32 %v1339_v11, %v1275_v60  ;;  %1533 = vmatmul.f32.gmra.mxu0 %v4647_v12  ;;  %1663 = vmatmul.f32.gmra.mxu2 %v4648_v14  ;;  %v4661_v60 = vld [vmem:[#allocation2 + $0x328] sm:$0xff]  ;;  %v4662_v11 = vld [vmem:[#allocation2 + $0x338] sm:$0xff] }
 0x217   :  { %2140 = vmatpush.xpose.msrb.mxu2 %v570_v8  ;;  %v571_v12 = vld [vmem:[#allocation5 + $0xbf8] sm:$0xff] }
 0x218   :  { %1598 = vmatmul.f32.gmra.mxu1 %v4649_v17  ;;  %1728 = vmatmul.f32.gmra.mxu3 %v4650_v9  ;;  %v569_v17 = vld [vmem:[#allocation5 + $0xbe8] sm:$0xff] }
 0x219   :  { %v1404_v33 = vpop.f32.mrf.mxu2  ;;  %2205 = vmatpush.xpose.msrb.mxu3 %v571_v12  ;;  %2075 = vmatpush.xpose.msrb.mxu1 %v569_v17 }
 0x21a   :  { %v1405_v61 = vadd.f32 %v1404_v33, %v1340_v39  ;;  %v568_v39 = vld [vmem:[#allocation5 + $0xbe0] sm:$0xff] }
 0x21b   :  { %v1277_v62 = vpop.f32.mrf.mxu0  ;;  %v1469_v1 = vpop.f32.mrf.mxu3  ;;  %2010 = vmatpush.xpose.msrb.mxu0 %v568_v39 }
 0x21c   :  { %v1278_v26 = vadd.f32 %v1277_v62, %v5372_v31  ;;  %v5474_v32 = vadd.f32 %v1469_v1, %v1405_v61  ;;  %v4663_v62 = vld [vmem:[#allocation2 + $0x360] sm:$0xff]  ;;  %v4664_v1 = vld [vmem:[#allocation2 + $0x370] sm:$0xff] }
 0x21d   :  { %v1342_v34 = vpop.f32.mrf.mxu1 }
 0x21e   :  { %v1343_v35 = vadd.f32 %v1342_v34, %v1278_v26  ;;  %1536 = vmatmul.f32.gmra.mxu0 %v4651_v7  ;;  %1666 = vmatmul.f32.gmra.mxu2 %v4652_v13  ;;  %v4665_v26 = vld [vmem:[#allocation2 + $0x368] sm:$0xff]  ;;  %v4666_v34 = vld [vmem:[#allocation2 + $0x378] sm:$0xff] }
 0x220   :  { %1601 = vmatmul.f32.gmra.mxu1 %v4653_v42  ;;  %1731 = vmatmul.f32.gmra.mxu3 %v4654_v19 }
 0x221   :  { %v1407_v45 = vpop.f32.mrf.mxu2 }
 0x222   :  { %v1408_v49 = vadd.f32 %v1407_v45, %v1343_v35  ;;  %v4667_v45 = vld [vmem:[#allocation2 + $0x3a0] sm:$0xff] }
 0x223   :  { %v1280_v46 = vpop.f32.mrf.mxu0  ;;  %v1472_v47 = vpop.f32.mrf.mxu3 }
 0x224   :  { %v1281_v50 = vadd.f32 %v1280_v46, %v5372_v31  ;;  %v5477_v43 = vadd.f32 %v1472_v47, %v1408_v49  ;;  %v4668_v49 = vld [vmem:[#allocation2 + $0x3b0] sm:$0xff]  ;;  %v4670_v46 = vld [vmem:[#allocation2 + $0x3b8] sm:$0xff] }
 0x225   :  { %v1345_v18 = vpop.f32.mrf.mxu1 }
 0x226   :  { %v1346_v56 = vadd.f32 %v1345_v18, %v1281_v50  ;;  %1539 = vmatmul.f32.gmra.mxu0 %v4655_v30  ;;  %1669 = vmatmul.f32.gmra.mxu2 %v4656_v38 }
 0x228   :  { %1604 = vmatmul.f32.gmra.mxu1 %v4657_v55  ;;  %1734 = vmatmul.f32.gmra.mxu3 %v4658_v22  ;;  %v4671_v22 = vld [vmem:[#allocation2 + $0x3e0] sm:$0xff] }
 0x229   :  { %v1410_v57 = vpop.f32.mrf.mxu2 }
 0x22a   :  { %v1411_v23 = vadd.f32 %v1410_v57, %v1346_v56  ;;  %v4674_v57 = vld [vmem:[#allocation2 + $0x3f8] sm:$0xff] }
 0x22b   :  { %v1283_v27 = vpop.f32.mrf.mxu0  ;;  %v1475_v0 = vpop.f32.mrf.mxu3 }
 0x22c   :  { %v1284_v48 = vadd.f32 %v1283_v27, %v5372_v31  ;;  %v5480_v2 = vadd.f32 %v1475_v0, %v1411_v23 }
 0x22d   :  { %v1348_v41 = vpop.f32.mrf.mxu1 }
 0x22e   :  { %v1349_v3 = vadd.f32 %v1348_v41, %v1284_v48  ;;  %1542 = vmatmul.f32.gmra.mxu0 %v4659_v6  ;;  %1672 = vmatmul.f32.gmra.mxu2 %v4660_v52  ;;  %v4676_v6 = vld [vmem:[#allocation2 + $0x10] sm:$0xff]  ;;  %v4677_v52 = vld [vmem:[#allocation2 + $0x8] sm:$0xff] }
 0x230   :  { %1607 = vmatmul.f32.gmra.mxu1 %v4661_v60  ;;  %1737 = vmatmul.f32.gmra.mxu3 %v4662_v11  ;;  %v4678_v60 = vld [vmem:[#allocation2 + $0x18] sm:$0xff] }
 0x231   :  { %v1413_v14 = vpop.f32.mrf.mxu2 }
 0x232   :  { %v1414_v15 = vadd.f32 %v1413_v14, %v1349_v3  ;;  %v4675_v3 = vld [vmem:[#allocation2] sm:$0xff] }
 0x233   :  { %v1286_v9 = vpop.f32.mrf.mxu0  ;;  %v1478_v5 = vpop.f32.mrf.mxu3 }
 0x234   :  { %v1287_v36 = vadd.f32 %v1286_v9, %v5372_v31  ;;  %v5483_v33 = vadd.f32 %v1478_v5, %v1414_v15  ;;  %v4679_v5 = vld [vmem:[#allocation2 + $0x40] sm:$0xff] }
 0x235   :  { %v1351_v61 = vpop.f32.mrf.mxu1 }
 0x236   :  { %v1352_v25 = vadd.f32 %v1351_v61, %v1287_v36  ;;  %1545 = vmatmul.f32.gmra.mxu0 %v4663_v62  ;;  %1675 = vmatmul.f32.gmra.mxu2 %v4664_v1  ;;  %v4680_v36 = vld [vmem:[#allocation2 + $0x50] sm:$0xff]  ;;  %v563_v62 = vld [vmem:[#allocation5 + $0xbb8] sm:$0xff]  ;;  %v4681_v1 = vld [vmem:[#allocation2 + $0x48] sm:$0xff] }
 0x237   :  { %v562_v61 = vld [vmem:[#allocation5 + $0xbb0] sm:$0xff]  ;;  %2206 = vmatpush.xpose.msrb.mxu3 %v563_v62 }
 0x238   :  { %1610 = vmatmul.f32.gmra.mxu1 %v4665_v26  ;;  %1740 = vmatmul.f32.gmra.mxu3 %v4666_v34  ;;  %v561_v26 = vld [vmem:[#allocation5 + $0xba8] sm:$0xff] }
 0x239   :  { %v1416_v35 = vpop.f32.mrf.mxu2  ;;  %2141 = vmatpush.xpose.msrb.mxu2 %v562_v61  ;;  %2076 = vmatpush.xpose.msrb.mxu1 %v561_v26 }
 0x23a   :  { %v1417_v7 = vadd.f32 %v1416_v35, %v1352_v25  ;;  %v560_v25 = vld [vmem:[#allocation5 + $0xba0] sm:$0xff]  ;;  %v4682_v35 = vld [vmem:[#allocation2 + $0x58] sm:$0xff] }
 0x23b   :  { %v1289_v13 = vpop.f32.mrf.mxu0  ;;  %v1481_v40 = vpop.f32.mrf.mxu3  ;;  %2011 = vmatpush.xpose.msrb.mxu0 %v560_v25 }
 0x23c   :  { %v1290_v42 = vadd.f32 %v1289_v13, %v5372_v31  ;;  %v5486_v19 = vadd.f32 %v1481_v40, %v1417_v7 }
 0x23d   :  { %v1354_v4 = vpop.f32.mrf.mxu1 }
 0x23e   :  { %v1355_v44 = vadd.f32 %v1354_v4, %v1290_v42  ;;  %1548 = vmatmul.f32.gmra.mxu0 %v4667_v45  ;;  %1678 = vmatmul.f32.gmra.mxu2 %v4668_v49 }
 0x240   :  { %1613 = vmatmul.f32.gmra.mxu1 %v4669_v16  ;;  %1743 = vmatmul.f32.gmra.mxu3 %v4670_v46  ;;  %v4683_v16 = vld [vmem:[#allocation2 + $0x80] sm:$0xff]  ;;  %v4684_v46 = vld [vmem:[#allocation2 + $0x90] sm:$0xff] }
 0x241   :  { %v1419_v47 = vpop.f32.mrf.mxu2 }
 0x242   :  { %v1420_v50 = vadd.f32 %v1419_v47, %v1355_v44  ;;  %v554_v47 = vld [vmem:[#allocation5 + $0xb70] sm:$0xff] }
 0x243   :  { %v1292_v18 = vpop.f32.mrf.mxu0  ;;  %v1484_v56 = vpop.f32.mrf.mxu3  ;;  %2142 = vmatpush.xpose.msrb.mxu2 %v554_v47 }
 0x244   :  { %v1293_v30 = vadd.f32 %v1292_v18, %v5372_v31  ;;  %v5489_v38 = vadd.f32 %v1484_v56, %v1420_v50  ;;  %v552_v50 = vld [vmem:[#allocation5 + $0xb60] sm:$0xff]  ;;  %v555_v18 = vld [vmem:[#allocation5 + $0xb78] sm:$0xff] }
 0x245   :  { %v1357_v54 = vpop.f32.mrf.mxu1  ;;  %2012 = vmatpush.xpose.msrb.mxu0 %v552_v50  ;;  %2207 = vmatpush.xpose.msrb.mxu3 %v555_v18  ;;  %v4693_v50 = vld [vmem:[#allocation2 + $0x108] sm:$0xff] }
 0x246   :  { %v1358_v55 = vadd.f32 %v1357_v54, %v1293_v30  ;;  %1551 = vmatmul.f32.gmra.mxu0 %v4671_v22  ;;  %1681 = vmatmul.f32.gmra.mxu2 %v4672_v58  ;;  %v4685_v30 = vld [vmem:[#allocation2 + $0x88] sm:$0xff] }
 0x247   :  { %v553_v54 = vld [vmem:[#allocation5 + $0xb68] sm:$0xff] }
 0x248   :  { %1616 = vmatmul.f32.gmra.mxu1 %v4673_v51  ;;  %1746 = vmatmul.f32.gmra.mxu3 %v4674_v57  ;;  %v537_v18 = vld [vmem:[#allocation5 + $0xae8] sm:$0xff] }
 0x249   :  { %v1422_v23 = vpop.f32.mrf.mxu2  ;;  %2077 = vmatpush.xpose.msrb.mxu1 %v553_v54 }
 0x24a   :  { %v1423_v53 = vadd.f32 %v1422_v23, %v1358_v55  ;;  %v4686_v55 = vld [vmem:[#allocation2 + $0x98] sm:$0xff] }
 0x24b   :  { %v1487_v27 = vpop.f32.mrf.mxu3  ;;  %v1507_v0 = vpop.f32.mrf.mxu0 }
 0x24c   :  { %v5491_v48 = vadd.f32 %v1487_v27, %v1423_v53  ;;  %v1508_v31 = vadd.f32 %v1507_v0, %v5407_v20 }
 0x24d   :  { %v1572_v41 = vpop.f32.mrf.mxu1 }
 0x24e   :  { %1766 = vmatmul.f32.vlgmr.msra.gmra.mxu0 %v4675_v3  ;;  %1896 = vmatmul.f32.vlgmr.msra.gmra.mxu2 %v4676_v6  ;;  %v1573_v8 = vadd.f32 %v1572_v41, %v1508_v31  ;;  %v4687_v41 = vld [vmem:[#allocation2 + $0xc0] sm:$0xff]  ;;  %v4688_v3 = vld [vmem:[#allocation2 + $0xd0] sm:$0xff] }
 0x24f   :  { %v546_v6 = vld [vmem:[#allocation5 + $0xb30] sm:$0xff] }
 0x250   :  { %1831 = vmatmul.f32.vlgmr.msra.gmra.mxu1 %v4677_v52  ;;  %1961 = vmatmul.f32.vlgmr.msra.gmra.mxu3 %v4678_v60  ;;  %v544_v52 = vld [vmem:[#allocation5 + $0xb20] sm:$0xff] }
 0x251   :  { %v1637_v11 = vpop.f32.mrf.mxu2  ;;  %2143 = vmatpush.xpose.msrb.mxu2 %v546_v6  ;;  %2013 = vmatpush.xpose.msrb.mxu0 %v544_v52 }
 0x252   :  { %v1638_v39 = vadd.f32 %v1637_v11, %v1573_v8  ;;  %v547_v8 = vld [vmem:[#allocation5 + $0xb38] sm:$0xff] }
 0x253   :  { %v1510_v12 = vpop.f32.mrf.mxu0  ;;  %v1702_v14 = vpop.f32.mrf.mxu3  ;;  %2208 = vmatpush.xpose.msrb.mxu3 %v547_v8 }
 0x254   :  { %v1511_v15 = vadd.f32 %v1510_v12, %v5430_v21  ;;  %v5495_v17 = vadd.f32 %v1702_v14, %v1638_v39  ;;  %v4689_v39 = vld [vmem:[#allocation2 + $0xc8] sm:$0xff] }
 0x255   :  { %v1575_v9 = vpop.f32.mrf.mxu1 }
 0x256   :  { %v4219_v20 = vmul.f32 -1.442695, %v5495_v17  ;;  %1769 = vmatmul.f32.gmra.mxu0 %v4679_v5  ;;  %1899 = vmatmul.f32.gmra.mxu2 %v4680_v36  ;;  %v1576_v34 = vadd.f32 %v1575_v9, %v1511_v15  ;;  %v4690_v15 = vld [vmem:[#allocation2 + $0xd8] sm:$0xff] }
 0x258   :  { %1834 = vmatmul.f32.gmra.mxu1 %v4681_v1  ;;  %4354 = vpow2.f32 %v4219_v20  ;;  %1964 = vmatmul.f32.gmra.mxu3 %v4682_v35 }
 0x259   :  { %v1640_v21 = vpop.f32.mrf.mxu2 }
 0x25a   :  { %v1641_v7 = vadd.f32 %v1640_v21, %v1576_v34 }
 0x25b   :  { %v1513_v13 = vpop.f32.mrf.mxu0  ;;  %v1705_v40 = vpop.f32.mrf.mxu3 }
 0x25c   :  { %v1514_v42 = vadd.f32 %v1513_v13, %v5447_v24  ;;  %v5499_v4 = vadd.f32 %v1705_v40, %v1641_v7  ;;  %v4691_v40 = vld [vmem:[#allocation2 + $0x100] sm:$0xff] }
 0x25d   :  { %v1578_v44 = vpop.f32.mrf.mxu1 }
 0x25e   :  { %v4355_v45 = vpop.eup %4354  ;;  %v4223_v49 = vmul.f32 -1.442695, %v5499_v4  ;;  %1772 = vmatmul.f32.gmra.mxu0 %v4683_v16  ;;  %1902 = vmatmul.f32.gmra.mxu2 %v4684_v46  ;;  %v1579_v24 = vadd.f32 %v1578_v44, %v1514_v42  ;;  %v4692_v42 = vld [vmem:[#allocation2 + $0x110] sm:$0xff] }
 0x25f   :  { %v5502_v56 = vadd.f32 1.0, %v4355_v45  ;;  %v538_v44 = vld [vmem:[#allocation5 + $0xaf0] sm:$0xff]  ;;  %v536_v45 = vld [vmem:[#allocation5 + $0xae0] sm:$0xff] }
 0x260   :  { %1837 = vmatmul.f32.gmra.mxu1 %v4685_v30  ;;  %4356 = vpow2.f32 %v4223_v49  ;;  %1967 = vmatmul.f32.gmra.mxu3 %v4686_v55  ;;  %v539_v49 = vld [vmem:[#allocation5 + $0xaf8] sm:$0xff] }
 0x261   :  { %4358 = vrcp.f32 %v5502_v56  ;;  %v1643_v22 = vpop.f32.mrf.mxu2  ;;  %v3070_v36 = vand.u32 2147483647, %v5502_v56  ;;  %v3072_v61 = vand.u32 2147483648, %v5502_v56  ;;  %vm3066_vm1 = vweird.f32 %v5502_v56  ;;  %2144 = vmatpush.xpose.msrb.mxu2 %v538_v44  ;;  %2014 = vmatpush.xpose.msrb.mxu0 %v536_v45 }
 0x262   :  { %v1644_v58 = vadd.f32 %v1643_v22, %v1579_v24  ;;  %v4694_v24 = vld [vmem:[#allocation2 + $0x118] sm:$0xff]  ;;  %2209 = vmatpush.xpose.msrb.mxu3 %v539_v49 }
 0x263   :  { %v1516_v51 = vpop.f32.mrf.mxu0  ;;  %v1708_v57 = vpop.f32.mrf.mxu3  ;;  %vm3071_vm3 = vcmp.eq.f32.partialorder %v3070_v36, 8.507059e+37  ;;  %v3073_v46 = vor.u32 1.1754944e-38, %v3072_v61  ;;  %v4698_v36 = vld [vmem:[#allocation2 + $0x158] sm:$0xff]  ;;  %v528_v61 = vld [vmem:[#allocation5 + $0xaa0] sm:$0xff] }
 0x264   :  { %v1517_v23 = vadd.f32 %v1516_v51, %v5456_v28  ;;  %v5506_v53 = vadd.f32 %v1708_v57, %v1644_v58  ;;  %v545_v28 = vld [vmem:[#allocation5 + $0xb28] sm:$0xff] }
 0x265   :  { %v1581_v27 = vpop.f32.mrf.mxu1  ;;  %2078 = vmatpush.xpose.msrb.mxu1 %v545_v28  ;;  %v4696_v28 = vld [vmem:[#allocation2 + $0x150] sm:$0xff]  ;;  %2015 = vmatpush.xpose.msrb.mxu0 %v528_v61  ;;  %v4703_v61 = vld [vmem:[#allocation2 + $0x1c0] sm:$0xff] }
 0x266   :  { %v4357_v0 = vpop.eup %4356  ;;  %v4227_v31 = vmul.f32 -1.442695, %v5506_v53  ;;  %1775 = vmatmul.f32.gmra.mxu0 %v4687_v41  ;;  %1905 = vmatmul.f32.gmra.mxu2 %v4688_v3  ;;  %v1582_v14 = vadd.f32 %v1581_v27, %v1517_v23 }
 0x267   :  { %v4359_v60 = vpop.eup %4358  ;;  %v5509_v11 = vadd.f32 1.0, %v4357_v0 }
 0x268   :  { %1840 = vmatmul.f32.gmra.mxu1 %v4689_v39  ;;  %v3062_v12 = vmul.f32 %v4359_v60, %v5502_v56  ;;  %4360 = vpow2.f32 %v4227_v31  ;;  %1970 = vmatmul.f32.gmra.mxu3 %v4690_v15  ;;  %vm3067_vm0 = vweird.f32 %v4359_v60 }
 0x269   :  { %4362 = vrcp.f32 %v5509_v11  ;;  %v1646_v9 = vpop.f32.mrf.mxu2  ;;  %vm5521_vm2 = vmor %vm3066_vm1, %vm3067_vm0  ;;  %2079 = vmatpush.xpose.msrb.mxu1 %v537_v18  ;;  %v3132_v23 = vand.u32 2147483648, %v5509_v11  ;;  %v3130_v3 = vand.u32 2147483647, %v5509_v11  ;;  %vm3126_vm5 = vweird.f32 %v5509_v11 }
 0x26a   :  { %v3063_v20 = vsub.f32 1.0, %v3062_v12  ;;  %v1647_v5 = vadd.f32 %v1646_v9, %v1582_v14 }
 0x26b   :  { %v1519_v25 = vpop.f32.mrf.mxu0  ;;  %v1711_v62 = vpop.f32.mrf.mxu3  ;;  %v3133_v14 = vor.u32 1.1754944e-38, %v3132_v23  ;;  %vm3131_vm7 = vcmp.eq.f32.partialorder %v3130_v3, 8.507059e+37 }
 0x26c   :  { %v3064_v1 = vmul.f32 %v4359_v60, %v3063_v20  ;;  %v1520_v26 = vadd.f32 %v1519_v25, %v5459_v63  ;;  %v5516_v34 = vadd.f32 %v1711_v62, %v1647_v5  ;;  %v531_v25 = vld [vmem:[#allocation5 + $0xab8] sm:$0xff] }
 0x26d   :  { %v1584_v35 = vpop.f32.mrf.mxu1  ;;  %2210 = vmatpush.xpose.msrb.mxu3 %v531_v25  ;;  %v4704_v25 = vld [vmem:[#allocation2 + $0x1d0] sm:$0xff] }
 0x26e   :  { %v4361_v21 = vpop.eup %4360  ;;  %v3065_v7 = vadd.f32 %v4359_v60, %v3064_v1  ;;  %v4231_v13 = vmul.f32 -1.442695, %v5516_v34  ;;  %1778 = vmatmul.f32.gmra.mxu0 %v4691_v40  ;;  %1908 = vmatmul.f32.gmra.mxu2 %v4692_v42  ;;  %v1585_v54 = vadd.f32 %v1584_v35, %v1520_v26  ;;  %v529_v35 = vld [vmem:[#allocation5 + $0xaa8] sm:$0xff] }
 0x26f   :  { %v4363_v16 = vpop.eup %4362  ;;  %v5525_v47 = vadd.f32 1.0, %v4361_v21  ;;  %2080 = vmatpush.xpose.msrb.mxu1 %v529_v35 }
 0x270   :  { %1843 = vmatmul.f32.gmra.mxu1 %v4693_v50  ;;  %v3069_v56 = vsel %vm5521_vm2, %v4359_v60, %v3065_v7  ;;  %v3122_v30 = vmul.f32 %v4363_v16, %v5509_v11  ;;  %4364 = vpow2.f32 %v4231_v13  ;;  %1973 = vmatmul.f32.gmra.mxu3 %v4694_v24  ;;  %vm3127_vm4 = vweird.f32 %v4363_v16  ;;  %v530_v11 = vld [vmem:[#allocation5 + $0xab0] sm:$0xff] }
 0x271   :  { %v3074_v55 = vsel %vm3071_vm3, %v3073_v46, %v3069_v56  ;;  %4366 = vrcp.f32 %v5525_v47  ;;  %v1649_v22 = vpop.f32.mrf.mxu2  ;;  %vm3128_vm6 = vmor %vm3126_vm5, %vm3127_vm4  ;;  %2145 = vmatpush.xpose.msrb.mxu2 %v530_v11  ;;  %v3192_v13 = vand.u32 2147483648, %v5525_v47  ;;  %vm3186_vm9 = vweird.f32 %v5525_v47  ;;  %v4699_v56 = vld [vmem:[#allocation2 + $0x180] sm:$0xff] }
 0x272   :  { %v4007_v58 = vmul.f32 %v3074_v55, %v5495_v17  ;;  %v3123_v51 = vsub.f32 1.0, %v3122_v30  ;;  %v1650_v57 = vadd.f32 %v1649_v22, %v1585_v54  ;;  %v4695_v17 = vld [vmem:[#allocation2 + $0x140] sm:$0xff]  ;;  %v4700_v30 = vld [vmem:[#allocation2 + $0x190] sm:$0xff] }
 0x273   :  { %v1522_v27 = vpop.f32.mrf.mxu0  ;;  %v1714_v0 = vpop.f32.mrf.mxu3  ;;  %v3193_v24 = vor.u32 1.1754944e-38, %v3192_v13  ;;  %v522_v55 = vld [vmem:[#allocation5 + $0xa70] sm:$0xff]  ;;  %v520_v22 = vld [vmem:[#allocation5 + $0xa60] sm:$0xff] }
 0x274   :  { %v4071_v31 = vmul.f32 2.0, %v4007_v58  ;;  %v3124_v41 = vmul.f32 %v4363_v16, %v3123_v51  ;;  %v1523_v52 = vadd.f32 %v1522_v27, %v5462_v37  ;;  %v5535_v8 = vadd.f32 %v1714_v0, %v1650_v57  ;;  %v4697_v37 = vld [vmem:[#allocation2 + $0x148] sm:$0xff]  ;;  %v523_v58 = vld [vmem:[#allocation5 + $0xa78] sm:$0xff]  ;;  %2016 = vmatpush.xpose.msrb.mxu0 %v520_v22 }
 0x275   :  { %v1587_v6 = vpop.f32.mrf.mxu1  ;;  %2146 = vmatpush.xpose.msrb.mxu2 %v522_v55  ;;  %v4702_v0 = vld [vmem:[#allocation2 + $0x198] sm:$0xff]  ;;  %2211 = vmatpush.xpose.msrb.mxu3 %v523_v58  ;;  %v4707_v58 = vld [vmem:[#allocation2 + $0x200] sm:$0xff] }
 0x276   :  { %v4365_v60 = vpop.eup %4364  ;;  %4135 = vst [vmem:[#allocation8 + $0x8] sm:$0xff] %v4071_v31  ;;  %v3125_v39 = vadd.f32 %v4363_v16, %v3124_v41  ;;  %1781 = vmatmul.f32.gmra.mxu0 %v4695_v17  ;;  %1911 = vmatmul.f32.gmra.mxu2 %v4696_v28  ;;  %v4235_v9 = vmul.f32 -1.442695, %v5535_v8  ;;  %v1588_v1 = vadd.f32 %v1587_v6, %v1523_v52  ;;  %v521_v31 = vld [vmem:[#allocation5 + $0xa68] sm:$0xff] }
 0x277   :  { %v5538_v12 = vpop.eup %4366  ;;  %v5540_v15 = vadd.f32 1.0, %v4365_v60  ;;  %2081 = vmatpush.xpose.msrb.mxu1 %v521_v31  ;;  %v506_v31 = vld [vmem:[#allocation5 + $0x9f0] sm:$0xff] }
 0x278   :  { %1846 = vmatmul.f32.gmra.mxu1 %v4697_v37  ;;  %v3129_v20 = vsel %vm3128_vm6, %v4363_v16, %v3125_v39  ;;  %v3182_v5 = vmul.f32 %v5538_v12, %v5525_v47  ;;  %1976 = vmatmul.f32.gmra.mxu3 %v4698_v36  ;;  %vm3187_vm8 = vweird.f32 %v5538_v12  ;;  %v3190_v16 = vand.u32 2147483647, %v5525_v47  ;;  %v4701_v47 = vld [vmem:[#allocation2 + $0x188] sm:$0xff] }
 0x279   :  { %v3134_v62 = vsel %vm3131_vm7, %v3133_v14, %v3129_v20  ;;  %4368 = vrcp.f32 %v5540_v15  ;;  %v1652_v26 = vpop.f32.mrf.mxu2  ;;  %vm5556_vm10 = vmor %vm3186_vm9, %vm3187_vm8  ;;  %v3250_v17 = vand.u32 2147483647, %v5540_v15  ;;  %v3252_v28 = vand.u32 2147483648, %v5540_v15 }
 0x27a   :  { %v4011_v21 = vmul.f32 %v3134_v62, %v5499_v4  ;;  %v3183_v7 = vsub.f32 1.0, %v3182_v5  ;;  %4370 = vpow2.f32 %v4235_v9  ;;  %v1653_v40 = vadd.f32 %v1652_v26, %v1588_v1  ;;  %v514_v62 = vld [vmem:[#allocation5 + $0xa30] sm:$0xff]  ;;  %v512_v1 = vld [vmem:[#allocation5 + $0xa20] sm:$0xff]  ;;  %v515_v26 = vld [vmem:[#allocation5 + $0xa38] sm:$0xff] }
 0x27b   :  { %v1525_v42 = vpop.f32.mrf.mxu0  ;;  %v1717_v44 = vpop.f32.mrf.mxu3  ;;  %vm3191_vm11 = vcmp.eq.f32.partialorder %v3190_v16, 8.507059e+37  ;;  %vm3246_vm13 = vweird.f32 %v5540_v15  ;;  %2147 = vmatpush.xpose.msrb.mxu2 %v514_v62  ;;  %vm3251_vm15 = vcmp.eq.f32.partialorder %v3250_v17, 8.507059e+37  ;;  %2017 = vmatpush.xpose.msrb.mxu0 %v512_v1 }
 0x27c   :  { %v4075_v45 = vmul.f32 2.0, %v4011_v21  ;;  %v3184_v49 = vmul.f32 %v5538_v12, %v3183_v7  ;;  %v1526_v63 = vadd.f32 %v1525_v42, %v5465_v29  ;;  %v5553_v4 = vadd.f32 %v1717_v44, %v1653_v40  ;;  %v513_v7 = vld [vmem:[#allocation5 + $0xa28] sm:$0xff]  ;;  %v4706_v40 = vld [vmem:[#allocation2 + $0x1d8] sm:$0xff]  ;;  %2212 = vmatpush.xpose.msrb.mxu3 %v515_v26 }
 0x27d   :  { %v1590_v46 = vpop.f32.mrf.mxu1  ;;  %v3253_v21 = vor.u32 1.1754944e-38, %v3252_v28  ;;  %2082 = vmatpush.xpose.msrb.mxu1 %v513_v7  ;;  %v4711_v7 = vld [vmem:[#allocation2 + $0x240] sm:$0xff] }
 0x27e   :  { %4139 = vst [vmem:[#allocation8 + $0x28] sm:$0xff] %v4075_v45  ;;  %v3185_v50 = vadd.f32 %v5538_v12, %v3184_v49  ;;  %1784 = vmatmul.f32.gmra.mxu0 %v4699_v56  ;;  %1914 = vmatmul.f32.gmra.mxu2 %v4700_v30  ;;  %v4239_v29 = vmul.f32 -1.442695, %v5553_v4  ;;  %v1591_v27 = vadd.f32 %v1590_v46, %v1526_v63 }
 0x27f   :  { %v5560_v54 = vpop.eup %4368  ;;  %2148 = vmatpush.xpose.msrb.mxu2 %v506_v31 }
 0x280   :  { %1849 = vmatmul.f32.gmra.mxu1 %v4701_v47  ;;  %v4371_v51 = vpop.eup %4370  ;;  %v3189_v57 = vsel %vm5556_vm10, %v5538_v12, %v3185_v50  ;;  %v3242_v23 = vmul.f32 %v5560_v54, %v5540_v15  ;;  %1979 = vmatmul.f32.gmra.mxu3 %v4702_v0  ;;  %4372 = vpow2.f32 %v4239_v29  ;;  %vm3247_vm12 = vweird.f32 %v5560_v54 }
 0x281   :  { %v3194_v41 = vsel %vm3191_vm11, %v3193_v24, %v3189_v57  ;;  %v5568_v3 = vadd.f32 1.0, %v4371_v51  ;;  %v1655_v6 = vpop.f32.mrf.mxu2  ;;  %vm3248_vm14 = vmor %vm3246_vm13, %vm3247_vm12  ;;  %v4708_v51 = vld [vmem:[#allocation2 + $0x210] sm:$0xff] }
 0x282   :  { %v4015_v52 = vmul.f32 %v3194_v41, %v5506_v53  ;;  %v3243_v60 = vsub.f32 1.0, %v3242_v23  ;;  %v1656_v39 = vadd.f32 %v1655_v6, %v1591_v27  ;;  %v4709_v27 = vld [vmem:[#allocation2 + $0x208] sm:$0xff]  ;;  %v4710_v41 = vld [vmem:[#allocation2 + $0x218] sm:$0xff]  ;;  %v504_v6 = vld [vmem:[#allocation5 + $0x9e0] sm:$0xff] }
 0x283   :  { %4374 = vrcp.f32 %v5568_v3  ;;  %v1528_v12 = vpop.f32.mrf.mxu0  ;;  %v1720_v14 = vpop.f32.mrf.mxu3  ;;  %v3312_v24 = vand.u32 2147483648, %v5568_v3  ;;  %vm3306_vm1 = vweird.f32 %v5568_v3  ;;  %2018 = vmatpush.xpose.msrb.mxu0 %v504_v6 }
 0x284   :  { %v4079_v9 = vmul.f32 2.0, %v4015_v52  ;;  %v3244_v37 = vmul.f32 %v5560_v54, %v3243_v60  ;;  %v5576_v20 = vadd.f32 %v1720_v14, %v1656_v39  ;;  %v1529_v53 = vadd.f32 %v1528_v12, %v5468_v59  ;;  %v4705_v59 = vld [vmem:[#allocation2 + $0x1c8] sm:$0xff]  ;;  %v507_v52 = vld [vmem:[#allocation5 + $0x9f8] sm:$0xff] }
 0x285   :  { %v1593_v5 = vpop.f32.mrf.mxu1  ;;  %v3313_v60 = vor.u32 1.1754944e-38, %v3312_v24  ;;  %v505_v12 = vld [vmem:[#allocation5 + $0x9e8] sm:$0xff]  ;;  %2213 = vmatpush.xpose.msrb.mxu3 %v507_v52  ;;  %v488_v24 = vld [vmem:[#allocation5 + $0x960] sm:$0xff] }
 0x286   :  { %4143 = vst [vmem:[#allocation8 + $0x48] sm:$0xff] %v4079_v9  ;;  %v3245_v11 = vadd.f32 %v5560_v54, %v3244_v37  ;;  %v4243_v36 = vmul.f32 -1.442695, %v5576_v20  ;;  %1787 = vmatmul.f32.gmra.mxu0 %v4703_v61  ;;  %1917 = vmatmul.f32.gmra.mxu2 %v4704_v25  ;;  %v4373_v35 = vpop.eup %4372  ;;  %v1594_v45 = vadd.f32 %v1593_v5, %v1529_v53 }
 0x287   :  { %v5585_v13 = vadd.f32 1.0, %v4373_v35  ;;  %2083 = vmatpush.xpose.msrb.mxu1 %v505_v12  ;;  %v498_v35 = vld [vmem:[#allocation5 + $0x9b0] sm:$0xff]  ;;  %v4715_v12 = vld [vmem:[#allocation2 + $0x280] sm:$0xff] }
 0x288   :  { %1852 = vmatmul.f32.gmra.mxu1 %v4705_v59  ;;  %v3249_v15 = vsel %vm3248_vm14, %v5560_v54, %v3245_v11  ;;  %4376 = vpow2.f32 %v4243_v36  ;;  %1982 = vmatmul.f32.gmra.mxu3 %v4706_v40 }
 0x289   :  { %v4375_v42 = vpop.eup %4374  ;;  %v3254_v44 = vsel %vm3251_vm15, %v3253_v21, %v3249_v15  ;;  %v1658_v49 = vpop.f32.mrf.mxu2  ;;  %4378 = vrcp.f32 %v5585_v13  ;;  %v3372_v36 = vand.u32 2147483648, %v5585_v13  ;;  %v3370_v1 = vand.u32 2147483647, %v5585_v13  ;;  %v496_v21 = vld [vmem:[#allocation5 + $0x9a0] sm:$0xff]  ;;  %v4712_v15 = vld [vmem:[#allocation2 + $0x250] sm:$0xff]  ;;  %2149 = vmatpush.xpose.msrb.mxu2 %v498_v35 }
 0x28a   :  { %v4019_v16 = vmul.f32 %v3254_v44, %v5516_v34  ;;  %v3302_v63 = vmul.f32 %v4375_v42, %v5568_v3  ;;  %v1659_v46 = vadd.f32 %v1658_v49, %v1594_v45  ;;  %vm3307_vm0 = vweird.f32 %v4375_v42  ;;  %v499_v44 = vld [vmem:[#allocation5 + $0x9b8] sm:$0xff]  ;;  %v497_v45 = vld [vmem:[#allocation5 + $0x9a8] sm:$0xff]  ;;  %2019 = vmatpush.xpose.msrb.mxu0 %v496_v21  ;;  %v474_v35 = vld [vmem:[#allocation5 + $0x8f0] sm:$0xff] }
 0x28b   :  { %v1531_v50 = vpop.f32.mrf.mxu0  ;;  %v1723_v18 = vpop.f32.mrf.mxu3  ;;  %v3310_v34 = vand.u32 2147483647, %v5568_v3  ;;  %vm3308_vm2 = vmor %vm3306_vm1, %vm3307_vm0  ;;  %vm3366_vm5 = vweird.f32 %v5585_v13  ;;  %vm3371_vm7 = vcmp.eq.f32.partialorder %v3370_v1, 8.507059e+37  ;;  %2214 = vmatpush.xpose.msrb.mxu3 %v499_v44  ;;  %2084 = vmatpush.xpose.msrb.mxu1 %v497_v45  ;;  %v472_v21 = vld [vmem:[#allocation5 + $0x8e0] sm:$0xff] }
 0x28c   :  { %v4083_v56 = vmul.f32 2.0, %v4019_v16  ;;  %v3303_v30 = vsub.f32 1.0, %v3302_v63  ;;  %v1532_v29 = vadd.f32 %v1531_v50, %v5471_v10  ;;  %v5592_v55 = vadd.f32 %v1723_v18, %v1659_v46  ;;  %v4714_v50 = vld [vmem:[#allocation2 + $0x258] sm:$0xff] }
 0x28d   :  { %v1596_v54 = vpop.f32.mrf.mxu1  ;;  %vm3311_vm3 = vcmp.eq.f32.partialorder %v3310_v34, 8.507059e+37  ;;  %v3373_v63 = vor.u32 1.1754944e-38, %v3372_v36  ;;  %v4718_v36 = vld [vmem:[#allocation2 + $0x298] sm:$0xff] }
 0x28e   :  { %v4377_v47 = vpop.eup %4376  ;;  %4147 = vst [vmem:[#allocation8 + $0x68] sm:$0xff] %v4083_v56  ;;  %v3304_v22 = vmul.f32 %v4375_v42, %v3303_v30  ;;  %1790 = vmatmul.f32.gmra.mxu0 %v4707_v58  ;;  %1920 = vmatmul.f32.gmra.mxu2 %v4708_v51  ;;  %v4247_v23 = vmul.f32 -1.442695, %v5592_v55  ;;  %v1597_v17 = vadd.f32 %v1596_v54, %v1532_v29  ;;  %v490_v54 = vld [vmem:[#allocation5 + $0x970] sm:$0xff] }
 0x28f   :  { %v5595_v57 = vadd.f32 1.0, %v4377_v47  ;;  %v5598_v0 = vpop.eup %4378  ;;  %2150 = vmatpush.xpose.msrb.mxu2 %v490_v54  ;;  %2020 = vmatpush.xpose.msrb.mxu0 %v488_v24  ;;  %v4719_v54 = vld [vmem:[#allocation2 + $0x2c0] sm:$0xff]  ;;  %v4720_v24 = vld [vmem:[#allocation2 + $0x2d0] sm:$0xff] }
 0x290   :  { %1855 = vmatmul.f32.gmra.mxu1 %v4709_v27  ;;  %v3305_v10 = vadd.f32 %v4375_v42, %v3304_v22  ;;  %1985 = vmatmul.f32.gmra.mxu3 %v4710_v41  ;;  %v3362_v39 = vmul.f32 %v5598_v0, %v5585_v13  ;;  %vm3367_vm4 = vweird.f32 %v5598_v0  ;;  %v491_v27 = vld [vmem:[#allocation5 + $0x978] sm:$0xff] }
 0x291   :  { %4380 = vrcp.f32 %v5595_v57  ;;  %v1661_v28 = vpop.f32.mrf.mxu2  ;;  %vm5620_vm6 = vmor %vm3366_vm5, %vm3367_vm4  ;;  %v3432_v58 = vand.u32 2147483648, %v5595_v57  ;;  %v3430_v31 = vand.u32 2147483647, %v5595_v57  ;;  %2215 = vmatpush.xpose.msrb.mxu3 %v491_v27  ;;  %vm3426_vm9 = vweird.f32 %v5595_v57 }
 0x292   :  { %v3309_v14 = vsel %vm3308_vm2, %v4375_v42, %v3305_v10  ;;  %4382 = vpow2.f32 %v4247_v23  ;;  %v3363_v9 = vsub.f32 1.0, %v3362_v39  ;;  %v1662_v37 = vadd.f32 %v1661_v28, %v1597_v17  ;;  %v4713_v42 = vld [vmem:[#allocation2 + $0x248] sm:$0xff]  ;;  %v480_v39 = vld [vmem:[#allocation5 + $0x920] sm:$0xff] }
 0x293   :  { %v3314_v3 = vsel %vm3311_vm3, %v3313_v60, %v3309_v14  ;;  %v1534_v5 = vpop.f32.mrf.mxu0  ;;  %v1726_v53 = vpop.f32.mrf.mxu3  ;;  %v482_v60 = vld [vmem:[#allocation5 + $0x930] sm:$0xff]  ;;  %vm3431_vm11 = vcmp.eq.f32.partialorder %v3430_v31, 8.507059e+37  ;;  %2021 = vmatpush.xpose.msrb.mxu0 %v480_v39 }
 0x294   :  { %v4023_v11 = vmul.f32 %v3314_v3, %v5535_v8  ;;  %v1535_v61 = vadd.f32 %v1534_v5, %v5474_v32  ;;  %v3364_v62 = vmul.f32 %v5598_v0, %v3363_v9  ;;  %v5611_v26 = vadd.f32 %v1726_v53, %v1662_v37  ;;  %v4716_v14 = vld [vmem:[#allocation2 + $0x290] sm:$0xff]  ;;  %v4717_v37 = vld [vmem:[#allocation2 + $0x288] sm:$0xff]  ;;  %2151 = vmatpush.xpose.msrb.mxu2 %v482_v60  ;;  %v483_v5 = vld [vmem:[#allocation5 + $0x938] sm:$0xff] }
 0x295   :  { %v1599_v25 = vpop.f32.mrf.mxu1  ;;  %v3433_v9 = vor.u32 1.1754944e-38, %v3432_v58  ;;  %2216 = vmatpush.xpose.msrb.mxu3 %v483_v5 }
 0x296   :  { %v4087_v59 = vmul.f32 2.0, %v4023_v11  ;;  %1793 = vmatmul.f32.gmra.mxu0 %v4711_v7  ;;  %1923 = vmatmul.f32.gmra.mxu2 %v4712_v15  ;;  %v3365_v32 = vadd.f32 %v5598_v0, %v3364_v62  ;;  %v4251_v40 = vmul.f32 -1.442695, %v5611_v26  ;;  %v1600_v13 = vadd.f32 %v1599_v25, %v1535_v61 }
 0x297   :  { %v5613_v8 = vpop.eup %4380  ;;  %2022 = vmatpush.xpose.msrb.mxu0 %v472_v21  ;;  %v4725_v21 = vld [vmem:[#allocation2 + $0x308] sm:$0xff] }
 0x298   :  { %1858 = vmatmul.f32.gmra.mxu1 %v4713_v42  ;;  %v4383_v49 = vpop.eup %4382  ;;  %4151 = vst [vmem:[#allocation8 + $0x88] sm:$0xff] %v4087_v59  ;;  %v3422_v46 = vmul.f32 %v5613_v8, %v5595_v57  ;;  %1988 = vmatmul.f32.gmra.mxu3 %v4714_v50  ;;  %v3369_v18 = vsel %vm5620_vm6, %v5598_v0, %v3365_v32  ;;  %4384 = vpow2.f32 %v4251_v40  ;;  %v489_v0 = vld [vmem:[#allocation5 + $0x968] sm:$0xff]  ;;  %vm3427_vm8 = vweird.f32 %v5613_v8  ;;  %v475_v40 = vld [vmem:[#allocation5 + $0x8f8] sm:$0xff] }
 0x299   :  { %v5629_v56 = vadd.f32 1.0, %v4383_v49  ;;  %v1664_v30 = vpop.f32.mrf.mxu2  ;;  %v3374_v29 = vsel %vm3371_vm7, %v3373_v63, %v3369_v18  ;;  %2085 = vmatpush.xpose.msrb.mxu1 %v489_v0  ;;  %vm5645_vm10 = vmor %vm3426_vm9, %vm3427_vm8  ;;  %v481_v57 = vld [vmem:[#allocation5 + $0x928] sm:$0xff]  ;;  %2152 = vmatpush.xpose.msrb.mxu2 %v474_v35 }
 0x29a   :  { %v3423_v47 = vsub.f32 1.0, %v3422_v46  ;;  %v1665_v22 = vadd.f32 %v1664_v30, %v1600_v13  ;;  %v4027_v34 = vmul.f32 %v3374_v29, %v5553_v4  ;;  %v473_v42 = vld [vmem:[#allocation5 + $0x8e8] sm:$0xff]  ;;  %2217 = vmatpush.xpose.msrb.mxu3 %v475_v40  ;;  %v466_v46 = vld [vmem:[#allocation5 + $0x8b0] sm:$0xff]  ;;  %v464_v13 = vld [vmem:[#allocation5 + $0x8a0] sm:$0xff] }
 0x29b   :  { %4386 = vrcp.f32 %v5629_v56  ;;  %v1537_v51 = vpop.f32.mrf.mxu0  ;;  %v1729_v23 = vpop.f32.mrf.mxu3  ;;  %v3492_v16 = vand.u32 2147483648, %v5629_v56  ;;  %v3490_v30 = vand.u32 2147483647, %v5629_v56  ;;  %vm3486_vm13 = vweird.f32 %v5629_v56  ;;  %2023 = vmatpush.xpose.msrb.mxu0 %v464_v13 }
 0x29c   :  { %v3424_v10 = vmul.f32 %v5613_v8, %v3423_v47  ;;  %v5637_v41 = vadd.f32 %v1729_v23, %v1665_v22  ;;  %v4091_v4 = vmul.f32 2.0, %v4027_v34  ;;  %v1538_v52 = vadd.f32 %v1537_v51, %v5477_v43  ;;  %v4721_v47 = vld [vmem:[#allocation2 + $0x2c8] sm:$0xff]  ;;  %v467_v22 = vld [vmem:[#allocation5 + $0x8b8] sm:$0xff] }
 0x29d   :  { %v1602_v6 = vpop.f32.mrf.mxu1  ;;  %2086 = vmatpush.xpose.msrb.mxu1 %v481_v57  ;;  %2153 = vmatpush.xpose.msrb.mxu2 %v466_v46  ;;  %v465_v34 = vld [vmem:[#allocation5 + $0x8a8] sm:$0xff]  ;;  %v4722_v23 = vld [vmem:[#allocation2 + $0x2d8] sm:$0xff]  ;;  %v3493_v27 = vor.u32 1.1754944e-38, %v3492_v16  ;;  %vm3491_vm15 = vcmp.eq.f32.partialorder %v3490_v30, 8.507059e+37 }
 0x29e   :  { %v3425_v17 = vadd.f32 %v5613_v8, %v3424_v10  ;;  %v4255_v28 = vmul.f32 -1.442695, %v5637_v41  ;;  %1796 = vmatmul.f32.gmra.mxu0 %v4715_v12  ;;  %1926 = vmatmul.f32.gmra.mxu2 %v4716_v14  ;;  %v4385_v3 = vpop.eup %4384  ;;  %4155 = vst [vmem:[#allocation8 + $0xa8] sm:$0xff] %v4091_v4  ;;  %v1603_v62 = vadd.f32 %v1602_v6, %v1538_v52  ;;  %v458_v6 = vld [vmem:[#allocation5 + $0x870] sm:$0xff]  ;;  %v456_v4 = vld [vmem:[#allocation5 + $0x860] sm:$0xff]  ;;  %v459_v12 = vld [vmem:[#allocation5 + $0x878] sm:$0xff] }
 0x29f   :  { %v5652_v11 = vadd.f32 1.0, %v4385_v3  ;;  %2218 = vmatpush.xpose.msrb.mxu3 %v467_v22  ;;  %v457_v14 = vld [vmem:[#allocation5 + $0x868] sm:$0xff]  ;;  %2024 = vmatpush.xpose.msrb.mxu0 %v456_v4 }
 0x2a0   :  { %1861 = vmatmul.f32.gmra.mxu1 %v4717_v37  ;;  %v3429_v53 = vsel %vm5645_vm10, %v5613_v8, %v3425_v17  ;;  %4388 = vpow2.f32 %v4255_v28  ;;  %1991 = vmatmul.f32.gmra.mxu3 %v4718_v36  ;;  %v450_v36 = vld [vmem:[#allocation5 + $0x830] sm:$0xff] }
 0x2a1   :  { %v5654_v61 = vpop.eup %4386  ;;  %v3434_v25 = vsel %vm3431_vm11, %v3433_v9, %v3429_v53  ;;  %v1667_v1 = vpop.f32.mrf.mxu2  ;;  %4390 = vrcp.f32 %v5652_v11  ;;  %2087 = vmatpush.xpose.msrb.mxu1 %v473_v42  ;;  %2154 = vmatpush.xpose.msrb.mxu2 %v458_v6  ;;  %v3552_v43 = vand.u32 2147483648, %v5652_v11  ;;  %v3550_v57 = vand.u32 2147483647, %v5652_v11  ;;  %v4726_v42 = vld [vmem:[#allocation2 + $0x318] sm:$0xff] }
 0x2a2   :  { %v4031_v59 = vmul.f32 %v3434_v25, %v5576_v20  ;;  %v3482_v7 = vmul.f32 %v5654_v61, %v5629_v56  ;;  %v1668_v15 = vadd.f32 %v1667_v1, %v1603_v62  ;;  %vm3487_vm12 = vweird.f32 %v5654_v61  ;;  %v4724_v62 = vld [vmem:[#allocation2 + $0x310] sm:$0xff] }
 0x2a3   :  { %v1540_v8 = vpop.f32.mrf.mxu0  ;;  %v1732_v32 = vpop.f32.mrf.mxu3  ;;  %vm3488_vm14 = vmor %vm3486_vm13, %vm3487_vm12  ;;  %2219 = vmatpush.xpose.msrb.mxu3 %v459_v12  ;;  %vm3546_vm1 = vweird.f32 %v5652_v11  ;;  %vm3551_vm3 = vcmp.eq.f32.partialorder %v3550_v57, 8.507059e+37 }
 0x2a4   :  { %v4095_v44 = vmul.f32 2.0, %v4031_v59  ;;  %v3483_v45 = vsub.f32 1.0, %v3482_v7  ;;  %v1541_v63 = vadd.f32 %v1540_v8, %v5480_v2  ;;  %v5662_v20 = vadd.f32 %v1732_v32, %v1668_v15  ;;  %v451_v59 = vld [vmem:[#allocation5 + $0x838] sm:$0xff]  ;;  %v449_v7 = vld [vmem:[#allocation5 + $0x828] sm:$0xff] }
 0x2a5   :  { %v1605_v49 = vpop.f32.mrf.mxu1  ;;  %2088 = vmatpush.xpose.msrb.mxu1 %v465_v34  ;;  %2155 = vmatpush.xpose.msrb.mxu2 %v450_v36  ;;  %v3553_v8 = vor.u32 1.1754944e-38, %v3552_v43  ;;  %v4731_v36 = vld [vmem:[#allocation2 + $0x380] sm:$0xff] }
 0x2a6   :  { %v4389_v50 = vpop.eup %4388  ;;  %4159 = vst [vmem:[#allocation8 + $0xc8] sm:$0xff] %v4095_v44  ;;  %v3484_v18 = vmul.f32 %v5654_v61, %v3483_v45  ;;  %1799 = vmatmul.f32.gmra.mxu0 %v4719_v54  ;;  %1929 = vmatmul.f32.gmra.mxu2 %v4720_v24  ;;  %v4259_v2 = vmul.f32 -1.442695, %v5662_v20  ;;  %v1606_v10 = vadd.f32 %v1605_v49, %v1541_v63 }
 0x2a7   :  { %v5667_v29 = vadd.f32 1.0, %v4389_v50  ;;  %v5670_v58 = vpop.eup %4390  ;;  %2220 = vmatpush.xpose.msrb.mxu3 %v451_v59 }
 0x2a8   :  { %1864 = vmatmul.f32.gmra.mxu1 %v4721_v47  ;;  %v3485_v51 = vadd.f32 %v5654_v61, %v3484_v18  ;;  %1994 = vmatmul.f32.gmra.mxu3 %v4722_v23  ;;  %v3542_v0 = vmul.f32 %v5670_v58, %v5652_v11  ;;  %vm3547_vm0 = vweird.f32 %v5670_v58 }
 0x2a9   :  { %4392 = vrcp.f32 %v5667_v29  ;;  %v1670_v31 = vpop.f32.mrf.mxu2  ;;  %2089 = vmatpush.xpose.msrb.mxu1 %v457_v14  ;;  %vm3548_vm2 = vmor %vm3546_vm1, %vm3547_vm0  ;;  %v3612_v13 = vand.u32 2147483648, %v5667_v29  ;;  %v3610_v54 = vand.u32 2147483647, %v5667_v29  ;;  %vm3606_vm5 = vweird.f32 %v5667_v29 }
 0x2aa   :  { %v3489_v56 = vsel %vm3488_vm14, %v5654_v61, %v3485_v51  ;;  %4394 = vpow2.f32 %v4259_v2  ;;  %v3543_v60 = vsub.f32 1.0, %v3542_v0  ;;  %v1671_v39 = vadd.f32 %v1670_v31, %v1606_v10  ;;  %v448_v61 = vld [vmem:[#allocation5 + $0x820] sm:$0xff]  ;;  %v4728_v51 = vld [vmem:[#allocation2 + $0x350] sm:$0xff]  ;;  %v4729_v0 = vld [vmem:[#allocation2 + $0x348] sm:$0xff] }
 0x2ab   :  { %v3494_v52 = vsel %vm3491_vm15, %v3493_v27, %v3489_v56  ;;  %v1543_v17 = vpop.f32.mrf.mxu0  ;;  %v1735_v28 = vpop.f32.mrf.mxu3  ;;  %2025 = vmatpush.xpose.msrb.mxu0 %v448_v61  ;;  %v3613_v27 = vor.u32 1.1754944e-38, %v3612_v13  ;;  %vm3611_vm7 = vcmp.eq.f32.partialorder %v3610_v54, 8.507059e+37  ;;  %v4732_v61 = vld [vmem:[#allocation2 + $0x390] sm:$0xff] }
 0x2ac   :  { %v4035_v3 = vmul.f32 %v3494_v52, %v5592_v55  ;;  %v1544_v9 = vadd.f32 %v1543_v17, %v5483_v33  ;;  %v3544_v5 = vmul.f32 %v5670_v58, %v3543_v60  ;;  %v5686_v53 = vadd.f32 %v1735_v28, %v1671_v39  ;;  %v4723_v55 = vld [vmem:[#allocation2 + $0x300] sm:$0xff] }
 0x2ad   :  { %v1608_v37 = vpop.f32.mrf.mxu1  ;;  %2090 = vmatpush.xpose.msrb.mxu1 %v449_v7 }
 0x2ae   :  { %v4099_v25 = vmul.f32 2.0, %v4035_v3  ;;  %1802 = vmatmul.f32.gmra.mxu0 %v4723_v55  ;;  %1932 = vmatmul.f32.gmra.mxu2 %v4724_v62  ;;  %v3545_v1 = vadd.f32 %v5670_v58, %v3544_v5  ;;  %v4263_v35 = vmul.f32 -1.442695, %v5686_v53  ;;  %v1609_v40 = vadd.f32 %v1608_v37, %v1544_v9  ;;  %v4733_v62 = vld [vmem:[#allocation2 + $0x388] sm:$0xff] }
 0x2af   :  { %v4393_v33 = vpop.eup %4392 }
 0x2b0   :  { %1867 = vmatmul.f32.gmra.mxu1 %v4725_v21  ;;  %v4395_v15 = vpop.eup %4394  ;;  %4163 = vst [vmem:[#allocation8 + $0xe8] sm:$0xff] %v4099_v25  ;;  %v3602_v32 = vmul.f32 %v4393_v33, %v5667_v29  ;;  %1997 = vmatmul.f32.gmra.mxu3 %v4726_v42  ;;  %v3549_v11 = vsel %vm3548_vm2, %v5670_v58, %v3545_v1  ;;  %4396 = vpow2.f32 %v4263_v35  ;;  %vm3607_vm4 = vweird.f32 %v4393_v33  ;;  %v4727_v58 = vld [vmem:[#allocation2 + $0x340] sm:$0xff]  ;;  %v4734_v1 = vld [vmem:[#allocation2 + $0x398] sm:$0xff] }
 0x2b1   :  { %v5695_v44 = vadd.f32 1.0, %v4395_v15  ;;  %v1673_v45 = vpop.f32.mrf.mxu2  ;;  %v3554_v49 = vsel %vm3551_vm3, %v3553_v8, %v3549_v11  ;;  %vm3608_vm6 = vmor %vm3606_vm5, %vm3607_vm4 }
 0x2b2   :  { %v3603_v16 = vsub.f32 1.0, %v3602_v32  ;;  %v1674_v63 = vadd.f32 %v1673_v45, %v1609_v40  ;;  %v4039_v46 = vmul.f32 %v3554_v49, %v5611_v26 }
 0x2b3   :  { %4398 = vrcp.f32 %v5695_v44  ;;  %v1546_v50 = vpop.f32.mrf.mxu0  ;;  %v1738_v18 = vpop.f32.mrf.mxu3  ;;  %v3672_v43 = vand.u32 2147483648, %v5695_v44  ;;  %vm3666_vm9 = vweird.f32 %v5695_v44 }
 0x2b4   :  { %v3604_v30 = vmul.f32 %v4393_v33, %v3603_v16  ;;  %v5701_v24 = vadd.f32 %v1738_v18, %v1674_v63  ;;  %v4103_v47 = vmul.f32 2.0, %v4039_v46  ;;  %v1547_v22 = vadd.f32 %v1546_v50, %v5486_v19  ;;  %v4730_v19 = vld [vmem:[#allocation2 + $0x358] sm:$0xff]  ;;  %v4735_v18 = vld [vmem:[#allocation2 + $0x3c0] sm:$0xff] }
 0x2b5   :  { %v1611_v2 = vpop.f32.mrf.mxu1  ;;  %v3673_v35 = vor.u32 1.1754944e-38, %v3672_v43  ;;  %v4740_v43 = vld [vmem:[#allocation2 + $0x20] sm:$0xff] }
 0x2b6   :  { %v3605_v34 = vadd.f32 %v4393_v33, %v3604_v30  ;;  %v4267_v26 = vmul.f32 -1.442695, %v5701_v24  ;;  %1805 = vmatmul.f32.gmra.mxu0 %v4727_v58  ;;  %1935 = vmatmul.f32.gmra.mxu2 %v4728_v51  ;;  %v4397_v23 = vpop.eup %4396  ;;  %4167 = vst [vmem:[#allocation8 + $0x108] sm:$0xff] %v4103_v47  ;;  %v1612_v4 = vadd.f32 %v1611_v2, %v1547_v22  ;;  %v4736_v30 = vld [vmem:[#allocation2 + $0x3d0] sm:$0xff]  ;;  %v4738_v58 = vld [vmem:[#allocation2 + $0x3d8] sm:$0xff] }
 0x2b7   :  { %v5707_v31 = vadd.f32 1.0, %v4397_v23  ;;  %v4739_v51 = vld [vmem:[#allocation7] sm:$0xf] }
 0x2b8   :  { %1870 = vmatmul.f32.gmra.mxu1 %v4729_v0  ;;  %v3609_v10 = vsel %vm3608_vm6, %v4393_v33, %v3605_v34  ;;  %4400 = vpow2.f32 %v4267_v26  ;;  %2000 = vmatmul.f32.gmra.mxu3 %v4730_v19  ;;  %v5737_v23 = vperm.slane %v4739_v51, 2 }
 0x2b9   :  { %v4399_v29 = vpop.eup %4398  ;;  %v3614_v6 = vsel %vm3611_vm7, %v3613_v27, %v3609_v10  ;;  %v1676_v56 = vpop.f32.mrf.mxu2  ;;  %4402 = vrcp.f32 %v5707_v31  ;;  %v3732_v45 = vand.u32 2147483648, %v5707_v31  ;;  %v3730_v46 = vand.u32 2147483647, %v5707_v31 }
 0x2ba   :  { %v4043_v52 = vmul.f32 %v3614_v6, %v5637_v41  ;;  %v3662_v60 = vmul.f32 %v4399_v29, %v5695_v44  ;;  %v1677_v39 = vadd.f32 %v1676_v56, %v1612_v4  ;;  %vm3667_vm8 = vweird.f32 %v4399_v29 }
 0x2bb   :  { %v1549_v17 = vpop.f32.mrf.mxu0  ;;  %v1741_v28 = vpop.f32.mrf.mxu3  ;;  %v3670_v41 = vand.u32 2147483647, %v5695_v44  ;;  %vm3668_vm10 = vmor %vm3666_vm9, %vm3667_vm8  ;;  %vm3726_vm13 = vweird.f32 %v5707_v31  ;;  %v3733_v22 = vor.u32 1.1754944e-38, %v3732_v45  ;;  %vm3731_vm15 = vcmp.eq.f32.partialorder %v3730_v46, 8.507059e+37 }
 0x2bc   :  { %v4107_v12 = vmul.f32 2.0, %v4043_v52  ;;  %v3663_v14 = vsub.f32 1.0, %v3662_v60  ;;  %v1550_v9 = vadd.f32 %v1549_v17, %v5489_v38  ;;  %v5714_v37 = vadd.f32 %v1741_v28, %v1677_v39 }
 0x2bd   :  { %v1614_v3 = vpop.f32.mrf.mxu1  ;;  %vm3671_vm11 = vcmp.eq.f32.partialorder %v3670_v41, 8.507059e+37  ;;  %v695_v41 = vld [vmem:[#allocation5 + $0xfd8] sm:$0xff] }
 0x2be   :  { %v4401_v5 = vpop.eup %4400  ;;  %4171 = vst [vmem:[#allocation8 + $0x128] sm:$0xff] %v4107_v12  ;;  %v3664_v57 = vmul.f32 %v4399_v29, %v3663_v14  ;;  %1808 = vmatmul.f32.gmra.mxu0 %v4731_v36  ;;  %1938 = vmatmul.f32.gmra.mxu2 %v4732_v61  ;;  %v4271_v55 = vmul.f32 -1.442695, %v5714_v37  ;;  %v1615_v59 = vadd.f32 %v1614_v3, %v1550_v9  ;;  %v4741_v9 = vld [vmem:[#allocation2 + $0x30] sm:$0xff] }
 0x2bf   :  { %v5717_v25 = vadd.f32 1.0, %v4401_v5  ;;  %v4403_v33 = vpop.eup %4402  ;;  %v694_v5 = vld [vmem:[#allocation5 + $0xfd0] sm:$0xff]  ;;  %2465 = vmatpush.xpose.msra.mxu3 %v695_v41 }
 0x2c0   :  { %1873 = vmatmul.f32.gmra.mxu1 %v4733_v62  ;;  %v3665_v38 = vadd.f32 %v4399_v29, %v3664_v57  ;;  %2003 = vmatmul.f32.gmra.mxu3 %v4734_v1  ;;  %v3722_v21 = vmul.f32 %v4403_v33, %v5707_v31  ;;  %vm3727_vm12 = vweird.f32 %v4403_v33  ;;  %v692_v57 = vld [vmem:[#allocation5 + $0xfc0] sm:$0xff]  ;;  %v662_v41 = vld [vmem:[#allocation5 + $0xed0] sm:$0xff] }
 0x2c1   :  { %4404 = vrcp.f32 %v5717_v25  ;;  %v1679_v7 = vpop.f32.mrf.mxu2  ;;  %vm3728_vm14 = vmor %vm3726_vm13, %vm3727_vm12  ;;  %v3790_v4 = vand.u32 2147483647, %v5717_v25  ;;  %v3792_v56 = vand.u32 2147483648, %v5717_v25  ;;  %vm3786_vm1 = vweird.f32 %v5717_v25  ;;  %2400 = vmatpush.xpose.msra.mxu2 %v694_v5  ;;  %2270 = vmatpush.xpose.msra.mxu0 %v692_v57 }
 0x2c2   :  { %v3669_v15 = vsel %vm3668_vm10, %v4399_v29, %v3665_v38  ;;  %4406 = vpow2.f32 %v4271_v55  ;;  %v3723_v32 = vsub.f32 1.0, %v3722_v21  ;;  %v1680_v40 = vadd.f32 %v1679_v7, %v1615_v59  ;;  %v686_v21 = vld [vmem:[#allocation5 + $0xf90] sm:$0xff] }
 0x2c3   :  { %v3674_v8 = vsel %vm3671_vm11, %v3673_v35, %v3669_v15  ;;  %v1552_v42 = vpop.f32.mrf.mxu0  ;;  %v1744_v11 = vpop.f32.mrf.mxu3  ;;  %v3793_v55 = vor.u32 1.1754944e-38, %v3792_v56  ;;  %vm3791_vm3 = vcmp.eq.f32.partialorder %v3790_v4, 8.507059e+37  ;;  %v4743_v35 = vld [vmem:[#allocation2 + $0x38] sm:$0xff] }
 0x2c4   :  { %v4047_v44 = vmul.f32 %v3674_v8, %v5662_v20  ;;  %v1553_v49 = vadd.f32 %v1552_v42, %v5491_v48  ;;  %v3724_v63 = vmul.f32 %v4403_v33, %v3723_v32  ;;  %v5728_v13 = vadd.f32 %v1744_v11, %v1680_v40  ;;  %v4737_v48 = vld [vmem:[#allocation2 + $0x3c8] sm:$0xff]  ;;  %v684_v8 = vld [vmem:[#allocation5 + $0xf80] sm:$0xff]  ;;  %v687_v42 = vld [vmem:[#allocation5 + $0xf98] sm:$0xff] }
 0x2c5   :  { %v1617_v16 = vpop.f32.mrf.mxu1  ;;  %v685_v11 = vld [vmem:[#allocation5 + $0xf88] sm:$0xff]  ;;  %2401 = vmatpush.xpose.msra.mxu2 %v686_v21  ;;  %2271 = vmatpush.xpose.msra.mxu0 %v684_v8 }
 0x2c6   :  { %v4111_v50 = vmul.f32 2.0, %v4047_v44  ;;  %1811 = vmatmul.f32.gmra.mxu0 %v4735_v18  ;;  %1941 = vmatmul.f32.gmra.mxu2 %v4736_v30  ;;  %v3725_v2 = vadd.f32 %v4403_v33, %v3724_v63  ;;  %v4275_v20 = vmul.f32 -1.442695, %v5728_v13  ;;  %v1618_v26 = vadd.f32 %v1617_v16, %v1553_v49  ;;  %v678_v18 = vld [vmem:[#allocation5 + $0xf50] sm:$0xff]  ;;  %v661_v21 = vld [vmem:[#allocation5 + $0xec8] sm:$0xff] }
 0x2c7   :  { %v5730_v54 = vpop.eup %4404  ;;  %2466 = vmatpush.xpose.msra.mxu3 %v687_v42  ;;  %v654_v42 = vld [vmem:[#allocation5 + $0xe90] sm:$0xff] }
 0x2c8   :  { %1876 = vmatmul.f32.gmra.mxu1 %v4737_v48  ;;  %v4407_v47 = vpop.eup %4406  ;;  %4175 = vst [vmem:[#allocation8 + $0x148] sm:$0xff] %v4111_v50  ;;  %v3782_v34 = vmul.f32 %v5730_v54, %v5717_v25  ;;  %2006 = vmatmul.f32.gmra.mxu3 %v4738_v58  ;;  %v3729_v27 = vsel %vm3728_vm14, %v4403_v33, %v3725_v2  ;;  %4408 = vpow2.f32 %v4275_v20  ;;  %vm3787_vm0 = vweird.f32 %v5730_v54  ;;  %v4742_v25 = vld [vmem:[#allocation2 + $0x28] sm:$0xff] }
 0x2c9   :  { %v5739_v0 = vadd.f32 1.0, %v4407_v47  ;;  %v1682_v10 = vpop.f32.mrf.mxu2  ;;  %v3734_v31 = vsel %vm3731_vm15, %v3733_v22, %v3729_v27  ;;  %vm5755_vm2 = vmor %vm3786_vm1, %vm3787_vm0  ;;  %v693_v33 = vld [vmem:[#allocation5 + $0xfc8] sm:$0xff]  ;;  %v4744_v22 = vld [vmem:[#allocation2 + $0x60] sm:$0xff]  ;;  %2402 = vmatpush.xpose.msra.mxu2 %v678_v18 }
 0x2ca   :  { %v3783_v19 = vsub.f32 1.0, %v3782_v34  ;;  %v1683_v29 = vadd.f32 %v1682_v10, %v1618_v26  ;;  %v4051_v6 = vmul.f32 %v3734_v31, %v5686_v53  ;;  %2335 = vmatpush.xpose.msra.mxu1 %v693_v33  ;;  %v4745_v34 = vld [vmem:[#allocation2 + $0x70] sm:$0xff]  ;;  %v679_v26 = vld [vmem:[#allocation5 + $0xf58] sm:$0xff]  ;;  %v677_v58 = vld [vmem:[#allocation5 + $0xf48] sm:$0xff] }
 0x2cb   :  { %4410 = vrcp.f32 %v5739_v0  ;;  %v1747_v52 = vpop.f32.mrf.mxu3  ;;  %v1767_v60 = vpop.f32.mrf.mxu0  ;;  %v3850_v48 = vand.u32 2147483647, %v5739_v0  ;;  %v4746_v27 = vld [vmem:[#allocation2 + $0x68] sm:$0xff]  ;;  %vm3846_vm5 = vweird.f32 %v5739_v0  ;;  %2467 = vmatpush.xpose.msra.mxu3 %v679_v26  ;;  %v4748_v33 = vld [vmem:[#allocation2 + $0xa0] sm:$0xff] }
 0x2cc   :  { %v3784_v39 = vmul.f32 %v5730_v54, %v3783_v19  ;;  %v5747_v17 = vadd.f32 %v1747_v52, %v1683_v29  ;;  %v1768_v28 = vadd.f32 %v1767_v60, %v5737_v23  ;;  %v4115_v14 = vmul.f32 2.0, %v4051_v6  ;;  %v4747_v19 = vld [vmem:[#allocation2 + $0x78] sm:$0xff]  ;;  %v670_v29 = vld [vmem:[#allocation5 + $0xf10] sm:$0xff]  ;;  %v668_v52 = vld [vmem:[#allocation5 + $0xf00] sm:$0xff] }
 0x2cd   :  { %v1832_v12 = vpop.f32.mrf.mxu1  ;;  %vm3851_vm7 = vcmp.eq.f32.partialorder %v3850_v48, 8.507059e+37  ;;  %2403 = vmatpush.xpose.msra.mxu2 %v670_v29  ;;  %v645_v29 = vld [vmem:[#allocation5 + $0xe48] sm:$0xff] }
 0x2ce   :  { %v3785_v53 = vadd.f32 %v5730_v54, %v3784_v39  ;;  %v4279_v3 = vmul.f32 -1.442695, %v5747_v17  ;;  %2026 = vmatmul.f32.vlgmr.msrb.gmra.mxu0 %v4740_v43  ;;  %2156 = vmatmul.f32.vlgmr.msrb.gmra.mxu2 %v4741_v9  ;;  %v4409_v36 = vpop.eup %4408  ;;  %4179 = vst [vmem:[#allocation8 + $0x168] sm:$0xff] %v4115_v14  ;;  %v1833_v62 = vadd.f32 %v1832_v12, %v1768_v28  ;;  %v671_v39 = vld [vmem:[#allocation5 + $0xf18] sm:$0xff]  ;;  %v669_v28 = vld [vmem:[#allocation5 + $0xf08] sm:$0xff] }
 0x2cf   :  { %v5762_v1 = vadd.f32 1.0, %v4409_v36  ;;  %2336 = vmatpush.xpose.msra.mxu1 %v685_v11  ;;  %2468 = vmatpush.xpose.msra.mxu3 %v671_v39  ;;  %v636_v39 = vld [vmem:[#allocation5 + $0xe00] sm:$0xff] }
 0x2d0   :  { %2091 = vmatmul.f32.vlgmr.msrb.gmra.mxu1 %v4742_v25  ;;  %v3789_v38 = vsel %vm5755_vm2, %v5730_v54, %v3785_v53  ;;  %4412 = vpow2.f32 %v4279_v3  ;;  %2221 = vmatmul.f32.vlgmr.msrb.gmra.mxu3 %v4743_v35  ;;  %v676_v54 = vld [vmem:[#allocation5 + $0xf40] sm:$0xff]  ;;  %v663_v35 = vld [vmem:[#allocation5 + $0xed8] sm:$0xff] }
 0x2d1   :  { %v5764_v59 = vpop.eup %4410  ;;  %v3794_v7 = vsel %vm3791_vm3, %v3793_v55, %v3789_v38  ;;  %v1897_v15 = vpop.f32.mrf.mxu2  ;;  %4414 = vrcp.f32 %v5762_v1  ;;  %2272 = vmatpush.xpose.msra.mxu0 %v676_v54  ;;  %v3912_v9 = vand.u32 2147483648, %v5762_v1  ;;  %v3910_v61 = vand.u32 2147483647, %v5762_v1  ;;  %v4749_v38 = vld [vmem:[#allocation2 + $0xb0] sm:$0xff]  ;;  %2404 = vmatpush.xpose.msra.mxu2 %v662_v41 }
 0x2d2   :  { %v4055_v32 = vmul.f32 %v3794_v7, %v5701_v24  ;;  %v3842_v40 = vmul.f32 %v5764_v59, %v5739_v0  ;;  %v1898_v44 = vadd.f32 %v1897_v15, %v1833_v62  ;;  %v3852_v24 = vand.u32 2147483648, %v5739_v0  ;;  %v660_v62 = vld [vmem:[#allocation5 + $0xec0] sm:$0xff]  ;;  %v4750_v15 = vld [vmem:[#allocation2 + $0xa8] sm:$0xff] }
 0x2d3   :  { %v1770_v45 = vpop.f32.mrf.mxu0  ;;  %v1962_v49 = vpop.f32.mrf.mxu3  ;;  %vm3847_vm4 = vweird.f32 %v5764_v59  ;;  %2337 = vmatpush.xpose.msra.mxu1 %v677_v58  ;;  %vm3906_vm9 = vweird.f32 %v5762_v1  ;;  %v3913_v8 = vor.u32 1.1754944e-38, %v3912_v9  ;;  %vm3911_vm11 = vcmp.eq.f32.partialorder %v3910_v61, 8.507059e+37  ;;  %2469 = vmatpush.xpose.msra.mxu3 %v663_v35  ;;  %v4756_v61 = vld [vmem:[#allocation2 + $0x120] sm:$0xff] }
 0x2d4   :  { %v4119_v16 = vmul.f32 2.0, %v4055_v32  ;;  %v3843_v63 = vsub.f32 1.0, %v3842_v40  ;;  %v1771_v46 = vadd.f32 %v1770_v45, %v5737_v23  ;;  %v5772_v30 = vadd.f32 %v1962_v49, %v1898_v44  ;;  %vm3848_vm6 = vmor %vm3846_vm5, %vm3847_vm4  ;;  %v4751_v40 = vld [vmem:[#allocation2 + $0xb8] sm:$0xff] }
 0x2d5   :  { %v1835_v50 = vpop.f32.mrf.mxu1  ;;  %v3853_v6 = vor.u32 1.1754944e-38, %v3852_v24  ;;  %2273 = vmatpush.xpose.msra.mxu0 %v668_v52  ;;  %2405 = vmatpush.xpose.msra.mxu2 %v654_v42  ;;  %v4755_v52 = vld [vmem:[#allocation2 + $0xf8] sm:$0xff] }
 0x2d6   :  { %v4413_v2 = vpop.eup %4412  ;;  %4183 = vst [vmem:[#allocation8 + $0x188] sm:$0xff] %v4119_v16  ;;  %v3844_v20 = vmul.f32 %v5764_v59, %v3843_v63  ;;  %v1836_v47 = vadd.f32 %v1835_v50, %v1771_v46  ;;  %2029 = vmatmul.f32.gmra.mxu0 %v4744_v22  ;;  %2159 = vmatmul.f32.gmra.mxu2 %v4745_v34  ;;  %v655_v63 = vld [vmem:[#allocation5 + $0xe98] sm:$0xff]  ;;  %v653_v46 = vld [vmem:[#allocation5 + $0xe88] sm:$0xff]  ;;  %v646_v34 = vld [vmem:[#allocation5 + $0xe50] sm:$0xff] }
 0x2d7   :  { %v5777_v51 = vadd.f32 1.0, %v4413_v2  ;;  %v5779_v10 = vpop.eup %4414  ;;  %2338 = vmatpush.xpose.msra.mxu1 %v669_v28  ;;  %2470 = vmatpush.xpose.msra.mxu3 %v655_v63  ;;  %v623_v63 = vld [vmem:[#allocation5 + $0xd98] sm:$0xff] }
 0x2d8   :  { %2094 = vmatmul.f32.gmra.mxu1 %v4746_v27  ;;  %v3845_v31 = vadd.f32 %v5764_v59, %v3844_v20  ;;  %2224 = vmatmul.f32.gmra.mxu3 %v4747_v19  ;;  %v3902_v4 = vmul.f32 %v5779_v10, %v5762_v1  ;;  %vm3907_vm8 = vweird.f32 %v5779_v10  ;;  %v652_v1 = vld [vmem:[#allocation5 + $0xe80] sm:$0xff]  ;;  %v647_v19 = vld [vmem:[#allocation5 + $0xe58] sm:$0xff] }
 0x2d9   :  { %4416 = vrcp.f32 %v5777_v51  ;;  %v1900_v56 = vpop.f32.mrf.mxu2  ;;  %vm3908_vm10 = vmor %vm3906_vm9, %vm3907_vm8  ;;  %2274 = vmatpush.xpose.msra.mxu0 %v660_v62  ;;  %v3970_v18 = vand.u32 2147483647, %v5777_v51  ;;  %v3972_v24 = vand.u32 2147483648, %v5777_v51  ;;  %vm3966_vm13 = vweird.f32 %v5777_v51  ;;  %2406 = vmatpush.xpose.msra.mxu2 %v646_v34  ;;  %v630_v62 = vld [vmem:[#allocation5 + $0xdd0] sm:$0xff]  ;;  %v4764_v34 = vld [vmem:[#allocation2 + $0x1a0] sm:$0xff] }
 0x2da   :  { %v3849_v60 = vsel %vm3848_vm6, %v5764_v59, %v3845_v31  ;;  %v1901_v0 = vadd.f32 %v1900_v56, %v1836_v47  ;;  %v3903_v14 = vsub.f32 1.0, %v3902_v4  ;;  %v4753_v31 = vld [vmem:[#allocation2 + $0xf0] sm:$0xff]  ;;  %v4754_v4 = vld [vmem:[#allocation2 + $0xe8] sm:$0xff] }
 0x2db   :  { %v3854_v12 = vsel %vm3851_vm7, %v3853_v6, %v3849_v60  ;;  %v1773_v53 = vpop.f32.mrf.mxu0  ;;  %v1965_v3 = vpop.f32.mrf.mxu3  ;;  %2339 = vmatpush.xpose.msra.mxu1 %v661_v21  ;;  %v3973_v6 = vor.u32 1.1754944e-38, %v3972_v24  ;;  %vm3971_vm15 = vcmp.eq.f32.partialorder %v3970_v18, 8.507059e+37  ;;  %2471 = vmatpush.xpose.msra.mxu3 %v647_v19  ;;  %v621_v18 = vld [vmem:[#allocation5 + $0xd88] sm:$0xff] }
 0x2dc   :  { %v4059_v43 = vmul.f32 %v3854_v12, %v5714_v37  ;;  %v1774_v5 = vadd.f32 %v1773_v53, %v5737_v23  ;;  %v3904_v36 = vmul.f32 %v5779_v10, %v3903_v14  ;;  %v5795_v55 = vadd.f32 %v1965_v3, %v1901_v0  ;;  %v639_v14 = vld [vmem:[#allocation5 + $0xe18] sm:$0xff]  ;;  %v637_v53 = vld [vmem:[#allocation5 + $0xe08] sm:$0xff] }
 0x2dd   :  { %v1838_v57 = vpop.f32.mrf.mxu1  ;;  %2275 = vmatpush.xpose.msra.mxu0 %v652_v1  ;;  %v622_v1 = vld [vmem:[#allocation5 + $0xd90] sm:$0xff] }
 0x2de   :  { %v4123_v25 = vmul.f32 2.0, %v4059_v43  ;;  %v1839_v37 = vadd.f32 %v1838_v57, %v1774_v5  ;;  %2032 = vmatmul.f32.gmra.mxu0 %v4748_v33  ;;  %2162 = vmatmul.f32.gmra.mxu2 %v4749_v38  ;;  %v3905_v7 = vadd.f32 %v5779_v10, %v3904_v36  ;;  %v628_v33 = vld [vmem:[#allocation5 + $0xdc0] sm:$0xff]  ;;  %v631_v38 = vld [vmem:[#allocation5 + $0xdd8] sm:$0xff] }
 0x2df   :  { %v5797_v59 = vpop.eup %4416  ;;  %2340 = vmatpush.xpose.msra.mxu1 %v653_v46  ;;  %2472 = vmatpush.xpose.msra.mxu3 %v639_v14  ;;  %v4770_v14 = vld [vmem:[#allocation2 + $0x1e8] sm:$0xff] }
 0x2e0   :  { %2097 = vmatmul.f32.gmra.mxu1 %v4750_v15  ;;  %4187 = vst [vmem:[#allocation8 + $0x1a8] sm:$0xff] %v4123_v25  ;;  %v3962_v32 = vmul.f32 %v5797_v59, %v5777_v51  ;;  %2227 = vmatmul.f32.gmra.mxu3 %v4751_v40  ;;  %v3909_v11 = vsel %vm3908_vm10, %v5779_v10, %v3905_v7  ;;  %vm3967_vm12 = vweird.f32 %v5797_v59  ;;  %v4752_v10 = vld [vmem:[#allocation2 + $0xe0] sm:$0xff]  ;;  %v638_v51 = vld [vmem:[#allocation5 + $0xe10] sm:$0xff]  ;;  %v4758_v25 = vld [vmem:[#allocation2 + $0x128] sm:$0xff] }
 0x2e1   :  { %v1903_v44 = vpop.f32.mrf.mxu2  ;;  %v3914_v45 = vsel %vm3911_vm11, %v3913_v8, %v3909_v11  ;;  %vm3968_vm14 = vmor %vm3966_vm13, %vm3967_vm12  ;;  %2407 = vmatpush.xpose.msra.mxu2 %v638_v51  ;;  %v4760_v11 = vld [vmem:[#allocation2 + $0x160] sm:$0xff] }
 0x2e2   :  { %v3963_v49 = vsub.f32 1.0, %v3962_v32  ;;  %v1904_v16 = vadd.f32 %v1903_v44, %v1839_v37  ;;  %v4063_v50 = vmul.f32 %v3914_v45, %v5728_v13  ;;  %v644_v13 = vld [vmem:[#allocation5 + $0xe40] sm:$0xff]  ;;  %v4759_v37 = vld [vmem:[#allocation2 + $0x138] sm:$0xff]  ;;  %v4761_v44 = vld [vmem:[#allocation2 + $0x170] sm:$0xff] }
 0x2e3   :  { %v1776_v54 = vpop.f32.mrf.mxu0  ;;  %v1968_v2 = vpop.f32.mrf.mxu3  ;;  %2276 = vmatpush.xpose.msra.mxu0 %v644_v13  ;;  %2341 = vmatpush.xpose.msra.mxu1 %v645_v29  ;;  %v4762_v45 = vld [vmem:[#allocation2 + $0x168] sm:$0xff]  ;;  %v614_v13 = vld [vmem:[#allocation5 + $0xd50] sm:$0xff] }
 0x2e4   :  { %v3964_v20 = vmul.f32 %v5797_v59, %v3963_v49  ;;  %v1777_v48 = vadd.f32 %v1776_v54, %v5737_v23  ;;  %v5812_v47 = vadd.f32 %v1968_v2, %v1904_v16  ;;  %v4127_v26 = vmul.f32 2.0, %v4063_v50  ;;  %2473 = vmatpush.xpose.msra.mxu3 %v631_v38  ;;  %v4763_v49 = vld [vmem:[#allocation2 + $0x178] sm:$0xff]  ;;  %v620_v16 = vld [vmem:[#allocation5 + $0xd80] sm:$0xff]  ;;  %v4773_v38 = vld [vmem:[#allocation2 + $0x230] sm:$0xff] }
 0x2e5   :  { %v1841_v22 = vpop.f32.mrf.mxu1  ;;  %2408 = vmatpush.xpose.msra.mxu2 %v630_v62 }
 0x2e6   :  { %v3965_v58 = vadd.f32 %v5797_v59, %v3964_v20  ;;  %v1842_v27 = vadd.f32 %v1841_v22, %v1777_v48  ;;  %2035 = vmatmul.f32.gmra.mxu0 %v4752_v10  ;;  %2165 = vmatmul.f32.gmra.mxu2 %v4753_v31  ;;  %4191 = vst [vmem:[#allocation8 + $0x1c8] sm:$0xff] %v4127_v26  ;;  %v4765_v26 = vld [vmem:[#allocation2 + $0x1b0] sm:$0xff]  ;;  %v612_v10 = vld [vmem:[#allocation5 + $0xd40] sm:$0xff]  ;;  %v615_v31 = vld [vmem:[#allocation5 + $0xd58] sm:$0xff] }
 0x2e7   :  { %2277 = vmatpush.xpose.msra.mxu0 %v636_v39  ;;  %2342 = vmatpush.xpose.msra.mxu1 %v637_v53  ;;  %v4768_v39 = vld [vmem:[#allocation2 + $0x1e0] sm:$0xff]  ;;  %v4771_v53 = vld [vmem:[#allocation2 + $0x1f8] sm:$0xff] }
 0x2e8   :  { %2100 = vmatmul.f32.gmra.mxu1 %v4754_v4  ;;  %v3969_v56 = vsel %vm3968_vm14, %v5797_v59, %v3965_v58  ;;  %2230 = vmatmul.f32.gmra.mxu3 %v4755_v52  ;;  %v629_v59 = vld [vmem:[#allocation5 + $0xdc8] sm:$0xff] }
 0x2e9   :  { %v3974_v60 = vsel %vm3971_vm15, %v3973_v6, %v3969_v56  ;;  %v1906_v0 = vpop.f32.mrf.mxu2  ;;  %2409 = vmatpush.xpose.msra.mxu2 %v622_v1  ;;  %2474 = vmatpush.xpose.msra.mxu3 %v623_v63  ;;  %v4766_v58 = vld [vmem:[#allocation2 + $0x1a8] sm:$0xff]  ;;  %v4776_v63 = vld [vmem:[#allocation2 + $0x260] sm:$0xff] }
 0x2ea   :  { %v4067_v28 = vmul.f32 %v3974_v60, %v5747_v17  ;;  %v1907_v12 = vadd.f32 %v1906_v0, %v1842_v27  ;;  %v4757_v17 = vld [vmem:[#allocation2 + $0x130] sm:$0xff]  ;;  %v4767_v27 = vld [vmem:[#allocation2 + $0x1b8] sm:$0xff]  ;;  %v613_v6 = vld [vmem:[#allocation5 + $0xd48] sm:$0xff] }
 0x2eb   :  { %v1779_v3 = vpop.f32.mrf.mxu0  ;;  %v1971_v43 = vpop.f32.mrf.mxu3  ;;  %2278 = vmatpush.xpose.msra.mxu0 %v628_v33  ;;  %2343 = vmatpush.xpose.msra.mxu1 %v629_v59  ;;  %v4772_v33 = vld [vmem:[#allocation2 + $0x220] sm:$0xff]  ;;  %v4775_v59 = vld [vmem:[#allocation2 + $0x238] sm:$0xff] }
 0x2ec   :  { %v4131_v9 = vmul.f32 2.0, %v4067_v28  ;;  %v1780_v5 = vadd.f32 %v1779_v3, %v5737_v23  ;;  %v5821_v57 = vadd.f32 %v1971_v43, %v1907_v12  ;;  %v4769_v28 = vld [vmem:[#allocation2 + $0x1f0] sm:$0xff]  ;;  %v604_v3 = vld [vmem:[#allocation5 + $0xd00] sm:$0xff]  ;;  %v607_v43 = vld [vmem:[#allocation5 + $0xd18] sm:$0xff] }
 0x2ed   :  { %v1844_v41 = vpop.f32.mrf.mxu1  ;;  %2410 = vmatpush.xpose.msra.mxu2 %v614_v13  ;;  %2475 = vmatpush.xpose.msra.mxu3 %v615_v31  ;;  %v606_v12 = vld [vmem:[#allocation5 + $0xd10] sm:$0xff] }
 0x2ee   :  { %4195 = vst [vmem:[#allocation8 + $0x1e8] sm:$0xff] %v4131_v9  ;;  %v1845_v36 = vadd.f32 %v1844_v41, %v1780_v5  ;;  %2038 = vmatmul.f32.gmra.mxu0 %v4756_v61  ;;  %2168 = vmatmul.f32.gmra.mxu2 %v4757_v17  ;;  %v605_v41 = vld [vmem:[#allocation5 + $0xd08] sm:$0xff] }
 0x2ef   :  { %2279 = vmatpush.xpose.msra.mxu0 %v620_v16  ;;  %2344 = vmatpush.xpose.msra.mxu1 %v621_v18  ;;  %v4778_v18 = vld [vmem:[#allocation2 + $0x268] sm:$0xff] }
 0x2f0   :  { %2103 = vmatmul.f32.gmra.mxu1 %v4758_v25  ;;  %2233 = vmatmul.f32.gmra.mxu3 %v4759_v37 }
 0x2f1   :  { %v1909_v35 = vpop.f32.mrf.mxu2  ;;  %2411 = vmatpush.xpose.msra.mxu2 %v606_v12  ;;  %2476 = vmatpush.xpose.msra.mxu3 %v607_v43 }
 0x2f2   :  { %v1910_v21 = vadd.f32 %v1909_v35, %v1845_v36  ;;  %v598_v35 = vld [vmem:[#allocation5 + $0xcd0] sm:$0xff] }
 0x2f3   :  { %v1782_v7 = vpop.f32.mrf.mxu0  ;;  %v1974_v15 = vpop.f32.mrf.mxu3  ;;  %2280 = vmatpush.xpose.msra.mxu0 %v612_v10  ;;  %2345 = vmatpush.xpose.msra.mxu1 %v613_v6  ;;  %v582_v6 = vld [vmem:[#allocation5 + $0xc50] sm:$0xff] }
 0x2f4   :  { %v1783_v8 = vadd.f32 %v1782_v7, %v5737_v23  ;;  %v5824_v32 = vadd.f32 %v1974_v15, %v1910_v21  ;;  %v4774_v21 = vld [vmem:[#allocation2 + $0x228] sm:$0xff]  ;;  %v596_v7 = vld [vmem:[#allocation5 + $0xcc0] sm:$0xff]  ;;  %v599_v15 = vld [vmem:[#allocation5 + $0xcd8] sm:$0xff] }
 0x2f5   :  { %v1847_v40 = vpop.f32.mrf.mxu1  ;;  %2412 = vmatpush.xpose.msra.mxu2 %v598_v35  ;;  %2477 = vmatpush.xpose.msra.mxu3 %v599_v15  ;;  %v573_v35 = vld [vmem:[#allocation5 + $0xc08] sm:$0xff] }
 0x2f6   :  { %v1848_v42 = vadd.f32 %v1847_v40, %v1783_v8  ;;  %2041 = vmatmul.f32.gmra.mxu0 %v4760_v11  ;;  %2171 = vmatmul.f32.gmra.mxu2 %v4761_v44 }
 0x2f7   :  { %2281 = vmatpush.xpose.msra.mxu0 %v604_v3  ;;  %2346 = vmatpush.xpose.msra.mxu1 %v605_v41  ;;  %v4785_v41 = vld [vmem:[#allocation2 + $0x2f0] sm:$0xff] }
 0x2f8   :  { %2106 = vmatmul.f32.gmra.mxu1 %v4762_v45  ;;  %2236 = vmatmul.f32.gmra.mxu3 %v4763_v49 }
 0x2f9   :  { %v1912_v46 = vpop.f32.mrf.mxu2 }
 0x2fa   :  { %v1913_v50 = vadd.f32 %v1912_v46, %v1848_v42  ;;  %v597_v42 = vld [vmem:[#allocation5 + $0xcc8] sm:$0xff]  ;;  %v4777_v46 = vld [vmem:[#allocation2 + $0x270] sm:$0xff] }
 0x2fb   :  { %v1785_v24 = vpop.f32.mrf.mxu0  ;;  %v1977_v54 = vpop.f32.mrf.mxu3  ;;  %2282 = vmatpush.xpose.msra.mxu0 %v596_v7  ;;  %2347 = vmatpush.xpose.msra.mxu1 %v597_v42  ;;  %v4788_v42 = vld [vmem:[#allocation2 + $0x320] sm:$0xff] }
 0x2fc   :  { %v1786_v2 = vadd.f32 %v1785_v24, %v5737_v23  ;;  %v5827_v20 = vadd.f32 %v1977_v54, %v1913_v50  ;;  %v590_v50 = vld [vmem:[#allocation5 + $0xc90] sm:$0xff]  ;;  %v4779_v24 = vld [vmem:[#allocation2 + $0x278] sm:$0xff]  ;;  %v588_v54 = vld [vmem:[#allocation5 + $0xc80] sm:$0xff] }
 0x2fd   :  { %v1850_v48 = vpop.f32.mrf.mxu1  ;;  %2413 = vmatpush.xpose.msra.mxu2 %v590_v50 }
 0x2fe   :  { %v1851_v22 = vadd.f32 %v1850_v48, %v1786_v2  ;;  %2044 = vmatmul.f32.gmra.mxu0 %v4764_v34  ;;  %2174 = vmatmul.f32.gmra.mxu2 %v4765_v26  ;;  %v591_v2 = vld [vmem:[#allocation5 + $0xc98] sm:$0xff]  ;;  %v589_v34 = vld [vmem:[#allocation5 + $0xc88] sm:$0xff] }
 0x2ff   :  { %2283 = vmatpush.xpose.msra.mxu0 %v588_v54  ;;  %2478 = vmatpush.xpose.msra.mxu3 %v591_v2 }
 0x300   :  { %2109 = vmatmul.f32.gmra.mxu1 %v4766_v58  ;;  %2239 = vmatmul.f32.gmra.mxu3 %v4767_v27 }
 0x301   :  { %v1915_v19 = vpop.f32.mrf.mxu2  ;;  %2348 = vmatpush.xpose.msra.mxu1 %v589_v34  ;;  %2414 = vmatpush.xpose.msra.mxu2 %v582_v6 }
 0x302   :  { %v1916_v29 = vadd.f32 %v1915_v19, %v1851_v22  ;;  %v4780_v19 = vld [vmem:[#allocation2 + $0x2a0] sm:$0xff] }
 0x303   :  { %v1788_v4 = vpop.f32.mrf.mxu0  ;;  %v1980_v56 = vpop.f32.mrf.mxu3 }
 0x304   :  { %v1789_v52 = vadd.f32 %v1788_v4, %v5737_v23  ;;  %v5830_v51 = vadd.f32 %v1980_v56, %v1916_v29  ;;  %v4781_v29 = vld [vmem:[#allocation2 + $0x2b0] sm:$0xff]  ;;  %v4782_v4 = vld [vmem:[#allocation2 + $0x2a8] sm:$0xff]  ;;  %v4783_v56 = vld [vmem:[#allocation2 + $0x2b8] sm:$0xff] }
 0x305   :  { %v1853_v60 = vpop.f32.mrf.mxu1 }
 0x306   :  { %v1854_v0 = vadd.f32 %v1853_v60, %v1789_v52  ;;  %2047 = vmatmul.f32.gmra.mxu0 %v4768_v39  ;;  %2177 = vmatmul.f32.gmra.mxu2 %v4769_v28  ;;  %v580_v52 = vld [vmem:[#allocation5 + $0xc40] sm:$0xff]  ;;  %v583_v60 = vld [vmem:[#allocation5 + $0xc58] sm:$0xff]  ;;  %v581_v28 = vld [vmem:[#allocation5 + $0xc48] sm:$0xff] }
 0x307   :  { %2284 = vmatpush.xpose.msra.mxu0 %v580_v52  ;;  %2479 = vmatpush.xpose.msra.mxu3 %v583_v60 }
 0x308   :  { %2112 = vmatmul.f32.gmra.mxu1 %v4770_v14  ;;  %2242 = vmatmul.f32.gmra.mxu3 %v4771_v53 }
 0x309   :  { %v1918_v9 = vpop.f32.mrf.mxu2  ;;  %2349 = vmatpush.xpose.msra.mxu1 %v581_v28  ;;  %v4798_v28 = vld [vmem:[#allocation2 + $0x3a8] sm:$0xff] }
 0x30a   :  { %v1919_v5 = vadd.f32 %v1918_v9, %v1854_v0 }
 0x30b   :  { %v1791_v36 = vpop.f32.mrf.mxu0  ;;  %v1983_v61 = vpop.f32.mrf.mxu3 }
 0x30c   :  { %v1792_v17 = vadd.f32 %v1791_v36, %v5737_v23  ;;  %v5833_v62 = vadd.f32 %v1983_v61, %v1919_v5  ;;  %v4784_v5 = vld [vmem:[#allocation2 + $0x2e0] sm:$0xff]  ;;  %v574_v36 = vld [vmem:[#allocation5 + $0xc10] sm:$0xff]  ;;  %v4786_v61 = vld [vmem:[#allocation2 + $0x2e8] sm:$0xff] }
 0x30d   :  { %v1856_v25 = vpop.f32.mrf.mxu1  ;;  %2415 = vmatpush.xpose.msra.mxu2 %v574_v36  ;;  %2350 = vmatpush.xpose.msra.mxu1 %v573_v35 }
 0x30e   :  { %v1857_v37 = vadd.f32 %v1856_v25, %v1792_v17  ;;  %2050 = vmatmul.f32.gmra.mxu0 %v4772_v33  ;;  %2180 = vmatmul.f32.gmra.mxu2 %v4773_v38  ;;  %v4787_v17 = vld [vmem:[#allocation2 + $0x2f8] sm:$0xff]  ;;  %v572_v25 = vld [vmem:[#allocation5 + $0xc00] sm:$0xff] }
 0x30f   :  { %2285 = vmatpush.xpose.msra.mxu0 %v572_v25  ;;  %v4801_v25 = vld [vmem:[#allocation2 + $0x3f0] sm:$0xff] }
 0x310   :  { %2115 = vmatmul.f32.gmra.mxu1 %v4774_v21  ;;  %2245 = vmatmul.f32.gmra.mxu3 %v4775_v59 }
 0x311   :  { %v1921_v8 = vpop.f32.mrf.mxu2 }
 0x312   :  { %v1922_v40 = vadd.f32 %v1921_v8, %v1857_v37  ;;  %v575_v37 = vld [vmem:[#allocation5 + $0xc18] sm:$0xff] }
 0x313   :  { %v1794_v11 = vpop.f32.mrf.mxu0  ;;  %v1986_v44 = vpop.f32.mrf.mxu3  ;;  %2480 = vmatpush.xpose.msra.mxu3 %v575_v37  ;;  %v4802_v37 = vld [vmem:[#allocation2 + $0x3e8] sm:$0xff] }
 0x314   :  { %v1795_v1 = vadd.f32 %v1794_v11, %v5737_v23  ;;  %v5836_v45 = vadd.f32 %v1986_v44, %v1922_v40  ;;  %v4789_v11 = vld [vmem:[#allocation2 + $0x330] sm:$0xff] }
 0x315   :  { %v1859_v49 = vpop.f32.mrf.mxu1  ;;  %v698_v44 = vld [vmem:[#allocation5 + $0xff0] sm:$0xff] }
 0x316   :  { %v1860_v16 = vadd.f32 %v1859_v49, %v1795_v1  ;;  %2053 = vmatmul.f32.gmra.mxu0 %v4776_v63  ;;  %2183 = vmatmul.f32.gmra.mxu2 %v4777_v46  ;;  %v4790_v1 = vld [vmem:[#allocation2 + $0x328] sm:$0xff]  ;;  %v4791_v49 = vld [vmem:[#allocation2 + $0x338] sm:$0xff] }
 0x317   :  { %2660 = vmatpush.xpose.msrb.mxu2 %v698_v44  ;;  %v699_v63 = vld [vmem:[#allocation5 + $0xff8] sm:$0xff] }
 0x318   :  { %2118 = vmatmul.f32.gmra.mxu1 %v4778_v18  ;;  %2248 = vmatmul.f32.gmra.mxu3 %v4779_v24  ;;  %v697_v18 = vld [vmem:[#allocation5 + $0xfe8] sm:$0xff] }
 0x319   :  { %v1924_v48 = vpop.f32.mrf.mxu2  ;;  %2725 = vmatpush.xpose.msrb.mxu3 %v699_v63  ;;  %2595 = vmatpush.xpose.msrb.mxu1 %v697_v18 }
 0x31a   :  { %v1925_v22 = vadd.f32 %v1924_v48, %v1860_v16  ;;  %v696_v16 = vld [vmem:[#allocation5 + $0xfe0] sm:$0xff] }
 0x31b   :  { %v1797_v26 = vpop.f32.mrf.mxu0  ;;  %v1989_v13 = vpop.f32.mrf.mxu3  ;;  %2530 = vmatpush.xpose.msrb.mxu0 %v696_v16 }
 0x31c   :  { %v1798_v58 = vadd.f32 %v1797_v26, %v5737_v23  ;;  %v5839_v27 = vadd.f32 %v1989_v13, %v1925_v22  ;;  %v4792_v26 = vld [vmem:[#allocation2 + $0x360] sm:$0xff]  ;;  %v4793_v13 = vld [vmem:[#allocation2 + $0x370] sm:$0xff] }
 0x31d   :  { %v1862_v10 = vpop.f32.mrf.mxu1 }
 0x31e   :  { %v1863_v31 = vadd.f32 %v1862_v10, %v1798_v58  ;;  %2056 = vmatmul.f32.gmra.mxu0 %v4780_v19  ;;  %2186 = vmatmul.f32.gmra.mxu2 %v4781_v29  ;;  %v4794_v58 = vld [vmem:[#allocation2 + $0x368] sm:$0xff]  ;;  %v4795_v10 = vld [vmem:[#allocation2 + $0x378] sm:$0xff] }
 0x320   :  { %2121 = vmatmul.f32.gmra.mxu1 %v4782_v4  ;;  %2251 = vmatmul.f32.gmra.mxu3 %v4783_v56 }
 0x321   :  { %v1927_v0 = vpop.f32.mrf.mxu2 }
 0x322   :  { %v1928_v39 = vadd.f32 %v1927_v0, %v1863_v31  ;;  %v4796_v0 = vld [vmem:[#allocation2 + $0x3a0] sm:$0xff] }
 0x323   :  { %v1800_v12 = vpop.f32.mrf.mxu0  ;;  %v1992_v14 = vpop.f32.mrf.mxu3 }
 0x324   :  { %v1801_v53 = vadd.f32 %v1800_v12, %v5737_v23  ;;  %v5842_v3 = vadd.f32 %v1992_v14, %v1928_v39  ;;  %v4797_v39 = vld [vmem:[#allocation2 + $0x3b0] sm:$0xff]  ;;  %v4799_v12 = vld [vmem:[#allocation2 + $0x3b8] sm:$0xff] }
 0x325   :  { %v1865_v43 = vpop.f32.mrf.mxu1 }
 0x326   :  { %v1866_v9 = vadd.f32 %v1865_v43, %v1801_v53  ;;  %2059 = vmatmul.f32.gmra.mxu0 %v4784_v5  ;;  %2189 = vmatmul.f32.gmra.mxu2 %v4785_v41 }
 0x328   :  { %2124 = vmatmul.f32.gmra.mxu1 %v4786_v61  ;;  %2254 = vmatmul.f32.gmra.mxu3 %v4787_v17  ;;  %v4800_v17 = vld [vmem:[#allocation2 + $0x3e0] sm:$0xff] }
 0x329   :  { %v1930_v33 = vpop.f32.mrf.mxu2 }
 0x32a   :  { %v1931_v38 = vadd.f32 %v1930_v33, %v1866_v9  ;;  %v4803_v33 = vld [vmem:[#allocation2 + $0x3f8] sm:$0xff] }
 0x32b   :  { %v1803_v21 = vpop.f32.mrf.mxu0  ;;  %v1995_v59 = vpop.f32.mrf.mxu3 }
 0x32c   :  { %v1804_v7 = vadd.f32 %v1803_v21, %v5737_v23  ;;  %v5845_v15 = vadd.f32 %v1995_v59, %v1931_v38 }
 0x32d   :  { %v1868_v8 = vpop.f32.mrf.mxu1 }
 0x32e   :  { %v1869_v40 = vadd.f32 %v1868_v8, %v1804_v7  ;;  %2062 = vmatmul.f32.gmra.mxu0 %v4788_v42  ;;  %2192 = vmatmul.f32.gmra.mxu2 %v4789_v11  ;;  %v4805_v42 = vld [vmem:[#allocation2 + $0x10] sm:$0xff]  ;;  %v4806_v11 = vld [vmem:[#allocation2 + $0x8] sm:$0xff] }
 0x330   :  { %2127 = vmatmul.f32.gmra.mxu1 %v4790_v1  ;;  %2257 = vmatmul.f32.gmra.mxu3 %v4791_v49  ;;  %v4807_v1 = vld [vmem:[#allocation2 + $0x18] sm:$0xff] }
 0x331   :  { %v1933_v46 = vpop.f32.mrf.mxu2 }
 0x332   :  { %v1934_v50 = vadd.f32 %v1933_v46, %v1869_v40  ;;  %v4804_v40 = vld [vmem:[#allocation2] sm:$0xff] }
 0x333   :  { %v1806_v24 = vpop.f32.mrf.mxu0  ;;  %v1998_v54 = vpop.f32.mrf.mxu3 }
 0x334   :  { %v1807_v2 = vadd.f32 %v1806_v24, %v5737_v23  ;;  %v5848_v48 = vadd.f32 %v1998_v54, %v1934_v50  ;;  %v4808_v54 = vld [vmem:[#allocation2 + $0x40] sm:$0xff] }
 0x335   :  { %v1871_v22 = vpop.f32.mrf.mxu1 }
 0x336   :  { %v1872_v34 = vadd.f32 %v1871_v22, %v1807_v2  ;;  %2065 = vmatmul.f32.gmra.mxu0 %v4792_v26  ;;  %2195 = vmatmul.f32.gmra.mxu2 %v4793_v13  ;;  %v4809_v2 = vld [vmem:[#allocation2 + $0x50] sm:$0xff]  ;;  %v691_v26 = vld [vmem:[#allocation5 + $0xfb8] sm:$0xff]  ;;  %v4810_v13 = vld [vmem:[#allocation2 + $0x48] sm:$0xff] }
 0x337   :  { %v690_v22 = vld [vmem:[#allocation5 + $0xfb0] sm:$0xff]  ;;  %2726 = vmatpush.xpose.msrb.mxu3 %v691_v26 }
 0x338   :  { %2130 = vmatmul.f32.gmra.mxu1 %v4794_v58  ;;  %2260 = vmatmul.f32.gmra.mxu3 %v4795_v10  ;;  %v689_v58 = vld [vmem:[#allocation5 + $0xfa8] sm:$0xff] }
 0x339   :  { %v1936_v31 = vpop.f32.mrf.mxu2  ;;  %2661 = vmatpush.xpose.msrb.mxu2 %v690_v22  ;;  %2596 = vmatpush.xpose.msrb.mxu1 %v689_v58 }
 0x33a   :  { %v1937_v19 = vadd.f32 %v1936_v31, %v1872_v34  ;;  %v688_v34 = vld [vmem:[#allocation5 + $0xfa0] sm:$0xff]  ;;  %v4811_v31 = vld [vmem:[#allocation2 + $0x58] sm:$0xff] }
 0x33b   :  { %v1809_v29 = vpop.f32.mrf.mxu0  ;;  %v2001_v6 = vpop.f32.mrf.mxu3  ;;  %2531 = vmatpush.xpose.msrb.mxu0 %v688_v34 }
 0x33c   :  { %v1810_v4 = vadd.f32 %v1809_v29, %v5737_v23  ;;  %v5851_v56 = vadd.f32 %v2001_v6, %v1937_v19 }
 0x33d   :  { %v1874_v52 = vpop.f32.mrf.mxu1 }
 0x33e   :  { %v1875_v60 = vadd.f32 %v1874_v52, %v1810_v4  ;;  %2068 = vmatmul.f32.gmra.mxu0 %v4796_v0  ;;  %2198 = vmatmul.f32.gmra.mxu2 %v4797_v39 }
 0x340   :  { %2133 = vmatmul.f32.gmra.mxu1 %v4798_v28  ;;  %2263 = vmatmul.f32.gmra.mxu3 %v4799_v12  ;;  %v4812_v28 = vld [vmem:[#allocation2 + $0x80] sm:$0xff]  ;;  %v4813_v12 = vld [vmem:[#allocation2 + $0x90] sm:$0xff] }
 0x341   :  { %v1939_v14 = vpop.f32.mrf.mxu2 }
 0x342   :  { %v1940_v53 = vadd.f32 %v1939_v14, %v1875_v60  ;;  %v682_v14 = vld [vmem:[#allocation5 + $0xf70] sm:$0xff] }
 0x343   :  { %v1812_v43 = vpop.f32.mrf.mxu0  ;;  %v2004_v9 = vpop.f32.mrf.mxu3  ;;  %2662 = vmatpush.xpose.msrb.mxu2 %v682_v14 }
 0x344   :  { %v1813_v5 = vadd.f32 %v1812_v43, %v5737_v23  ;;  %v5854_v41 = vadd.f32 %v2004_v9, %v1940_v53  ;;  %v680_v53 = vld [vmem:[#allocation5 + $0xf60] sm:$0xff]  ;;  %v683_v43 = vld [vmem:[#allocation5 + $0xf78] sm:$0xff] }
 0x345   :  { %v1877_v36 = vpop.f32.mrf.mxu1  ;;  %2532 = vmatpush.xpose.msrb.mxu0 %v680_v53  ;;  %2727 = vmatpush.xpose.msrb.mxu3 %v683_v43  ;;  %v4822_v53 = vld [vmem:[#allocation2 + $0x108] sm:$0xff] }
 0x346   :  { %v1878_v61 = vadd.f32 %v1877_v36, %v1813_v5  ;;  %2071 = vmatmul.f32.gmra.mxu0 %v4800_v17  ;;  %2201 = vmatmul.f32.gmra.mxu2 %v4801_v25  ;;  %v4814_v5 = vld [vmem:[#allocation2 + $0x88] sm:$0xff] }
 0x347   :  { %v681_v36 = vld [vmem:[#allocation5 + $0xf68] sm:$0xff] }
 0x348   :  { %2136 = vmatmul.f32.gmra.mxu1 %v4802_v37  ;;  %2266 = vmatmul.f32.gmra.mxu3 %v4803_v33  ;;  %v665_v43 = vld [vmem:[#allocation5 + $0xee8] sm:$0xff] }
 0x349   :  { %v1942_v38 = vpop.f32.mrf.mxu2  ;;  %2597 = vmatpush.xpose.msrb.mxu1 %v681_v36 }
 0x34a   :  { %v1943_v35 = vadd.f32 %v1942_v38, %v1878_v61  ;;  %v4815_v61 = vld [vmem:[#allocation2 + $0x98] sm:$0xff] }
 0x34b   :  { %v2007_v21 = vpop.f32.mrf.mxu3  ;;  %v2027_v59 = vpop.f32.mrf.mxu0 }
 0x34c   :  { %v5856_v7 = vadd.f32 %v2007_v21, %v1943_v35  ;;  %v2028_v23 = vadd.f32 %v2027_v59, %v5772_v30 }
 0x34d   :  { %v2092_v8 = vpop.f32.mrf.mxu1 }
 0x34e   :  { %2286 = vmatmul.f32.vlgmr.msra.gmra.mxu0 %v4804_v40  ;;  %2416 = vmatmul.f32.vlgmr.msra.gmra.mxu2 %v4805_v42  ;;  %v2093_v44 = vadd.f32 %v2092_v8, %v2028_v23  ;;  %v4816_v8 = vld [vmem:[#allocation2 + $0xc0] sm:$0xff]  ;;  %v4817_v40 = vld [vmem:[#allocation2 + $0xd0] sm:$0xff] }
 0x34f   :  { %v674_v42 = vld [vmem:[#allocation5 + $0xf30] sm:$0xff] }
 0x350   :  { %2351 = vmatmul.f32.vlgmr.msra.gmra.mxu1 %v4806_v11  ;;  %2481 = vmatmul.f32.vlgmr.msra.gmra.mxu3 %v4807_v1  ;;  %v672_v11 = vld [vmem:[#allocation5 + $0xf20] sm:$0xff] }
 0x351   :  { %v2157_v49 = vpop.f32.mrf.mxu2  ;;  %2663 = vmatpush.xpose.msrb.mxu2 %v674_v42  ;;  %2533 = vmatpush.xpose.msrb.mxu0 %v672_v11 }
 0x352   :  { %v2158_v16 = vadd.f32 %v2157_v49, %v2093_v44  ;;  %v675_v44 = vld [vmem:[#allocation5 + $0xf38] sm:$0xff] }
 0x353   :  { %v2030_v63 = vpop.f32.mrf.mxu0  ;;  %v2222_v46 = vpop.f32.mrf.mxu3  ;;  %2728 = vmatpush.xpose.msrb.mxu3 %v675_v44 }
 0x354   :  { %v2031_v50 = vadd.f32 %v2030_v63, %v5795_v55  ;;  %v5860_v18 = vadd.f32 %v2222_v46, %v2158_v16  ;;  %v4818_v16 = vld [vmem:[#allocation2 + $0xc8] sm:$0xff] }
 0x355   :  { %v2095_v24 = vpop.f32.mrf.mxu1 }
 0x356   :  { %v4220_v30 = vmul.f32 -1.442695, %v5860_v18  ;;  %2289 = vmatmul.f32.gmra.mxu0 %v4808_v54  ;;  %2419 = vmatmul.f32.gmra.mxu2 %v4809_v2  ;;  %v2096_v10 = vadd.f32 %v2095_v24, %v2031_v50  ;;  %v4819_v50 = vld [vmem:[#allocation2 + $0xd8] sm:$0xff] }
 0x358   :  { %2354 = vmatmul.f32.gmra.mxu1 %v4810_v13  ;;  %4418 = vpow2.f32 %v4220_v30  ;;  %2484 = vmatmul.f32.gmra.mxu3 %v4811_v31 }
 0x359   :  { %v2160_v55 = vpop.f32.mrf.mxu2 }
 0x35a   :  { %v2161_v19 = vadd.f32 %v2160_v55, %v2096_v10 }
 0x35b   :  { %v2033_v29 = vpop.f32.mrf.mxu0  ;;  %v2225_v6 = vpop.f32.mrf.mxu3 }
 0x35c   :  { %v2034_v4 = vadd.f32 %v2033_v29, %v5812_v47  ;;  %v5864_v52 = vadd.f32 %v2225_v6, %v2161_v19  ;;  %v4820_v6 = vld [vmem:[#allocation2 + $0x100] sm:$0xff] }
 0x35d   :  { %v2098_v60 = vpop.f32.mrf.mxu1 }
 0x35e   :  { %v4419_v0 = vpop.eup %4418  ;;  %v4224_v39 = vmul.f32 -1.442695, %v5864_v52  ;;  %2292 = vmatmul.f32.gmra.mxu0 %v4812_v28  ;;  %2422 = vmatmul.f32.gmra.mxu2 %v4813_v12  ;;  %v2099_v47 = vadd.f32 %v2098_v60, %v2034_v4  ;;  %v4821_v4 = vld [vmem:[#allocation2 + $0x110] sm:$0xff] }
 0x35f   :  { %v5867_v9 = vadd.f32 1.0, %v4419_v0  ;;  %v666_v60 = vld [vmem:[#allocation5 + $0xef0] sm:$0xff]  ;;  %v664_v0 = vld [vmem:[#allocation5 + $0xee0] sm:$0xff] }
 0x360   :  { %2357 = vmatmul.f32.gmra.mxu1 %v4814_v5  ;;  %4420 = vpow2.f32 %v4224_v39  ;;  %2487 = vmatmul.f32.gmra.mxu3 %v4815_v61  ;;  %v667_v39 = vld [vmem:[#allocation5 + $0xef8] sm:$0xff] }
 0x361   :  { %4422 = vrcp.f32 %v5867_v9  ;;  %v2163_v17 = vpop.f32.mrf.mxu2  ;;  %v3085_v2 = vand.u32 2147483647, %v5867_v9  ;;  %v3087_v22 = vand.u32 2147483648, %v5867_v9  ;;  %vm3081_vm1 = vweird.f32 %v5867_v9  ;;  %2664 = vmatpush.xpose.msrb.mxu2 %v666_v60  ;;  %2534 = vmatpush.xpose.msrb.mxu0 %v664_v0 }
 0x362   :  { %v2164_v25 = vadd.f32 %v2163_v17, %v2099_v47  ;;  %v4823_v47 = vld [vmem:[#allocation2 + $0x118] sm:$0xff]  ;;  %2729 = vmatpush.xpose.msrb.mxu3 %v667_v39 }
 0x363   :  { %v2036_v37 = vpop.f32.mrf.mxu0  ;;  %v2228_v33 = vpop.f32.mrf.mxu3  ;;  %vm3086_vm3 = vcmp.eq.f32.partialorder %v3085_v2, 8.507059e+37  ;;  %v3088_v12 = vor.u32 1.1754944e-38, %v3087_v22  ;;  %v4827_v2 = vld [vmem:[#allocation2 + $0x158] sm:$0xff]  ;;  %v656_v22 = vld [vmem:[#allocation5 + $0xea0] sm:$0xff] }
 0x364   :  { %v2037_v38 = vadd.f32 %v2036_v37, %v5821_v57  ;;  %v5871_v35 = vadd.f32 %v2228_v33, %v2164_v25  ;;  %v673_v57 = vld [vmem:[#allocation5 + $0xf28] sm:$0xff] }
 0x365   :  { %v2101_v21 = vpop.f32.mrf.mxu1  ;;  %2598 = vmatpush.xpose.msrb.mxu1 %v673_v57  ;;  %v4825_v57 = vld [vmem:[#allocation2 + $0x150] sm:$0xff]  ;;  %2535 = vmatpush.xpose.msrb.mxu0 %v656_v22  ;;  %v4832_v22 = vld [vmem:[#allocation2 + $0x1c0] sm:$0xff] }
 0x366   :  { %v4421_v59 = vpop.eup %4420  ;;  %v4228_v23 = vmul.f32 -1.442695, %v5871_v35  ;;  %2295 = vmatmul.f32.gmra.mxu0 %v4816_v8  ;;  %2425 = vmatmul.f32.gmra.mxu2 %v4817_v40  ;;  %v2102_v46 = vadd.f32 %v2101_v21, %v2037_v38 }
 0x367   :  { %v4423_v1 = vpop.eup %4422  ;;  %v5874_v49 = vadd.f32 1.0, %v4421_v59 }
 0x368   :  { %2360 = vmatmul.f32.gmra.mxu1 %v4818_v16  ;;  %v3077_v63 = vmul.f32 %v4423_v1, %v5867_v9  ;;  %4424 = vpow2.f32 %v4228_v23  ;;  %2490 = vmatmul.f32.gmra.mxu3 %v4819_v50  ;;  %vm3082_vm0 = vweird.f32 %v4423_v1 }
 0x369   :  { %4426 = vrcp.f32 %v5874_v49  ;;  %v2166_v24 = vpop.f32.mrf.mxu2  ;;  %vm5886_vm2 = vmor %vm3081_vm1, %vm3082_vm0  ;;  %2599 = vmatpush.xpose.msrb.mxu1 %v665_v43  ;;  %v3147_v38 = vand.u32 2147483648, %v5874_v49  ;;  %v3145_v40 = vand.u32 2147483647, %v5874_v49  ;;  %vm3141_vm5 = vweird.f32 %v5874_v49 }
 0x36a   :  { %v3078_v30 = vsub.f32 1.0, %v3077_v63  ;;  %v2167_v54 = vadd.f32 %v2166_v24, %v2102_v46 }
 0x36b   :  { %v2039_v34 = vpop.f32.mrf.mxu0  ;;  %v2231_v26 = vpop.f32.mrf.mxu3  ;;  %v3148_v46 = vor.u32 1.1754944e-38, %v3147_v38  ;;  %vm3146_vm7 = vcmp.eq.f32.partialorder %v3145_v40, 8.507059e+37 }
 0x36c   :  { %v3079_v13 = vmul.f32 %v4423_v1, %v3078_v30  ;;  %v2040_v58 = vadd.f32 %v2039_v34, %v5824_v32  ;;  %v5881_v10 = vadd.f32 %v2231_v26, %v2167_v54  ;;  %v659_v34 = vld [vmem:[#allocation5 + $0xeb8] sm:$0xff] }
 0x36d   :  { %v2104_v31 = vpop.f32.mrf.mxu1  ;;  %2730 = vmatpush.xpose.msrb.mxu3 %v659_v34  ;;  %v4833_v34 = vld [vmem:[#allocation2 + $0x1d0] sm:$0xff] }
 0x36e   :  { %v4425_v55 = vpop.eup %4424  ;;  %v3080_v19 = vadd.f32 %v4423_v1, %v3079_v13  ;;  %v4232_v29 = vmul.f32 -1.442695, %v5881_v10  ;;  %2298 = vmatmul.f32.gmra.mxu0 %v4820_v6  ;;  %2428 = vmatmul.f32.gmra.mxu2 %v4821_v4  ;;  %v2105_v36 = vadd.f32 %v2104_v31, %v2040_v58  ;;  %v657_v31 = vld [vmem:[#allocation5 + $0xea8] sm:$0xff] }
 0x36f   :  { %v4427_v28 = vpop.eup %4426  ;;  %v5890_v14 = vadd.f32 1.0, %v4425_v55  ;;  %2600 = vmatpush.xpose.msrb.mxu1 %v657_v31 }
 0x370   :  { %2363 = vmatmul.f32.gmra.mxu1 %v4822_v53  ;;  %v3084_v9 = vsel %vm5886_vm2, %v4423_v1, %v3080_v19  ;;  %v3137_v5 = vmul.f32 %v4427_v28, %v5874_v49  ;;  %4428 = vpow2.f32 %v4232_v29  ;;  %2493 = vmatmul.f32.gmra.mxu3 %v4823_v47  ;;  %vm3142_vm4 = vweird.f32 %v4427_v28  ;;  %v658_v49 = vld [vmem:[#allocation5 + $0xeb0] sm:$0xff] }
 0x371   :  { %v3089_v61 = vsel %vm3086_vm3, %v3088_v12, %v3084_v9  ;;  %4430 = vrcp.f32 %v5890_v14  ;;  %v2169_v17 = vpop.f32.mrf.mxu2  ;;  %vm3143_vm6 = vmor %vm3141_vm5, %vm3142_vm4  ;;  %2665 = vmatpush.xpose.msrb.mxu2 %v658_v49  ;;  %v3207_v29 = vand.u32 2147483648, %v5890_v14  ;;  %vm3201_vm9 = vweird.f32 %v5890_v14  ;;  %v4828_v9 = vld [vmem:[#allocation2 + $0x180] sm:$0xff] }
 0x372   :  { %v4008_v25 = vmul.f32 %v3089_v61, %v5860_v18  ;;  %v3138_v37 = vsub.f32 1.0, %v3137_v5  ;;  %v2170_v33 = vadd.f32 %v2169_v17, %v2105_v36  ;;  %v4824_v18 = vld [vmem:[#allocation2 + $0x140] sm:$0xff]  ;;  %v4829_v5 = vld [vmem:[#allocation2 + $0x190] sm:$0xff] }
 0x373   :  { %v2042_v21 = vpop.f32.mrf.mxu0  ;;  %v2234_v59 = vpop.f32.mrf.mxu3  ;;  %v3208_v47 = vor.u32 1.1754944e-38, %v3207_v29  ;;  %v650_v61 = vld [vmem:[#allocation5 + $0xe70] sm:$0xff]  ;;  %v648_v17 = vld [vmem:[#allocation5 + $0xe60] sm:$0xff] }
 0x374   :  { %v4072_v23 = vmul.f32 2.0, %v4008_v25  ;;  %v3139_v8 = vmul.f32 %v4427_v28, %v3138_v37  ;;  %v2043_v11 = vadd.f32 %v2042_v21, %v5827_v20  ;;  %v5900_v44 = vadd.f32 %v2234_v59, %v2170_v33  ;;  %v4826_v20 = vld [vmem:[#allocation2 + $0x148] sm:$0xff]  ;;  %v651_v25 = vld [vmem:[#allocation5 + $0xe78] sm:$0xff]  ;;  %2536 = vmatpush.xpose.msrb.mxu0 %v648_v17 }
 0x375   :  { %v2107_v42 = vpop.f32.mrf.mxu1  ;;  %2666 = vmatpush.xpose.msrb.mxu2 %v650_v61  ;;  %v4831_v59 = vld [vmem:[#allocation2 + $0x198] sm:$0xff]  ;;  %2731 = vmatpush.xpose.msrb.mxu3 %v651_v25  ;;  %v4836_v25 = vld [vmem:[#allocation2 + $0x200] sm:$0xff] }
 0x376   :  { %v4429_v1 = vpop.eup %4428  ;;  %4136 = vst [vmem:[#allocation8 + $0x10] sm:$0xff] %v4072_v23  ;;  %v3140_v16 = vadd.f32 %v4427_v28, %v3139_v8  ;;  %2301 = vmatmul.f32.gmra.mxu0 %v4824_v18  ;;  %2431 = vmatmul.f32.gmra.mxu2 %v4825_v57  ;;  %v4236_v24 = vmul.f32 -1.442695, %v5900_v44  ;;  %v2108_v13 = vadd.f32 %v2107_v42, %v2043_v11  ;;  %v649_v23 = vld [vmem:[#allocation5 + $0xe68] sm:$0xff] }
 0x377   :  { %v5903_v63 = vpop.eup %4430  ;;  %v5905_v50 = vadd.f32 1.0, %v4429_v1  ;;  %2601 = vmatpush.xpose.msrb.mxu1 %v649_v23  ;;  %v634_v23 = vld [vmem:[#allocation5 + $0xdf0] sm:$0xff] }
 0x378   :  { %2366 = vmatmul.f32.gmra.mxu1 %v4826_v20  ;;  %v3144_v30 = vsel %vm3143_vm6, %v4427_v28, %v3140_v16  ;;  %v3197_v54 = vmul.f32 %v5903_v63, %v5890_v14  ;;  %2496 = vmatmul.f32.gmra.mxu3 %v4827_v2  ;;  %vm3202_vm8 = vweird.f32 %v5903_v63  ;;  %v3205_v28 = vand.u32 2147483647, %v5890_v14  ;;  %v4830_v14 = vld [vmem:[#allocation2 + $0x188] sm:$0xff] }
 0x379   :  { %v3149_v26 = vsel %vm3146_vm7, %v3148_v46, %v3144_v30  ;;  %4432 = vrcp.f32 %v5905_v50  ;;  %v2172_v58 = vpop.f32.mrf.mxu2  ;;  %vm5921_vm10 = vmor %vm3201_vm9, %vm3202_vm8  ;;  %v3265_v18 = vand.u32 2147483647, %v5905_v50  ;;  %v3267_v57 = vand.u32 2147483648, %v5905_v50 }
 0x37a   :  { %v4012_v55 = vmul.f32 %v3149_v26, %v5864_v52  ;;  %v3198_v19 = vsub.f32 1.0, %v3197_v54  ;;  %4434 = vpow2.f32 %v4236_v24  ;;  %v2173_v6 = vadd.f32 %v2172_v58, %v2108_v13  ;;  %v642_v26 = vld [vmem:[#allocation5 + $0xe30] sm:$0xff]  ;;  %v640_v13 = vld [vmem:[#allocation5 + $0xe20] sm:$0xff]  ;;  %v643_v58 = vld [vmem:[#allocation5 + $0xe38] sm:$0xff] }
 0x37b   :  { %v2045_v4 = vpop.f32.mrf.mxu0  ;;  %v2237_v60 = vpop.f32.mrf.mxu3  ;;  %vm3206_vm11 = vcmp.eq.f32.partialorder %v3205_v28, 8.507059e+37  ;;  %vm3261_vm13 = vweird.f32 %v5905_v50  ;;  %2667 = vmatpush.xpose.msrb.mxu2 %v642_v26  ;;  %vm3266_vm15 = vcmp.eq.f32.partialorder %v3265_v18, 8.507059e+37  ;;  %2537 = vmatpush.xpose.msrb.mxu0 %v640_v13 }
 0x37c   :  { %v4076_v0 = vmul.f32 2.0, %v4012_v55  ;;  %v3199_v39 = vmul.f32 %v5903_v63, %v3198_v19  ;;  %v2046_v32 = vadd.f32 %v2045_v4, %v5830_v51  ;;  %v5918_v52 = vadd.f32 %v2237_v60, %v2173_v6  ;;  %v641_v19 = vld [vmem:[#allocation5 + $0xe28] sm:$0xff]  ;;  %v4835_v6 = vld [vmem:[#allocation2 + $0x1d8] sm:$0xff]  ;;  %2732 = vmatpush.xpose.msrb.mxu3 %v643_v58 }
 0x37d   :  { %v2110_v12 = vpop.f32.mrf.mxu1  ;;  %v3268_v55 = vor.u32 1.1754944e-38, %v3267_v57  ;;  %2602 = vmatpush.xpose.msrb.mxu1 %v641_v19  ;;  %v4840_v19 = vld [vmem:[#allocation2 + $0x240] sm:$0xff] }
 0x37e   :  { %4140 = vst [vmem:[#allocation8 + $0x30] sm:$0xff] %v4076_v0  ;;  %v3200_v53 = vadd.f32 %v5903_v63, %v3199_v39  ;;  %2304 = vmatmul.f32.gmra.mxu0 %v4828_v9  ;;  %2434 = vmatmul.f32.gmra.mxu2 %v4829_v5  ;;  %v4240_v51 = vmul.f32 -1.442695, %v5918_v52  ;;  %v2111_v21 = vadd.f32 %v2110_v12, %v2046_v32 }
 0x37f   :  { %v5925_v36 = vpop.eup %4432  ;;  %2668 = vmatpush.xpose.msrb.mxu2 %v634_v23 }
 0x380   :  { %2369 = vmatmul.f32.gmra.mxu1 %v4830_v14  ;;  %v4435_v37 = vpop.eup %4434  ;;  %v3204_v33 = vsel %vm5921_vm10, %v5903_v63, %v3200_v53  ;;  %v3257_v38 = vmul.f32 %v5925_v36, %v5905_v50  ;;  %2499 = vmatmul.f32.gmra.mxu3 %v4831_v59  ;;  %4436 = vpow2.f32 %v4240_v51  ;;  %vm3262_vm12 = vweird.f32 %v5925_v36 }
 0x381   :  { %v3209_v8 = vsel %vm3206_vm11, %v3208_v47, %v3204_v33  ;;  %v5933_v40 = vadd.f32 1.0, %v4435_v37  ;;  %v2175_v42 = vpop.f32.mrf.mxu2  ;;  %vm3263_vm14 = vmor %vm3261_vm13, %vm3262_vm12  ;;  %v4837_v37 = vld [vmem:[#allocation2 + $0x210] sm:$0xff] }
 0x382   :  { %v4016_v11 = vmul.f32 %v3209_v8, %v5871_v35  ;;  %v3258_v1 = vsub.f32 1.0, %v3257_v38  ;;  %v2176_v16 = vadd.f32 %v2175_v42, %v2111_v21  ;;  %v4838_v21 = vld [vmem:[#allocation2 + $0x208] sm:$0xff]  ;;  %v4839_v8 = vld [vmem:[#allocation2 + $0x218] sm:$0xff]  ;;  %v632_v42 = vld [vmem:[#allocation5 + $0xde0] sm:$0xff] }
 0x383   :  { %4438 = vrcp.f32 %v5933_v40  ;;  %v2048_v63 = vpop.f32.mrf.mxu0  ;;  %v2240_v46 = vpop.f32.mrf.mxu3  ;;  %v3327_v47 = vand.u32 2147483648, %v5933_v40  ;;  %vm3321_vm1 = vweird.f32 %v5933_v40  ;;  %2538 = vmatpush.xpose.msrb.mxu0 %v632_v42 }
 0x384   :  { %v4080_v24 = vmul.f32 2.0, %v4016_v11  ;;  %v3259_v20 = vmul.f32 %v5925_v36, %v3258_v1  ;;  %v5941_v30 = vadd.f32 %v2240_v46, %v2176_v16  ;;  %v2049_v35 = vadd.f32 %v2048_v63, %v5833_v62  ;;  %v4834_v62 = vld [vmem:[#allocation2 + $0x1c8] sm:$0xff]  ;;  %v635_v11 = vld [vmem:[#allocation5 + $0xdf8] sm:$0xff] }
 0x385   :  { %v2113_v54 = vpop.f32.mrf.mxu1  ;;  %v3328_v1 = vor.u32 1.1754944e-38, %v3327_v47  ;;  %v633_v63 = vld [vmem:[#allocation5 + $0xde8] sm:$0xff]  ;;  %2733 = vmatpush.xpose.msrb.mxu3 %v635_v11  ;;  %v616_v47 = vld [vmem:[#allocation5 + $0xd60] sm:$0xff] }
 0x386   :  { %4144 = vst [vmem:[#allocation8 + $0x50] sm:$0xff] %v4080_v24  ;;  %v3260_v49 = vadd.f32 %v5925_v36, %v3259_v20  ;;  %v4244_v2 = vmul.f32 -1.442695, %v5941_v30  ;;  %2307 = vmatmul.f32.gmra.mxu0 %v4832_v22  ;;  %2437 = vmatmul.f32.gmra.mxu2 %v4833_v34  ;;  %v4437_v31 = vpop.eup %4436  ;;  %v2114_v0 = vadd.f32 %v2113_v54, %v2049_v35 }
 0x387   :  { %v5950_v29 = vadd.f32 1.0, %v4437_v31  ;;  %2603 = vmatpush.xpose.msrb.mxu1 %v633_v63  ;;  %v626_v31 = vld [vmem:[#allocation5 + $0xdb0] sm:$0xff]  ;;  %v4844_v63 = vld [vmem:[#allocation2 + $0x280] sm:$0xff] }
 0x388   :  { %2372 = vmatmul.f32.gmra.mxu1 %v4834_v62  ;;  %v3264_v50 = vsel %vm3263_vm14, %v5925_v36, %v3260_v49  ;;  %4440 = vpow2.f32 %v4244_v2  ;;  %2502 = vmatmul.f32.gmra.mxu3 %v4835_v6 }
 0x389   :  { %v4439_v4 = vpop.eup %4438  ;;  %v3269_v60 = vsel %vm3266_vm15, %v3268_v55, %v3264_v50  ;;  %v2178_v39 = vpop.f32.mrf.mxu2  ;;  %4442 = vrcp.f32 %v5950_v29  ;;  %v3387_v2 = vand.u32 2147483648, %v5950_v29  ;;  %v3385_v13 = vand.u32 2147483647, %v5950_v29  ;;  %v624_v55 = vld [vmem:[#allocation5 + $0xda0] sm:$0xff]  ;;  %v4841_v50 = vld [vmem:[#allocation2 + $0x250] sm:$0xff]  ;;  %2669 = vmatpush.xpose.msrb.mxu2 %v626_v31 }
 0x38a   :  { %v4020_v28 = vmul.f32 %v3269_v60, %v5881_v10  ;;  %v3317_v32 = vmul.f32 %v4439_v4, %v5933_v40  ;;  %v2179_v12 = vadd.f32 %v2178_v39, %v2114_v0  ;;  %vm3322_vm0 = vweird.f32 %v4439_v4  ;;  %v627_v60 = vld [vmem:[#allocation5 + $0xdb8] sm:$0xff]  ;;  %v625_v0 = vld [vmem:[#allocation5 + $0xda8] sm:$0xff]  ;;  %2539 = vmatpush.xpose.msrb.mxu0 %v624_v55  ;;  %v602_v31 = vld [vmem:[#allocation5 + $0xcf0] sm:$0xff] }
 0x38b   :  { %v2051_v53 = vpop.f32.mrf.mxu0  ;;  %v2243_v43 = vpop.f32.mrf.mxu3  ;;  %v3325_v10 = vand.u32 2147483647, %v5933_v40  ;;  %vm3323_vm2 = vmor %vm3321_vm1, %vm3322_vm0  ;;  %vm3381_vm5 = vweird.f32 %v5950_v29  ;;  %vm3386_vm7 = vcmp.eq.f32.partialorder %v3385_v13, 8.507059e+37  ;;  %2734 = vmatpush.xpose.msrb.mxu3 %v627_v60  ;;  %2604 = vmatpush.xpose.msrb.mxu1 %v625_v0  ;;  %v600_v55 = vld [vmem:[#allocation5 + $0xce0] sm:$0xff] }
 0x38c   :  { %v4084_v9 = vmul.f32 2.0, %v4020_v28  ;;  %v3318_v5 = vsub.f32 1.0, %v3317_v32  ;;  %v2052_v51 = vadd.f32 %v2051_v53, %v5836_v45  ;;  %v5957_v61 = vadd.f32 %v2243_v43, %v2179_v12  ;;  %v4843_v53 = vld [vmem:[#allocation2 + $0x258] sm:$0xff] }
 0x38d   :  { %v2116_v36 = vpop.f32.mrf.mxu1  ;;  %vm3326_vm3 = vcmp.eq.f32.partialorder %v3325_v10, 8.507059e+37  ;;  %v3388_v32 = vor.u32 1.1754944e-38, %v3387_v2  ;;  %v4847_v2 = vld [vmem:[#allocation2 + $0x298] sm:$0xff] }
 0x38e   :  { %v4441_v14 = vpop.eup %4440  ;;  %4148 = vst [vmem:[#allocation8 + $0x70] sm:$0xff] %v4084_v9  ;;  %v3319_v17 = vmul.f32 %v4439_v4, %v3318_v5  ;;  %2310 = vmatmul.f32.gmra.mxu0 %v4836_v25  ;;  %2440 = vmatmul.f32.gmra.mxu2 %v4837_v37  ;;  %v4248_v38 = vmul.f32 -1.442695, %v5957_v61  ;;  %v2117_v18 = vadd.f32 %v2116_v36, %v2052_v51  ;;  %v618_v36 = vld [vmem:[#allocation5 + $0xd70] sm:$0xff] }
 0x38f   :  { %v5960_v33 = vadd.f32 1.0, %v4441_v14  ;;  %v5963_v59 = vpop.eup %4442  ;;  %2670 = vmatpush.xpose.msrb.mxu2 %v618_v36  ;;  %2540 = vmatpush.xpose.msrb.mxu0 %v616_v47  ;;  %v4848_v36 = vld [vmem:[#allocation2 + $0x2c0] sm:$0xff]  ;;  %v4849_v47 = vld [vmem:[#allocation2 + $0x2d0] sm:$0xff] }
 0x390   :  { %2375 = vmatmul.f32.gmra.mxu1 %v4838_v21  ;;  %v3320_v45 = vadd.f32 %v4439_v4, %v3319_v17  ;;  %2505 = vmatmul.f32.gmra.mxu3 %v4839_v8  ;;  %v3377_v16 = vmul.f32 %v5963_v59, %v5950_v29  ;;  %vm3382_vm4 = vweird.f32 %v5963_v59  ;;  %v619_v21 = vld [vmem:[#allocation5 + $0xd78] sm:$0xff] }
 0x391   :  { %4444 = vrcp.f32 %v5960_v33  ;;  %v2181_v57 = vpop.f32.mrf.mxu2  ;;  %vm5985_vm6 = vmor %vm3381_vm5, %vm3382_vm4  ;;  %v3447_v25 = vand.u32 2147483648, %v5960_v33  ;;  %v3445_v23 = vand.u32 2147483647, %v5960_v33  ;;  %2735 = vmatpush.xpose.msrb.mxu3 %v619_v21  ;;  %vm3441_vm9 = vweird.f32 %v5960_v33 }
 0x392   :  { %v3324_v46 = vsel %vm3323_vm2, %v4439_v4, %v3320_v45  ;;  %4446 = vpow2.f32 %v4248_v38  ;;  %v3378_v24 = vsub.f32 1.0, %v3377_v16  ;;  %v2182_v20 = vadd.f32 %v2181_v57, %v2117_v18  ;;  %v4842_v4 = vld [vmem:[#allocation2 + $0x248] sm:$0xff]  ;;  %v608_v16 = vld [vmem:[#allocation5 + $0xd20] sm:$0xff] }
 0x393   :  { %v3329_v40 = vsel %vm3326_vm3, %v3328_v1, %v3324_v46  ;;  %v2054_v54 = vpop.f32.mrf.mxu0  ;;  %v2246_v35 = vpop.f32.mrf.mxu3  ;;  %v610_v1 = vld [vmem:[#allocation5 + $0xd30] sm:$0xff]  ;;  %vm3446_vm11 = vcmp.eq.f32.partialorder %v3445_v23, 8.507059e+37  ;;  %2541 = vmatpush.xpose.msrb.mxu0 %v608_v16 }
 0x394   :  { %v4024_v49 = vmul.f32 %v3329_v40, %v5900_v44  ;;  %v2055_v22 = vadd.f32 %v2054_v54, %v5839_v27  ;;  %v3379_v26 = vmul.f32 %v5963_v59, %v3378_v24  ;;  %v5976_v58 = vadd.f32 %v2246_v35, %v2182_v20  ;;  %v4845_v46 = vld [vmem:[#allocation2 + $0x290] sm:$0xff]  ;;  %v4846_v20 = vld [vmem:[#allocation2 + $0x288] sm:$0xff]  ;;  %2671 = vmatpush.xpose.msrb.mxu2 %v610_v1  ;;  %v611_v54 = vld [vmem:[#allocation5 + $0xd38] sm:$0xff] }
 0x395   :  { %v2119_v34 = vpop.f32.mrf.mxu1  ;;  %v3448_v24 = vor.u32 1.1754944e-38, %v3447_v25  ;;  %2736 = vmatpush.xpose.msrb.mxu3 %v611_v54 }
 0x396   :  { %v4088_v62 = vmul.f32 2.0, %v4024_v49  ;;  %2313 = vmatmul.f32.gmra.mxu0 %v4840_v19  ;;  %2443 = vmatmul.f32.gmra.mxu2 %v4841_v50  ;;  %v3380_v27 = vadd.f32 %v5963_v59, %v3379_v26  ;;  %v4252_v6 = vmul.f32 -1.442695, %v5976_v58  ;;  %v2120_v29 = vadd.f32 %v2119_v34, %v2055_v22 }
 0x397   :  { %v5978_v44 = vpop.eup %4444  ;;  %2542 = vmatpush.xpose.msrb.mxu0 %v600_v55  ;;  %v4854_v55 = vld [vmem:[#allocation2 + $0x308] sm:$0xff] }
 0x398   :  { %2378 = vmatmul.f32.gmra.mxu1 %v4842_v4  ;;  %v4447_v39 = vpop.eup %4446  ;;  %4152 = vst [vmem:[#allocation8 + $0x90] sm:$0xff] %v4088_v62  ;;  %v3437_v12 = vmul.f32 %v5978_v44, %v5960_v33  ;;  %2508 = vmatmul.f32.gmra.mxu3 %v4843_v53  ;;  %v3384_v43 = vsel %vm5985_vm6, %v5963_v59, %v3380_v27  ;;  %4448 = vpow2.f32 %v4252_v6  ;;  %v617_v59 = vld [vmem:[#allocation5 + $0xd68] sm:$0xff]  ;;  %vm3442_vm8 = vweird.f32 %v5978_v44  ;;  %v603_v6 = vld [vmem:[#allocation5 + $0xcf8] sm:$0xff] }
 0x399   :  { %v5994_v9 = vadd.f32 1.0, %v4447_v39  ;;  %v2184_v5 = vpop.f32.mrf.mxu2  ;;  %v3389_v51 = vsel %vm3386_vm7, %v3388_v32, %v3384_v43  ;;  %2605 = vmatpush.xpose.msrb.mxu1 %v617_v59  ;;  %vm6010_vm10 = vmor %vm3441_vm9, %vm3442_vm8  ;;  %v609_v33 = vld [vmem:[#allocation5 + $0xd28] sm:$0xff]  ;;  %2672 = vmatpush.xpose.msrb.mxu2 %v602_v31 }
 0x39a   :  { %v3438_v14 = vsub.f32 1.0, %v3437_v12  ;;  %v2185_v17 = vadd.f32 %v2184_v5, %v2120_v29  ;;  %v4028_v10 = vmul.f32 %v3389_v51, %v5918_v52  ;;  %v601_v4 = vld [vmem:[#allocation5 + $0xce8] sm:$0xff]  ;;  %2737 = vmatpush.xpose.msrb.mxu3 %v603_v6  ;;  %v594_v12 = vld [vmem:[#allocation5 + $0xcb0] sm:$0xff]  ;;  %v592_v29 = vld [vmem:[#allocation5 + $0xca0] sm:$0xff] }
 0x39b   :  { %4450 = vrcp.f32 %v5994_v9  ;;  %v2057_v37 = vpop.f32.mrf.mxu0  ;;  %v2249_v38 = vpop.f32.mrf.mxu3  ;;  %v3507_v28 = vand.u32 2147483648, %v5994_v9  ;;  %v3505_v5 = vand.u32 2147483647, %v5994_v9  ;;  %vm3501_vm13 = vweird.f32 %v5994_v9  ;;  %2543 = vmatpush.xpose.msrb.mxu0 %v592_v29 }
 0x39c   :  { %v3439_v45 = vmul.f32 %v5978_v44, %v3438_v14  ;;  %v6002_v8 = vadd.f32 %v2249_v38, %v2185_v17  ;;  %v4092_v52 = vmul.f32 2.0, %v4028_v10  ;;  %v2058_v11 = vadd.f32 %v2057_v37, %v5842_v3  ;;  %v4850_v14 = vld [vmem:[#allocation2 + $0x2c8] sm:$0xff]  ;;  %v595_v17 = vld [vmem:[#allocation5 + $0xcb8] sm:$0xff] }
 0x39d   :  { %v2122_v42 = vpop.f32.mrf.mxu1  ;;  %2606 = vmatpush.xpose.msrb.mxu1 %v609_v33  ;;  %2673 = vmatpush.xpose.msrb.mxu2 %v594_v12  ;;  %v593_v10 = vld [vmem:[#allocation5 + $0xca8] sm:$0xff]  ;;  %v4851_v38 = vld [vmem:[#allocation2 + $0x2d8] sm:$0xff]  ;;  %v3508_v21 = vor.u32 1.1754944e-38, %v3507_v28  ;;  %vm3506_vm15 = vcmp.eq.f32.partialorder %v3505_v5, 8.507059e+37 }
 0x39e   :  { %v3440_v18 = vadd.f32 %v5978_v44, %v3439_v45  ;;  %v4256_v57 = vmul.f32 -1.442695, %v6002_v8  ;;  %2316 = vmatmul.f32.gmra.mxu0 %v4844_v63  ;;  %2446 = vmatmul.f32.gmra.mxu2 %v4845_v46  ;;  %v4449_v40 = vpop.eup %4448  ;;  %4156 = vst [vmem:[#allocation8 + $0xb0] sm:$0xff] %v4092_v52  ;;  %v2123_v26 = vadd.f32 %v2122_v42, %v2058_v11  ;;  %v586_v42 = vld [vmem:[#allocation5 + $0xc70] sm:$0xff]  ;;  %v584_v52 = vld [vmem:[#allocation5 + $0xc60] sm:$0xff]  ;;  %v587_v63 = vld [vmem:[#allocation5 + $0xc78] sm:$0xff] }
 0x39f   :  { %v6017_v49 = vadd.f32 1.0, %v4449_v40  ;;  %2738 = vmatpush.xpose.msrb.mxu3 %v595_v17  ;;  %v585_v46 = vld [vmem:[#allocation5 + $0xc68] sm:$0xff]  ;;  %2544 = vmatpush.xpose.msrb.mxu0 %v584_v52 }
 0x3a0   :  { %2381 = vmatmul.f32.gmra.mxu1 %v4846_v20  ;;  %v3444_v35 = vsel %vm6010_vm10, %v5978_v44, %v3440_v18  ;;  %4452 = vpow2.f32 %v4256_v57  ;;  %2511 = vmatmul.f32.gmra.mxu3 %v4847_v2  ;;  %v578_v2 = vld [vmem:[#allocation5 + $0xc30] sm:$0xff] }
 0x3a1   :  { %v6019_v22 = vpop.eup %4450  ;;  %v3449_v34 = vsel %vm3446_vm11, %v3448_v24, %v3444_v35  ;;  %v2187_v13 = vpop.f32.mrf.mxu2  ;;  %4454 = vrcp.f32 %v6017_v49  ;;  %2607 = vmatpush.xpose.msrb.mxu1 %v601_v4  ;;  %2674 = vmatpush.xpose.msrb.mxu2 %v586_v42  ;;  %v3567_v3 = vand.u32 2147483648, %v6017_v49  ;;  %v3565_v33 = vand.u32 2147483647, %v6017_v49  ;;  %v4855_v4 = vld [vmem:[#allocation2 + $0x318] sm:$0xff] }
 0x3a2   :  { %v4032_v62 = vmul.f32 %v3449_v34, %v5941_v30  ;;  %v3497_v19 = vmul.f32 %v6019_v22, %v5994_v9  ;;  %v2188_v50 = vadd.f32 %v2187_v13, %v2123_v26  ;;  %vm3502_vm12 = vweird.f32 %v6019_v22  ;;  %v4853_v26 = vld [vmem:[#allocation2 + $0x310] sm:$0xff] }
 0x3a3   :  { %v2060_v44 = vpop.f32.mrf.mxu0  ;;  %v2252_v27 = vpop.f32.mrf.mxu3  ;;  %vm3503_vm14 = vmor %vm3501_vm13, %vm3502_vm12  ;;  %2739 = vmatpush.xpose.msrb.mxu3 %v587_v63  ;;  %vm3561_vm1 = vweird.f32 %v6017_v49  ;;  %vm3566_vm3 = vcmp.eq.f32.partialorder %v3565_v33, 8.507059e+37 }
 0x3a4   :  { %v4096_v60 = vmul.f32 2.0, %v4032_v62  ;;  %v3498_v0 = vsub.f32 1.0, %v3497_v19  ;;  %v2061_v32 = vadd.f32 %v2060_v44, %v5845_v15  ;;  %v6027_v30 = vadd.f32 %v2252_v27, %v2188_v50  ;;  %v579_v62 = vld [vmem:[#allocation5 + $0xc38] sm:$0xff]  ;;  %v577_v19 = vld [vmem:[#allocation5 + $0xc28] sm:$0xff] }
 0x3a5   :  { %v2125_v39 = vpop.f32.mrf.mxu1  ;;  %2608 = vmatpush.xpose.msrb.mxu1 %v593_v10  ;;  %2675 = vmatpush.xpose.msrb.mxu2 %v578_v2  ;;  %v3568_v44 = vor.u32 1.1754944e-38, %v3567_v3  ;;  %v4860_v2 = vld [vmem:[#allocation2 + $0x380] sm:$0xff] }
 0x3a6   :  { %v4453_v53 = vpop.eup %4452  ;;  %4160 = vst [vmem:[#allocation8 + $0xd0] sm:$0xff] %v4096_v60  ;;  %v3499_v43 = vmul.f32 %v6019_v22, %v3498_v0  ;;  %2319 = vmatmul.f32.gmra.mxu0 %v4848_v36  ;;  %2449 = vmatmul.f32.gmra.mxu2 %v4849_v47  ;;  %v4260_v15 = vmul.f32 -1.442695, %v6027_v30  ;;  %v2126_v45 = vadd.f32 %v2125_v39, %v2061_v32 }
 0x3a7   :  { %v6032_v51 = vadd.f32 1.0, %v4453_v53  ;;  %v6035_v25 = vpop.eup %4454  ;;  %2740 = vmatpush.xpose.msrb.mxu3 %v579_v62 }
 0x3a8   :  { %2384 = vmatmul.f32.gmra.mxu1 %v4850_v14  ;;  %v3500_v37 = vadd.f32 %v6019_v22, %v3499_v43  ;;  %2514 = vmatmul.f32.gmra.mxu3 %v4851_v38  ;;  %v3557_v59 = vmul.f32 %v6035_v25, %v6017_v49  ;;  %vm3562_vm0 = vweird.f32 %v6035_v25 }
 0x3a9   :  { %4456 = vrcp.f32 %v6032_v51  ;;  %v2190_v23 = vpop.f32.mrf.mxu2  ;;  %2609 = vmatpush.xpose.msrb.mxu1 %v585_v46  ;;  %vm3563_vm2 = vmor %vm3561_vm1, %vm3562_vm0  ;;  %v3627_v29 = vand.u32 2147483648, %v6032_v51  ;;  %v3625_v36 = vand.u32 2147483647, %v6032_v51  ;;  %vm3621_vm5 = vweird.f32 %v6032_v51 }
 0x3aa   :  { %v3504_v9 = vsel %vm3503_vm14, %v6019_v22, %v3500_v37  ;;  %4458 = vpow2.f32 %v4260_v15  ;;  %v3558_v1 = vsub.f32 1.0, %v3557_v59  ;;  %v2191_v16 = vadd.f32 %v2190_v23, %v2126_v45  ;;  %v576_v22 = vld [vmem:[#allocation5 + $0xc20] sm:$0xff]  ;;  %v4857_v37 = vld [vmem:[#allocation2 + $0x350] sm:$0xff]  ;;  %v4858_v59 = vld [vmem:[#allocation2 + $0x348] sm:$0xff] }
 0x3ab   :  { %v3509_v11 = vsel %vm3506_vm15, %v3508_v21, %v3504_v9  ;;  %v2063_v18 = vpop.f32.mrf.mxu0  ;;  %v2255_v57 = vpop.f32.mrf.mxu3  ;;  %2545 = vmatpush.xpose.msrb.mxu0 %v576_v22  ;;  %v3628_v21 = vor.u32 1.1754944e-38, %v3627_v29  ;;  %vm3626_vm7 = vcmp.eq.f32.partialorder %v3625_v36, 8.507059e+37  ;;  %v4861_v22 = vld [vmem:[#allocation2 + $0x390] sm:$0xff] }
 0x3ac   :  { %v4036_v40 = vmul.f32 %v3509_v11, %v5957_v61  ;;  %v2064_v24 = vadd.f32 %v2063_v18, %v5848_v48  ;;  %v3559_v54 = vmul.f32 %v6035_v25, %v3558_v1  ;;  %v6051_v35 = vadd.f32 %v2255_v57, %v2191_v16  ;;  %v4852_v61 = vld [vmem:[#allocation2 + $0x300] sm:$0xff] }
 0x3ad   :  { %v2128_v20 = vpop.f32.mrf.mxu1  ;;  %2610 = vmatpush.xpose.msrb.mxu1 %v577_v19 }
 0x3ae   :  { %v4100_v34 = vmul.f32 2.0, %v4036_v40  ;;  %2322 = vmatmul.f32.gmra.mxu0 %v4852_v61  ;;  %2452 = vmatmul.f32.gmra.mxu2 %v4853_v26  ;;  %v3560_v13 = vadd.f32 %v6035_v25, %v3559_v54  ;;  %v4264_v31 = vmul.f32 -1.442695, %v6051_v35  ;;  %v2129_v6 = vadd.f32 %v2128_v20, %v2064_v24  ;;  %v4862_v26 = vld [vmem:[#allocation2 + $0x388] sm:$0xff] }
 0x3af   :  { %v4457_v48 = vpop.eup %4456 }
 0x3b0   :  { %2387 = vmatmul.f32.gmra.mxu1 %v4854_v55  ;;  %v4459_v50 = vpop.eup %4458  ;;  %4164 = vst [vmem:[#allocation8 + $0xf0] sm:$0xff] %v4100_v34  ;;  %v3617_v27 = vmul.f32 %v4457_v48, %v6032_v51  ;;  %2517 = vmatmul.f32.gmra.mxu3 %v4855_v4  ;;  %v3564_v49 = vsel %vm3563_vm2, %v6035_v25, %v3560_v13  ;;  %4460 = vpow2.f32 %v4264_v31  ;;  %vm3622_vm4 = vweird.f32 %v4457_v48  ;;  %v4856_v25 = vld [vmem:[#allocation2 + $0x340] sm:$0xff]  ;;  %v4863_v13 = vld [vmem:[#allocation2 + $0x398] sm:$0xff] }
 0x3b1   :  { %v6060_v60 = vadd.f32 1.0, %v4459_v50  ;;  %v2193_v0 = vpop.f32.mrf.mxu2  ;;  %v3569_v39 = vsel %vm3566_vm3, %v3568_v44, %v3564_v49  ;;  %vm3623_vm6 = vmor %vm3621_vm5, %vm3622_vm4 }
 0x3b2   :  { %v3618_v28 = vsub.f32 1.0, %v3617_v27  ;;  %v2194_v32 = vadd.f32 %v2193_v0, %v2129_v6  ;;  %v4040_v12 = vmul.f32 %v3569_v39, %v5976_v58 }
 0x3b3   :  { %4462 = vrcp.f32 %v6060_v60  ;;  %v2066_v53 = vpop.f32.mrf.mxu0  ;;  %v2258_v43 = vpop.f32.mrf.mxu3  ;;  %v3687_v3 = vand.u32 2147483648, %v6060_v60  ;;  %vm3681_vm9 = vweird.f32 %v6060_v60 }
 0x3b4   :  { %v3619_v5 = vmul.f32 %v4457_v48, %v3618_v28  ;;  %v6066_v47 = vadd.f32 %v2258_v43, %v2194_v32  ;;  %v4104_v14 = vmul.f32 2.0, %v4040_v12  ;;  %v2067_v17 = vadd.f32 %v2066_v53, %v5851_v56  ;;  %v4859_v56 = vld [vmem:[#allocation2 + $0x358] sm:$0xff]  ;;  %v4864_v43 = vld [vmem:[#allocation2 + $0x3c0] sm:$0xff] }
 0x3b5   :  { %v2131_v15 = vpop.f32.mrf.mxu1  ;;  %v3688_v31 = vor.u32 1.1754944e-38, %v3687_v3  ;;  %v4869_v3 = vld [vmem:[#allocation2 + $0x20] sm:$0xff] }
 0x3b6   :  { %v3620_v10 = vadd.f32 %v4457_v48, %v3619_v5  ;;  %v4268_v58 = vmul.f32 -1.442695, %v6066_v47  ;;  %2325 = vmatmul.f32.gmra.mxu0 %v4856_v25  ;;  %2455 = vmatmul.f32.gmra.mxu2 %v4857_v37  ;;  %v4461_v38 = vpop.eup %4460  ;;  %4168 = vst [vmem:[#allocation8 + $0x110] sm:$0xff] %v4104_v14  ;;  %v2132_v52 = vadd.f32 %v2131_v15, %v2067_v17  ;;  %v4865_v5 = vld [vmem:[#allocation2 + $0x3d0] sm:$0xff]  ;;  %v4866_v14 = vld [vmem:[#allocation2 + $0x3c8] sm:$0xff]  ;;  %v4867_v25 = vld [vmem:[#allocation2 + $0x3d8] sm:$0xff] }
 0x3b7   :  { %v6072_v23 = vadd.f32 1.0, %v4461_v38  ;;  %v4868_v37 = vld [vmem:[#allocation7] sm:$0xf] }
 0x3b8   :  { %2390 = vmatmul.f32.gmra.mxu1 %v4858_v59  ;;  %v3624_v45 = vsel %vm3623_vm6, %v4457_v48, %v3620_v10  ;;  %4464 = vpow2.f32 %v4268_v58  ;;  %2520 = vmatmul.f32.gmra.mxu3 %v4859_v56  ;;  %v6099_v38 = vperm.slane %v4868_v37, 3 }
 0x3b9   :  { %v4463_v51 = vpop.eup %4462  ;;  %v3629_v42 = vsel %vm3626_vm7, %v3628_v21, %v3624_v45  ;;  %v2196_v9 = vpop.f32.mrf.mxu2  ;;  %4466 = vrcp.f32 %v6072_v23  ;;  %v3747_v0 = vand.u32 2147483648, %v6072_v23  ;;  %v3745_v12 = vand.u32 2147483647, %v6072_v23 }
 0x3ba   :  { %v4044_v11 = vmul.f32 %v3629_v42, %v6002_v8  ;;  %v3677_v1 = vmul.f32 %v4463_v51, %v6060_v60  ;;  %v2197_v16 = vadd.f32 %v2196_v9, %v2132_v52  ;;  %vm3682_vm8 = vweird.f32 %v4463_v51 }
 0x3bb   :  { %v2069_v18 = vpop.f32.mrf.mxu0  ;;  %v2261_v57 = vpop.f32.mrf.mxu3  ;;  %v3685_v8 = vand.u32 2147483647, %v6060_v60  ;;  %vm3683_vm10 = vmor %vm3681_vm9, %vm3682_vm8  ;;  %vm3741_vm13 = vweird.f32 %v6072_v23  ;;  %v3748_v17 = vor.u32 1.1754944e-38, %v3747_v0  ;;  %vm3746_vm15 = vcmp.eq.f32.partialorder %v3745_v12, 8.507059e+37 }
 0x3bc   :  { %v4108_v63 = vmul.f32 2.0, %v4044_v11  ;;  %v3678_v46 = vsub.f32 1.0, %v3677_v1  ;;  %v2070_v24 = vadd.f32 %v2069_v18, %v5854_v41  ;;  %v6079_v20 = vadd.f32 %v2261_v57, %v2197_v16 }
 0x3bd   :  { %v2134_v40 = vpop.f32.mrf.mxu1  ;;  %vm3686_vm11 = vcmp.eq.f32.partialorder %v3685_v8, 8.507059e+37 }
 0x3be   :  { %v4465_v54 = vpop.eup %4464  ;;  %4172 = vst [vmem:[#allocation8 + $0x130] sm:$0xff] %v4108_v63  ;;  %v3679_v33 = vmul.f32 %v4463_v51, %v3678_v46  ;;  %2328 = vmatmul.f32.gmra.mxu0 %v4860_v2  ;;  %2458 = vmatmul.f32.gmra.mxu2 %v4861_v22  ;;  %v4272_v61 = vmul.f32 -1.442695, %v6079_v20  ;;  %v2135_v62 = vadd.f32 %v2134_v40, %v2070_v24  ;;  %v4870_v24 = vld [vmem:[#allocation2 + $0x30] sm:$0xff]  ;;  %v4871_v2 = vld [vmem:[#allocation2 + $0x28] sm:$0xff] }
 0x3bf   :  { %v6082_v34 = vadd.f32 1.0, %v4465_v54  ;;  %v4467_v48 = vpop.eup %4466 }
 0x3c0   :  { %2393 = vmatmul.f32.gmra.mxu1 %v4862_v26  ;;  %v3680_v41 = vadd.f32 %v4463_v51, %v3679_v33  ;;  %2523 = vmatmul.f32.gmra.mxu3 %v4863_v13  ;;  %v3737_v55 = vmul.f32 %v4467_v48, %v6072_v23  ;;  %vm3742_vm12 = vweird.f32 %v4467_v48  ;;  %v4872_v26 = vld [vmem:[#allocation2 + $0x38] sm:$0xff] }
 0x3c1   :  { %4468 = vrcp.f32 %v6082_v34  ;;  %v2199_v19 = vpop.f32.mrf.mxu2  ;;  %vm3743_vm14 = vmor %vm3741_vm13, %vm3742_vm12  ;;  %v3805_v52 = vand.u32 2147483647, %v6082_v34  ;;  %v3807_v9 = vand.u32 2147483648, %v6082_v34  ;;  %vm3801_vm1 = vweird.f32 %v6082_v34 }
 0x3c2   :  { %v3684_v50 = vsel %vm3683_vm10, %v4463_v51, %v3680_v41  ;;  %4470 = vpow2.f32 %v4272_v61  ;;  %v3738_v27 = vsub.f32 1.0, %v3737_v55  ;;  %v2200_v6 = vadd.f32 %v2199_v19, %v2135_v62 }
 0x3c3   :  { %v3689_v44 = vsel %vm3686_vm11, %v3688_v31, %v3684_v50  ;;  %v2072_v4 = vpop.f32.mrf.mxu0  ;;  %v2264_v49 = vpop.f32.mrf.mxu3  ;;  %v3808_v33 = vor.u32 1.1754944e-38, %v3807_v9  ;;  %vm3806_vm3 = vcmp.eq.f32.partialorder %v3805_v52, 8.507059e+37 }
 0x3c4   :  { %v4048_v60 = vmul.f32 %v3689_v44, %v6027_v30  ;;  %v2073_v39 = vadd.f32 %v2072_v4, %v5856_v7  ;;  %v3739_v32 = vmul.f32 %v4467_v48, %v3738_v27  ;;  %v6093_v29 = vadd.f32 %v2264_v49, %v2200_v6 }
 0x3c5   :  { %v2137_v28 = vpop.f32.mrf.mxu1 }
 0x3c6   :  { %v4112_v53 = vmul.f32 2.0, %v4048_v60  ;;  %2331 = vmatmul.f32.gmra.mxu0 %v4864_v43  ;;  %2461 = vmatmul.f32.gmra.mxu2 %v4865_v5  ;;  %v3740_v15 = vadd.f32 %v4467_v48, %v3739_v32  ;;  %v4276_v30 = vmul.f32 -1.442695, %v6093_v29  ;;  %v2138_v58 = vadd.f32 %v2137_v28, %v2073_v39  ;;  %v4873_v28 = vld [vmem:[#allocation2 + $0x60] sm:$0xff]  ;;  %v4874_v32 = vld [vmem:[#allocation2 + $0x70] sm:$0xff] }
 0x3c7   :  { %v4469_v36 = vpop.eup %4468 }
 0x3c8   :  { %2396 = vmatmul.f32.gmra.mxu1 %v4866_v14  ;;  %v4471_v7 = vpop.eup %4470  ;;  %4176 = vst [vmem:[#allocation8 + $0x150] sm:$0xff] %v4112_v53  ;;  %v3797_v10 = vmul.f32 %v4469_v36, %v6082_v34  ;;  %2526 = vmatmul.f32.gmra.mxu3 %v4867_v25  ;;  %v3744_v21 = vsel %vm3743_vm14, %v4467_v48, %v3740_v15  ;;  %4472 = vpow2.f32 %v4276_v30  ;;  %vm3802_vm0 = vweird.f32 %v4469_v36  ;;  %v4875_v53 = vld [vmem:[#allocation2 + $0x68] sm:$0xff] }
 0x3c9   :  { %v6101_v59 = vadd.f32 1.0, %v4471_v7  ;;  %v2202_v45 = vpop.f32.mrf.mxu2  ;;  %v3749_v23 = vsel %vm3746_vm15, %v3748_v17, %v3744_v21  ;;  %vm3803_vm2 = vmor %vm3801_vm1, %vm3802_vm0 }
 0x3ca   :  { %v3798_v56 = vsub.f32 1.0, %v3797_v10  ;;  %v2203_v51 = vadd.f32 %v2202_v45, %v2138_v58  ;;  %v4052_v42 = vmul.f32 %v3749_v23, %v6051_v35 }
 0x3cb   :  { %4474 = vrcp.f32 %v6101_v59  ;;  %v2267_v11 = vpop.f32.mrf.mxu3  ;;  %v2287_v1 = vpop.f32.mrf.mxu0  ;;  %v3867_v4 = vand.u32 2147483648, %v6101_v59  ;;  %vm3861_vm5 = vweird.f32 %v6101_v59 }
 0x3cc   :  { %v3799_v16 = vmul.f32 %v4469_v36, %v3798_v56  ;;  %v6107_v18 = vadd.f32 %v2267_v11, %v2203_v51  ;;  %v2288_v57 = vadd.f32 %v2287_v1, %v6099_v38  ;;  %v4116_v46 = vmul.f32 2.0, %v4052_v42  ;;  %v4877_v11 = vld [vmem:[#allocation2 + $0xa0] sm:$0xff]  ;;  %v4878_v1 = vld [vmem:[#allocation2 + $0xb0] sm:$0xff] }
 0x3cd   :  { %v2352_v63 = vpop.f32.mrf.mxu1  ;;  %v3868_v15 = vor.u32 1.1754944e-38, %v3867_v4 }
 0x3ce   :  { %v3800_v40 = vadd.f32 %v4469_v36, %v3799_v16  ;;  %v4280_v35 = vmul.f32 -1.442695, %v6107_v18  ;;  %2546 = vmatmul.f32.vlgmr.msrb.gmra.mxu0 %v4869_v3  ;;  %2676 = vmatmul.f32.vlgmr.msrb.gmra.mxu2 %v4870_v24  ;;  %v4473_v54 = vpop.eup %4472  ;;  %4180 = vst [vmem:[#allocation8 + $0x170] sm:$0xff] %v4116_v46  ;;  %v2353_v8 = vadd.f32 %v2352_v63, %v2288_v57 }
 0x3cf   :  { %v6112_v61 = vadd.f32 1.0, %v4473_v54 }
 0x3d0   :  { %2611 = vmatmul.f32.vlgmr.msrb.gmra.mxu1 %v4871_v2  ;;  %v3804_v22 = vsel %vm3803_vm2, %v4469_v36, %v3800_v40  ;;  %4476 = vpow2.f32 %v4280_v35  ;;  %2741 = vmatmul.f32.vlgmr.msrb.gmra.mxu3 %v4872_v26  ;;  %v4876_v36 = vld [vmem:[#allocation2 + $0x78] sm:$0xff] }
 0x3d1   :  { %v4475_v34 = vpop.eup %4474  ;;  %v3809_v48 = vsel %vm3806_vm3, %v3808_v33, %v3804_v22  ;;  %v2417_v41 = vpop.f32.mrf.mxu2  ;;  %4478 = vrcp.f32 %v6112_v61  ;;  %v3925_v51 = vand.u32 2147483647, %v6112_v61  ;;  %vm3921_vm9 = vweird.f32 %v6112_v61  ;;  %v4880_v40 = vld [vmem:[#allocation2 + $0xb8] sm:$0xff] }
 0x3d2   :  { %v4056_v13 = vmul.f32 %v3809_v48, %v6066_v47  ;;  %v3857_v31 = vmul.f32 %v4475_v34, %v6101_v59  ;;  %v2418_v55 = vadd.f32 %v2417_v41, %v2353_v8  ;;  %vm3862_vm4 = vweird.f32 %v4475_v34 }
 0x3d3   :  { %v2290_v62 = vpop.f32.mrf.mxu0  ;;  %v2482_v19 = vpop.f32.mrf.mxu3  ;;  %v3865_v47 = vand.u32 2147483647, %v6101_v59  ;;  %vm3863_vm6 = vmor %vm3861_vm5, %vm3862_vm4  ;;  %v3927_v59 = vand.u32 2147483648, %v6112_v61  ;;  %vm3926_vm11 = vcmp.eq.f32.partialorder %v3925_v51, 8.507059e+37 }
 0x3d4   :  { %v4120_v50 = vmul.f32 2.0, %v4056_v13  ;;  %v3858_v44 = vsub.f32 1.0, %v3857_v31  ;;  %v2291_v27 = vadd.f32 %v2290_v62, %v6099_v38  ;;  %v6119_v49 = vadd.f32 %v2482_v19, %v2418_v55  ;;  %v4881_v19 = vld [vmem:[#allocation2 + $0xe0] sm:$0xff] }
 0x3d5   :  { %v2355_v6 = vpop.f32.mrf.mxu1  ;;  %vm3866_vm7 = vcmp.eq.f32.partialorder %v3865_v47, 8.507059e+37  ;;  %v3928_v63 = vor.u32 1.1754944e-38, %v3927_v59  ;;  %v4889_v59 = vld [vmem:[#allocation2 + $0x160] sm:$0xff] }
 0x3d6   :  { %v4477_v60 = vpop.eup %4476  ;;  %4184 = vst [vmem:[#allocation8 + $0x190] sm:$0xff] %v4120_v50  ;;  %v3859_v0 = vmul.f32 %v4475_v34, %v3858_v44  ;;  %v2356_v39 = vadd.f32 %v2355_v6, %v2291_v27  ;;  %2549 = vmatmul.f32.gmra.mxu0 %v4873_v28  ;;  %2679 = vmatmul.f32.gmra.mxu2 %v4874_v32  ;;  %v4883_v44 = vld [vmem:[#allocation2 + $0xe8] sm:$0xff]  ;;  %v4884_v6 = vld [vmem:[#allocation2 + $0xf8] sm:$0xff] }
 0x3d7   :  { %v6122_v12 = vadd.f32 1.0, %v4477_v60  ;;  %v4479_v43 = vpop.eup %4478 }
 0x3d8   :  { %2614 = vmatmul.f32.gmra.mxu1 %v4875_v53  ;;  %v3860_v5 = vadd.f32 %v4475_v34, %v3859_v0  ;;  %2744 = vmatmul.f32.gmra.mxu3 %v4876_v36  ;;  %v3917_v30 = vmul.f32 %v4479_v43, %v6112_v61  ;;  %vm3922_vm8 = vweird.f32 %v4479_v43  ;;  %v4885_v36 = vld [vmem:[#allocation2 + $0x120] sm:$0xff] }
 0x3d9   :  { %4480 = vrcp.f32 %v6122_v12  ;;  %v2420_v14 = vpop.f32.mrf.mxu2  ;;  %vm3923_vm10 = vmor %vm3921_vm9, %vm3922_vm8  ;;  %v3985_v2 = vand.u32 2147483647, %v6122_v12  ;;  %v3987_v22 = vand.u32 2147483648, %v6122_v12  ;;  %vm3981_vm13 = vweird.f32 %v6122_v12 }
 0x3da   :  { %v3864_v7 = vsel %vm3863_vm6, %v4475_v34, %v3860_v5  ;;  %v2421_v17 = vadd.f32 %v2420_v14, %v2356_v39  ;;  %v3918_v58 = vsub.f32 1.0, %v3917_v30  ;;  %v4887_v30 = vld [vmem:[#allocation2 + $0x128] sm:$0xff]  ;;  %v4888_v14 = vld [vmem:[#allocation2 + $0x138] sm:$0xff] }
 0x3db   :  { %v3869_v10 = vsel %vm3866_vm7, %v3868_v15, %v3864_v7  ;;  %v2293_v25 = vpop.f32.mrf.mxu0  ;;  %v2485_v37 = vpop.f32.mrf.mxu3  ;;  %v3988_v50 = vor.u32 1.1754944e-38, %v3987_v22  ;;  %vm3986_vm15 = vcmp.eq.f32.partialorder %v3985_v2, 8.507059e+37  ;;  %v4886_v15 = vld [vmem:[#allocation2 + $0x130] sm:$0xff] }
 0x3dc   :  { %v4060_v21 = vmul.f32 %v3869_v10, %v6079_v20  ;;  %v2294_v45 = vadd.f32 %v2293_v25, %v6099_v38  ;;  %v3919_v56 = vmul.f32 %v4479_v43, %v3918_v58  ;;  %v6132_v42 = vadd.f32 %v2485_v37, %v2421_v17  ;;  %v4879_v20 = vld [vmem:[#allocation2 + $0xa8] sm:$0xff] }
 0x3dd   :  { %v2358_v23 = vpop.f32.mrf.mxu1 }
 0x3de   :  { %v4124_v52 = vmul.f32 2.0, %v4060_v21  ;;  %v2359_v9 = vadd.f32 %v2358_v23, %v2294_v45  ;;  %2552 = vmatmul.f32.gmra.mxu0 %v4877_v11  ;;  %2682 = vmatmul.f32.gmra.mxu2 %v4878_v1  ;;  %v3920_v57 = vadd.f32 %v4479_v43, %v3919_v56  ;;  %v4890_v45 = vld [vmem:[#allocation2 + $0x170] sm:$0xff]  ;;  %v4891_v23 = vld [vmem:[#allocation2 + $0x168] sm:$0xff]  ;;  %v4892_v56 = vld [vmem:[#allocation2 + $0x178] sm:$0xff] }
 0x3df   :  { %v4481_v16 = vpop.eup %4480 }
 0x3e0   :  { %2617 = vmatmul.f32.gmra.mxu1 %v4879_v20  ;;  %4188 = vst [vmem:[#allocation8 + $0x1b0] sm:$0xff] %v4124_v52  ;;  %v3977_v46 = vmul.f32 %v4481_v16, %v6122_v12  ;;  %2747 = vmatmul.f32.gmra.mxu3 %v4880_v40  ;;  %v3924_v35 = vsel %vm3923_vm10, %v4479_v43, %v3920_v57  ;;  %vm3982_vm12 = vweird.f32 %v4481_v16  ;;  %v4895_v40 = vld [vmem:[#allocation2 + $0x1a8] sm:$0xff] }
 0x3e1   :  { %v2423_v3 = vpop.f32.mrf.mxu2  ;;  %v3929_v24 = vsel %vm3926_vm11, %v3928_v63, %v3924_v35  ;;  %vm3983_vm14 = vmor %vm3981_vm13, %vm3982_vm12  ;;  %v4893_v63 = vld [vmem:[#allocation2 + $0x1a0] sm:$0xff]  ;;  %v4896_v35 = vld [vmem:[#allocation2 + $0x1b8] sm:$0xff] }
 0x3e2   :  { %v3978_v54 = vsub.f32 1.0, %v3977_v46  ;;  %v2424_v33 = vadd.f32 %v2423_v3, %v2359_v9  ;;  %v4064_v8 = vmul.f32 %v3929_v24, %v6093_v29  ;;  %v4882_v29 = vld [vmem:[#allocation2 + $0xf0] sm:$0xff] }
 0x3e3   :  { %v2296_v61 = vpop.f32.mrf.mxu0  ;;  %v2488_v26 = vpop.f32.mrf.mxu3  ;;  %v4894_v46 = vld [vmem:[#allocation2 + $0x1b0] sm:$0xff] }
 0x3e4   :  { %v3979_v34 = vmul.f32 %v4481_v16, %v3978_v54  ;;  %v2297_v48 = vadd.f32 %v2296_v61, %v6099_v38  ;;  %v6141_v41 = vadd.f32 %v2488_v26, %v2424_v33  ;;  %v4128_v31 = vmul.f32 2.0, %v4064_v8  ;;  %v4897_v26 = vld [vmem:[#allocation2 + $0x1e0] sm:$0xff] }
 0x3e5   :  { %v2361_v13 = vpop.f32.mrf.mxu1 }
 0x3e6   :  { %v3980_v55 = vadd.f32 %v4481_v16, %v3979_v34  ;;  %v2362_v62 = vadd.f32 %v2361_v13, %v2297_v48  ;;  %2555 = vmatmul.f32.gmra.mxu0 %v4881_v19  ;;  %2685 = vmatmul.f32.gmra.mxu2 %v4882_v29  ;;  %4192 = vst [vmem:[#allocation8 + $0x1d0] sm:$0xff] %v4128_v31  ;;  %v4898_v34 = vld [vmem:[#allocation2 + $0x1f0] sm:$0xff]  ;;  %v4899_v48 = vld [vmem:[#allocation2 + $0x1e8] sm:$0xff]  ;;  %v4900_v13 = vld [vmem:[#allocation2 + $0x1f8] sm:$0xff] }
 0x3e8   :  { %2620 = vmatmul.f32.gmra.mxu1 %v4883_v44  ;;  %v3984_v27 = vsel %vm3983_vm14, %v4481_v16, %v3980_v55  ;;  %2750 = vmatmul.f32.gmra.mxu3 %v4884_v6  ;;  %v4901_v6 = vld [vmem:[#allocation2 + $0x220] sm:$0xff] }
 0x3e9   :  { %v3989_v4 = vsel %vm3986_vm15, %v3988_v50, %v3984_v27  ;;  %v2426_v60 = vpop.f32.mrf.mxu2 }
 0x3ea   :  { %v4068_v0 = vmul.f32 %v3989_v4, %v6107_v18  ;;  %v2427_v47 = vadd.f32 %v2426_v60, %v2362_v62  ;;  %v4902_v4 = vld [vmem:[#allocation2 + $0x230] sm:$0xff]  ;;  %v4903_v60 = vld [vmem:[#allocation2 + $0x228] sm:$0xff] }
 0x3eb   :  { %v2299_v39 = vpop.f32.mrf.mxu0  ;;  %v2491_v28 = vpop.f32.mrf.mxu3 }
 0x3ec   :  { %v4132_v32 = vmul.f32 2.0, %v4068_v0  ;;  %v2300_v12 = vadd.f32 %v2299_v39, %v6099_v38  ;;  %v6146_v53 = vadd.f32 %v2491_v28, %v2427_v47  ;;  %v4904_v0 = vld [vmem:[#allocation2 + $0x238] sm:$0xff] }
 0x3ed   :  { %v2364_v43 = vpop.f32.mrf.mxu1 }
 0x3ee   :  { %4196 = vst [vmem:[#allocation8 + $0x1f0] sm:$0xff] %v4132_v32  ;;  %v2365_v5 = vadd.f32 %v2364_v43, %v2300_v12  ;;  %2558 = vmatmul.f32.gmra.mxu0 %v4885_v36  ;;  %2688 = vmatmul.f32.gmra.mxu2 %v4886_v15  ;;  %v4905_v15 = vld [vmem:[#allocation2 + $0x260] sm:$0xff] }
 0x3f0   :  { %2623 = vmatmul.f32.gmra.mxu1 %v4887_v30  ;;  %2753 = vmatmul.f32.gmra.mxu3 %v4888_v14  ;;  %v4906_v30 = vld [vmem:[#allocation2 + $0x270] sm:$0xff]  ;;  %v4907_v14 = vld [vmem:[#allocation2 + $0x268] sm:$0xff] }
 0x3f1   :  { %v2429_v18 = vpop.f32.mrf.mxu2 }
 0x3f2   :  { %v2430_v7 = vadd.f32 %v2429_v18, %v2365_v5  ;;  %v4908_v18 = vld [vmem:[#allocation2 + $0x278] sm:$0xff] }
 0x3f3   :  { %v2302_v17 = vpop.f32.mrf.mxu0  ;;  %v2494_v10 = vpop.f32.mrf.mxu3 }
 0x3f4   :  { %v2303_v58 = vadd.f32 %v2302_v17, %v6099_v38  ;;  %v6149_v25 = vadd.f32 %v2494_v10, %v2430_v7 }
 0x3f5   :  { %v2367_v37 = vpop.f32.mrf.mxu1 }
 0x3f6   :  { %v2368_v21 = vadd.f32 %v2367_v37, %v2303_v58  ;;  %2561 = vmatmul.f32.gmra.mxu0 %v4889_v59  ;;  %2691 = vmatmul.f32.gmra.mxu2 %v4890_v45 }
 0x3f8   :  { %2626 = vmatmul.f32.gmra.mxu1 %v4891_v23  ;;  %2756 = vmatmul.f32.gmra.mxu3 %v4892_v56  ;;  %v4909_v23 = vld [vmem:[#allocation2 + $0x2a0] sm:$0xff]  ;;  %v4910_v56 = vld [vmem:[#allocation2 + $0x2b0] sm:$0xff] }
 0x3f9   :  { %v2432_v51 = vpop.f32.mrf.mxu2 }
 0x3fa   :  { %v2433_v52 = vadd.f32 %v2432_v51, %v2368_v21  ;;  %v4911_v51 = vld [vmem:[#allocation2 + $0x2a8] sm:$0xff] }
 0x3fb   :  { %v2305_v9 = vpop.f32.mrf.mxu0  ;;  %v2497_v11 = vpop.f32.mrf.mxu3 }
 0x3fc   :  { %v2306_v1 = vadd.f32 %v2305_v9, %v6099_v38  ;;  %v6152_v16 = vadd.f32 %v2497_v11, %v2433_v52  ;;  %v4912_v52 = vld [vmem:[#allocation2 + $0x2b8] sm:$0xff] }
 0x3fd   :  { %v2370_v57 = vpop.f32.mrf.mxu1 }
 0x3fe   :  { %v2371_v20 = vadd.f32 %v2370_v57, %v2306_v1  ;;  %2564 = vmatmul.f32.gmra.mxu0 %v4893_v63  ;;  %2694 = vmatmul.f32.gmra.mxu2 %v4894_v46 }
 0x400   :  { %2629 = vmatmul.f32.gmra.mxu1 %v4895_v40  ;;  %2759 = vmatmul.f32.gmra.mxu3 %v4896_v35  ;;  %v4913_v35 = vld [vmem:[#allocation2 + $0x2e0] sm:$0xff] }
 0x401   :  { %v2435_v3 = vpop.f32.mrf.mxu2 }
 0x402   :  { %v2436_v24 = vadd.f32 %v2435_v3, %v2371_v20  ;;  %v4914_v3 = vld [vmem:[#allocation2 + $0x2f0] sm:$0xff] }
 0x403   :  { %v2308_v54 = vpop.f32.mrf.mxu0  ;;  %v2500_v33 = vpop.f32.mrf.mxu3 }
 0x404   :  { %v2309_v8 = vadd.f32 %v2308_v54, %v6099_v38  ;;  %v6155_v2 = vadd.f32 %v2500_v33, %v2436_v24  ;;  %v4915_v24 = vld [vmem:[#allocation2 + $0x2e8] sm:$0xff]  ;;  %v4916_v54 = vld [vmem:[#allocation2 + $0x2f8] sm:$0xff] }
 0x405   :  { %v2373_v22 = vpop.f32.mrf.mxu1 }
 0x406   :  { %v2374_v61 = vadd.f32 %v2373_v22, %v2309_v8  ;;  %2567 = vmatmul.f32.gmra.mxu0 %v4897_v26  ;;  %2697 = vmatmul.f32.gmra.mxu2 %v4898_v34 }
 0x408   :  { %2632 = vmatmul.f32.gmra.mxu1 %v4899_v48  ;;  %2762 = vmatmul.f32.gmra.mxu3 %v4900_v13 }
 0x409   :  { %v2438_v31 = vpop.f32.mrf.mxu2 }
 0x40a   :  { %v2439_v55 = vadd.f32 %v2438_v31, %v2374_v61  ;;  %v4917_v31 = vld [vmem:[#allocation2 + $0x320] sm:$0xff] }
 0x40b   :  { %v2311_v62 = vpop.f32.mrf.mxu0  ;;  %v2503_v19 = vpop.f32.mrf.mxu3 }
 0x40c   :  { %v2312_v29 = vadd.f32 %v2311_v62, %v6099_v38  ;;  %v6158_v50 = vadd.f32 %v2503_v19, %v2439_v55  ;;  %v4918_v55 = vld [vmem:[#allocation2 + $0x330] sm:$0xff]  ;;  %v4919_v62 = vld [vmem:[#allocation2 + $0x328] sm:$0xff]  ;;  %v4920_v19 = vld [vmem:[#allocation2 + $0x338] sm:$0xff] }
 0x40d   :  { %v2376_v44 = vpop.f32.mrf.mxu1 }
 0x40e   :  { %v2377_v27 = vadd.f32 %v2376_v44, %v2312_v29  ;;  %2570 = vmatmul.f32.gmra.mxu0 %v4901_v6  ;;  %2700 = vmatmul.f32.gmra.mxu2 %v4902_v4 }
 0x410   :  { %2635 = vmatmul.f32.gmra.mxu1 %v4903_v60  ;;  %2765 = vmatmul.f32.gmra.mxu3 %v4904_v0 }
 0x411   :  { %v2441_v47 = vpop.f32.mrf.mxu2 }
 0x412   :  { %v2442_v39 = vadd.f32 %v2441_v47, %v2377_v27 }
 0x413   :  { %v2314_v28 = vpop.f32.mrf.mxu0  ;;  %v2506_v32 = vpop.f32.mrf.mxu3 }
 0x414   :  { %v2315_v12 = vadd.f32 %v2314_v28, %v6099_v38  ;;  %v6161_v43 = vadd.f32 %v2506_v32, %v2442_v39  ;;  %v4921_v39 = vld [vmem:[#allocation2 + $0x360] sm:$0xff]  ;;  %v4922_v28 = vld [vmem:[#allocation2 + $0x370] sm:$0xff]  ;;  %v4923_v32 = vld [vmem:[#allocation2 + $0x368] sm:$0xff] }
 0x415   :  { %v2379_v5 = vpop.f32.mrf.mxu1 }
 0x416   :  { %v2380_v36 = vadd.f32 %v2379_v5, %v2315_v12  ;;  %2573 = vmatmul.f32.gmra.mxu0 %v4905_v15  ;;  %2703 = vmatmul.f32.gmra.mxu2 %v4906_v30  ;;  %v4924_v12 = vld [vmem:[#allocation2 + $0x378] sm:$0xff] }
 0x418   :  { %2638 = vmatmul.f32.gmra.mxu1 %v4907_v14  ;;  %2768 = vmatmul.f32.gmra.mxu3 %v4908_v18 }
 0x419   :  { %v2444_v7 = vpop.f32.mrf.mxu2 }
 0x41a   :  { %v2445_v17 = vadd.f32 %v2444_v7, %v2380_v36 }
 0x41b   :  { %v2317_v10 = vpop.f32.mrf.mxu0  ;;  %v2509_v58 = vpop.f32.mrf.mxu3 }
 0x41c   :  { %v2318_v37 = vadd.f32 %v2317_v10, %v6099_v38  ;;  %v6164_v21 = vadd.f32 %v2509_v58, %v2445_v17  ;;  %v4925_v10 = vld [vmem:[#allocation2 + $0x3a0] sm:$0xff]  ;;  %v4926_v58 = vld [vmem:[#allocation2 + $0x3b0] sm:$0xff] }
 0x41d   :  { %v2382_v59 = vpop.f32.mrf.mxu1 }
 0x41e   :  { %v2383_v45 = vadd.f32 %v2382_v59, %v2318_v37  ;;  %2576 = vmatmul.f32.gmra.mxu0 %v4909_v23  ;;  %2706 = vmatmul.f32.gmra.mxu2 %v4910_v56  ;;  %v4927_v37 = vld [vmem:[#allocation2 + $0x3a8] sm:$0xff]  ;;  %v4928_v59 = vld [vmem:[#allocation2 + $0x3b8] sm:$0xff] }
 0x420   :  { %2641 = vmatmul.f32.gmra.mxu1 %v4911_v51  ;;  %2771 = vmatmul.f32.gmra.mxu3 %v4912_v52 }
 0x421   :  { %v2447_v9 = vpop.f32.mrf.mxu2 }
 0x422   :  { %v2448_v11 = vadd.f32 %v2447_v9, %v2383_v45 }
 0x423   :  { %v2320_v1 = vpop.f32.mrf.mxu0  ;;  %v2512_v57 = vpop.f32.mrf.mxu3 }
 0x424   :  { %v2321_v20 = vadd.f32 %v2320_v1, %v6099_v38  ;;  %v6167_v63 = vadd.f32 %v2512_v57, %v2448_v11  ;;  %v4929_v57 = vld [vmem:[#allocation2 + $0x3e0] sm:$0xff] }
 0x425   :  { %v2385_v46 = vpop.f32.mrf.mxu1 }
 0x426   :  { %v2386_v40 = vadd.f32 %v2385_v46, %v2321_v20  ;;  %2579 = vmatmul.f32.gmra.mxu0 %v4913_v35  ;;  %2709 = vmatmul.f32.gmra.mxu2 %v4914_v3  ;;  %v4930_v20 = vld [vmem:[#allocation2 + $0x3f0] sm:$0xff]  ;;  %v4931_v46 = vld [vmem:[#allocation2 + $0x3e8] sm:$0xff] }
 0x428   :  { %2644 = vmatmul.f32.gmra.mxu1 %v4915_v24  ;;  %2774 = vmatmul.f32.gmra.mxu3 %v4916_v54 }
 0x429   :  { %v2450_v33 = vpop.f32.mrf.mxu2 }
 0x42a   :  { %v2451_v8 = vadd.f32 %v2450_v33, %v2386_v40  ;;  %v4932_v40 = vld [vmem:[#allocation2 + $0x3f8] sm:$0xff] }
 0x42b   :  { %v2323_v22 = vpop.f32.mrf.mxu0  ;;  %v2515_v61 = vpop.f32.mrf.mxu3 }
 0x42c   :  { %v2324_v26 = vadd.f32 %v2323_v22, %v6099_v38  ;;  %v6170_v34 = vadd.f32 %v2515_v61, %v2451_v8 }
 0x42d   :  { %v2388_v48 = vpop.f32.mrf.mxu1 }
 0x42e   :  { %v2389_v13 = vadd.f32 %v2388_v48, %v2324_v26  ;;  %2582 = vmatmul.f32.gmra.mxu0 %v4917_v31  ;;  %2712 = vmatmul.f32.gmra.mxu2 %v4918_v55 }
 0x430   :  { %2647 = vmatmul.f32.gmra.mxu1 %v4919_v62  ;;  %2777 = vmatmul.f32.gmra.mxu3 %v4920_v19 }
 0x431   :  { %v2453_v29 = vpop.f32.mrf.mxu2 }
 0x432   :  { %v2454_v44 = vadd.f32 %v2453_v29, %v2389_v13 }
 0x433   :  { %v2326_v27 = vpop.f32.mrf.mxu0  ;;  %v2518_v6 = vpop.f32.mrf.mxu3 }
 0x434   :  { %v2327_v4 = vadd.f32 %v2326_v27, %v6099_v38  ;;  %v6173_v60 = vadd.f32 %v2518_v6, %v2454_v44 }
 0x435   :  { %v2391_v0 = vpop.f32.mrf.mxu1 }
 0x436   :  { %v2392_v47 = vadd.f32 %v2391_v0, %v2327_v4  ;;  %2585 = vmatmul.f32.gmra.mxu0 %v4921_v39  ;;  %2715 = vmatmul.f32.gmra.mxu2 %v4922_v28 }
 0x438   :  { %2650 = vmatmul.f32.gmra.mxu1 %v4923_v32  ;;  %2780 = vmatmul.f32.gmra.mxu3 %v4924_v12 }
 0x439   :  { %v2456_v5 = vpop.f32.mrf.mxu2 }
 0x43a   :  { %v2457_v36 = vadd.f32 %v2456_v5, %v2392_v47 }
 0x43b   :  { %v2329_v15 = vpop.f32.mrf.mxu0  ;;  %v2521_v30 = vpop.f32.mrf.mxu3 }
 0x43c   :  { %v2330_v14 = vadd.f32 %v2329_v15, %v6099_v38  ;;  %v6176_v18 = vadd.f32 %v2521_v30, %v2457_v36 }
 0x43d   :  { %v2394_v7 = vpop.f32.mrf.mxu1 }
 0x43e   :  { %v2395_v17 = vadd.f32 %v2394_v7, %v2330_v14  ;;  %2588 = vmatmul.f32.gmra.mxu0 %v4925_v10  ;;  %2718 = vmatmul.f32.gmra.mxu2 %v4926_v58 }
 0x440   :  { %2653 = vmatmul.f32.gmra.mxu1 %v4927_v37  ;;  %2783 = vmatmul.f32.gmra.mxu3 %v4928_v59 }
 0x441   :  { %v2459_v45 = vpop.f32.mrf.mxu2 }
 0x442   :  { %v2460_v23 = vadd.f32 %v2459_v45, %v2395_v17 }
 0x443   :  { %v2332_v56 = vpop.f32.mrf.mxu0  ;;  %v2524_v51 = vpop.f32.mrf.mxu3 }
 0x444   :  { %v2333_v52 = vadd.f32 %v2332_v56, %v6099_v38  ;;  %v6179_v9 = vadd.f32 %v2524_v51, %v2460_v23 }
 0x445   :  { %v2397_v11 = vpop.f32.mrf.mxu1 }
 0x446   :  { %v2398_v1 = vadd.f32 %v2397_v11, %v2333_v52  ;;  %2591 = vmatmul.f32.gmra.mxu0 %v4929_v57  ;;  %2721 = vmatmul.f32.gmra.mxu2 %v4930_v20 }
 0x448   :  { %2656 = vmatmul.f32.gmra.mxu1 %v4931_v46  ;;  %2786 = vmatmul.f32.gmra.mxu3 %v4932_v40 }
 0x449   :  { %v2462_v35 = vpop.f32.mrf.mxu2 }
 0x44a   :  { %v2463_v3 = vadd.f32 %v2462_v35, %v2398_v1 }
 0x44b   :  { %v2527_v24 = vpop.f32.mrf.mxu3  ;;  %v2547_v54 = vpop.f32.mrf.mxu0 }
 0x44c   :  { %v6181_v33 = vadd.f32 %v2527_v24, %v2463_v3  ;;  %v2548_v38 = vadd.f32 %v2547_v54, %v6119_v49 }
 0x44d   :  { %v2612_v8 = vpop.f32.mrf.mxu1 }
 0x44e   :  { %v2613_v22 = vadd.f32 %v2612_v8, %v2548_v38 }
 0x451   :  { %v2677_v61 = vpop.f32.mrf.mxu2 }
 0x452   :  { %v2678_v26 = vadd.f32 %v2677_v61, %v2613_v22 }
 0x453   :  { %v2550_v48 = vpop.f32.mrf.mxu0  ;;  %v2742_v13 = vpop.f32.mrf.mxu3 }
 0x454   :  { %v2551_v31 = vadd.f32 %v2550_v48, %v6132_v42  ;;  %v2743_v55 = vadd.f32 %v2742_v13, %v2678_v26 }
 0x455   :  { %v2615_v62 = vpop.f32.mrf.mxu1 }
 0x456   :  { %v4221_v19 = vmul.f32 -1.442695, %v2743_v55  ;;  %v2616_v29 = vadd.f32 %v2615_v62, %v2551_v31 }
 0x458   :  { %4482 = vpow2.f32 %v4221_v19 }
 0x459   :  { %v2680_v44 = vpop.f32.mrf.mxu2 }
 0x45a   :  { %v2681_v27 = vadd.f32 %v2680_v44, %v2616_v29 }
 0x45b   :  { %v2553_v6 = vpop.f32.mrf.mxu0  ;;  %v2745_v4 = vpop.f32.mrf.mxu3 }
 0x45c   :  { %v2554_v0 = vadd.f32 %v2553_v6, %v6141_v41  ;;  %v6186_v49 = vadd.f32 %v2745_v4, %v2681_v27 }
 0x45d   :  { %v2618_v47 = vpop.f32.mrf.mxu1 }
 0x45e   :  { %v4483_v39 = vpop.eup %4482  ;;  %v4225_v28 = vmul.f32 -1.442695, %v6186_v49  ;;  %v2619_v42 = vadd.f32 %v2618_v47, %v2554_v0 }
 0x45f   :  { %v2985_v32 = vadd.f32 1.0, %v4483_v39 }
 0x460   :  { %4484 = vpow2.f32 %v4225_v28 }
 0x461   :  { %4486 = vrcp.f32 %v2985_v32  ;;  %v2683_v12 = vpop.f32.mrf.mxu2  ;;  %v3100_v51 = vand.u32 2147483647, %v2985_v32  ;;  %v3102_v52 = vand.u32 2147483648, %v2985_v32  ;;  %vm3096_vm1 = vweird.f32 %v2985_v32 }
 0x462   :  { %v2684_v5 = vadd.f32 %v2683_v12, %v2619_v42 }
 0x463   :  { %v2556_v36 = vpop.f32.mrf.mxu0  ;;  %v2748_v15 = vpop.f32.mrf.mxu3  ;;  %vm3101_vm3 = vcmp.eq.f32.partialorder %v3100_v51, 8.507059e+37  ;;  %v3103_v54 = vor.u32 1.1754944e-38, %v3102_v52 }
 0x464   :  { %v2557_v30 = vadd.f32 %v2556_v36, %v6146_v53  ;;  %v6190_v14 = vadd.f32 %v2748_v15, %v2684_v5 }
 0x465   :  { %v2621_v7 = vpop.f32.mrf.mxu1 }
 0x466   :  { %v4485_v41 = vpop.eup %4484  ;;  %v4229_v17 = vmul.f32 -1.442695, %v6190_v14  ;;  %v2622_v59 = vadd.f32 %v2621_v7, %v2557_v30 }
 0x467   :  { %v4487_v10 = vpop.eup %4486  ;;  %v2989_v58 = vadd.f32 1.0, %v4485_v41 }
 0x468   :  { %v3092_v37 = vmul.f32 %v4487_v10, %v2985_v32  ;;  %4488 = vpow2.f32 %v4229_v17  ;;  %vm3097_vm0 = vweird.f32 %v4487_v10 }
 0x469   :  { %4490 = vrcp.f32 %v2989_v58  ;;  %v2686_v45 = vpop.f32.mrf.mxu2  ;;  %vm3098_vm2 = vmor %vm3096_vm1, %vm3097_vm0  ;;  %v3162_v62 = vand.u32 2147483648, %v2989_v58  ;;  %v3160_v6 = vand.u32 2147483647, %v2989_v58  ;;  %vm3156_vm5 = vweird.f32 %v2989_v58 }
 0x46a   :  { %v3093_v23 = vsub.f32 1.0, %v3092_v37  ;;  %v2687_v56 = vadd.f32 %v2686_v45, %v2622_v59 }
 0x46b   :  { %v2559_v11 = vpop.f32.mrf.mxu0  ;;  %v2751_v1 = vpop.f32.mrf.mxu3  ;;  %vm3161_vm7 = vcmp.eq.f32.partialorder %v3160_v6, 8.507059e+37 }
 0x46c   :  { %v3094_v53 = vmul.f32 %v4487_v10, %v3093_v23  ;;  %v2560_v57 = vadd.f32 %v2559_v11, %v6149_v25  ;;  %v6194_v20 = vadd.f32 %v2751_v1, %v2687_v56 }
 0x46d   :  { %v2624_v46 = vpop.f32.mrf.mxu1 }
 0x46e   :  { %v4489_v40 = vpop.eup %4488  ;;  %v3095_v35 = vadd.f32 %v4487_v10, %v3094_v53  ;;  %v4233_v3 = vmul.f32 -1.442695, %v6194_v20  ;;  %v2625_v61 = vadd.f32 %v2624_v46, %v2560_v57 }
 0x46f   :  { %v4491_v24 = vpop.eup %4490  ;;  %v2993_v38 = vadd.f32 1.0, %v4489_v40 }
 0x470   :  { %v3099_v8 = vsel %vm3098_vm2, %v4487_v10, %v3095_v35  ;;  %v3152_v22 = vmul.f32 %v4491_v24, %v2989_v58  ;;  %4492 = vpow2.f32 %v4233_v3  ;;  %vm3157_vm4 = vweird.f32 %v4491_v24 }
 0x471   :  { %v3104_v26 = vsel %vm3101_vm3, %v3103_v54, %v3099_v8  ;;  %4494 = vrcp.f32 %v2993_v38  ;;  %v2689_v25 = vpop.f32.mrf.mxu2  ;;  %vm3158_vm6 = vmor %vm3156_vm5, %vm3157_vm4  ;;  %v3220_v17 = vand.u32 2147483647, %v2993_v38  ;;  %v3222_v10 = vand.u32 2147483648, %v2993_v38 }
 0x472   :  { %v4009_v48 = vmul.f32 %v3104_v26, %v2743_v55  ;;  %v3153_v13 = vsub.f32 1.0, %v3152_v22  ;;  %v2690_v31 = vadd.f32 %v2689_v25, %v2625_v61  ;;  %v3163_v55 = vor.u32 1.1754944e-38, %v3162_v62 }
 0x473   :  { %v2562_v19 = vpop.f32.mrf.mxu0  ;;  %v2754_v29 = vpop.f32.mrf.mxu3  ;;  %vm3216_vm9 = vweird.f32 %v2993_v38  ;;  %vm3221_vm11 = vcmp.eq.f32.partialorder %v3220_v17, 8.507059e+37 }
 0x474   :  { %v4073_v44 = vmul.f32 2.0, %v4009_v48  ;;  %v3154_v27 = vmul.f32 %v4491_v24, %v3153_v13  ;;  %v2563_v0 = vadd.f32 %v2562_v19, %v6152_v16  ;;  %v6198_v47 = vadd.f32 %v2754_v29, %v2690_v31 }
 0x475   :  { %v2627_v4 = vpop.f32.mrf.mxu1 }
 0x476   :  { %v4493_v39 = vpop.eup %4492  ;;  %4137 = vst [vmem:[#allocation8 + $0x18] sm:$0xff] %v4073_v44  ;;  %v3155_v28 = vadd.f32 %v4491_v24, %v3154_v27  ;;  %v4237_v12 = vmul.f32 -1.442695, %v6198_v47  ;;  %v2628_v30 = vadd.f32 %v2627_v4, %v2563_v0 }
 0x477   :  { %v4495_v32 = vpop.eup %4494  ;;  %v2997_v42 = vadd.f32 1.0, %v4493_v39 }
 0x478   :  { %v3159_v5 = vsel %vm3158_vm6, %v4491_v24, %v3155_v28  ;;  %v3212_v36 = vmul.f32 %v4495_v32, %v2993_v38  ;;  %vm3217_vm8 = vweird.f32 %v4495_v32 }
 0x479   :  { %v3164_v15 = vsel %vm3161_vm7, %v3163_v55, %v3159_v5  ;;  %4496 = vrcp.f32 %v2997_v42  ;;  %v2692_v7 = vpop.f32.mrf.mxu2  ;;  %vm3218_vm10 = vmor %vm3216_vm9, %vm3217_vm8  ;;  %v3280_v61 = vand.u32 2147483647, %v2997_v42  ;;  %v3282_v38 = vand.u32 2147483648, %v2997_v42 }
 0x47a   :  { %v4013_v16 = vmul.f32 %v3164_v15, %v6186_v49  ;;  %v3213_v41 = vsub.f32 1.0, %v3212_v36  ;;  %4498 = vpow2.f32 %v4237_v12  ;;  %v2693_v58 = vadd.f32 %v2692_v7, %v2628_v30 }
 0x47b   :  { %v2565_v37 = vpop.f32.mrf.mxu0  ;;  %v2757_v59 = vpop.f32.mrf.mxu3  ;;  %v3223_v49 = vor.u32 1.1754944e-38, %v3222_v10  ;;  %vm3276_vm13 = vweird.f32 %v2997_v42  ;;  %v3283_v27 = vor.u32 1.1754944e-38, %v3282_v38  ;;  %vm3281_vm15 = vcmp.eq.f32.partialorder %v3280_v61, 8.507059e+37 }
 0x47c   :  { %v4077_v45 = vmul.f32 2.0, %v4013_v16  ;;  %v3214_v23 = vmul.f32 %v4495_v32, %v3213_v41  ;;  %v2566_v56 = vadd.f32 %v2565_v37, %v6155_v2  ;;  %v6203_v52 = vadd.f32 %v2757_v59, %v2693_v58 }
 0x47d   :  { %v2630_v51 = vpop.f32.mrf.mxu1 }
 0x47e   :  { %4141 = vst [vmem:[#allocation8 + $0x38] sm:$0xff] %v4077_v45  ;;  %v3215_v11 = vadd.f32 %v4495_v32, %v3214_v23  ;;  %v4241_v53 = vmul.f32 -1.442695, %v6203_v52  ;;  %v2631_v35 = vadd.f32 %v2630_v51, %v2566_v56 }
 0x47f   :  { %v4497_v1 = vpop.eup %4496 }
 0x480   :  { %v4499_v57 = vpop.eup %4498  ;;  %v3219_v46 = vsel %vm3218_vm10, %v4495_v32, %v3215_v11  ;;  %v3272_v40 = vmul.f32 %v4497_v1, %v2997_v42  ;;  %4500 = vpow2.f32 %v4241_v53  ;;  %vm3277_vm12 = vweird.f32 %v4497_v1 }
 0x481   :  { %v3224_v3 = vsel %vm3221_vm11, %v3223_v49, %v3219_v46  ;;  %v3001_v24 = vadd.f32 1.0, %v4499_v57  ;;  %v2695_v2 = vpop.f32.mrf.mxu2  ;;  %vm3278_vm14 = vmor %vm3276_vm13, %vm3277_vm12 }
 0x482   :  { %v4017_v54 = vmul.f32 %v3224_v3, %v6190_v14  ;;  %v3273_v8 = vsub.f32 1.0, %v3272_v40  ;;  %v2696_v22 = vadd.f32 %v2695_v2, %v2631_v35 }
 0x483   :  { %4502 = vrcp.f32 %v3001_v24  ;;  %v2568_v26 = vpop.f32.mrf.mxu0  ;;  %v2760_v25 = vpop.f32.mrf.mxu3  ;;  %v3342_v7 = vand.u32 2147483648, %v3001_v24  ;;  %v3340_v58 = vand.u32 2147483647, %v3001_v24  ;;  %vm3336_vm1 = vweird.f32 %v3001_v24 }
 0x484   :  { %v4081_v48 = vmul.f32 2.0, %v4017_v54  ;;  %v3274_v13 = vmul.f32 %v4497_v1, %v3273_v8  ;;  %v6207_v31 = vadd.f32 %v2760_v25, %v2696_v22  ;;  %v2569_v19 = vadd.f32 %v2568_v26, %v6158_v50 }
 0x485   :  { %v2633_v62 = vpop.f32.mrf.mxu1  ;;  %v3343_v23 = vor.u32 1.1754944e-38, %v3342_v7  ;;  %vm3341_vm3 = vcmp.eq.f32.partialorder %v3340_v58, 8.507059e+37 }
 0x486   :  { %4145 = vst [vmem:[#allocation8 + $0x58] sm:$0xff] %v4081_v48  ;;  %v3275_v29 = vadd.f32 %v4497_v1, %v3274_v13  ;;  %v4245_v14 = vmul.f32 -1.442695, %v6207_v31  ;;  %v4501_v44 = vpop.eup %4500  ;;  %v2634_v28 = vadd.f32 %v2633_v62, %v2569_v19 }
 0x487   :  { %v6211_v4 = vadd.f32 1.0, %v4501_v44 }
 0x488   :  { %v3279_v6 = vsel %vm3278_vm14, %v4497_v1, %v3275_v29  ;;  %4504 = vpow2.f32 %v4245_v14 }
 0x489   :  { %v4503_v0 = vpop.eup %4502  ;;  %v3284_v39 = vsel %vm3281_vm15, %v3283_v27, %v3279_v6  ;;  %v2698_v32 = vpop.f32.mrf.mxu2  ;;  %4506 = vrcp.f32 %v6211_v4  ;;  %v3402_v35 = vand.u32 2147483648, %v6211_v4  ;;  %v3400_v54 = vand.u32 2147483647, %v6211_v4 }
 0x48a   :  { %v4021_v55 = vmul.f32 %v3284_v39, %v6194_v20  ;;  %v3332_v50 = vmul.f32 %v4503_v0, %v3001_v24  ;;  %v2699_v42 = vadd.f32 %v2698_v32, %v2634_v28  ;;  %vm3337_vm0 = vweird.f32 %v4503_v0 }
 0x48b   :  { %v2571_v12 = vpop.f32.mrf.mxu0  ;;  %v2763_v5 = vpop.f32.mrf.mxu3  ;;  %vm3338_vm2 = vmor %vm3336_vm1, %vm3337_vm0  ;;  %vm3396_vm5 = vweird.f32 %v6211_v4  ;;  %vm3401_vm7 = vcmp.eq.f32.partialorder %v3400_v54, 8.507059e+37 }
 0x48c   :  { %v4085_v36 = vmul.f32 2.0, %v4021_v55  ;;  %v3333_v15 = vsub.f32 1.0, %v3332_v50  ;;  %v2572_v16 = vadd.f32 %v2571_v12, %v6161_v43  ;;  %v6216_v41 = vadd.f32 %v2763_v5, %v2699_v42 }
 0x48d   :  { %v2636_v30 = vpop.f32.mrf.mxu1 }
 0x48e   :  { %v4505_v17 = vpop.eup %4504  ;;  %4149 = vst [vmem:[#allocation8 + $0x78] sm:$0xff] %v4085_v36  ;;  %v3334_v10 = vmul.f32 %v4503_v0, %v3333_v15  ;;  %v4249_v37 = vmul.f32 -1.442695, %v6216_v41  ;;  %v2637_v43 = vadd.f32 %v2636_v30, %v2572_v16 }
 0x48f   :  { %v6218_v20 = vadd.f32 1.0, %v4505_v17  ;;  %v4507_v59 = vpop.eup %4506 }
 0x490   :  { %v3335_v45 = vadd.f32 %v4503_v0, %v3334_v10  ;;  %v3392_v56 = vmul.f32 %v4507_v59, %v6211_v4  ;;  %vm3397_vm4 = vweird.f32 %v4507_v59 }
 0x491   :  { %4508 = vrcp.f32 %v6218_v20  ;;  %v2701_v51 = vpop.f32.mrf.mxu2  ;;  %vm3398_vm6 = vmor %vm3396_vm5, %vm3397_vm4  ;;  %v3462_v6 = vand.u32 2147483648, %v6218_v20  ;;  %v3460_v28 = vand.u32 2147483647, %v6218_v20  ;;  %vm3456_vm9 = vweird.f32 %v6218_v20 }
 0x492   :  { %v3339_v11 = vsel %vm3338_vm2, %v4503_v0, %v3335_v45  ;;  %4510 = vpow2.f32 %v4249_v37  ;;  %v3393_v49 = vsub.f32 1.0, %v3392_v56  ;;  %v2702_v53 = vadd.f32 %v2701_v51, %v2637_v43 }
 0x493   :  { %v3344_v1 = vsel %vm3341_vm3, %v3343_v23, %v3339_v11  ;;  %v2574_v57 = vpop.f32.mrf.mxu0  ;;  %v2766_v46 = vpop.f32.mrf.mxu3  ;;  %v3463_v36 = vor.u32 1.1754944e-38, %v3462_v6  ;;  %vm3461_vm11 = vcmp.eq.f32.partialorder %v3460_v28, 8.507059e+37 }
 0x494   :  { %v4025_v40 = vmul.f32 %v3344_v1, %v6198_v47  ;;  %v2575_v3 = vadd.f32 %v2574_v57, %v6164_v21  ;;  %v3394_v2 = vmul.f32 %v4507_v59, %v3393_v49  ;;  %v6227_v8 = vadd.f32 %v2766_v46, %v2702_v53 }
 0x495   :  { %v2639_v24 = vpop.f32.mrf.mxu1  ;;  %v3403_v47 = vor.u32 1.1754944e-38, %v3402_v35 }
 0x496   :  { %v4089_v22 = vmul.f32 2.0, %v4025_v40  ;;  %v3395_v38 = vadd.f32 %v4507_v59, %v3394_v2  ;;  %v4253_v26 = vmul.f32 -1.442695, %v6227_v8  ;;  %v2640_v48 = vadd.f32 %v2639_v24, %v2575_v3 }
 0x497   :  { %v4509_v61 = vpop.eup %4508 }
 0x498   :  { %v4511_v25 = vpop.eup %4510  ;;  %4153 = vst [vmem:[#allocation8 + $0x98] sm:$0xff] %v4089_v22  ;;  %v3452_v21 = vmul.f32 %v4509_v61, %v6218_v20  ;;  %v3399_v13 = vsel %vm3398_vm6, %v4507_v59, %v3395_v38  ;;  %4512 = vpow2.f32 %v4253_v26  ;;  %vm3457_vm8 = vweird.f32 %v4509_v61 }
 0x499   :  { %v6232_v62 = vadd.f32 1.0, %v4511_v25  ;;  %v2704_v19 = vpop.f32.mrf.mxu2  ;;  %v3404_v29 = vsel %vm3401_vm7, %v3403_v47, %v3399_v13  ;;  %vm3458_vm10 = vmor %vm3456_vm9, %vm3457_vm8 }
 0x49a   :  { %v3453_v14 = vsub.f32 1.0, %v3452_v21  ;;  %v2705_v44 = vadd.f32 %v2704_v19, %v2640_v48  ;;  %v4029_v27 = vmul.f32 %v3404_v29, %v6203_v52 }
 0x49b   :  { %4514 = vrcp.f32 %v6232_v62  ;;  %v2577_v4 = vpop.f32.mrf.mxu0  ;;  %v2769_v0 = vpop.f32.mrf.mxu3  ;;  %v3522_v43 = vand.u32 2147483648, %v6232_v62  ;;  %vm3516_vm13 = vweird.f32 %v6232_v62 }
 0x49c   :  { %v3454_v39 = vmul.f32 %v4509_v61, %v3453_v14  ;;  %v6238_v32 = vadd.f32 %v2769_v0, %v2705_v44  ;;  %v4093_v50 = vmul.f32 2.0, %v4029_v27  ;;  %v2578_v42 = vadd.f32 %v2577_v4, %v6167_v63 }
 0x49d   :  { %v2642_v55 = vpop.f32.mrf.mxu1  ;;  %v3523_v35 = vor.u32 1.1754944e-38, %v3522_v43 }
 0x49e   :  { %v3455_v12 = vadd.f32 %v4509_v61, %v3454_v39  ;;  %v4257_v52 = vmul.f32 -1.442695, %v6238_v32  ;;  %v4513_v5 = vpop.eup %4512  ;;  %4157 = vst [vmem:[#allocation8 + $0xb8] sm:$0xff] %v4093_v50  ;;  %v2643_v17 = vadd.f32 %v2642_v55, %v2578_v42 }
 0x49f   :  { %v6243_v30 = vadd.f32 1.0, %v4513_v5 }
 0x4a0   :  { %v3459_v15 = vsel %vm3458_vm10, %v4509_v61, %v3455_v12  ;;  %4516 = vpow2.f32 %v4257_v52 }
 0x4a1   :  { %v4515_v7 = vpop.eup %4514  ;;  %v3464_v16 = vsel %vm3461_vm11, %v3463_v36, %v3459_v15  ;;  %v2707_v10 = vpop.f32.mrf.mxu2  ;;  %4518 = vrcp.f32 %v6243_v30  ;;  %v3582_v47 = vand.u32 2147483648, %v6243_v30  ;;  %vm3576_vm1 = vweird.f32 %v6243_v30 }
 0x4a2   :  { %v4033_v63 = vmul.f32 %v3464_v16, %v6207_v31  ;;  %v3512_v58 = vmul.f32 %v4515_v7, %v6232_v62  ;;  %v2708_v20 = vadd.f32 %v2707_v10, %v2643_v17  ;;  %vm3517_vm12 = vweird.f32 %v4515_v7 }
 0x4a3   :  { %v2580_v37 = vpop.f32.mrf.mxu0  ;;  %v2772_v59 = vpop.f32.mrf.mxu3  ;;  %v3520_v31 = vand.u32 2147483647, %v6232_v62  ;;  %vm3518_vm14 = vmor %vm3516_vm13, %vm3517_vm12  ;;  %v3580_v62 = vand.u32 2147483647, %v6243_v30 }
 0x4a4   :  { %v4097_v45 = vmul.f32 2.0, %v4033_v63  ;;  %v3513_v23 = vsub.f32 1.0, %v3512_v58  ;;  %v2581_v51 = vadd.f32 %v2580_v37, %v6170_v34  ;;  %v6250_v11 = vadd.f32 %v2772_v59, %v2708_v20 }
 0x4a5   :  { %v2645_v56 = vpop.f32.mrf.mxu1  ;;  %vm3521_vm15 = vcmp.eq.f32.partialorder %v3520_v31, 8.507059e+37  ;;  %vm3581_vm3 = vcmp.eq.f32.partialorder %v3580_v62, 8.507059e+37 }
 0x4a6   :  { %v4517_v1 = vpop.eup %4516  ;;  %4161 = vst [vmem:[#allocation8 + $0xd8] sm:$0xff] %v4097_v45  ;;  %v3514_v49 = vmul.f32 %v4515_v7, %v3513_v23  ;;  %v4261_v57 = vmul.f32 -1.442695, %v6250_v11  ;;  %v2646_v3 = vadd.f32 %v2645_v56, %v2581_v51 }
 0x4a7   :  { %v6253_v53 = vadd.f32 1.0, %v4517_v1  ;;  %v4519_v46 = vpop.eup %4518 }
 0x4a8   :  { %v3515_v40 = vadd.f32 %v4515_v7, %v3514_v49  ;;  %v3572_v34 = vmul.f32 %v4519_v46, %v6243_v30  ;;  %vm3577_vm0 = vweird.f32 %v4519_v46 }
 0x4a9   :  { %4520 = vrcp.f32 %v6253_v53  ;;  %v2710_v24 = vpop.f32.mrf.mxu2  ;;  %vm3578_vm2 = vmor %vm3576_vm1, %vm3577_vm0  ;;  %v3642_v52 = vand.u32 2147483648, %v6253_v53  ;;  %v3640_v30 = vand.u32 2147483647, %v6253_v53  ;;  %vm3636_vm5 = vweird.f32 %v6253_v53 }
 0x4aa   :  { %v3519_v2 = vsel %vm3518_vm14, %v4515_v7, %v3515_v40  ;;  %4522 = vpow2.f32 %v4261_v57  ;;  %v3573_v22 = vsub.f32 1.0, %v3572_v34  ;;  %v2711_v61 = vadd.f32 %v2710_v24, %v2646_v3 }
 0x4ab   :  { %v3524_v54 = vsel %vm3521_vm15, %v3523_v35, %v3519_v2  ;;  %v2583_v38 = vpop.f32.mrf.mxu0  ;;  %v2775_v26 = vpop.f32.mrf.mxu3  ;;  %v3643_v20 = vor.u32 1.1754944e-38, %v3642_v52  ;;  %vm3641_vm7 = vcmp.eq.f32.partialorder %v3640_v30, 8.507059e+37 }
 0x4ac   :  { %v4037_v25 = vmul.f32 %v3524_v54, %v6216_v41  ;;  %v2584_v21 = vadd.f32 %v2583_v38, %v6173_v60  ;;  %v3574_v13 = vmul.f32 %v4519_v46, %v3573_v22  ;;  %v6263_v19 = vadd.f32 %v2775_v26, %v2711_v61 }
 0x4ad   :  { %v2648_v48 = vpop.f32.mrf.mxu1  ;;  %v3583_v41 = vor.u32 1.1754944e-38, %v3582_v47 }
 0x4ae   :  { %v4101_v29 = vmul.f32 2.0, %v4037_v25  ;;  %v3575_v44 = vadd.f32 %v4519_v46, %v3574_v13  ;;  %v4265_v27 = vmul.f32 -1.442695, %v6263_v19  ;;  %v2649_v4 = vadd.f32 %v2648_v48, %v2584_v21 }
 0x4af   :  { %v4521_v14 = vpop.eup %4520 }
 0x4b0   :  { %v4523_v6 = vpop.eup %4522  ;;  %4165 = vst [vmem:[#allocation8 + $0xf8] sm:$0xff] %v4101_v29  ;;  %v3632_v60 = vmul.f32 %v4521_v14, %v6253_v53  ;;  %v3579_v0 = vsel %vm3578_vm2, %v4519_v46, %v3575_v44  ;;  %4524 = vpow2.f32 %v4265_v27  ;;  %vm3637_vm4 = vweird.f32 %v4521_v14 }
 0x4b1   :  { %v6268_v39 = vadd.f32 1.0, %v4523_v6  ;;  %v2713_v28 = vpop.f32.mrf.mxu2  ;;  %v3584_v55 = vsel %vm3581_vm3, %v3583_v41, %v3579_v0  ;;  %vm3638_vm6 = vmor %vm3636_vm5, %vm3637_vm4 }
 0x4b2   :  { %v3633_v50 = vsub.f32 1.0, %v3632_v60  ;;  %v2714_v42 = vadd.f32 %v2713_v28, %v2649_v4  ;;  %v4041_v12 = vmul.f32 %v3584_v55, %v6227_v8 }
 0x4b3   :  { %4526 = vrcp.f32 %v6268_v39  ;;  %v2586_v5 = vpop.f32.mrf.mxu0  ;;  %v2778_v36 = vpop.f32.mrf.mxu3  ;;  %v3702_v40 = vand.u32 2147483648, %v6268_v39  ;;  %vm3696_vm9 = vweird.f32 %v6268_v39 }
 0x4b4   :  { %v3634_v15 = vmul.f32 %v4521_v14, %v3633_v50  ;;  %v6274_v7 = vadd.f32 %v2778_v36, %v2714_v42  ;;  %v4105_v17 = vmul.f32 2.0, %v4041_v12  ;;  %v2587_v10 = vadd.f32 %v2586_v5, %v6176_v18 }
 0x4b5   :  { %v2651_v16 = vpop.f32.mrf.mxu1  ;;  %v3703_v38 = vor.u32 1.1754944e-38, %v3702_v40 }
 0x4b6   :  { %v3635_v63 = vadd.f32 %v4521_v14, %v3634_v15  ;;  %v4269_v8 = vmul.f32 -1.442695, %v6274_v7  ;;  %v4525_v58 = vpop.eup %4524  ;;  %4169 = vst [vmem:[#allocation8 + $0x118] sm:$0xff] %v4105_v17  ;;  %v2652_v56 = vadd.f32 %v2651_v16, %v2587_v10 }
 0x4b7   :  { %v6279_v59 = vadd.f32 1.0, %v4525_v58 }
 0x4b8   :  { %v3639_v37 = vsel %vm3638_vm6, %v4521_v14, %v3635_v63  ;;  %4528 = vpow2.f32 %v4269_v8 }
 0x4b9   :  { %v4527_v45 = vpop.eup %4526  ;;  %v3644_v23 = vsel %vm3641_vm7, %v3643_v20, %v3639_v37  ;;  %v2716_v43 = vpop.f32.mrf.mxu2  ;;  %4530 = vrcp.f32 %v6279_v59  ;;  %v3762_v44 = vand.u32 2147483648, %v6279_v59  ;;  %v3760_v41 = vand.u32 2147483647, %v6279_v59 }
 0x4ba   :  { %v4045_v18 = vmul.f32 %v3644_v23, %v6238_v32  ;;  %v3692_v51 = vmul.f32 %v4527_v45, %v6268_v39  ;;  %v2717_v1 = vadd.f32 %v2716_v43, %v2652_v56  ;;  %vm3697_vm8 = vweird.f32 %v4527_v45 }
 0x4bb   :  { %v2589_v49 = vpop.f32.mrf.mxu0  ;;  %v2781_v31 = vpop.f32.mrf.mxu3  ;;  %v3700_v32 = vand.u32 2147483647, %v6268_v39  ;;  %vm3698_vm10 = vmor %vm3696_vm9, %vm3697_vm8  ;;  %vm3756_vm13 = vweird.f32 %v6279_v59  ;;  %vm3761_vm15 = vcmp.eq.f32.partialorder %v3760_v41, 8.507059e+37 }
 0x4bc   :  { %v4109_v53 = vmul.f32 2.0, %v4045_v18  ;;  %v3693_v57 = vsub.f32 1.0, %v3692_v51  ;;  %v2590_v35 = vadd.f32 %v2589_v49, %v6179_v9  ;;  %v6286_v34 = vadd.f32 %v2781_v31, %v2717_v1 }
 0x4bd   :  { %v2654_v46 = vpop.f32.mrf.mxu1  ;;  %vm3701_vm11 = vcmp.eq.f32.partialorder %v3700_v32, 8.507059e+37 }
 0x4be   :  { %v4529_v3 = vpop.eup %4528  ;;  %4173 = vst [vmem:[#allocation8 + $0x138] sm:$0xff] %v4109_v53  ;;  %v3694_v24 = vmul.f32 %v4527_v45, %v3693_v57  ;;  %v4273_v54 = vmul.f32 -1.442695, %v6286_v34  ;;  %v2655_v26 = vadd.f32 %v2654_v46, %v2590_v35 }
 0x4bf   :  { %v6289_v2 = vadd.f32 1.0, %v4529_v3  ;;  %v4531_v22 = vpop.eup %4530 }
 0x4c0   :  { %v3695_v61 = vadd.f32 %v4527_v45, %v3694_v24  ;;  %v3752_v9 = vmul.f32 %v4531_v22, %v6279_v59  ;;  %vm3757_vm12 = vweird.f32 %v4531_v22 }
 0x4c1   :  { %4532 = vrcp.f32 %v6289_v2  ;;  %v2719_v25 = vpop.f32.mrf.mxu2  ;;  %vm3758_vm14 = vmor %vm3756_vm13, %vm3757_vm12  ;;  %v3822_v17 = vand.u32 2147483648, %v6289_v2  ;;  %v3820_v8 = vand.u32 2147483647, %v6289_v2  ;;  %vm3816_vm1 = vweird.f32 %v6289_v2 }
 0x4c2   :  { %v3699_v47 = vsel %vm3698_vm10, %v4527_v45, %v3695_v61  ;;  %4534 = vpow2.f32 %v4273_v54  ;;  %v3753_v48 = vsub.f32 1.0, %v3752_v9  ;;  %v2720_v13 = vadd.f32 %v2719_v25, %v2655_v26 }
 0x4c3   :  { %v3704_v21 = vsel %vm3701_vm11, %v3703_v38, %v3699_v47  ;;  %v2592_v62 = vpop.f32.mrf.mxu0  ;;  %v2784_v29 = vpop.f32.mrf.mxu3  ;;  %vm3821_vm3 = vcmp.eq.f32.partialorder %v3820_v8, 8.507059e+37 }
 0x4c4   :  { %v4049_v14 = vmul.f32 %v3704_v21, %v6250_v11  ;;  %v2593_v27 = vadd.f32 %v2592_v62, %v6181_v33  ;;  %v3754_v6 = vmul.f32 %v4531_v22, %v3753_v48  ;;  %v6299_v60 = vadd.f32 %v2784_v29, %v2720_v13 }
 0x4c5   :  { %v2657_v4 = vpop.f32.mrf.mxu1  ;;  %v3763_v11 = vor.u32 1.1754944e-38, %v3762_v44 }
 0x4c6   :  { %v4113_v0 = vmul.f32 2.0, %v4049_v14  ;;  %v3755_v28 = vadd.f32 %v4531_v22, %v3754_v6  ;;  %v4277_v55 = vmul.f32 -1.442695, %v6299_v60  ;;  %v2658_v42 = vadd.f32 %v2657_v4, %v2593_v27 }
 0x4c7   :  { %v4533_v39 = vpop.eup %4532 }
 0x4c8   :  { %v4535_v50 = vpop.eup %4534  ;;  %4177 = vst [vmem:[#allocation8 + $0x158] sm:$0xff] %v4113_v0  ;;  %v3812_v33 = vmul.f32 %v4533_v39, %v6289_v2  ;;  %v3759_v12 = vsel %vm3758_vm14, %v4531_v22, %v3755_v28  ;;  %4536 = vpow2.f32 %v4277_v55  ;;  %vm3817_vm0 = vweird.f32 %v4533_v39 }
 0x4c9   :  { %v3037_v52 = vadd.f32 1.0, %v4535_v50  ;;  %v2722_v5 = vpop.f32.mrf.mxu2  ;;  %v3764_v36 = vsel %vm3761_vm15, %v3763_v11, %v3759_v12  ;;  %vm3818_vm2 = vmor %vm3816_vm1, %vm3817_vm0 }
 0x4ca   :  { %v3813_v15 = vsub.f32 1.0, %v3812_v33  ;;  %v2723_v30 = vadd.f32 %v2722_v5, %v2658_v42  ;;  %v4053_v16 = vmul.f32 %v3764_v36, %v6263_v19  ;;  %v3823_v19 = vor.u32 1.1754944e-38, %v3822_v17 }
 0x4cb   :  { %4538 = vrcp.f32 %v3037_v52  ;;  %v2787_v10 = vpop.f32.mrf.mxu3  ;;  %v3882_v53 = vand.u32 2147483648, %v3037_v52  ;;  %v3880_v40 = vand.u32 2147483647, %v3037_v52  ;;  %vm3876_vm5 = vweird.f32 %v3037_v52 }
 0x4cc   :  { %v3814_v63 = vmul.f32 %v4533_v39, %v3813_v15  ;;  %v6307_v58 = vadd.f32 %v2787_v10, %v2723_v30  ;;  %v4117_v20 = vmul.f32 2.0, %v4053_v16 }
 0x4cd   :  { %v3883_v32 = vor.u32 1.1754944e-38, %v3882_v53  ;;  %vm3881_vm7 = vcmp.eq.f32.partialorder %v3880_v40, 8.507059e+37 }
 0x4ce   :  { %v3815_v37 = vadd.f32 %v4533_v39, %v3814_v63  ;;  %v4281_v59 = vmul.f32 -1.442695, %v6307_v58  ;;  %v4537_v45 = vpop.eup %4536  ;;  %4181 = vst [vmem:[#allocation8 + $0x178] sm:$0xff] %v4117_v20 }
 0x4cf   :  { %v3041_v56 = vadd.f32 1.0, %v4537_v45 }
 0x4d0   :  { %v3819_v23 = vsel %vm3818_vm2, %v4533_v39, %v3815_v37  ;;  %4540 = vpow2.f32 %v4281_v59 }
 0x4d1   :  { %v4539_v43 = vpop.eup %4538  ;;  %v3824_v18 = vsel %vm3821_vm3, %v3823_v19, %v3819_v23  ;;  %4542 = vrcp.f32 %v3041_v56  ;;  %v3942_v38 = vand.u32 2147483648, %v3041_v56  ;;  %v3940_v26 = vand.u32 2147483647, %v3041_v56 }
 0x4d2   :  { %v4057_v51 = vmul.f32 %v3824_v18, %v6274_v7  ;;  %v3872_v1 = vmul.f32 %v4539_v43, %v3037_v52  ;;  %vm3877_vm4 = vweird.f32 %v4539_v43  ;;  %vm3936_vm9 = vweird.f32 %v3041_v56 }
 0x4d3   :  { %vm3878_vm6 = vmor %vm3876_vm5, %vm3877_vm4  ;;  %v3943_v48 = vor.u32 1.1754944e-38, %v3942_v38  ;;  %vm3941_vm11 = vcmp.eq.f32.partialorder %v3940_v26, 8.507059e+37 }
 0x4d4   :  { %v4121_v49 = vmul.f32 2.0, %v4057_v51  ;;  %v3873_v31 = vsub.f32 1.0, %v3872_v1 }
 0x4d6   :  { %v4541_v57 = vpop.eup %4540  ;;  %4185 = vst [vmem:[#allocation8 + $0x198] sm:$0xff] %v4121_v49  ;;  %v3874_v46 = vmul.f32 %v4539_v43, %v3873_v31 }
 0x4d7   :  { %v3045_v35 = vadd.f32 1.0, %v4541_v57  ;;  %v4543_v3 = vpop.eup %4542 }
 0x4d8   :  { %v3875_v24 = vadd.f32 %v4539_v43, %v3874_v46  ;;  %v3932_v2 = vmul.f32 %v4543_v3, %v3041_v56  ;;  %vm3937_vm8 = vweird.f32 %v4543_v3 }
 0x4d9   :  { %4544 = vrcp.f32 %v3045_v35  ;;  %vm3938_vm10 = vmor %vm3936_vm9, %vm3937_vm8  ;;  %v4002_v27 = vand.u32 2147483648, %v3045_v35  ;;  %v4000_v6 = vand.u32 2147483647, %v3045_v35  ;;  %vm3996_vm13 = vweird.f32 %v3045_v35 }
 0x4da   :  { %v3879_v54 = vsel %vm3878_vm6, %v4539_v43, %v3875_v24  ;;  %v3933_v22 = vsub.f32 1.0, %v3932_v2 }
 0x4db   :  { %v3884_v7 = vsel %vm3881_vm7, %v3883_v32, %v3879_v54  ;;  %v4003_v0 = vor.u32 1.1754944e-38, %v4002_v27  ;;  %vm4001_vm15 = vcmp.eq.f32.partialorder %v4000_v6, 8.507059e+37 }
 0x4dc   :  { %v4061_v61 = vmul.f32 %v3884_v7, %v6286_v34  ;;  %v3934_v9 = vmul.f32 %v4543_v3, %v3933_v22 }
 0x4de   :  { %v4125_v25 = vmul.f32 2.0, %v4061_v61  ;;  %v3935_v21 = vadd.f32 %v4543_v3, %v3934_v9 }
 0x4df   :  { %v4545_v47 = vpop.eup %4544 }
 0x4e0   :  { %4189 = vst [vmem:[#allocation8 + $0x1b8] sm:$0xff] %v4125_v25  ;;  %v3992_v13 = vmul.f32 %v4545_v47, %v3045_v35  ;;  %v3939_v62 = vsel %vm3938_vm10, %v4543_v3, %v3935_v21  ;;  %vm3997_vm12 = vweird.f32 %v4545_v47 }
 0x4e1   :  { %v3944_v29 = vsel %vm3941_vm11, %v3943_v48, %v3939_v62  ;;  %vm3998_vm14 = vmor %vm3996_vm13, %vm3997_vm12 }
 0x4e2   :  { %v3993_v14 = vsub.f32 1.0, %v3992_v13  ;;  %v4065_v44 = vmul.f32 %v3944_v29, %v6299_v60 }
 0x4e4   :  { %v3994_v34 = vmul.f32 %v4545_v47, %v3993_v14  ;;  %v4129_v41 = vmul.f32 2.0, %v4065_v44 }
 0x4e6   :  { %v3995_v4 = vadd.f32 %v4545_v47, %v3994_v34  ;;  %4193 = vst [vmem:[#allocation8 + $0x1d8] sm:$0xff] %v4129_v41 }
 0x4e8   :  { %v3999_v39 = vsel %vm3998_vm14, %v4545_v47, %v3995_v4 }
 0x4e9   :  { %v4004_v28 = vsel %vm4001_vm15, %v4003_v0, %v3999_v39 }
 0x4ea   :  { %v4069_v60 = vmul.f32 %v4004_v28, %v6307_v58 }
 0x4ec   :  { %v4133_v55 = vmul.f32 2.0, %v4069_v60 }
 0x4ee   :  { %4197 = vst [vmem:[#allocation8 + $0x1f8] sm:$0xff] %v4133_v55 }
 0x4ef   :  { %4210 = dma.vmem_to_hbm [thread:$0]  %s4203_s2, 8192, %s4205_s30, [#allocation4], %s5041_s4, %s5041_s4, %s5042_s5  }
 0x4f0   :  { %5033 = dma.done.wait [#allocation4], 8192  }
 0x4f1   :  { %5034 = vsyncadd [#allocation4], 4294959104 }
 0x4f2   :  { %4215 = vsyncpa [#allocation3], 1 }
 0x4f3   :  { %4216 = vsyncpa [#allocation6], 1 }
 0x4f4   :  { %4217 = vsyncpa [#allocation4], 1 }

</bundles_post_ra>
